<compile_context>
chip_gen: v6e
topology: v6e:2x2x1
jax: 0.10.0
libtpu: 0.0.40
codegen_flags: <defaults>
</compile_context>

<pallas_src>
import functools

import jax
import jax.numpy as jnp
from jax import lax
from jax.experimental import pallas as pl
from jax.experimental.pallas import tpu as pltpu


def _round_up(x, m):
    return ((x + m - 1) // m) * m


# ----------------------------------------------------------------------------
# Pallas kernel: fused Conv2d(k=4, s=2, p=1) + bias + LeakyReLU for one image.
#
# With the input zero-padded by 1 and split into 4 stride-2 phases (pr, pc),
# each flattened row-major over the (Ho+1, Wo+1) halo grid:
#   out[o, ho*(Wo+1)+wo] = sum_{pr,pc,qr,qc} W[o,:,2qr+pr,2qc+pc]
#                          . phase[pr,pc][:, (ho*(Wo+1)+wo) + qr*(Wo+1)+qc]
# i.e. every tap is a contiguous lane slice of a flat phase at a static offset.
# Flat positions with ho == Ho or wo == Wo are garbage and dropped by the glue.
# ----------------------------------------------------------------------------
def _conv4x4s2_lrelu_kernel(w_ref, x_ref, b_ref, o_ref, *, wo_out, m_out,
                            negative_slope):
    cout = w_ref.shape[1]
    acc = jnp.zeros((cout, m_out), dtype=jnp.float32)
    for pr in range(2):
        for pc in range(2):
            # (Cin_p, Mi_pad); up-cast so lane-offset slices act on f32 vregs.
            phase32 = x_ref[0, 2 * pr + pc].astype(jnp.float32)
            for qr in range(2):
                for qc in range(2):
                    di = 2 * qr + pr
                    dj = 2 * qc + pc
                    shift = qr * (wo_out + 1) + qc
                    rhs = phase32[:, shift:shift + m_out].astype(jnp.bfloat16)
                    acc = acc + jnp.dot(w_ref[di * 4 + dj], rhs,
                                        preferred_element_type=jnp.float32)
    acc = acc + b_ref[...]                                 # (Cout, 1) broadcast
    acc = jnp.maximum(acc, negative_slope * acc)           # LeakyReLU(0.1)
    o_ref[0] = acc.astype(o_ref.dtype)                     # bf16 writeback


# ----------------------------------------------------------------------------
# Wrapper: NCHW -> NCHW, glue = pad + phase split (contiguous reshapes only)
# ----------------------------------------------------------------------------
def conv4x4_s2_lrelu(x_nchw, w_oihw, bias, *, negative_slope=0.1):
    """x: (N, Cin, H, W) -> (N, Cout, H//2, W//2) bf16, fused conv+bias+LeakyReLU."""
    N, Cin, H, W = x_nchw.shape
    Cout = w_oihw.shape[0]
    assert H % 2 == 0 and W % 2 == 0, "spatial dims must be even (stride 2)"
    Ho, Wo = H // 2, W // 2
    Mi = (Ho + 1) * (Wo + 1)              # flat per-image positions incl. halo
    m_out = _round_up(Mi, 128)            # lane-dense output width
    mi_pad = m_out + 128                  # room for the max tap shift (Wo + 2)
    cin_p = max(8, _round_up(Cin, 8))

    # conv padding=1, then space-to-depth phase split (no strided gathers).
    xp = jnp.pad(x_nchw, ((0, 0), (0, 0), (1, 1), (1, 1)))
    xp = xp.reshape(N, Cin, Ho + 1, 2, Wo + 1, 2)
    xp = jnp.transpose(xp, (0, 3, 5, 1, 2, 4))             # (N, pr, pc, C, i, j)
    xp = xp.reshape(N, 4, Cin, Mi)
    xp = jnp.pad(xp, ((0, 0), (0, 0), (0, cin_p - Cin), (0, mi_pad - Mi)))
    xp = xp.astype(jnp.bfloat16)

    # per-tap weight matrices (16, Cout, Cin_p), tap index t = di*4 + dj
    wt = jnp.transpose(w_oihw, (2, 3, 0, 1)).reshape(16, Cout, Cin)
    wt = jnp.pad(wt, ((0, 0), (0, 0), (0, cin_p - Cin))).astype(jnp.bfloat16)
    b2 = bias.reshape(Cout, 1).astype(jnp.float32)

    kernel = functools.partial(_conv4x4s2_lrelu_kernel, wo_out=Wo, m_out=m_out,
                               negative_slope=negative_slope)
    flops = 2 * 16 * Cout * cin_p * m_out * N
    bytes_accessed = (xp.size * 2 + wt.size * 2 + b2.size * 4
                      + N * Cout * m_out * 2)

    out_flat = pl.pallas_call(
        kernel,
        out_shape=jax.ShapeDtypeStruct((N, Cout, m_out), jnp.bfloat16),
        grid=(N,),
        in_specs=[
            pl.BlockSpec((16, Cout, cin_p), lambda n: (0, 0, 0)),     # weights
            pl.BlockSpec((1, 4, cin_p, mi_pad), lambda n: (n, 0, 0, 0)),
            pl.BlockSpec((Cout, 1), lambda n: (0, 0)),                # bias
        ],
        out_specs=pl.BlockSpec((1, Cout, m_out), lambda n: (n, 0, 0)),
        compiler_params=pltpu.CompilerParams(
            dimension_semantics=("parallel",),
        ),
        cost_estimate=pl.CostEstimate(flops=flops, transcendentals=0,
                                      bytes_accessed=bytes_accessed),
    )(wt, xp, b2)

    # drop the halo / garbage positions: (N, Cout, m_out) -> (N, Cout, Ho, Wo)
    out = out_flat[:, :, :Mi].reshape(N, Cout, Ho + 1, Wo + 1)
    return out[:, :, :Ho, :Wo]


# ----------------------------------------------------------------------------
# Discriminator forward
# ----------------------------------------------------------------------------
def make_params(key, image_size):
    chans = [
        (3, image_size),
        (image_size, image_size * 2),
        (image_size * 2, image_size * 4),
        (image_size * 4, image_size * 8),
        (image_size * 8, 1),
    ]
    params = []
    for cin, cout in chans:
        key, kw, kb = jax.random.split(key, 3)
        w = 0.02 * jax.random.normal(kw, (cout, cin, 4, 4), dtype=jnp.float32)
        b = 0.02 * jax.random.normal(kb, (cout,), dtype=jnp.float32)
        params.append((w, b))
    return params


def discriminator_forward(x_nchw, params):
    h = x_nchw
    # layers 1-4: conv(k4,s2,p1) + LeakyReLU(0.1); Dropout == identity in eval.
    for (w, b) in params[:4]:
        h = conv4x4_s2_lrelu(h, w, b, negative_slope=0.1)
    # last: conv(k4, s1, p0) on a 4x4 map -> 1x1; ~4 KFLOP, so plain-JAX dot.
    w, b = params[4]
    N = h.shape[0]
    assert h.shape[-2:] == (w.shape[2], w.shape[3]), "last conv expects 4x4 map"
    logits = jnp.einsum("nchw,ochw->no", h, w.astype(jnp.bfloat16),
                        preferred_element_type=jnp.float32) + b.reshape(1, -1)
    return logits.reshape(N, -1, 1, 1)


# ----------------------------------------------------------------------------
# Reference (pure-JAX, matched bf16-input / f32-accumulate numerics)
# ----------------------------------------------------------------------------
def _ref_forward(x_nchw, params):
    out = x_nchw
    for li, (w, b) in enumerate(params):
        stride = 2 if li < 4 else 1
        pad = 1 if li < 4 else 0
        out = lax.conv_general_dilated(
            out.astype(jnp.bfloat16), w.astype(jnp.bfloat16),
            window_strides=(stride, stride),
            padding=[(pad, pad), (pad, pad)],
            dimension_numbers=("NCHW", "OIHW", "NCHW"),
            preferred_element_type=jnp.float32,
        ) + b.reshape(1, -1, 1, 1)
        if li < 4:
            out = jnp.maximum(out, 0.1 * out)   # LeakyReLU(0.1)
    return out


if __name__ == "__main__":
    key = jax.random.PRNGKey(0)
    key, kx = jax.random.split(key)

    image_size = 16          # channel multiplier (kept small)
    batch, spatial = 2, 64   # spatial must be 64 so the final 4x4 conv yields 1x1

    x = jax.random.normal(kx, (batch, 3, spatial, spatial), dtype=jnp.float32)
    params = make_params(key, image_size)

    fwd = jax.jit(discriminator_forward)
    out = fwd(x, params)
    jax.block_until_ready(out)

    assert out.shape == (batch, 1, 1, 1), out.shape

    ref = _ref_forward(x, params)
    assert jnp.allclose(out, ref, rtol=2e-2, atol=1e-3), (
        "mismatch vs reference", float(jnp.max(jnp.abs(out - ref))))

    print("KERNEL_OK")
</pallas_src>

<mosaic_0001>
module attributes {stable_mosaic.version = 11 : i64} {
  func.func @_conv4x4s2_lrelu_kernel(%arg0: i32, %arg1: memref<16x16x8xbf16, #tpu.memory_space<vmem>>, %arg2: memref<1x4x8x1280xbf16, #tpu.memory_space<vmem>>, %arg3: memref<16x1xf32, #tpu.memory_space<vmem>>, %arg4: memref<1x16x1152xbf16, #tpu.memory_space<vmem>>) attributes {dimension_semantics = [#tpu.dimension_semantics<parallel>], iteration_bounds = array<i64: 2>, scalar_prefetch = 0 : i64, scratch_operands = 0 : i64, tpu.core_type = #tpu.core_type<tc>, window_params = [{pipeline_mode = #tpu.pipeline_mode<synchronous>, transform_indices = @transform_0, window_bounds = array<i64: 16, 16, 8>}, {transform_indices = @transform_1, window_bounds = array<i64: 1, 4, 8, 1280>}, {pipeline_mode = #tpu.pipeline_mode<synchronous>, transform_indices = @transform_2, window_bounds = array<i64: 16, 1>}, {transform_indices = @transform_3, window_bounds = array<i64: 1, 16, 1152>}]} {
    %cst = arith.constant 0.000000e+00 : f32
    %0 = vector.broadcast %cst : f32 to vector<16x1152xf32>
    %c0 = arith.constant 0 : index
    %c0_0 = arith.constant 0 : index
    %c0_1 = arith.constant 0 : index
    %c0_2 = arith.constant 0 : index
    %1 = vector.load %arg2[%c0, %c0_0, %c0_1, %c0_2] : memref<1x4x8x1280xbf16, #tpu.memory_space<vmem>>, vector<1x1x8x1280xbf16>
    %2 = vector.shape_cast %1 : vector<1x1x8x1280xbf16> to vector<8x1280xbf16>
    %3 = arith.extf %2 : vector<8x1280xbf16> to vector<8x1280xf32>
    %4 = vector.extract_strided_slice %3 {offsets = [0, 0], sizes = [8, 1152], strides = [1, 1]} : vector<8x1280xf32> to vector<8x1152xf32>
    %5 = arith.truncf %4 : vector<8x1152xf32> to vector<8x1152xbf16>
    %c0_3 = arith.constant 0 : index
    %c0_4 = arith.constant 0 : index
    %c0_5 = arith.constant 0 : index
    %6 = vector.load %arg1[%c0_3, %c0_4, %c0_5] : memref<16x16x8xbf16, #tpu.memory_space<vmem>>, vector<1x16x8xbf16>
    %7 = vector.shape_cast %6 : vector<1x16x8xbf16> to vector<16x8xbf16>
    %cst_6 = arith.constant dense<0.000000e+00> : vector<16x1152xf32>
    %8 = tpu.matmul %7, %5, %cst_6 {dimension_numbers = #tpu.dot_dimension_numbers<[1], [0], [0], [1], [0, 0, 1, 1], [], []>} : vector<16x8xbf16>, vector<8x1152xbf16>, vector<16x1152xf32> -> vector<16x1152xf32>
    %9 = arith.addf %0, %8 : vector<16x1152xf32>
    %10 = vector.extract_strided_slice %3 {offsets = [0, 1], sizes = [8, 1152], strides = [1, 1]} : vector<8x1280xf32> to vector<8x1152xf32>
    %11 = arith.truncf %10 : vector<8x1152xf32> to vector<8x1152xbf16>
    %c2 = arith.constant 2 : index
    %c0_7 = arith.constant 0 : index
    %c0_8 = arith.constant 0 : index
    %12 = vector.load %arg1[%c2, %c0_7, %c0_8] : memref<16x16x8xbf16, #tpu.memory_space<vmem>>, vector<1x16x8xbf16>
    %13 = vector.shape_cast %12 : vector<1x16x8xbf16> to vector<16x8xbf16>
    %cst_9 = arith.constant dense<0.000000e+00> : vector<16x1152xf32>
    %14 = tpu.matmul %13, %11, %cst_9 {dimension_numbers = #tpu.dot_dimension_numbers<[1], [0], [0], [1], [0, 0, 1, 1], [], []>} : vector<16x8xbf16>, vector<8x1152xbf16>, vector<16x1152xf32> -> vector<16x1152xf32>
    %15 = arith.addf %9, %14 : vector<16x1152xf32>
    %16 = vector.extract_strided_slice %3 {offsets = [0, 33], sizes = [8, 1152], strides = [1, 1]} : vector<8x1280xf32> to vector<8x1152xf32>
    %17 = arith.truncf %16 : vector<8x1152xf32> to vector<8x1152xbf16>
    %c8 = arith.constant 8 : index
    %c0_10 = arith.constant 0 : index
    %c0_11 = arith.constant 0 : index
    %18 = vector.load %arg1[%c8, %c0_10, %c0_11] : memref<16x16x8xbf16, #tpu.memory_space<vmem>>, vector<1x16x8xbf16>
    %19 = vector.shape_cast %18 : vector<1x16x8xbf16> to vector<16x8xbf16>
    %cst_12 = arith.constant dense<0.000000e+00> : vector<16x1152xf32>
    %20 = tpu.matmul %19, %17, %cst_12 {dimension_numbers = #tpu.dot_dimension_numbers<[1], [0], [0], [1], [0, 0, 1, 1], [], []>} : vector<16x8xbf16>, vector<8x1152xbf16>, vector<16x1152xf32> -> vector<16x1152xf32>
    %21 = arith.addf %15, %20 : vector<16x1152xf32>
    %22 = vector.extract_strided_slice %3 {offsets = [0, 34], sizes = [8, 1152], strides = [1, 1]} : vector<8x1280xf32> to vector<8x1152xf32>
    %23 = arith.truncf %22 : vector<8x1152xf32> to vector<8x1152xbf16>
    %c10 = arith.constant 10 : index
    %c0_13 = arith.constant 0 : index
    %c0_14 = arith.constant 0 : index
    %24 = vector.load %arg1[%c10, %c0_13, %c0_14] : memref<16x16x8xbf16, #tpu.memory_space<vmem>>, vector<1x16x8xbf16>
    %25 = vector.shape_cast %24 : vector<1x16x8xbf16> to vector<16x8xbf16>
    %cst_15 = arith.constant dense<0.000000e+00> : vector<16x1152xf32>
    %26 = tpu.matmul %25, %23, %cst_15 {dimension_numbers = #tpu.dot_dimension_numbers<[1], [0], [0], [1], [0, 0, 1, 1], [], []>} : vector<16x8xbf16>, vector<8x1152xbf16>, vector<16x1152xf32> -> vector<16x1152xf32>
    %27 = arith.addf %21, %26 : vector<16x1152xf32>
    %c0_16 = arith.constant 0 : index
    %c1 = arith.constant 1 : index
    %c0_17 = arith.constant 0 : index
    %c0_18 = arith.constant 0 : index
    %28 = vector.load %arg2[%c0_16, %c1, %c0_17, %c0_18] : memref<1x4x8x1280xbf16, #tpu.memory_space<vmem>>, vector<1x1x8x1280xbf16>
    %29 = vector.shape_cast %28 : vector<1x1x8x1280xbf16> to vector<8x1280xbf16>
    %30 = arith.extf %29 : vector<8x1280xbf16> to vector<8x1280xf32>
    %31 = vector.extract_strided_slice %30 {offsets = [0, 0], sizes = [8, 1152], strides = [1, 1]} : vector<8x1280xf32> to vector<8x1152xf32>
    %32 = arith.truncf %31 : vector<8x1152xf32> to vector<8x1152xbf16>
    %c1_19 = arith.constant 1 : index
    %c0_20 = arith.constant 0 : index
    %c0_21 = arith.constant 0 : index
    %33 = vector.load %arg1[%c1_19, %c0_20, %c0_21] : memref<16x16x8xbf16, #tpu.memory_space<vmem>>, vector<1x16x8xbf16>
    %34 = vector.shape_cast %33 : vector<1x16x8xbf16> to vector<16x8xbf16>
    %cst_22 = arith.constant dense<0.000000e+00> : vector<16x1152xf32>
    %35 = tpu.matmul %34, %32, %cst_22 {dimension_numbers = #tpu.dot_dimension_numbers<[1], [0], [0], [1], [0, 0, 1, 1], [], []>} : vector<16x8xbf16>, vector<8x1152xbf16>, vector<16x1152xf32> -> vector<16x1152xf32>
    %36 = arith.addf %27, %35 : vector<16x1152xf32>
    %37 = vector.extract_strided_slice %30 {offsets = [0, 1], sizes = [8, 1152], strides = [1, 1]} : vector<8x1280xf32> to vector<8x1152xf32>
    %38 = arith.truncf %37 : vector<8x1152xf32> to vector<8x1152xbf16>
    %c3 = arith.constant 3 : index
    %c0_23 = arith.constant 0 : index
    %c0_24 = arith.constant 0 : index
    %39 = vector.load %arg1[%c3, %c0_23, %c0_24] : memref<16x16x8xbf16, #tpu.memory_space<vmem>>, vector<1x16x8xbf16>
    %40 = vector.shape_cast %39 : vector<1x16x8xbf16> to vector<16x8xbf16>
    %cst_25 = arith.constant dense<0.000000e+00> : vector<16x1152xf32>
    %41 = tpu.matmul %40, %38, %cst_25 {dimension_numbers = #tpu.dot_dimension_numbers<[1], [0], [0], [1], [0, 0, 1, 1], [], []>} : vector<16x8xbf16>, vector<8x1152xbf16>, vector<16x1152xf32> -> vector<16x1152xf32>
    %42 = arith.addf %36, %41 : vector<16x1152xf32>
    %43 = vector.extract_strided_slice %30 {offsets = [0, 33], sizes = [8, 1152], strides = [1, 1]} : vector<8x1280xf32> to vector<8x1152xf32>
    %44 = arith.truncf %43 : vector<8x1152xf32> to vector<8x1152xbf16>
    %c9 = arith.constant 9 : index
    %c0_26 = arith.constant 0 : index
    %c0_27 = arith.constant 0 : index
    %45 = vector.load %arg1[%c9, %c0_26, %c0_27] : memref<16x16x8xbf16, #tpu.memory_space<vmem>>, vector<1x16x8xbf16>
    %46 = vector.shape_cast %45 : vector<1x16x8xbf16> to vector<16x8xbf16>
    %cst_28 = arith.constant dense<0.000000e+00> : vector<16x1152xf32>
    %47 = tpu.matmul %46, %44, %cst_28 {dimension_numbers = #tpu.dot_dimension_numbers<[1], [0], [0], [1], [0, 0, 1, 1], [], []>} : vector<16x8xbf16>, vector<8x1152xbf16>, vector<16x1152xf32> -> vector<16x1152xf32>
    %48 = arith.addf %42, %47 : vector<16x1152xf32>
    %49 = vector.extract_strided_slice %30 {offsets = [0, 34], sizes = [8, 1152], strides = [1, 1]} : vector<8x1280xf32> to vector<8x1152xf32>
    %50 = arith.truncf %49 : vector<8x1152xf32> to vector<8x1152xbf16>
    %c11 = arith.constant 11 : index
    %c0_29 = arith.constant 0 : index
    %c0_30 = arith.constant 0 : index
    %51 = vector.load %arg1[%c11, %c0_29, %c0_30] : memref<16x16x8xbf16, #tpu.memory_space<vmem>>, vector<1x16x8xbf16>
    %52 = vector.shape_cast %51 : vector<1x16x8xbf16> to vector<16x8xbf16>
    %cst_31 = arith.constant dense<0.000000e+00> : vector<16x1152xf32>
    %53 = tpu.matmul %52, %50, %cst_31 {dimension_numbers = #tpu.dot_dimension_numbers<[1], [0], [0], [1], [0, 0, 1, 1], [], []>} : vector<16x8xbf16>, vector<8x1152xbf16>, vector<16x1152xf32> -> vector<16x1152xf32>
    %54 = arith.addf %48, %53 : vector<16x1152xf32>
    %c0_32 = arith.constant 0 : index
    %c2_33 = arith.constant 2 : index
    %c0_34 = arith.constant 0 : index
    %c0_35 = arith.constant 0 : index
    %55 = vector.load %arg2[%c0_32, %c2_33, %c0_34, %c0_35] : memref<1x4x8x1280xbf16, #tpu.memory_space<vmem>>, vector<1x1x8x1280xbf16>
    %56 = vector.shape_cast %55 : vector<1x1x8x1280xbf16> to vector<8x1280xbf16>
    %57 = arith.extf %56 : vector<8x1280xbf16> to vector<8x1280xf32>
    %58 = vector.extract_strided_slice %57 {offsets = [0, 0], sizes = [8, 1152], strides = [1, 1]} : vector<8x1280xf32> to vector<8x1152xf32>
    %59 = arith.truncf %58 : vector<8x1152xf32> to vector<8x1152xbf16>
    %c4 = arith.constant 4 : index
    %c0_36 = arith.constant 0 : index
    %c0_37 = arith.constant 0 : index
    %60 = vector.load %arg1[%c4, %c0_36, %c0_37] : memref<16x16x8xbf16, #tpu.memory_space<vmem>>, vector<1x16x8xbf16>
    %61 = vector.shape_cast %60 : vector<1x16x8xbf16> to vector<16x8xbf16>
    %cst_38 = arith.constant dense<0.000000e+00> : vector<16x1152xf32>
    %62 = tpu.matmul %61, %59, %cst_38 {dimension_numbers = #tpu.dot_dimension_numbers<[1], [0], [0], [1], [0, 0, 1, 1], [], []>} : vector<16x8xbf16>, vector<8x1152xbf16>, vector<16x1152xf32> -> vector<16x1152xf32>
    %63 = arith.addf %54, %62 : vector<16x1152xf32>
    %64 = vector.extract_strided_slice %57 {offsets = [0, 1], sizes = [8, 1152], strides = [1, 1]} : vector<8x1280xf32> to vector<8x1152xf32>
    %65 = arith.truncf %64 : vector<8x1152xf32> to vector<8x1152xbf16>
    %c6 = arith.constant 6 : index
    %c0_39 = arith.constant 0 : index
    %c0_40 = arith.constant 0 : index
    %66 = vector.load %arg1[%c6, %c0_39, %c0_40] : memref<16x16x8xbf16, #tpu.memory_space<vmem>>, vector<1x16x8xbf16>
    %67 = vector.shape_cast %66 : vector<1x16x8xbf16> to vector<16x8xbf16>
    %cst_41 = arith.constant dense<0.000000e+00> : vector<16x1152xf32>
    %68 = tpu.matmul %67, %65, %cst_41 {dimension_numbers = #tpu.dot_dimension_numbers<[1], [0], [0], [1], [0, 0, 1, 1], [], []>} : vector<16x8xbf16>, vector<8x1152xbf16>, vector<16x1152xf32> -> vector<16x1152xf32>
    %69 = arith.addf %63, %68 : vector<16x1152xf32>
    %70 = vector.extract_strided_slice %57 {offsets = [0, 33], sizes = [8, 1152], strides = [1, 1]} : vector<8x1280xf32> to vector<8x1152xf32>
    %71 = arith.truncf %70 : vector<8x1152xf32> to vector<8x1152xbf16>
    %c12 = arith.constant 12 : index
    %c0_42 = arith.constant 0 : index
    %c0_43 = arith.constant 0 : index
    %72 = vector.load %arg1[%c12, %c0_42, %c0_43] : memref<16x16x8xbf16, #tpu.memory_space<vmem>>, vector<1x16x8xbf16>
    %73 = vector.shape_cast %72 : vector<1x16x8xbf16> to vector<16x8xbf16>
    %cst_44 = arith.constant dense<0.000000e+00> : vector<16x1152xf32>
    %74 = tpu.matmul %73, %71, %cst_44 {dimension_numbers = #tpu.dot_dimension_numbers<[1], [0], [0], [1], [0, 0, 1, 1], [], []>} : vector<16x8xbf16>, vector<8x1152xbf16>, vector<16x1152xf32> -> vector<16x1152xf32>
    %75 = arith.addf %69, %74 : vector<16x1152xf32>
    %76 = vector.extract_strided_slice %57 {offsets = [0, 34], sizes = [8, 1152], strides = [1, 1]} : vector<8x1280xf32> to vector<8x1152xf32>
    %77 = arith.truncf %76 : vector<8x1152xf32> to vector<8x1152xbf16>
    %c14 = arith.constant 14 : index
    %c0_45 = arith.constant 0 : index
    %c0_46 = arith.constant 0 : index
    %78 = vector.load %arg1[%c14, %c0_45, %c0_46] : memref<16x16x8xbf16, #tpu.memory_space<vmem>>, vector<1x16x8xbf16>
    %79 = vector.shape_cast %78 : vector<1x16x8xbf16> to vector<16x8xbf16>
    %cst_47 = arith.constant dense<0.000000e+00> : vector<16x1152xf32>
    %80 = tpu.matmul %79, %77, %cst_47 {dimension_numbers = #tpu.dot_dimension_numbers<[1], [0], [0], [1], [0, 0, 1, 1], [], []>} : vector<16x8xbf16>, vector<8x1152xbf16>, vector<16x1152xf32> -> vector<16x1152xf32>
    %81 = arith.addf %75, %80 : vector<16x1152xf32>
    %c0_48 = arith.constant 0 : index
    %c3_49 = arith.constant 3 : index
    %c0_50 = arith.constant 0 : index
    %c0_51 = arith.constant 0 : index
    %82 = vector.load %arg2[%c0_48, %c3_49, %c0_50, %c0_51] : memref<1x4x8x1280xbf16, #tpu.memory_space<vmem>>, vector<1x1x8x1280xbf16>
    %83 = vector.shape_cast %82 : vector<1x1x8x1280xbf16> to vector<8x1280xbf16>
    %84 = arith.extf %83 : vector<8x1280xbf16> to vector<8x1280xf32>
    %85 = vector.extract_strided_slice %84 {offsets = [0, 0], sizes = [8, 1152], strides = [1, 1]} : vector<8x1280xf32> to vector<8x1152xf32>
    %86 = arith.truncf %85 : vector<8x1152xf32> to vector<8x1152xbf16>
    %c5 = arith.constant 5 : index
    %c0_52 = arith.constant 0 : index
    %c0_53 = arith.constant 0 : index
    %87 = vector.load %arg1[%c5, %c0_52, %c0_53] : memref<16x16x8xbf16, #tpu.memory_space<vmem>>, vector<1x16x8xbf16>
    %88 = vector.shape_cast %87 : vector<1x16x8xbf16> to vector<16x8xbf16>
    %cst_54 = arith.constant dense<0.000000e+00> : vector<16x1152xf32>
    %89 = tpu.matmul %88, %86, %cst_54 {dimension_numbers = #tpu.dot_dimension_numbers<[1], [0], [0], [1], [0, 0, 1, 1], [], []>} : vector<16x8xbf16>, vector<8x1152xbf16>, vector<16x1152xf32> -> vector<16x1152xf32>
    %90 = arith.addf %81, %89 : vector<16x1152xf32>
    %91 = vector.extract_strided_slice %84 {offsets = [0, 1], sizes = [8, 1152], strides = [1, 1]} : vector<8x1280xf32> to vector<8x1152xf32>
    %92 = arith.truncf %91 : vector<8x1152xf32> to vector<8x1152xbf16>
    %c7 = arith.constant 7 : index
    %c0_55 = arith.constant 0 : index
    %c0_56 = arith.constant 0 : index
    %93 = vector.load %arg1[%c7, %c0_55, %c0_56] : memref<16x16x8xbf16, #tpu.memory_space<vmem>>, vector<1x16x8xbf16>
    %94 = vector.shape_cast %93 : vector<1x16x8xbf16> to vector<16x8xbf16>
    %cst_57 = arith.constant dense<0.000000e+00> : vector<16x1152xf32>
    %95 = tpu.matmul %94, %92, %cst_57 {dimension_numbers = #tpu.dot_dimension_numbers<[1], [0], [0], [1], [0, 0, 1, 1], [], []>} : vector<16x8xbf16>, vector<8x1152xbf16>, vector<16x1152xf32> -> vector<16x1152xf32>
    %96 = arith.addf %90, %95 : vector<16x1152xf32>
    %97 = vector.extract_strided_slice %84 {offsets = [0, 33], sizes = [8, 1152], strides = [1, 1]} : vector<8x1280xf32> to vector<8x1152xf32>
    %98 = arith.truncf %97 : vector<8x1152xf32> to vector<8x1152xbf16>
    %c13 = arith.constant 13 : index
    %c0_58 = arith.constant 0 : index
    %c0_59 = arith.constant 0 : index
    %99 = vector.load %arg1[%c13, %c0_58, %c0_59] : memref<16x16x8xbf16, #tpu.memory_space<vmem>>, vector<1x16x8xbf16>
    %100 = vector.shape_cast %99 : vector<1x16x8xbf16> to vector<16x8xbf16>
    %cst_60 = arith.constant dense<0.000000e+00> : vector<16x1152xf32>
    %101 = tpu.matmul %100, %98, %cst_60 {dimension_numbers = #tpu.dot_dimension_numbers<[1], [0], [0], [1], [0, 0, 1, 1], [], []>} : vector<16x8xbf16>, vector<8x1152xbf16>, vector<16x1152xf32> -> vector<16x1152xf32>
    %102 = arith.addf %96, %101 : vector<16x1152xf32>
    %103 = vector.extract_strided_slice %84 {offsets = [0, 34], sizes = [8, 1152], strides = [1, 1]} : vector<8x1280xf32> to vector<8x1152xf32>
    %104 = arith.truncf %103 : vector<8x1152xf32> to vector<8x1152xbf16>
    %c15 = arith.constant 15 : index
    %c0_61 = arith.constant 0 : index
    %c0_62 = arith.constant 0 : index
    %105 = vector.load %arg1[%c15, %c0_61, %c0_62] : memref<16x16x8xbf16, #tpu.memory_space<vmem>>, vector<1x16x8xbf16>
    %106 = vector.shape_cast %105 : vector<1x16x8xbf16> to vector<16x8xbf16>
    %cst_63 = arith.constant dense<0.000000e+00> : vector<16x1152xf32>
    %107 = tpu.matmul %106, %104, %cst_63 {dimension_numbers = #tpu.dot_dimension_numbers<[1], [0], [0], [1], [0, 0, 1, 1], [], []>} : vector<16x8xbf16>, vector<8x1152xbf16>, vector<16x1152xf32> -> vector<16x1152xf32>
    %108 = arith.addf %102, %107 : vector<16x1152xf32>
    %c0_64 = arith.constant 0 : index
    %c0_65 = arith.constant 0 : index
    %109 = vector.load %arg3[%c0_64, %c0_65] : memref<16x1xf32, #tpu.memory_space<vmem>>, vector<16x1xf32>
    %110 = vector.broadcast %109 : vector<16x1xf32> to vector<16x1152xf32>
    %111 = arith.addf %108, %110 : vector<16x1152xf32>
    %cst_66 = arith.constant 1.000000e-01 : f32
    %112 = vector.broadcast %cst_66 : f32 to vector<16x1152xf32>
    %113 = arith.mulf %112, %111 : vector<16x1152xf32>
    %114 = arith.maximumf %111, %113 : vector<16x1152xf32>
    %115 = arith.truncf %114 : vector<16x1152xf32> to vector<16x1152xbf16>
    %c0_67 = arith.constant 0 : index
    %c0_68 = arith.constant 0 : index
    %c0_69 = arith.constant 0 : index
    %116 = vector.load %arg4[%c0_67, %c0_68, %c0_69] : memref<1x16x1152xbf16, #tpu.memory_space<vmem>>, vector<1x16x1152xbf16>
    %117 = vector.shape_cast %116 : vector<1x16x1152xbf16> to vector<16x1152xbf16>
    %118 = vector.shape_cast %115 : vector<16x1152xbf16> to vector<1x16x1152xbf16>
    tpu.vector_store %arg4[%c0_67, %c0_68, %c0_69], %118 {strides = array<i32>} : memref<1x16x1152xbf16, #tpu.memory_space<vmem>>, vector<1x16x1152xbf16>,
    return
  }
  func.func @transform_0(%arg0: i32) -> (i32, i32, i32) {
    %c0_i32 = arith.constant 0 : i32
    %c0_i32_0 = arith.constant 0 : i32
    %c0_i32_1 = arith.constant 0 : i32
    %c0_i32_2 = arith.constant 0 : i32
    return %c0_i32, %c0_i32_0, %c0_i32_1 : i32, i32, i32
  }
  func.func @transform_1(%arg0: i32) -> (i32, i32, i32, i32) {
    %c0_i32 = arith.constant 0 : i32
    %c0_i32_0 = arith.constant 0 : i32
    %c0_i32_1 = arith.constant 0 : i32
    %c0_i32_2 = arith.constant 0 : i32
    return %arg0, %c0_i32, %c0_i32_0, %c0_i32_1 : i32, i32, i32, i32
  }
  func.func @transform_2(%arg0: i32) -> (i32, i32) {
    %c0_i32 = arith.constant 0 : i32
    %c0_i32_0 = arith.constant 0 : i32
    %c0_i32_1 = arith.constant 0 : i32
    return %c0_i32, %c0_i32_0 : i32, i32
  }
  func.func @transform_3(%arg0: i32) -> (i32, i32, i32) {
    %c0_i32 = arith.constant 0 : i32
    %c0_i32_0 = arith.constant 0 : i32
    %c0_i32_1 = arith.constant 0 : i32
    return %arg0, %c0_i32, %c0_i32_0 : i32, i32, i32
  }
}

module attributes {stable_mosaic.version = 11 : i64} {
  func.func @_conv4x4s2_lrelu_kernel(%arg0: i32, %arg1: memref<16x32x16xbf16, #tpu.memory_space<vmem>>, %arg2: memref<1x4x16x512xbf16, #tpu.memory_space<vmem>>, %arg3: memref<32x1xf32, #tpu.memory_space<vmem>>, %arg4: memref<1x32x384xbf16, #tpu.memory_space<vmem>>) attributes {dimension_semantics = [#tpu.dimension_semantics<parallel>], iteration_bounds = array<i64: 2>, scalar_prefetch = 0 : i64, scratch_operands = 0 : i64, tpu.core_type = #tpu.core_type<tc>, window_params = [{pipeline_mode = #tpu.pipeline_mode<synchronous>, transform_indices = @transform_0, window_bounds = array<i64: 16, 32, 16>}, {transform_indices = @transform_1, window_bounds = array<i64: 1, 4, 16, 512>}, {pipeline_mode = #tpu.pipeline_mode<synchronous>, transform_indices = @transform_2, window_bounds = array<i64: 32, 1>}, {transform_indices = @transform_3, window_bounds = array<i64: 1, 32, 384>}]} {
    %cst = arith.constant 0.000000e+00 : f32
    %0 = vector.broadcast %cst : f32 to vector<32x384xf32>
    %c0 = arith.constant 0 : index
    %c0_0 = arith.constant 0 : index
    %c0_1 = arith.constant 0 : index
    %c0_2 = arith.constant 0 : index
    %1 = vector.load %arg2[%c0, %c0_0, %c0_1, %c0_2] : memref<1x4x16x512xbf16, #tpu.memory_space<vmem>>, vector<1x1x16x512xbf16>
    %2 = vector.shape_cast %1 : vector<1x1x16x512xbf16> to vector<16x512xbf16>
    %3 = arith.extf %2 : vector<16x512xbf16> to vector<16x512xf32>
    %4 = vector.extract_strided_slice %3 {offsets = [0, 0], sizes = [16, 384], strides = [1, 1]} : vector<16x512xf32> to vector<16x384xf32>
    %5 = arith.truncf %4 : vector<16x384xf32> to vector<16x384xbf16>
    %c0_3 = arith.constant 0 : index
    %c0_4 = arith.constant 0 : index
    %c0_5 = arith.constant 0 : index
    %6 = vector.load %arg1[%c0_3, %c0_4, %c0_5] : memref<16x32x16xbf16, #tpu.memory_space<vmem>>, vector<1x32x16xbf16>
    %7 = vector.shape_cast %6 : vector<1x32x16xbf16> to vector<32x16xbf16>
    %cst_6 = arith.constant dense<0.000000e+00> : vector<32x384xf32>
    %8 = tpu.matmul %7, %5, %cst_6 {dimension_numbers = #tpu.dot_dimension_numbers<[1], [0], [0], [1], [0, 0, 1, 1], [], []>} : vector<32x16xbf16>, vector<16x384xbf16>, vector<32x384xf32> -> vector<32x384xf32>
    %9 = arith.addf %0, %8 : vector<32x384xf32>
    %10 = vector.extract_strided_slice %3 {offsets = [0, 1], sizes = [16, 384], strides = [1, 1]} : vector<16x512xf32> to vector<16x384xf32>
    %11 = arith.truncf %10 : vector<16x384xf32> to vector<16x384xbf16>
    %c2 = arith.constant 2 : index
    %c0_7 = arith.constant 0 : index
    %c0_8 = arith.constant 0 : index
    %12 = vector.load %arg1[%c2, %c0_7, %c0_8] : memref<16x32x16xbf16, #tpu.memory_space<vmem>>, vector<1x32x16xbf16>
    %13 = vector.shape_cast %12 : vector<1x32x16xbf16> to vector<32x16xbf16>
    %cst_9 = arith.constant dense<0.000000e+00> : vector<32x384xf32>
    %14 = tpu.matmul %13, %11, %cst_9 {dimension_numbers = #tpu.dot_dimension_numbers<[1], [0], [0], [1], [0, 0, 1, 1], [], []>} : vector<32x16xbf16>, vector<16x384xbf16>, vector<32x384xf32> -> vector<32x384xf32>
    %15 = arith.addf %9, %14 : vector<32x384xf32>
    %16 = vector.extract_strided_slice %3 {offsets = [0, 17], sizes = [16, 384], strides = [1, 1]} : vector<16x512xf32> to vector<16x384xf32>
    %17 = arith.truncf %16 : vector<16x384xf32> to vector<16x384xbf16>
    %c8 = arith.constant 8 : index
    %c0_10 = arith.constant 0 : index
    %c0_11 = arith.constant 0 : index
    %18 = vector.load %arg1[%c8, %c0_10, %c0_11] : memref<16x32x16xbf16, #tpu.memory_space<vmem>>, vector<1x32x16xbf16>
    %19 = vector.shape_cast %18 : vector<1x32x16xbf16> to vector<32x16xbf16>
    %cst_12 = arith.constant dense<0.000000e+00> : vector<32x384xf32>
    %20 = tpu.matmul %19, %17, %cst_12 {dimension_numbers = #tpu.dot_dimension_numbers<[1], [0], [0], [1], [0, 0, 1, 1], [], []>} : vector<32x16xbf16>, vector<16x384xbf16>, vector<32x384xf32> -> vector<32x384xf32>
    %21 = arith.addf %15, %20 : vector<32x384xf32>
    %22 = vector.extract_strided_slice %3 {offsets = [0, 18], sizes = [16, 384], strides = [1, 1]} : vector<16x512xf32> to vector<16x384xf32>
    %23 = arith.truncf %22 : vector<16x384xf32> to vector<16x384xbf16>
    %c10 = arith.constant 10 : index
    %c0_13 = arith.constant 0 : index
    %c0_14 = arith.constant 0 : index
    %24 = vector.load %arg1[%c10, %c0_13, %c0_14] : memref<16x32x16xbf16, #tpu.memory_space<vmem>>, vector<1x32x16xbf16>
    %25 = vector.shape_cast %24 : vector<1x32x16xbf16> to vector<32x16xbf16>
    %cst_15 = arith.constant dense<0.000000e+00> : vector<32x384xf32>
    %26 = tpu.matmul %25, %23, %cst_15 {dimension_numbers = #tpu.dot_dimension_numbers<[1], [0], [0], [1], [0, 0, 1, 1], [], []>} : vector<32x16xbf16>, vector<16x384xbf16>, vector<32x384xf32> -> vector<32x384xf32>
    %27 = arith.addf %21, %26 : vector<32x384xf32>
    %c0_16 = arith.constant 0 : index
    %c1 = arith.constant 1 : index
    %c0_17 = arith.constant 0 : index
    %c0_18 = arith.constant 0 : index
    %28 = vector.load %arg2[%c0_16, %c1, %c0_17, %c0_18] : memref<1x4x16x512xbf16, #tpu.memory_space<vmem>>, vector<1x1x16x512xbf16>
    %29 = vector.shape_cast %28 : vector<1x1x16x512xbf16> to vector<16x512xbf16>
    %30 = arith.extf %29 : vector<16x512xbf16> to vector<16x512xf32>
    %31 = vector.extract_strided_slice %30 {offsets = [0, 0], sizes = [16, 384], strides = [1, 1]} : vector<16x512xf32> to vector<16x384xf32>
    %32 = arith.truncf %31 : vector<16x384xf32> to vector<16x384xbf16>
    %c1_19 = arith.constant 1 : index
    %c0_20 = arith.constant 0 : index
    %c0_21 = arith.constant 0 : index
    %33 = vector.load %arg1[%c1_19, %c0_20, %c0_21] : memref<16x32x16xbf16, #tpu.memory_space<vmem>>, vector<1x32x16xbf16>
    %34 = vector.shape_cast %33 : vector<1x32x16xbf16> to vector<32x16xbf16>
    %cst_22 = arith.constant dense<0.000000e+00> : vector<32x384xf32>
    %35 = tpu.matmul %34, %32, %cst_22 {dimension_numbers = #tpu.dot_dimension_numbers<[1], [0], [0], [1], [0, 0, 1, 1], [], []>} : vector<32x16xbf16>, vector<16x384xbf16>, vector<32x384xf32> -> vector<32x384xf32>
    %36 = arith.addf %27, %35 : vector<32x384xf32>
    %37 = vector.extract_strided_slice %30 {offsets = [0, 1], sizes = [16, 384], strides = [1, 1]} : vector<16x512xf32> to vector<16x384xf32>
    %38 = arith.truncf %37 : vector<16x384xf32> to vector<16x384xbf16>
    %c3 = arith.constant 3 : index
    %c0_23 = arith.constant 0 : index
    %c0_24 = arith.constant 0 : index
    %39 = vector.load %arg1[%c3, %c0_23, %c0_24] : memref<16x32x16xbf16, #tpu.memory_space<vmem>>, vector<1x32x16xbf16>
    %40 = vector.shape_cast %39 : vector<1x32x16xbf16> to vector<32x16xbf16>
    %cst_25 = arith.constant dense<0.000000e+00> : vector<32x384xf32>
    %41 = tpu.matmul %40, %38, %cst_25 {dimension_numbers = #tpu.dot_dimension_numbers<[1], [0], [0], [1], [0, 0, 1, 1], [], []>} : vector<32x16xbf16>, vector<16x384xbf16>, vector<32x384xf32> -> vector<32x384xf32>
    %42 = arith.addf %36, %41 : vector<32x384xf32>
    %43 = vector.extract_strided_slice %30 {offsets = [0, 17], sizes = [16, 384], strides = [1, 1]} : vector<16x512xf32> to vector<16x384xf32>
    %44 = arith.truncf %43 : vector<16x384xf32> to vector<16x384xbf16>
    %c9 = arith.constant 9 : index
    %c0_26 = arith.constant 0 : index
    %c0_27 = arith.constant 0 : index
    %45 = vector.load %arg1[%c9, %c0_26, %c0_27] : memref<16x32x16xbf16, #tpu.memory_space<vmem>>, vector<1x32x16xbf16>
    %46 = vector.shape_cast %45 : vector<1x32x16xbf16> to vector<32x16xbf16>
    %cst_28 = arith.constant dense<0.000000e+00> : vector<32x384xf32>
    %47 = tpu.matmul %46, %44, %cst_28 {dimension_numbers = #tpu.dot_dimension_numbers<[1], [0], [0], [1], [0, 0, 1, 1], [], []>} : vector<32x16xbf16>, vector<16x384xbf16>, vector<32x384xf32> -> vector<32x384xf32>
    %48 = arith.addf %42, %47 : vector<32x384xf32>
    %49 = vector.extract_strided_slice %30 {offsets = [0, 18], sizes = [16, 384], strides = [1, 1]} : vector<16x512xf32> to vector<16x384xf32>
    %50 = arith.truncf %49 : vector<16x384xf32> to vector<16x384xbf16>
    %c11 = arith.constant 11 : index
    %c0_29 = arith.constant 0 : index
    %c0_30 = arith.constant 0 : index
    %51 = vector.load %arg1[%c11, %c0_29, %c0_30] : memref<16x32x16xbf16, #tpu.memory_space<vmem>>, vector<1x32x16xbf16>
    %52 = vector.shape_cast %51 : vector<1x32x16xbf16> to vector<32x16xbf16>
    %cst_31 = arith.constant dense<0.000000e+00> : vector<32x384xf32>
    %53 = tpu.matmul %52, %50, %cst_31 {dimension_numbers = #tpu.dot_dimension_numbers<[1], [0], [0], [1], [0, 0, 1, 1], [], []>} : vector<32x16xbf16>, vector<16x384xbf16>, vector<32x384xf32> -> vector<32x384xf32>
    %54 = arith.addf %48, %53 : vector<32x384xf32>
    %c0_32 = arith.constant 0 : index
    %c2_33 = arith.constant 2 : index
    %c0_34 = arith.constant 0 : index
    %c0_35 = arith.constant 0 : index
    %55 = vector.load %arg2[%c0_32, %c2_33, %c0_34, %c0_35] : memref<1x4x16x512xbf16, #tpu.memory_space<vmem>>, vector<1x1x16x512xbf16>
    %56 = vector.shape_cast %55 : vector<1x1x16x512xbf16> to vector<16x512xbf16>
    %57 = arith.extf %56 : vector<16x512xbf16> to vector<16x512xf32>
    %58 = vector.extract_strided_slice %57 {offsets = [0, 0], sizes = [16, 384], strides = [1, 1]} : vector<16x512xf32> to vector<16x384xf32>
    %59 = arith.truncf %58 : vector<16x384xf32> to vector<16x384xbf16>
    %c4 = arith.constant 4 : index
    %c0_36 = arith.constant 0 : index
    %c0_37 = arith.constant 0 : index
    %60 = vector.load %arg1[%c4, %c0_36, %c0_37] : memref<16x32x16xbf16, #tpu.memory_space<vmem>>, vector<1x32x16xbf16>
    %61 = vector.shape_cast %60 : vector<1x32x16xbf16> to vector<32x16xbf16>
    %cst_38 = arith.constant dense<0.000000e+00> : vector<32x384xf32>
    %62 = tpu.matmul %61, %59, %cst_38 {dimension_numbers = #tpu.dot_dimension_numbers<[1], [0], [0], [1], [0, 0, 1, 1], [], []>} : vector<32x16xbf16>, vector<16x384xbf16>, vector<32x384xf32> -> vector<32x384xf32>
    %63 = arith.addf %54, %62 : vector<32x384xf32>
    %64 = vector.extract_strided_slice %57 {offsets = [0, 1], sizes = [16, 384], strides = [1, 1]} : vector<16x512xf32> to vector<16x384xf32>
    %65 = arith.truncf %64 : vector<16x384xf32> to vector<16x384xbf16>
    %c6 = arith.constant 6 : index
    %c0_39 = arith.constant 0 : index
    %c0_40 = arith.constant 0 : index
    %66 = vector.load %arg1[%c6, %c0_39, %c0_40] : memref<16x32x16xbf16, #tpu.memory_space<vmem>>, vector<1x32x16xbf16>
    %67 = vector.shape_cast %66 : vector<1x32x16xbf16> to vector<32x16xbf16>
    %cst_41 = arith.constant dense<0.000000e+00> : vector<32x384xf32>
    %68 = tpu.matmul %67, %65, %cst_41 {dimension_numbers = #tpu.dot_dimension_numbers<[1], [0], [0], [1], [0, 0, 1, 1], [], []>} : vector<32x16xbf16>, vector<16x384xbf16>, vector<32x384xf32> -> vector<32x384xf32>
    %69 = arith.addf %63, %68 : vector<32x384xf32>
    %70 = vector.extract_strided_slice %57 {offsets = [0, 17], sizes = [16, 384], strides = [1, 1]} : vector<16x512xf32> to vector<16x384xf32>
    %71 = arith.truncf %70 : vector<16x384xf32> to vector<16x384xbf16>
    %c12 = arith.constant 12 : index
    %c0_42 = arith.constant 0 : index
    %c0_43 = arith.constant 0 : index
    %72 = vector.load %arg1[%c12, %c0_42, %c0_43] : memref<16x32x16xbf16, #tpu.memory_space<vmem>>, vector<1x32x16xbf16>
    %73 = vector.shape_cast %72 : vector<1x32x16xbf16> to vector<32x16xbf16>
    %cst_44 = arith.constant dense<0.000000e+00> : vector<32x384xf32>
    %74 = tpu.matmul %73, %71, %cst_44 {dimension_numbers = #tpu.dot_dimension_numbers<[1], [0], [0], [1], [0, 0, 1, 1], [], []>} : vector<32x16xbf16>, vector<16x384xbf16>, vector<32x384xf32> -> vector<32x384xf32>
    %75 = arith.addf %69, %74 : vector<32x384xf32>
    %76 = vector.extract_strided_slice %57 {offsets = [0, 18], sizes = [16, 384], strides = [1, 1]} : vector<16x512xf32> to vector<16x384xf32>
    %77 = arith.truncf %76 : vector<16x384xf32> to vector<16x384xbf16>
    %c14 = arith.constant 14 : index
    %c0_45 = arith.constant 0 : index
    %c0_46 = arith.constant 0 : index
    %78 = vector.load %arg1[%c14, %c0_45, %c0_46] : memref<16x32x16xbf16, #tpu.memory_space<vmem>>, vector<1x32x16xbf16>
    %79 = vector.shape_cast %78 : vector<1x32x16xbf16> to vector<32x16xbf16>
    %cst_47 = arith.constant dense<0.000000e+00> : vector<32x384xf32>
    %80 = tpu.matmul %79, %77, %cst_47 {dimension_numbers = #tpu.dot_dimension_numbers<[1], [0], [0], [1], [0, 0, 1, 1], [], []>} : vector<32x16xbf16>, vector<16x384xbf16>, vector<32x384xf32> -> vector<32x384xf32>
    %81 = arith.addf %75, %80 : vector<32x384xf32>
    %c0_48 = arith.constant 0 : index
    %c3_49 = arith.constant 3 : index
    %c0_50 = arith.constant 0 : index
    %c0_51 = arith.constant 0 : index
    %82 = vector.load %arg2[%c0_48, %c3_49, %c0_50, %c0_51] : memref<1x4x16x512xbf16, #tpu.memory_space<vmem>>, vector<1x1x16x512xbf16>
    %83 = vector.shape_cast %82 : vector<1x1x16x512xbf16> to vector<16x512xbf16>
    %84 = arith.extf %83 : vector<16x512xbf16> to vector<16x512xf32>
    %85 = vector.extract_strided_slice %84 {offsets = [0, 0], sizes = [16, 384], strides = [1, 1]} : vector<16x512xf32> to vector<16x384xf32>
    %86 = arith.truncf %85 : vector<16x384xf32> to vector<16x384xbf16>
    %c5 = arith.constant 5 : index
    %c0_52 = arith.constant 0 : index
    %c0_53 = arith.constant 0 : index
    %87 = vector.load %arg1[%c5, %c0_52, %c0_53] : memref<16x32x16xbf16, #tpu.memory_space<vmem>>, vector<1x32x16xbf16>
    %88 = vector.shape_cast %87 : vector<1x32x16xbf16> to vector<32x16xbf16>
    %cst_54 = arith.constant dense<0.000000e+00> : vector<32x384xf32>
    %89 = tpu.matmul %88, %86, %cst_54 {dimension_numbers = #tpu.dot_dimension_numbers<[1], [0], [0], [1], [0, 0, 1, 1], [], []>} : vector<32x16xbf16>, vector<16x384xbf16>, vector<32x384xf32> -> vector<32x384xf32>
    %90 = arith.addf %81, %89 : vector<32x384xf32>
    %91 = vector.extract_strided_slice %84 {offsets = [0, 1], sizes = [16, 384], strides = [1, 1]} : vector<16x512xf32> to vector<16x384xf32>
    %92 = arith.truncf %91 : vector<16x384xf32> to vector<16x384xbf16>
    %c7 = arith.constant 7 : index
    %c0_55 = arith.constant 0 : index
    %c0_56 = arith.constant 0 : index
    %93 = vector.load %arg1[%c7, %c0_55, %c0_56] : memref<16x32x16xbf16, #tpu.memory_space<vmem>>, vector<1x32x16xbf16>
    %94 = vector.shape_cast %93 : vector<1x32x16xbf16> to vector<32x16xbf16>
    %cst_57 = arith.constant dense<0.000000e+00> : vector<32x384xf32>
    %95 = tpu.matmul %94, %92, %cst_57 {dimension_numbers = #tpu.dot_dimension_numbers<[1], [0], [0], [1], [0, 0, 1, 1], [], []>} : vector<32x16xbf16>, vector<16x384xbf16>, vector<32x384xf32> -> vector<32x384xf32>
    %96 = arith.addf %90, %95 : vector<32x384xf32>
    %97 = vector.extract_strided_slice %84 {offsets = [0, 17], sizes = [16, 384], strides = [1, 1]} : vector<16x512xf32> to vector<16x384xf32>
    %98 = arith.truncf %97 : vector<16x384xf32> to vector<16x384xbf16>
    %c13 = arith.constant 13 : index
    %c0_58 = arith.constant 0 : index
    %c0_59 = arith.constant 0 : index
    %99 = vector.load %arg1[%c13, %c0_58, %c0_59] : memref<16x32x16xbf16, #tpu.memory_space<vmem>>, vector<1x32x16xbf16>
    %100 = vector.shape_cast %99 : vector<1x32x16xbf16> to vector<32x16xbf16>
    %cst_60 = arith.constant dense<0.000000e+00> : vector<32x384xf32>
    %101 = tpu.matmul %100, %98, %cst_60 {dimension_numbers = #tpu.dot_dimension_numbers<[1], [0], [0], [1], [0, 0, 1, 1], [], []>} : vector<32x16xbf16>, vector<16x384xbf16>, vector<32x384xf32> -> vector<32x384xf32>
    %102 = arith.addf %96, %101 : vector<32x384xf32>
    %103 = vector.extract_strided_slice %84 {offsets = [0, 18], sizes = [16, 384], strides = [1, 1]} : vector<16x512xf32> to vector<16x384xf32>
    %104 = arith.truncf %103 : vector<16x384xf32> to vector<16x384xbf16>
    %c15 = arith.constant 15 : index
    %c0_61 = arith.constant 0 : index
    %c0_62 = arith.constant 0 : index
    %105 = vector.load %arg1[%c15, %c0_61, %c0_62] : memref<16x32x16xbf16, #tpu.memory_space<vmem>>, vector<1x32x16xbf16>
    %106 = vector.shape_cast %105 : vector<1x32x16xbf16> to vector<32x16xbf16>
    %cst_63 = arith.constant dense<0.000000e+00> : vector<32x384xf32>
    %107 = tpu.matmul %106, %104, %cst_63 {dimension_numbers = #tpu.dot_dimension_numbers<[1], [0], [0], [1], [0, 0, 1, 1], [], []>} : vector<32x16xbf16>, vector<16x384xbf16>, vector<32x384xf32> -> vector<32x384xf32>
    %108 = arith.addf %102, %107 : vector<32x384xf32>
    %c0_64 = arith.constant 0 : index
    %c0_65 = arith.constant 0 : index
    %109 = vector.load %arg3[%c0_64, %c0_65] : memref<32x1xf32, #tpu.memory_space<vmem>>, vector<32x1xf32>
    %110 = vector.broadcast %109 : vector<32x1xf32> to vector<32x384xf32>
    %111 = arith.addf %108, %110 : vector<32x384xf32>
    %cst_66 = arith.constant 1.000000e-01 : f32
    %112 = vector.broadcast %cst_66 : f32 to vector<32x384xf32>
    %113 = arith.mulf %112, %111 : vector<32x384xf32>
    %114 = arith.maximumf %111, %113 : vector<32x384xf32>
    %115 = arith.truncf %114 : vector<32x384xf32> to vector<32x384xbf16>
    %c0_67 = arith.constant 0 : index
    %c0_68 = arith.constant 0 : index
    %c0_69 = arith.constant 0 : index
    %116 = vector.load %arg4[%c0_67, %c0_68, %c0_69] : memref<1x32x384xbf16, #tpu.memory_space<vmem>>, vector<1x32x384xbf16>
    %117 = vector.shape_cast %116 : vector<1x32x384xbf16> to vector<32x384xbf16>
    %118 = vector.shape_cast %115 : vector<32x384xbf16> to vector<1x32x384xbf16>
    tpu.vector_store %arg4[%c0_67, %c0_68, %c0_69], %118 {strides = array<i32>} : memref<1x32x384xbf16, #tpu.memory_space<vmem>>, vector<1x32x384xbf16>,
    return
  }
  func.func @transform_0(%arg0: i32) -> (i32, i32, i32) {
    %c0_i32 = arith.constant 0 : i32
    %c0_i32_0 = arith.constant 0 : i32
    %c0_i32_1 = arith.constant 0 : i32
    %c0_i32_2 = arith.constant 0 : i32
    return %c0_i32, %c0_i32_0, %c0_i32_1 : i32, i32, i32
  }
  func.func @transform_1(%arg0: i32) -> (i32, i32, i32, i32) {
    %c0_i32 = arith.constant 0 : i32
    %c0_i32_0 = arith.constant 0 : i32
    %c0_i32_1 = arith.constant 0 : i32
    %c0_i32_2 = arith.constant 0 : i32
    return %arg0, %c0_i32, %c0_i32_0, %c0_i32_1 : i32, i32, i32, i32
  }
  func.func @transform_2(%arg0: i32) -> (i32, i32) {
    %c0_i32 = arith.constant 0 : i32
    %c0_i32_0 = arith.constant 0 : i32
    %c0_i32_1 = arith.constant 0 : i32
    return %c0_i32, %c0_i32_0 : i32, i32
  }
  func.func @transform_3(%arg0: i32) -> (i32, i32, i32) {
    %c0_i32 = arith.constant 0 : i32
    %c0_i32_0 = arith.constant 0 : i32
    %c0_i32_1 = arith.constant 0 : i32
    return %arg0, %c0_i32, %c0_i32_0 : i32, i32, i32
  }
}

module attributes {stable_mosaic.version = 11 : i64} {
  func.func @_conv4x4s2_lrelu_kernel(%arg0: i32, %arg1: memref<16x64x32xbf16, #tpu.memory_space<vmem>>, %arg2: memref<1x4x32x256xbf16, #tpu.memory_space<vmem>>, %arg3: memref<64x1xf32, #tpu.memory_space<vmem>>, %arg4: memref<1x64x128xbf16, #tpu.memory_space<vmem>>) attributes {dimension_semantics = [#tpu.dimension_semantics<parallel>], iteration_bounds = array<i64: 2>, scalar_prefetch = 0 : i64, scratch_operands = 0 : i64, tpu.core_type = #tpu.core_type<tc>, window_params = [{pipeline_mode = #tpu.pipeline_mode<synchronous>, transform_indices = @transform_0, window_bounds = array<i64: 16, 64, 32>}, {transform_indices = @transform_1, window_bounds = array<i64: 1, 4, 32, 256>}, {pipeline_mode = #tpu.pipeline_mode<synchronous>, transform_indices = @transform_2, window_bounds = array<i64: 64, 1>}, {transform_indices = @transform_3, window_bounds = array<i64: 1, 64, 128>}]} {
    %cst = arith.constant 0.000000e+00 : f32
    %0 = vector.broadcast %cst : f32 to vector<64x128xf32>
    %c0 = arith.constant 0 : index
    %c0_0 = arith.constant 0 : index
    %c0_1 = arith.constant 0 : index
    %c0_2 = arith.constant 0 : index
    %1 = vector.load %arg2[%c0, %c0_0, %c0_1, %c0_2] : memref<1x4x32x256xbf16, #tpu.memory_space<vmem>>, vector<1x1x32x256xbf16>
    %2 = vector.shape_cast %1 : vector<1x1x32x256xbf16> to vector<32x256xbf16>
    %3 = arith.extf %2 : vector<32x256xbf16> to vector<32x256xf32>
    %4 = vector.extract_strided_slice %3 {offsets = [0, 0], sizes = [32, 128], strides = [1, 1]} : vector<32x256xf32> to vector<32x128xf32>
    %5 = arith.truncf %4 : vector<32x128xf32> to vector<32x128xbf16>
    %c0_3 = arith.constant 0 : index
    %c0_4 = arith.constant 0 : index
    %c0_5 = arith.constant 0 : index
    %6 = vector.load %arg1[%c0_3, %c0_4, %c0_5] : memref<16x64x32xbf16, #tpu.memory_space<vmem>>, vector<1x64x32xbf16>
    %7 = vector.shape_cast %6 : vector<1x64x32xbf16> to vector<64x32xbf16>
    %cst_6 = arith.constant dense<0.000000e+00> : vector<64x128xf32>
    %8 = tpu.matmul %7, %5, %cst_6 {dimension_numbers = #tpu.dot_dimension_numbers<[1], [0], [0], [1], [0, 0, 1, 1], [], []>} : vector<64x32xbf16>, vector<32x128xbf16>, vector<64x128xf32> -> vector<64x128xf32>
    %9 = arith.addf %0, %8 : vector<64x128xf32>
    %10 = vector.extract_strided_slice %3 {offsets = [0, 1], sizes = [32, 128], strides = [1, 1]} : vector<32x256xf32> to vector<32x128xf32>
    %11 = arith.truncf %10 : vector<32x128xf32> to vector<32x128xbf16>
    %c2 = arith.constant 2 : index
    %c0_7 = arith.constant 0 : index
    %c0_8 = arith.constant 0 : index
    %12 = vector.load %arg1[%c2, %c0_7, %c0_8] : memref<16x64x32xbf16, #tpu.memory_space<vmem>>, vector<1x64x32xbf16>
    %13 = vector.shape_cast %12 : vector<1x64x32xbf16> to vector<64x32xbf16>
    %cst_9 = arith.constant dense<0.000000e+00> : vector<64x128xf32>
    %14 = tpu.matmul %13, %11, %cst_9 {dimension_numbers = #tpu.dot_dimension_numbers<[1], [0], [0], [1], [0, 0, 1, 1], [], []>} : vector<64x32xbf16>, vector<32x128xbf16>, vector<64x128xf32> -> vector<64x128xf32>
    %15 = arith.addf %9, %14 : vector<64x128xf32>
    %16 = vector.extract_strided_slice %3 {offsets = [0, 9], sizes = [32, 128], strides = [1, 1]} : vector<32x256xf32> to vector<32x128xf32>
    %17 = arith.truncf %16 : vector<32x128xf32> to vector<32x128xbf16>
    %c8 = arith.constant 8 : index
    %c0_10 = arith.constant 0 : index
    %c0_11 = arith.constant 0 : index
    %18 = vector.load %arg1[%c8, %c0_10, %c0_11] : memref<16x64x32xbf16, #tpu.memory_space<vmem>>, vector<1x64x32xbf16>
    %19 = vector.shape_cast %18 : vector<1x64x32xbf16> to vector<64x32xbf16>
    %cst_12 = arith.constant dense<0.000000e+00> : vector<64x128xf32>
    %20 = tpu.matmul %19, %17, %cst_12 {dimension_numbers = #tpu.dot_dimension_numbers<[1], [0], [0], [1], [0, 0, 1, 1], [], []>} : vector<64x32xbf16>, vector<32x128xbf16>, vector<64x128xf32> -> vector<64x128xf32>
    %21 = arith.addf %15, %20 : vector<64x128xf32>
    %22 = vector.extract_strided_slice %3 {offsets = [0, 10], sizes = [32, 128], strides = [1, 1]} : vector<32x256xf32> to vector<32x128xf32>
    %23 = arith.truncf %22 : vector<32x128xf32> to vector<32x128xbf16>
    %c10 = arith.constant 10 : index
    %c0_13 = arith.constant 0 : index
    %c0_14 = arith.constant 0 : index
    %24 = vector.load %arg1[%c10, %c0_13, %c0_14] : memref<16x64x32xbf16, #tpu.memory_space<vmem>>, vector<1x64x32xbf16>
    %25 = vector.shape_cast %24 : vector<1x64x32xbf16> to vector<64x32xbf16>
    %cst_15 = arith.constant dense<0.000000e+00> : vector<64x128xf32>
    %26 = tpu.matmul %25, %23, %cst_15 {dimension_numbers = #tpu.dot_dimension_numbers<[1], [0], [0], [1], [0, 0, 1, 1], [], []>} : vector<64x32xbf16>, vector<32x128xbf16>, vector<64x128xf32> -> vector<64x128xf32>
    %27 = arith.addf %21, %26 : vector<64x128xf32>
    %c0_16 = arith.constant 0 : index
    %c1 = arith.constant 1 : index
    %c0_17 = arith.constant 0 : index
    %c0_18 = arith.constant 0 : index
    %28 = vector.load %arg2[%c0_16, %c1, %c0_17, %c0_18] : memref<1x4x32x256xbf16, #tpu.memory_space<vmem>>, vector<1x1x32x256xbf16>
    %29 = vector.shape_cast %28 : vector<1x1x32x256xbf16> to vector<32x256xbf16>
    %30 = arith.extf %29 : vector<32x256xbf16> to vector<32x256xf32>
    %31 = vector.extract_strided_slice %30 {offsets = [0, 0], sizes = [32, 128], strides = [1, 1]} : vector<32x256xf32> to vector<32x128xf32>
    %32 = arith.truncf %31 : vector<32x128xf32> to vector<32x128xbf16>
    %c1_19 = arith.constant 1 : index
    %c0_20 = arith.constant 0 : index
    %c0_21 = arith.constant 0 : index
    %33 = vector.load %arg1[%c1_19, %c0_20, %c0_21] : memref<16x64x32xbf16, #tpu.memory_space<vmem>>, vector<1x64x32xbf16>
    %34 = vector.shape_cast %33 : vector<1x64x32xbf16> to vector<64x32xbf16>
    %cst_22 = arith.constant dense<0.000000e+00> : vector<64x128xf32>
    %35 = tpu.matmul %34, %32, %cst_22 {dimension_numbers = #tpu.dot_dimension_numbers<[1], [0], [0], [1], [0, 0, 1, 1], [], []>} : vector<64x32xbf16>, vector<32x128xbf16>, vector<64x128xf32> -> vector<64x128xf32>
    %36 = arith.addf %27, %35 : vector<64x128xf32>
    %37 = vector.extract_strided_slice %30 {offsets = [0, 1], sizes = [32, 128], strides = [1, 1]} : vector<32x256xf32> to vector<32x128xf32>
    %38 = arith.truncf %37 : vector<32x128xf32> to vector<32x128xbf16>
    %c3 = arith.constant 3 : index
    %c0_23 = arith.constant 0 : index
    %c0_24 = arith.constant 0 : index
    %39 = vector.load %arg1[%c3, %c0_23, %c0_24] : memref<16x64x32xbf16, #tpu.memory_space<vmem>>, vector<1x64x32xbf16>
    %40 = vector.shape_cast %39 : vector<1x64x32xbf16> to vector<64x32xbf16>
    %cst_25 = arith.constant dense<0.000000e+00> : vector<64x128xf32>
    %41 = tpu.matmul %40, %38, %cst_25 {dimension_numbers = #tpu.dot_dimension_numbers<[1], [0], [0], [1], [0, 0, 1, 1], [], []>} : vector<64x32xbf16>, vector<32x128xbf16>, vector<64x128xf32> -> vector<64x128xf32>
    %42 = arith.addf %36, %41 : vector<64x128xf32>
    %43 = vector.extract_strided_slice %30 {offsets = [0, 9], sizes = [32, 128], strides = [1, 1]} : vector<32x256xf32> to vector<32x128xf32>
    %44 = arith.truncf %43 : vector<32x128xf32> to vector<32x128xbf16>
    %c9 = arith.constant 9 : index
    %c0_26 = arith.constant 0 : index
    %c0_27 = arith.constant 0 : index
    %45 = vector.load %arg1[%c9, %c0_26, %c0_27] : memref<16x64x32xbf16, #tpu.memory_space<vmem>>, vector<1x64x32xbf16>
    %46 = vector.shape_cast %45 : vector<1x64x32xbf16> to vector<64x32xbf16>
    %cst_28 = arith.constant dense<0.000000e+00> : vector<64x128xf32>
    %47 = tpu.matmul %46, %44, %cst_28 {dimension_numbers = #tpu.dot_dimension_numbers<[1], [0], [0], [1], [0, 0, 1, 1], [], []>} : vector<64x32xbf16>, vector<32x128xbf16>, vector<64x128xf32> -> vector<64x128xf32>
    %48 = arith.addf %42, %47 : vector<64x128xf32>
    %49 = vector.extract_strided_slice %30 {offsets = [0, 10], sizes = [32, 128], strides = [1, 1]} : vector<32x256xf32> to vector<32x128xf32>
    %50 = arith.truncf %49 : vector<32x128xf32> to vector<32x128xbf16>
    %c11 = arith.constant 11 : index
    %c0_29 = arith.constant 0 : index
    %c0_30 = arith.constant 0 : index
    %51 = vector.load %arg1[%c11, %c0_29, %c0_30] : memref<16x64x32xbf16, #tpu.memory_space<vmem>>, vector<1x64x32xbf16>
    %52 = vector.shape_cast %51 : vector<1x64x32xbf16> to vector<64x32xbf16>
    %cst_31 = arith.constant dense<0.000000e+00> : vector<64x128xf32>
    %53 = tpu.matmul %52, %50, %cst_31 {dimension_numbers = #tpu.dot_dimension_numbers<[1], [0], [0], [1], [0, 0, 1, 1], [], []>} : vector<64x32xbf16>, vector<32x128xbf16>, vector<64x128xf32> -> vector<64x128xf32>
    %54 = arith.addf %48, %53 : vector<64x128xf32>
    %c0_32 = arith.constant 0 : index
    %c2_33 = arith.constant 2 : index
    %c0_34 = arith.constant 0 : index
    %c0_35 = arith.constant 0 : index
    %55 = vector.load %arg2[%c0_32, %c2_33, %c0_34, %c0_35] : memref<1x4x32x256xbf16, #tpu.memory_space<vmem>>, vector<1x1x32x256xbf16>
    %56 = vector.shape_cast %55 : vector<1x1x32x256xbf16> to vector<32x256xbf16>
    %57 = arith.extf %56 : vector<32x256xbf16> to vector<32x256xf32>
    %58 = vector.extract_strided_slice %57 {offsets = [0, 0], sizes = [32, 128], strides = [1, 1]} : vector<32x256xf32> to vector<32x128xf32>
    %59 = arith.truncf %58 : vector<32x128xf32> to vector<32x128xbf16>
    %c4 = arith.constant 4 : index
    %c0_36 = arith.constant 0 : index
    %c0_37 = arith.constant 0 : index
    %60 = vector.load %arg1[%c4, %c0_36, %c0_37] : memref<16x64x32xbf16, #tpu.memory_space<vmem>>, vector<1x64x32xbf16>
    %61 = vector.shape_cast %60 : vector<1x64x32xbf16> to vector<64x32xbf16>
    %cst_38 = arith.constant dense<0.000000e+00> : vector<64x128xf32>
    %62 = tpu.matmul %61, %59, %cst_38 {dimension_numbers = #tpu.dot_dimension_numbers<[1], [0], [0], [1], [0, 0, 1, 1], [], []>} : vector<64x32xbf16>, vector<32x128xbf16>, vector<64x128xf32> -> vector<64x128xf32>
    %63 = arith.addf %54, %62 : vector<64x128xf32>
    %64 = vector.extract_strided_slice %57 {offsets = [0, 1], sizes = [32, 128], strides = [1, 1]} : vector<32x256xf32> to vector<32x128xf32>
    %65 = arith.truncf %64 : vector<32x128xf32> to vector<32x128xbf16>
    %c6 = arith.constant 6 : index
    %c0_39 = arith.constant 0 : index
    %c0_40 = arith.constant 0 : index
    %66 = vector.load %arg1[%c6, %c0_39, %c0_40] : memref<16x64x32xbf16, #tpu.memory_space<vmem>>, vector<1x64x32xbf16>
    %67 = vector.shape_cast %66 : vector<1x64x32xbf16> to vector<64x32xbf16>
    %cst_41 = arith.constant dense<0.000000e+00> : vector<64x128xf32>
    %68 = tpu.matmul %67, %65, %cst_41 {dimension_numbers = #tpu.dot_dimension_numbers<[1], [0], [0], [1], [0, 0, 1, 1], [], []>} : vector<64x32xbf16>, vector<32x128xbf16>, vector<64x128xf32> -> vector<64x128xf32>
    %69 = arith.addf %63, %68 : vector<64x128xf32>
    %70 = vector.extract_strided_slice %57 {offsets = [0, 9], sizes = [32, 128], strides = [1, 1]} : vector<32x256xf32> to vector<32x128xf32>
    %71 = arith.truncf %70 : vector<32x128xf32> to vector<32x128xbf16>
    %c12 = arith.constant 12 : index
    %c0_42 = arith.constant 0 : index
    %c0_43 = arith.constant 0 : index
    %72 = vector.load %arg1[%c12, %c0_42, %c0_43] : memref<16x64x32xbf16, #tpu.memory_space<vmem>>, vector<1x64x32xbf16>
    %73 = vector.shape_cast %72 : vector<1x64x32xbf16> to vector<64x32xbf16>
    %cst_44 = arith.constant dense<0.000000e+00> : vector<64x128xf32>
    %74 = tpu.matmul %73, %71, %cst_44 {dimension_numbers = #tpu.dot_dimension_numbers<[1], [0], [0], [1], [0, 0, 1, 1], [], []>} : vector<64x32xbf16>, vector<32x128xbf16>, vector<64x128xf32> -> vector<64x128xf32>
    %75 = arith.addf %69, %74 : vector<64x128xf32>
    %76 = vector.extract_strided_slice %57 {offsets = [0, 10], sizes = [32, 128], strides = [1, 1]} : vector<32x256xf32> to vector<32x128xf32>
    %77 = arith.truncf %76 : vector<32x128xf32> to vector<32x128xbf16>
    %c14 = arith.constant 14 : index
    %c0_45 = arith.constant 0 : index
    %c0_46 = arith.constant 0 : index
    %78 = vector.load %arg1[%c14, %c0_45, %c0_46] : memref<16x64x32xbf16, #tpu.memory_space<vmem>>, vector<1x64x32xbf16>
    %79 = vector.shape_cast %78 : vector<1x64x32xbf16> to vector<64x32xbf16>
    %cst_47 = arith.constant dense<0.000000e+00> : vector<64x128xf32>
    %80 = tpu.matmul %79, %77, %cst_47 {dimension_numbers = #tpu.dot_dimension_numbers<[1], [0], [0], [1], [0, 0, 1, 1], [], []>} : vector<64x32xbf16>, vector<32x128xbf16>, vector<64x128xf32> -> vector<64x128xf32>
    %81 = arith.addf %75, %80 : vector<64x128xf32>
    %c0_48 = arith.constant 0 : index
    %c3_49 = arith.constant 3 : index
    %c0_50 = arith.constant 0 : index
    %c0_51 = arith.constant 0 : index
    %82 = vector.load %arg2[%c0_48, %c3_49, %c0_50, %c0_51] : memref<1x4x32x256xbf16, #tpu.memory_space<vmem>>, vector<1x1x32x256xbf16>
    %83 = vector.shape_cast %82 : vector<1x1x32x256xbf16> to vector<32x256xbf16>
    %84 = arith.extf %83 : vector<32x256xbf16> to vector<32x256xf32>
    %85 = vector.extract_strided_slice %84 {offsets = [0, 0], sizes = [32, 128], strides = [1, 1]} : vector<32x256xf32> to vector<32x128xf32>
    %86 = arith.truncf %85 : vector<32x128xf32> to vector<32x128xbf16>
    %c5 = arith.constant 5 : index
    %c0_52 = arith.constant 0 : index
    %c0_53 = arith.constant 0 : index
    %87 = vector.load %arg1[%c5, %c0_52, %c0_53] : memref<16x64x32xbf16, #tpu.memory_space<vmem>>, vector<1x64x32xbf16>
    %88 = vector.shape_cast %87 : vector<1x64x32xbf16> to vector<64x32xbf16>
    %cst_54 = arith.constant dense<0.000000e+00> : vector<64x128xf32>
    %89 = tpu.matmul %88, %86, %cst_54 {dimension_numbers = #tpu.dot_dimension_numbers<[1], [0], [0], [1], [0, 0, 1, 1], [], []>} : vector<64x32xbf16>, vector<32x128xbf16>, vector<64x128xf32> -> vector<64x128xf32>
    %90 = arith.addf %81, %89 : vector<64x128xf32>
    %91 = vector.extract_strided_slice %84 {offsets = [0, 1], sizes = [32, 128], strides = [1, 1]} : vector<32x256xf32> to vector<32x128xf32>
    %92 = arith.truncf %91 : vector<32x128xf32> to vector<32x128xbf16>
    %c7 = arith.constant 7 : index
    %c0_55 = arith.constant 0 : index
    %c0_56 = arith.constant 0 : index
    %93 = vector.load %arg1[%c7, %c0_55, %c0_56] : memref<16x64x32xbf16, #tpu.memory_space<vmem>>, vector<1x64x32xbf16>
    %94 = vector.shape_cast %93 : vector<1x64x32xbf16> to vector<64x32xbf16>
    %cst_57 = arith.constant dense<0.000000e+00> : vector<64x128xf32>
    %95 = tpu.matmul %94, %92, %cst_57 {dimension_numbers = #tpu.dot_dimension_numbers<[1], [0], [0], [1], [0, 0, 1, 1], [], []>} : vector<64x32xbf16>, vector<32x128xbf16>, vector<64x128xf32> -> vector<64x128xf32>
    %96 = arith.addf %90, %95 : vector<64x128xf32>
    %97 = vector.extract_strided_slice %84 {offsets = [0, 9], sizes = [32, 128], strides = [1, 1]} : vector<32x256xf32> to vector<32x128xf32>
    %98 = arith.truncf %97 : vector<32x128xf32> to vector<32x128xbf16>
    %c13 = arith.constant 13 : index
    %c0_58 = arith.constant 0 : index
    %c0_59 = arith.constant 0 : index
    %99 = vector.load %arg1[%c13, %c0_58, %c0_59] : memref<16x64x32xbf16, #tpu.memory_space<vmem>>, vector<1x64x32xbf16>
    %100 = vector.shape_cast %99 : vector<1x64x32xbf16> to vector<64x32xbf16>
    %cst_60 = arith.constant dense<0.000000e+00> : vector<64x128xf32>
    %101 = tpu.matmul %100, %98, %cst_60 {dimension_numbers = #tpu.dot_dimension_numbers<[1], [0], [0], [1], [0, 0, 1, 1], [], []>} : vector<64x32xbf16>, vector<32x128xbf16>, vector<64x128xf32> -> vector<64x128xf32>
    %102 = arith.addf %96, %101 : vector<64x128xf32>
    %103 = vector.extract_strided_slice %84 {offsets = [0, 10], sizes = [32, 128], strides = [1, 1]} : vector<32x256xf32> to vector<32x128xf32>
    %104 = arith.truncf %103 : vector<32x128xf32> to vector<32x128xbf16>
    %c15 = arith.constant 15 : index
    %c0_61 = arith.constant 0 : index
    %c0_62 = arith.constant 0 : index
    %105 = vector.load %arg1[%c15, %c0_61, %c0_62] : memref<16x64x32xbf16, #tpu.memory_space<vmem>>, vector<1x64x32xbf16>
    %106 = vector.shape_cast %105 : vector<1x64x32xbf16> to vector<64x32xbf16>
    %cst_63 = arith.constant dense<0.000000e+00> : vector<64x128xf32>
    %107 = tpu.matmul %106, %104, %cst_63 {dimension_numbers = #tpu.dot_dimension_numbers<[1], [0], [0], [1], [0, 0, 1, 1], [], []>} : vector<64x32xbf16>, vector<32x128xbf16>, vector<64x128xf32> -> vector<64x128xf32>
    %108 = arith.addf %102, %107 : vector<64x128xf32>
    %c0_64 = arith.constant 0 : index
    %c0_65 = arith.constant 0 : index
    %109 = vector.load %arg3[%c0_64, %c0_65] : memref<64x1xf32, #tpu.memory_space<vmem>>, vector<64x1xf32>
    %110 = vector.broadcast %109 : vector<64x1xf32> to vector<64x128xf32>
    %111 = arith.addf %108, %110 : vector<64x128xf32>
    %cst_66 = arith.constant 1.000000e-01 : f32
    %112 = vector.broadcast %cst_66 : f32 to vector<64x128xf32>
    %113 = arith.mulf %112, %111 : vector<64x128xf32>
    %114 = arith.maximumf %111, %113 : vector<64x128xf32>
    %115 = arith.truncf %114 : vector<64x128xf32> to vector<64x128xbf16>
    %c0_67 = arith.constant 0 : index
    %c0_68 = arith.constant 0 : index
    %c0_69 = arith.constant 0 : index
    %116 = vector.load %arg4[%c0_67, %c0_68, %c0_69] : memref<1x64x128xbf16, #tpu.memory_space<vmem>>, vector<1x64x128xbf16>
    %117 = vector.shape_cast %116 : vector<1x64x128xbf16> to vector<64x128xbf16>
    %118 = vector.shape_cast %115 : vector<64x128xbf16> to vector<1x64x128xbf16>
    tpu.vector_store %arg4[%c0_67, %c0_68, %c0_69], %118 {strides = array<i32>} : memref<1x64x128xbf16, #tpu.memory_space<vmem>>, vector<1x64x128xbf16>,
    return
  }
  func.func @transform_0(%arg0: i32) -> (i32, i32, i32) {
    %c0_i32 = arith.constant 0 : i32
    %c0_i32_0 = arith.constant 0 : i32
    %c0_i32_1 = arith.constant 0 : i32
    %c0_i32_2 = arith.constant 0 : i32
    return %c0_i32, %c0_i32_0, %c0_i32_1 : i32, i32, i32
  }
  func.func @transform_1(%arg0: i32) -> (i32, i32, i32, i32) {
    %c0_i32 = arith.constant 0 : i32
    %c0_i32_0 = arith.constant 0 : i32
    %c0_i32_1 = arith.constant 0 : i32
    %c0_i32_2 = arith.constant 0 : i32
    return %arg0, %c0_i32, %c0_i32_0, %c0_i32_1 : i32, i32, i32, i32
  }
  func.func @transform_2(%arg0: i32) -> (i32, i32) {
    %c0_i32 = arith.constant 0 : i32
    %c0_i32_0 = arith.constant 0 : i32
    %c0_i32_1 = arith.constant 0 : i32
    return %c0_i32, %c0_i32_0 : i32, i32
  }
  func.func @transform_3(%arg0: i32) -> (i32, i32, i32) {
    %c0_i32 = arith.constant 0 : i32
    %c0_i32_0 = arith.constant 0 : i32
    %c0_i32_1 = arith.constant 0 : i32
    return %arg0, %c0_i32, %c0_i32_0 : i32, i32, i32
  }
}

module attributes {stable_mosaic.version = 11 : i64} {
  func.func @_conv4x4s2_lrelu_kernel(%arg0: i32, %arg1: memref<16x128x64xbf16, #tpu.memory_space<vmem>>, %arg2: memref<1x4x64x256xbf16, #tpu.memory_space<vmem>>, %arg3: memref<128x1xf32, #tpu.memory_space<vmem>>, %arg4: memref<1x128x128xbf16, #tpu.memory_space<vmem>>) attributes {dimension_semantics = [#tpu.dimension_semantics<parallel>], iteration_bounds = array<i64: 2>, scalar_prefetch = 0 : i64, scratch_operands = 0 : i64, tpu.core_type = #tpu.core_type<tc>, window_params = [{pipeline_mode = #tpu.pipeline_mode<synchronous>, transform_indices = @transform_0, window_bounds = array<i64: 16, 128, 64>}, {transform_indices = @transform_1, window_bounds = array<i64: 1, 4, 64, 256>}, {pipeline_mode = #tpu.pipeline_mode<synchronous>, transform_indices = @transform_2, window_bounds = array<i64: 128, 1>}, {transform_indices = @transform_3, window_bounds = array<i64: 1, 128, 128>}]} {
    %cst = arith.constant 0.000000e+00 : f32
    %0 = vector.broadcast %cst : f32 to vector<128x128xf32>
    %c0 = arith.constant 0 : index
    %c0_0 = arith.constant 0 : index
    %c0_1 = arith.constant 0 : index
    %c0_2 = arith.constant 0 : index
    %1 = vector.load %arg2[%c0, %c0_0, %c0_1, %c0_2] : memref<1x4x64x256xbf16, #tpu.memory_space<vmem>>, vector<1x1x64x256xbf16>
    %2 = vector.shape_cast %1 : vector<1x1x64x256xbf16> to vector<64x256xbf16>
    %3 = arith.extf %2 : vector<64x256xbf16> to vector<64x256xf32>
    %4 = vector.extract_strided_slice %3 {offsets = [0, 0], sizes = [64, 128], strides = [1, 1]} : vector<64x256xf32> to vector<64x128xf32>
    %5 = arith.truncf %4 : vector<64x128xf32> to vector<64x128xbf16>
    %c0_3 = arith.constant 0 : index
    %c0_4 = arith.constant 0 : index
    %c0_5 = arith.constant 0 : index
    %6 = vector.load %arg1[%c0_3, %c0_4, %c0_5] : memref<16x128x64xbf16, #tpu.memory_space<vmem>>, vector<1x128x64xbf16>
    %7 = vector.shape_cast %6 : vector<1x128x64xbf16> to vector<128x64xbf16>
    %cst_6 = arith.constant dense<0.000000e+00> : vector<128x128xf32>
    %8 = tpu.matmul %7, %5, %cst_6 {dimension_numbers = #tpu.dot_dimension_numbers<[1], [0], [0], [1], [0, 0, 1, 1], [], []>} : vector<128x64xbf16>, vector<64x128xbf16>, vector<128x128xf32> -> vector<128x128xf32>
    %9 = arith.addf %0, %8 : vector<128x128xf32>
    %10 = vector.extract_strided_slice %3 {offsets = [0, 1], sizes = [64, 128], strides = [1, 1]} : vector<64x256xf32> to vector<64x128xf32>
    %11 = arith.truncf %10 : vector<64x128xf32> to vector<64x128xbf16>
    %c2 = arith.constant 2 : index
    %c0_7 = arith.constant 0 : index
    %c0_8 = arith.constant 0 : index
    %12 = vector.load %arg1[%c2, %c0_7, %c0_8] : memref<16x128x64xbf16, #tpu.memory_space<vmem>>, vector<1x128x64xbf16>
    %13 = vector.shape_cast %12 : vector<1x128x64xbf16> to vector<128x64xbf16>
    %cst_9 = arith.constant dense<0.000000e+00> : vector<128x128xf32>
    %14 = tpu.matmul %13, %11, %cst_9 {dimension_numbers = #tpu.dot_dimension_numbers<[1], [0], [0], [1], [0, 0, 1, 1], [], []>} : vector<128x64xbf16>, vector<64x128xbf16>, vector<128x128xf32> -> vector<128x128xf32>
    %15 = arith.addf %9, %14 : vector<128x128xf32>
    %16 = vector.extract_strided_slice %3 {offsets = [0, 5], sizes = [64, 128], strides = [1, 1]} : vector<64x256xf32> to vector<64x128xf32>
    %17 = arith.truncf %16 : vector<64x128xf32> to vector<64x128xbf16>
    %c8 = arith.constant 8 : index
    %c0_10 = arith.constant 0 : index
    %c0_11 = arith.constant 0 : index
    %18 = vector.load %arg1[%c8, %c0_10, %c0_11] : memref<16x128x64xbf16, #tpu.memory_space<vmem>>, vector<1x128x64xbf16>
    %19 = vector.shape_cast %18 : vector<1x128x64xbf16> to vector<128x64xbf16>
    %cst_12 = arith.constant dense<0.000000e+00> : vector<128x128xf32>
    %20 = tpu.matmul %19, %17, %cst_12 {dimension_numbers = #tpu.dot_dimension_numbers<[1], [0], [0], [1], [0, 0, 1, 1], [], []>} : vector<128x64xbf16>, vector<64x128xbf16>, vector<128x128xf32> -> vector<128x128xf32>
    %21 = arith.addf %15, %20 : vector<128x128xf32>
    %22 = vector.extract_strided_slice %3 {offsets = [0, 6], sizes = [64, 128], strides = [1, 1]} : vector<64x256xf32> to vector<64x128xf32>
    %23 = arith.truncf %22 : vector<64x128xf32> to vector<64x128xbf16>
    %c10 = arith.constant 10 : index
    %c0_13 = arith.constant 0 : index
    %c0_14 = arith.constant 0 : index
    %24 = vector.load %arg1[%c10, %c0_13, %c0_14] : memref<16x128x64xbf16, #tpu.memory_space<vmem>>, vector<1x128x64xbf16>
    %25 = vector.shape_cast %24 : vector<1x128x64xbf16> to vector<128x64xbf16>
    %cst_15 = arith.constant dense<0.000000e+00> : vector<128x128xf32>
    %26 = tpu.matmul %25, %23, %cst_15 {dimension_numbers = #tpu.dot_dimension_numbers<[1], [0], [0], [1], [0, 0, 1, 1], [], []>} : vector<128x64xbf16>, vector<64x128xbf16>, vector<128x128xf32> -> vector<128x128xf32>
    %27 = arith.addf %21, %26 : vector<128x128xf32>
    %c0_16 = arith.constant 0 : index
    %c1 = arith.constant 1 : index
    %c0_17 = arith.constant 0 : index
    %c0_18 = arith.constant 0 : index
    %28 = vector.load %arg2[%c0_16, %c1, %c0_17, %c0_18] : memref<1x4x64x256xbf16, #tpu.memory_space<vmem>>, vector<1x1x64x256xbf16>
    %29 = vector.shape_cast %28 : vector<1x1x64x256xbf16> to vector<64x256xbf16>
    %30 = arith.extf %29 : vector<64x256xbf16> to vector<64x256xf32>
    %31 = vector.extract_strided_slice %30 {offsets = [0, 0], sizes = [64, 128], strides = [1, 1]} : vector<64x256xf32> to vector<64x128xf32>
    %32 = arith.truncf %31 : vector<64x128xf32> to vector<64x128xbf16>
    %c1_19 = arith.constant 1 : index
    %c0_20 = arith.constant 0 : index
    %c0_21 = arith.constant 0 : index
    %33 = vector.load %arg1[%c1_19, %c0_20, %c0_21] : memref<16x128x64xbf16, #tpu.memory_space<vmem>>, vector<1x128x64xbf16>
    %34 = vector.shape_cast %33 : vector<1x128x64xbf16> to vector<128x64xbf16>
    %cst_22 = arith.constant dense<0.000000e+00> : vector<128x128xf32>
    %35 = tpu.matmul %34, %32, %cst_22 {dimension_numbers = #tpu.dot_dimension_numbers<[1], [0], [0], [1], [0, 0, 1, 1], [], []>} : vector<128x64xbf16>, vector<64x128xbf16>, vector<128x128xf32> -> vector<128x128xf32>
    %36 = arith.addf %27, %35 : vector<128x128xf32>
    %37 = vector.extract_strided_slice %30 {offsets = [0, 1], sizes = [64, 128], strides = [1, 1]} : vector<64x256xf32> to vector<64x128xf32>
    %38 = arith.truncf %37 : vector<64x128xf32> to vector<64x128xbf16>
    %c3 = arith.constant 3 : index
    %c0_23 = arith.constant 0 : index
    %c0_24 = arith.constant 0 : index
    %39 = vector.load %arg1[%c3, %c0_23, %c0_24] : memref<16x128x64xbf16, #tpu.memory_space<vmem>>, vector<1x128x64xbf16>
    %40 = vector.shape_cast %39 : vector<1x128x64xbf16> to vector<128x64xbf16>
    %cst_25 = arith.constant dense<0.000000e+00> : vector<128x128xf32>
    %41 = tpu.matmul %40, %38, %cst_25 {dimension_numbers = #tpu.dot_dimension_numbers<[1], [0], [0], [1], [0, 0, 1, 1], [], []>} : vector<128x64xbf16>, vector<64x128xbf16>, vector<128x128xf32> -> vector<128x128xf32>
    %42 = arith.addf %36, %41 : vector<128x128xf32>
    %43 = vector.extract_strided_slice %30 {offsets = [0, 5], sizes = [64, 128], strides = [1, 1]} : vector<64x256xf32> to vector<64x128xf32>
    %44 = arith.truncf %43 : vector<64x128xf32> to vector<64x128xbf16>
    %c9 = arith.constant 9 : index
    %c0_26 = arith.constant 0 : index
    %c0_27 = arith.constant 0 : index
    %45 = vector.load %arg1[%c9, %c0_26, %c0_27] : memref<16x128x64xbf16, #tpu.memory_space<vmem>>, vector<1x128x64xbf16>
    %46 = vector.shape_cast %45 : vector<1x128x64xbf16> to vector<128x64xbf16>
    %cst_28 = arith.constant dense<0.000000e+00> : vector<128x128xf32>
    %47 = tpu.matmul %46, %44, %cst_28 {dimension_numbers = #tpu.dot_dimension_numbers<[1], [0], [0], [1], [0, 0, 1, 1], [], []>} : vector<128x64xbf16>, vector<64x128xbf16>, vector<128x128xf32> -> vector<128x128xf32>
    %48 = arith.addf %42, %47 : vector<128x128xf32>
    %49 = vector.extract_strided_slice %30 {offsets = [0, 6], sizes = [64, 128], strides = [1, 1]} : vector<64x256xf32> to vector<64x128xf32>
    %50 = arith.truncf %49 : vector<64x128xf32> to vector<64x128xbf16>
    %c11 = arith.constant 11 : index
    %c0_29 = arith.constant 0 : index
    %c0_30 = arith.constant 0 : index
    %51 = vector.load %arg1[%c11, %c0_29, %c0_30] : memref<16x128x64xbf16, #tpu.memory_space<vmem>>, vector<1x128x64xbf16>
    %52 = vector.shape_cast %51 : vector<1x128x64xbf16> to vector<128x64xbf16>
    %cst_31 = arith.constant dense<0.000000e+00> : vector<128x128xf32>
    %53 = tpu.matmul %52, %50, %cst_31 {dimension_numbers = #tpu.dot_dimension_numbers<[1], [0], [0], [1], [0, 0, 1, 1], [], []>} : vector<128x64xbf16>, vector<64x128xbf16>, vector<128x128xf32> -> vector<128x128xf32>
    %54 = arith.addf %48, %53 : vector<128x128xf32>
    %c0_32 = arith.constant 0 : index
    %c2_33 = arith.constant 2 : index
    %c0_34 = arith.constant 0 : index
    %c0_35 = arith.constant 0 : index
    %55 = vector.load %arg2[%c0_32, %c2_33, %c0_34, %c0_35] : memref<1x4x64x256xbf16, #tpu.memory_space<vmem>>, vector<1x1x64x256xbf16>
    %56 = vector.shape_cast %55 : vector<1x1x64x256xbf16> to vector<64x256xbf16>
    %57 = arith.extf %56 : vector<64x256xbf16> to vector<64x256xf32>
    %58 = vector.extract_strided_slice %57 {offsets = [0, 0], sizes = [64, 128], strides = [1, 1]} : vector<64x256xf32> to vector<64x128xf32>
    %59 = arith.truncf %58 : vector<64x128xf32> to vector<64x128xbf16>
    %c4 = arith.constant 4 : index
    %c0_36 = arith.constant 0 : index
    %c0_37 = arith.constant 0 : index
    %60 = vector.load %arg1[%c4, %c0_36, %c0_37] : memref<16x128x64xbf16, #tpu.memory_space<vmem>>, vector<1x128x64xbf16>
    %61 = vector.shape_cast %60 : vector<1x128x64xbf16> to vector<128x64xbf16>
    %cst_38 = arith.constant dense<0.000000e+00> : vector<128x128xf32>
    %62 = tpu.matmul %61, %59, %cst_38 {dimension_numbers = #tpu.dot_dimension_numbers<[1], [0], [0], [1], [0, 0, 1, 1], [], []>} : vector<128x64xbf16>, vector<64x128xbf16>, vector<128x128xf32> -> vector<128x128xf32>
    %63 = arith.addf %54, %62 : vector<128x128xf32>
    %64 = vector.extract_strided_slice %57 {offsets = [0, 1], sizes = [64, 128], strides = [1, 1]} : vector<64x256xf32> to vector<64x128xf32>
    %65 = arith.truncf %64 : vector<64x128xf32> to vector<64x128xbf16>
    %c6 = arith.constant 6 : index
    %c0_39 = arith.constant 0 : index
    %c0_40 = arith.constant 0 : index
    %66 = vector.load %arg1[%c6, %c0_39, %c0_40] : memref<16x128x64xbf16, #tpu.memory_space<vmem>>, vector<1x128x64xbf16>
    %67 = vector.shape_cast %66 : vector<1x128x64xbf16> to vector<128x64xbf16>
    %cst_41 = arith.constant dense<0.000000e+00> : vector<128x128xf32>
    %68 = tpu.matmul %67, %65, %cst_41 {dimension_numbers = #tpu.dot_dimension_numbers<[1], [0], [0], [1], [0, 0, 1, 1], [], []>} : vector<128x64xbf16>, vector<64x128xbf16>, vector<128x128xf32> -> vector<128x128xf32>
    %69 = arith.addf %63, %68 : vector<128x128xf32>
    %70 = vector.extract_strided_slice %57 {offsets = [0, 5], sizes = [64, 128], strides = [1, 1]} : vector<64x256xf32> to vector<64x128xf32>
    %71 = arith.truncf %70 : vector<64x128xf32> to vector<64x128xbf16>
    %c12 = arith.constant 12 : index
    %c0_42 = arith.constant 0 : index
    %c0_43 = arith.constant 0 : index
    %72 = vector.load %arg1[%c12, %c0_42, %c0_43] : memref<16x128x64xbf16, #tpu.memory_space<vmem>>, vector<1x128x64xbf16>
    %73 = vector.shape_cast %72 : vector<1x128x64xbf16> to vector<128x64xbf16>
    %cst_44 = arith.constant dense<0.000000e+00> : vector<128x128xf32>
    %74 = tpu.matmul %73, %71, %cst_44 {dimension_numbers = #tpu.dot_dimension_numbers<[1], [0], [0], [1], [0, 0, 1, 1], [], []>} : vector<128x64xbf16>, vector<64x128xbf16>, vector<128x128xf32> -> vector<128x128xf32>
    %75 = arith.addf %69, %74 : vector<128x128xf32>
    %76 = vector.extract_strided_slice %57 {offsets = [0, 6], sizes = [64, 128], strides = [1, 1]} : vector<64x256xf32> to vector<64x128xf32>
    %77 = arith.truncf %76 : vector<64x128xf32> to vector<64x128xbf16>
    %c14 = arith.constant 14 : index
    %c0_45 = arith.constant 0 : index
    %c0_46 = arith.constant 0 : index
    %78 = vector.load %arg1[%c14, %c0_45, %c0_46] : memref<16x128x64xbf16, #tpu.memory_space<vmem>>, vector<1x128x64xbf16>
    %79 = vector.shape_cast %78 : vector<1x128x64xbf16> to vector<128x64xbf16>
    %cst_47 = arith.constant dense<0.000000e+00> : vector<128x128xf32>
    %80 = tpu.matmul %79, %77, %cst_47 {dimension_numbers = #tpu.dot_dimension_numbers<[1], [0], [0], [1], [0, 0, 1, 1], [], []>} : vector<128x64xbf16>, vector<64x128xbf16>, vector<128x128xf32> -> vector<128x128xf32>
    %81 = arith.addf %75, %80 : vector<128x128xf32>
    %c0_48 = arith.constant 0 : index
    %c3_49 = arith.constant 3 : index
    %c0_50 = arith.constant 0 : index
    %c0_51 = arith.constant 0 : index
    %82 = vector.load %arg2[%c0_48, %c3_49, %c0_50, %c0_51] : memref<1x4x64x256xbf16, #tpu.memory_space<vmem>>, vector<1x1x64x256xbf16>
    %83 = vector.shape_cast %82 : vector<1x1x64x256xbf16> to vector<64x256xbf16>
    %84 = arith.extf %83 : vector<64x256xbf16> to vector<64x256xf32>
    %85 = vector.extract_strided_slice %84 {offsets = [0, 0], sizes = [64, 128], strides = [1, 1]} : vector<64x256xf32> to vector<64x128xf32>
    %86 = arith.truncf %85 : vector<64x128xf32> to vector<64x128xbf16>
    %c5 = arith.constant 5 : index
    %c0_52 = arith.constant 0 : index
    %c0_53 = arith.constant 0 : index
    %87 = vector.load %arg1[%c5, %c0_52, %c0_53] : memref<16x128x64xbf16, #tpu.memory_space<vmem>>, vector<1x128x64xbf16>
    %88 = vector.shape_cast %87 : vector<1x128x64xbf16> to vector<128x64xbf16>
    %cst_54 = arith.constant dense<0.000000e+00> : vector<128x128xf32>
    %89 = tpu.matmul %88, %86, %cst_54 {dimension_numbers = #tpu.dot_dimension_numbers<[1], [0], [0], [1], [0, 0, 1, 1], [], []>} : vector<128x64xbf16>, vector<64x128xbf16>, vector<128x128xf32> -> vector<128x128xf32>
    %90 = arith.addf %81, %89 : vector<128x128xf32>
    %91 = vector.extract_strided_slice %84 {offsets = [0, 1], sizes = [64, 128], strides = [1, 1]} : vector<64x256xf32> to vector<64x128xf32>
    %92 = arith.truncf %91 : vector<64x128xf32> to vector<64x128xbf16>
    %c7 = arith.constant 7 : index
    %c0_55 = arith.constant 0 : index
    %c0_56 = arith.constant 0 : index
    %93 = vector.load %arg1[%c7, %c0_55, %c0_56] : memref<16x128x64xbf16, #tpu.memory_space<vmem>>, vector<1x128x64xbf16>
    %94 = vector.shape_cast %93 : vector<1x128x64xbf16> to vector<128x64xbf16>
    %cst_57 = arith.constant dense<0.000000e+00> : vector<128x128xf32>
    %95 = tpu.matmul %94, %92, %cst_57 {dimension_numbers = #tpu.dot_dimension_numbers<[1], [0], [0], [1], [0, 0, 1, 1], [], []>} : vector<128x64xbf16>, vector<64x128xbf16>, vector<128x128xf32> -> vector<128x128xf32>
    %96 = arith.addf %90, %95 : vector<128x128xf32>
    %97 = vector.extract_strided_slice %84 {offsets = [0, 5], sizes = [64, 128], strides = [1, 1]} : vector<64x256xf32> to vector<64x128xf32>
    %98 = arith.truncf %97 : vector<64x128xf32> to vector<64x128xbf16>
    %c13 = arith.constant 13 : index
    %c0_58 = arith.constant 0 : index
    %c0_59 = arith.constant 0 : index
    %99 = vector.load %arg1[%c13, %c0_58, %c0_59] : memref<16x128x64xbf16, #tpu.memory_space<vmem>>, vector<1x128x64xbf16>
    %100 = vector.shape_cast %99 : vector<1x128x64xbf16> to vector<128x64xbf16>
    %cst_60 = arith.constant dense<0.000000e+00> : vector<128x128xf32>
    %101 = tpu.matmul %100, %98, %cst_60 {dimension_numbers = #tpu.dot_dimension_numbers<[1], [0], [0], [1], [0, 0, 1, 1], [], []>} : vector<128x64xbf16>, vector<64x128xbf16>, vector<128x128xf32> -> vector<128x128xf32>
    %102 = arith.addf %96, %101 : vector<128x128xf32>
    %103 = vector.extract_strided_slice %84 {offsets = [0, 6], sizes = [64, 128], strides = [1, 1]} : vector<64x256xf32> to vector<64x128xf32>
    %104 = arith.truncf %103 : vector<64x128xf32> to vector<64x128xbf16>
    %c15 = arith.constant 15 : index
    %c0_61 = arith.constant 0 : index
    %c0_62 = arith.constant 0 : index
    %105 = vector.load %arg1[%c15, %c0_61, %c0_62] : memref<16x128x64xbf16, #tpu.memory_space<vmem>>, vector<1x128x64xbf16>
    %106 = vector.shape_cast %105 : vector<1x128x64xbf16> to vector<128x64xbf16>
    %cst_63 = arith.constant dense<0.000000e+00> : vector<128x128xf32>
    %107 = tpu.matmul %106, %104, %cst_63 {dimension_numbers = #tpu.dot_dimension_numbers<[1], [0], [0], [1], [0, 0, 1, 1], [], []>} : vector<128x64xbf16>, vector<64x128xbf16>, vector<128x128xf32> -> vector<128x128xf32>
    %108 = arith.addf %102, %107 : vector<128x128xf32>
    %c0_64 = arith.constant 0 : index
    %c0_65 = arith.constant 0 : index
    %109 = vector.load %arg3[%c0_64, %c0_65] : memref<128x1xf32, #tpu.memory_space<vmem>>, vector<128x1xf32>
    %110 = vector.broadcast %109 : vector<128x1xf32> to vector<128x128xf32>
    %111 = arith.addf %108, %110 : vector<128x128xf32>
    %cst_66 = arith.constant 1.000000e-01 : f32
    %112 = vector.broadcast %cst_66 : f32 to vector<128x128xf32>
    %113 = arith.mulf %112, %111 : vector<128x128xf32>
    %114 = arith.maximumf %111, %113 : vector<128x128xf32>
    %115 = arith.truncf %114 : vector<128x128xf32> to vector<128x128xbf16>
    %c0_67 = arith.constant 0 : index
    %c0_68 = arith.constant 0 : index
    %c0_69 = arith.constant 0 : index
    %116 = vector.load %arg4[%c0_67, %c0_68, %c0_69] : memref<1x128x128xbf16, #tpu.memory_space<vmem>>, vector<1x128x128xbf16>
    %117 = vector.shape_cast %116 : vector<1x128x128xbf16> to vector<128x128xbf16>
    %118 = vector.shape_cast %115 : vector<128x128xbf16> to vector<1x128x128xbf16>
    tpu.vector_store %arg4[%c0_67, %c0_68, %c0_69], %118 {strides = array<i32>} : memref<1x128x128xbf16, #tpu.memory_space<vmem>>, vector<1x128x128xbf16>,
    return
  }
  func.func @transform_0(%arg0: i32) -> (i32, i32, i32) {
    %c0_i32 = arith.constant 0 : i32
    %c0_i32_0 = arith.constant 0 : i32
    %c0_i32_1 = arith.constant 0 : i32
    %c0_i32_2 = arith.constant 0 : i32
    return %c0_i32, %c0_i32_0, %c0_i32_1 : i32, i32, i32
  }
  func.func @transform_1(%arg0: i32) -> (i32, i32, i32, i32) {
    %c0_i32 = arith.constant 0 : i32
    %c0_i32_0 = arith.constant 0 : i32
    %c0_i32_1 = arith.constant 0 : i32
    %c0_i32_2 = arith.constant 0 : i32
    return %arg0, %c0_i32, %c0_i32_0, %c0_i32_1 : i32, i32, i32, i32
  }
  func.func @transform_2(%arg0: i32) -> (i32, i32) {
    %c0_i32 = arith.constant 0 : i32
    %c0_i32_0 = arith.constant 0 : i32
    %c0_i32_1 = arith.constant 0 : i32
    return %c0_i32, %c0_i32_0 : i32, i32
  }
  func.func @transform_3(%arg0: i32) -> (i32, i32, i32) {
    %c0_i32 = arith.constant 0 : i32
    %c0_i32_0 = arith.constant 0 : i32
    %c0_i32_1 = arith.constant 0 : i32
    return %arg0, %c0_i32, %c0_i32_0 : i32, i32, i32
  }
}

</mosaic_0001>

<bundles_post_ra>
// kernel: discriminator_forward.4
= control target key start
LH: loop header
LB: loop body
LE: loop exit
PB: predicated region body
PF: predicated region fallthrough
CT: control target
= control target key end

     0   :  { %s5632_s12 = smov 0   ;;  %s7196_s0 = inlined_call_operand.vmem [shape: bf16[16,16,8], index: 0, kind: input, shape index: {}]   ;;  %s7197_s1 = inlined_call_operand.vmem [shape: bf16[2,4,8,1280], index: 1, kind: input, shape index: {}]   ;;  %s7198_s2 = inlined_call_operand.vmem [shape: f32[16,1], index: 2, kind: input, shape index: {}]   ;;  %s7199_s3 = inlined_call_operand.vmem [shape: bf16[2,16,1152], index: 3, kind: output, shape index: {}]  }
   0x1 LB: > { %s5122_s13 = sadd.s32 4294967295, %s5604_s12   ;;  %p5126_p0 = scmp.ge.s32.totalorder %s5604_s12, 1  ;;  %s5604_s12 = sphi %s5632_s12, %s13_s12  }
   0x2   : > { %p137_p1 = scmp.lt.s32.totalorder %s5604_s12, 3 }
   0x4   : > { %p138_p2 = pnand %p5126_p0, %p137_p1 }
   0x6   : > { %141 = sbr.rel (%p138_p2) target bundleno = 669 (0x29d), region = 32 }
   0xb   : > { %p161_p3 = scmp.lt.s32.totalorder %s5122_s13, 1  ;;  %v5606_v0 = vmov 0   ;;  %s5607_s18 = smov 127   ;;  %vm237_vm0 = vcmask 1039360   ;;  %vm251_vm1 = vcmask 1043456   ;;  %v5825_v42 = vld [vmem:[%s7196_s0 + $0x10] sm:$0xff]  }
   0xc   : > { %311 = vmatprep.mubr.bf16.mxu0 %v5606_v0  ;;  %354 = vmatprep.mubr.bf16.mxu1 %v5606_v0  ;;  %s5608_s19 = smov 95   ;;  %s5609_s20 = smov 94   ;;  %vm247_vm2 = vcmask 64512   ;;  %v5610_v62 = vmov 0.0   ;;  %vm5611_vm3 = vmmov 0   ;;  %vm768_vm4 = vcmask 777216  }
   0xd   : > { %s7229_s13 = smov (!%p161_p3, %s5122_s13), 1  ;;  %5540 = vset.pattern.permute.xlu0 %v5606_v0  ;;  %5541 = vset.pattern.permute.xlu1 %v5606_v0  ;;  %vm1067_vm5 = vcmask 769024  }
   0xe   : > { %s5524_s14 = smul.u32 160, %s7229_s13 }
   0xf   : > { %s5525_s5 = smul.u32 72, %s7229_s13 }
  0x10   : > { %s5648_s17 = scalar_lea.vmem %s7197_s1, %s5524_s14 }
  0x11   : > { %v173_v1 = vld [vmem:[%s5648_s17 + $0x8] sm:$0xff]  ;;  %v172_v2 = vld [vmem:[%s5648_s17] sm:$0xff]  ;;  %v174_v7 = vld [vmem:[%s5648_s17 + $0x10] sm:$0xff]  ;;  %s7165_s7 = scalar_lea.vmem %s7199_s3, %s5525_s5 }
  0x12   : > { %v5654_v3 = vcombine.low %v173_v1, %v173_v1  ;;  %v5656_v4 = vcombine.low %v172_v2, %v172_v2  ;;  %v5662_v5 = vcombine.high %v173_v1, %v173_v1  ;;  %v5664_v6 = vcombine.high %v172_v2, %v172_v2  ;;  %v175_v8 = vld [vmem:[%s5648_s17 + $0x18] sm:$0xff]  ;;  %v176_v13 = vld [vmem:[%s5648_s17 + $0x20] sm:$0xff]  ;;  %v5185_v16 = vld [vmem:[%s5648_s17 + $0x28] sm:$0xff] }
  0x13   : > { %v5672_v9 = vcombine.high %v174_v7, %v174_v7  ;;  %v5674_v10 = vcombine.low %v174_v7, %v174_v7  ;;  %v5680_v11 = vcombine.high %v175_v8, %v175_v8  ;;  %v5682_v12 = vcombine.low %v175_v8, %v175_v8  ;;  %v5186_v19 = vld [vmem:[%s5648_s17 + $0x30] sm:$0xff]  ;;  %v5187_v22 = vld [vmem:[%s5648_s17 + $0x38] sm:$0xff]  ;;  %v5188_v25 = vld [vmem:[%s5648_s17 + $0x40] sm:$0xff] }
  0x14   : > { %221 = vrot.lane.b32.xlu1 %v5654_v3, %s5607_s18  ;;  %217 = vrot.lane.b32.xlu0 %v5656_v4, %s5607_s18  ;;  %v5689_v14 = vcombine.low %v176_v13, %v176_v13  ;;  %v5138_v15 = vcombine.high %v176_v13, %v176_v13  ;;  %v5733_v17 = vcombine.low %v5185_v16, %v5185_v16  ;;  %v5189_v28 = vld [vmem:[%s5648_s17 + $0x48] sm:$0xff]  ;;  %v5248_v31 = vld [vmem:[%s5648_s17 + $0x50] sm:$0xff] }
  0x15   : > { %v5735_v18 = vcombine.high %v5185_v16, %v5185_v16  ;;  %v5742_v20 = vcombine.low %v5186_v19, %v5186_v19  ;;  %v5744_v21 = vcombine.high %v5186_v19, %v5186_v19  ;;  %v5751_v23 = vcombine.low %v5187_v22, %v5187_v22  ;;  %v5249_v40 = vld [vmem:[%s5648_s17 + $0x58] sm:$0xff]  ;;  %v5250_v49 = vld [vmem:[%s5648_s17 + $0x60] sm:$0xff]  ;;  %v5251_v58 = vld [vmem:[%s5648_s17 + $0x68] sm:$0xff] }
  0x16   : > { %v5753_v24 = vcombine.high %v5187_v22, %v5187_v22  ;;  %v5760_v26 = vcombine.low %v5188_v25, %v5188_v25  ;;  %v5762_v27 = vcombine.high %v5188_v25, %v5188_v25  ;;  %v5769_v29 = vcombine.low %v5189_v28, %v5189_v28 }
  0x17   : > { %v5211_v30 = vcombine.high %v5189_v28, %v5189_v28  ;;  %v5813_v34 = vcombine.low %v5248_v31, %v5248_v31  ;;  %v5815_v35 = vcombine.high %v5248_v31, %v5248_v31  ;;  %v5832_v46 = vcombine.low %v5249_v40, %v5249_v40 }
  0x18   : > { %223 = vrot.lane.b32.xlu1 %v5662_v5, %s5607_s18  ;;  %219 = vrot.lane.b32.xlu0 %v5664_v6, %s5607_s18  ;;  %v5834_v47 = vcombine.high %v5249_v40, %v5249_v40  ;;  %v5848_v54 = vcombine.low %v5250_v49, %v5250_v49  ;;  %v5851_v56 = vcombine.high %v5250_v49, %v5250_v49  ;;  %v501_v16 = vsel %vm251_vm1, %v5656_v4, 0 }
  0x19   : > { %v5867_v2 = vcombine.low %v5251_v58, %v5251_v58  ;;  %v5874_v13 = vcombine.high %v5251_v58, %v5251_v58 }
  0x1c   : > { %227 = vrot.lane.b32.xlu1 %v5672_v9, %s5607_s18  ;;  %225 = vrot.lane.b32.xlu0 %v5674_v10, %s5607_s18 }
  0x20   : > { %231 = vrot.lane.b32.xlu1 %v5680_v11, %s5607_s18  ;;  %229 = vrot.lane.b32.xlu0 %v5682_v12, %s5607_s18 }
  0x24   : > { %235 = vrot.lane.b32.xlu1 %v5138_v15, %s5607_s18  ;;  %233 = vrot.lane.b32.xlu0 %v5689_v14, %s5607_s18 }
  0x28   : > { %748 = vrot.lane.b32.xlu0 %v5656_v4, %s5608_s19  ;;  %750 = vrot.lane.b32.xlu1 %v5664_v6, %s5608_s19 }
  0x2c   : > { %752 = vrot.lane.b32.xlu0 %v5654_v3, %s5608_s19  ;;  %754 = vrot.lane.b32.xlu1 %v5662_v5, %s5608_s19 }
  0x30   : > { %756 = vrot.lane.b32.xlu0 %v5674_v10, %s5608_s19  ;;  %758 = vrot.lane.b32.xlu1 %v5672_v9, %s5608_s19 }
  0x34   : > { %760 = vrot.lane.b32.xlu0 %v5682_v12, %s5608_s19  ;;  %762 = vrot.lane.b32.xlu1 %v5680_v11, %s5608_s19 }
  0x38   : > { %764 = vrot.lane.b32.xlu0 %v5689_v14, %s5608_s19  ;;  %766 = vrot.lane.b32.xlu1 %v5138_v15, %s5608_s19 }
  0x3c   : > { %1047 = vrot.lane.b32.xlu0 %v5656_v4, %s5609_s20  ;;  %1049 = vrot.lane.b32.xlu1 %v5664_v6, %s5609_s20  ;;  %v507_v4 = vsel %vm251_vm1, %v5654_v3, 0 }
  0x40   : > { %1051 = vrot.lane.b32.xlu0 %v5654_v3, %s5609_s20  ;;  %1053 = vrot.lane.b32.xlu1 %v5662_v5, %s5609_s20  ;;  %v513_v3 = vsel %vm251_vm1, %v5674_v10, 0 }
  0x44   : > { %1055 = vrot.lane.b32.xlu0 %v5674_v10, %s5609_s20  ;;  %1057 = vrot.lane.b32.xlu1 %v5672_v9, %s5609_s20  ;;  %v519_v10 = vsel %vm251_vm1, %v5682_v12, 0 }
  0x48   : > { %1059 = vrot.lane.b32.xlu0 %v5682_v12, %s5609_s20  ;;  %1061 = vrot.lane.b32.xlu1 %v5680_v11, %s5609_s20  ;;  %v525_v12 = vsel %vm251_vm1, %v5689_v14, 0 }
  0x4c   : > { %1063 = vrot.lane.b32.xlu0 %v5689_v14, %s5609_s20  ;;  %1065 = vrot.lane.b32.xlu1 %v5138_v15, %s5609_s20  ;;  %v5252_v15 = vld [vmem:[%s5648_s17 + $0x70] sm:$0xff] }
  0x4d   : > { %v5887_v25 = vcombine.low %v5252_v15, %v5252_v15 }
  0x50   : > { %1651 = vrot.lane.b32.xlu0 %v5733_v17, %s5607_s18  ;;  %1653 = vrot.lane.b32.xlu1 %v5735_v18, %s5607_s18 }
  0x54   : > { %1655 = vrot.lane.b32.xlu0 %v5742_v20, %s5607_s18  ;;  %1657 = vrot.lane.b32.xlu1 %v5744_v21, %s5607_s18 }
  0x58   : > { %1659 = vrot.lane.b32.xlu0 %v5751_v23, %s5607_s18  ;;  %1661 = vrot.lane.b32.xlu1 %v5753_v24, %s5607_s18 }
  0x5c   : > { %1663 = vrot.lane.b32.xlu0 %v5760_v26, %s5607_s18  ;;  %1665 = vrot.lane.b32.xlu1 %v5762_v27, %s5607_s18 }
  0x60   : > { %1667 = vrot.lane.b32.xlu0 %v5769_v29, %s5607_s18  ;;  %1669 = vrot.lane.b32.xlu1 %v5211_v30, %s5607_s18 }
  0x64   : > { %1949 = vrot.lane.b32.xlu0 %v5733_v17, %s5608_s19  ;;  %1951 = vrot.lane.b32.xlu1 %v5735_v18, %s5608_s19 }
  0x68   : > { %1953 = vrot.lane.b32.xlu0 %v5742_v20, %s5608_s19  ;;  %1955 = vrot.lane.b32.xlu1 %v5744_v21, %s5608_s19 }
  0x6c   : > { %1957 = vrot.lane.b32.xlu0 %v5751_v23, %s5608_s19  ;;  %1959 = vrot.lane.b32.xlu1 %v5753_v24, %s5608_s19 }
  0x70   : > { %1961 = vrot.lane.b32.xlu0 %v5760_v26, %s5608_s19  ;;  %1963 = vrot.lane.b32.xlu1 %v5762_v27, %s5608_s19 }
  0x74   : > { %1965 = vrot.lane.b32.xlu0 %v5769_v29, %s5608_s19  ;;  %1967 = vrot.lane.b32.xlu1 %v5211_v30, %s5608_s19 }
  0x78   : > { %2247 = vrot.lane.b32.xlu0 %v5733_v17, %s5609_s20  ;;  %2249 = vrot.lane.b32.xlu1 %v5735_v18, %s5609_s20 }
  0x7c   : > { %2251 = vrot.lane.b32.xlu0 %v5742_v20, %s5609_s20  ;;  %2253 = vrot.lane.b32.xlu1 %v5744_v21, %s5609_s20 }
  0x80   : > { %2255 = vrot.lane.b32.xlu0 %v5751_v23, %s5609_s20  ;;  %2257 = vrot.lane.b32.xlu1 %v5753_v24, %s5609_s20 }
  0x84   : > { %2259 = vrot.lane.b32.xlu0 %v5760_v26, %s5609_s20  ;;  %2261 = vrot.lane.b32.xlu1 %v5762_v27, %s5609_s20 }
  0x86   : > { %v222_v32 = vpop.permute.xlu1 %221  ;;  %v218_v33 = vpop.permute.xlu0 %217 }
  0x88   : > { %2263 = vrot.lane.b32.xlu0 %v5769_v29, %s5609_s20  ;;  %2265 = vrot.lane.b32.xlu1 %v5211_v30, %s5609_s20  ;;  %v5563_v30 = vld [vmem:[%s7196_s0] sm:$0xff]  }
  0x8a   : > { %v224_v36 = vpop.permute.xlu1 %223  ;;  %v220_v37 = vpop.permute.xlu0 %219 }
  0x8b   : > { %v239_v38 = vsel %vm237_vm0, %v220_v37, %v222_v32  ;;  %v238_v39 = vsel %vm237_vm0, %v218_v33, %v220_v37  ;;  %v240_v43 = vsel %vm237_vm0, %v222_v32, %v224_v36 }
  0x8c   : > { %5142 = vmatprep.subr.msk.bf16.mxu0 %vm251_vm1, %v239_v38  ;;  %v253_v41 = vsel %vm251_vm1, %v238_v39, 0  ;;  %2850 = vrot.lane.b32.xlu0 %v5813_v34, %s5607_s18  ;;  %v259_v50 = vsel %vm251_vm1, %v240_v43, 0 }
  0x8d   : > { %294 = vmatpush1.bf16.msra.mxu0 %v253_v41  ;;  %2852 = vrot.lane.b32.xlu1 %v5815_v35, %s5607_s18 }
  0x8e   : > { %v228_v44 = vpop.permute.xlu1 %227  ;;  %v226_v45 = vpop.permute.xlu0 %225 }
  0x8f   : > { %v241_v48 = vsel %vm237_vm0, %v224_v36, %v226_v45  ;;  %v242_v51 = vsel %vm237_vm0, %v226_v45, %v228_v44 }
  0x90   : > { %5143 = vmatmul.mubr.msk.bf16.vlgmr.msra.gmra.mxu0 %vm247_vm2, %v5825_v42  ;;  %5144 = vmatprep.subr.msk.bf16.mxu1 %vm251_vm1, %v241_v48  ;;  %v265_v57 = vsel %vm251_vm1, %v242_v51, 0  ;;  %v5564_v51 = vld [vmem:[%s7196_s0 + $0x40] sm:$0xff]  }
  0x91   : > { %337 = vmatpush1.bf16.msra.mxu1 %v259_v50  ;;  %397 = vmatprep.mubr.bf16.mxu0 %v5606_v0 }
  0x92   : > { %v232_v52 = vpop.permute.xlu1 %231  ;;  %v230_v53 = vpop.permute.xlu0 %229  ;;  %2854 = vrot.lane.b32.xlu0 %v5832_v46, %s5607_s18  ;;  %2856 = vrot.lane.b32.xlu1 %v5834_v47, %s5607_s18 }
  0x93   : > { %v243_v55 = vsel %vm237_vm0, %v228_v44, %v230_v53  ;;  %v244_v59 = vsel %vm237_vm0, %v230_v53, %v232_v52 }
  0x94   : > { %5145 = vmatmul.mubr.msk.bf16.vlgmr.msra.gmra.mxu1 %vm247_vm2, %v5825_v42  ;;  %5146 = vmatprep.subr.msk.bf16.mxu0 %vm251_vm1, %v243_v55  ;;  %v271_v7 = vsel %vm251_vm1, %v244_v59, 0 }
  0x95   : > { %380 = vmatpush1.bf16.msra.mxu0 %v265_v57  ;;  %440 = vmatprep.mubr.bf16.mxu1 %v5606_v0 }
  0x96   : > { %v236_v60 = vpop.permute.xlu1 %235  ;;  %v234_v61 = vpop.permute.xlu0 %233  ;;  %5428 = vmatprep.subr.bf16.mxu0 %v5610_v62  ;;  %2858 = vrot.lane.b32.xlu0 %v5848_v54, %s5607_s18 }
  0x97   : > { %v246_v63 = vsel %vm237_vm0, %v234_v61, %v236_v60  ;;  %v245_v1 = vsel %vm237_vm0, %v232_v52, %v234_v61  ;;  %2860 = vrot.lane.b32.xlu1 %v5851_v56, %s5607_s18 }
  0x98   : > { %5147 = vmatmul.mubr.msk.bf16.vlgmr.msra.gmra.mxu0 %vm247_vm2, %v5825_v42  ;;  %5148 = vmatprep.subr.msk.bf16.mxu1 %vm251_vm1, %v245_v1  ;;  %v277_v8 = vsel %vm251_vm1, %v246_v63, 0 }
  0x99   : > { %423 = vmatpush1.bf16.msra.mxu1 %v271_v7  ;;  %5429 = vmatpush3.bf16.msra.mxu0 %v277_v8 }
  0x9a   : > { %5430 = vmatprep.mubr.msk.bf16.mxu0 %vm5611_vm3, %v5610_v62  ;;  %5152 = vmatprep.subr.msk.bf16.mxu1 %vm251_vm1, %v5664_v6  ;;  %v749_v19 = vpop.permute.xlu0 %748  ;;  %v751_v22 = vpop.permute.xlu1 %750  ;;  %v5893_v6 = vcombine.high %v5252_v15, %v5252_v15 }
  0x9b   : > { %5154 = vmatprep.subr.msk.bf16.mxu0 %vm251_vm1, %v5662_v5  ;;  %2862 = vrot.lane.b32.xlu0 %v5867_v2, %s5607_s18  ;;  %v769_v38 = vsel %vm768_vm4, %v749_v19, %v751_v22 }
  0x9c   : > { %5149 = vmatmul.mubr.msk.bf16.vlgmr.msra.gmra.mxu1 %vm247_vm2, %v5825_v42  ;;  %2864 = vrot.lane.b32.xlu1 %v5874_v13, %s5607_s18  ;;  %v782_v14 = vsel %vm251_vm1, %v769_v38, 0 }
  0x9d   : > { %542 = vmatpush1.bf16.msra.mxu1 %v501_v16  ;;  %559 = vmatprep.mubr.bf16.mxu1 %v5606_v0 }
  0x9e   : > { %5156 = vmatprep.subr.msk.bf16.mxu1 %vm251_vm1, %v5672_v9  ;;  %v753_v5 = vpop.permute.xlu0 %752  ;;  %v755_v28 = vpop.permute.xlu1 %754 }
  0x9f   : > { %2866 = vrot.lane.b32.xlu0 %v5887_v25, %s5607_s18  ;;  %v770_v33 = vsel %vm768_vm4, %v751_v22, %v753_v5 }
  0xa0   : > { %5431 = vmatmul.mubr.msk.bf16.vlgmr.msra.gmra.mxu0 %vm247_vm2, %v5825_v42  ;;  %2868 = vrot.lane.b32.xlu1 %v5893_v6, %s5607_s18  ;;  %v771_v42 = vsel %vm768_vm4, %v753_v5, %v755_v28 }
  0xa1   : > { %585 = vmatpush1.bf16.msra.mxu0 %v507_v4  ;;  %602 = vmatprep.mubr.bf16.mxu0 %v5606_v0  ;;  %v788_v44 = vsel %vm251_vm1, %v771_v42, 0 }
  0xa2   : > { %5158 = vmatprep.subr.msk.bf16.mxu0 %vm251_vm1, %v5680_v11  ;;  %v757_v9 = vpop.permute.xlu0 %756  ;;  %v759_v31 = vpop.permute.xlu1 %758 }
  0xa3   : > { %3148 = vrot.lane.b32.xlu0 %v5813_v34, %s5608_s19  ;;  %v772_v39 = vsel %vm768_vm4, %v755_v28, %v757_v9  ;;  %v773_v49 = vsel %vm768_vm4, %v757_v9, %v759_v31 }
  0xa4   : > { %5153 = vmatmul.mubr.msk.bf16.vlgmr.msra.gmra.mxu1 %vm247_vm2, %v5563_v30  ;;  %3150 = vrot.lane.b32.xlu1 %v5815_v35, %s5608_s19  ;;  %v794_v52 = vsel %vm251_vm1, %v773_v49, 0 }
  0xa5   : > { %628 = vmatpush1.bf16.msra.mxu1 %v513_v3  ;;  %645 = vmatprep.mubr.bf16.mxu1 %v5606_v0 }
  0xa6   : > { %5434 = vmatprep.subr.bf16.mxu1 %v5610_v62  ;;  %v761_v11 = vpop.permute.xlu0 %760  ;;  %v763_v32 = vpop.permute.xlu1 %762 }
  0xa7   : > { %3152 = vrot.lane.b32.xlu0 %v5832_v46, %s5608_s19  ;;  %v774_v43 = vsel %vm768_vm4, %v759_v31, %v761_v11  ;;  %v775_v57 = vsel %vm768_vm4, %v761_v11, %v763_v32 }
  0xa8   : > { %5155 = vmatmul.mubr.msk.bf16.vlgmr.msra.gmra.mxu0 %vm247_vm2, %v5563_v30  ;;  %3154 = vrot.lane.b32.xlu1 %v5834_v47, %s5608_s19  ;;  %v800_v58 = vsel %vm251_vm1, %v775_v57, 0 }
  0xa9   : > { %671 = vmatpush1.bf16.msra.mxu0 %v519_v10  ;;  %688 = vmatprep.mubr.bf16.mxu0 %v5606_v0 }
  0xaa   : > { %5164 = vmatprep.subr.msk.bf16.mxu0 %vm251_vm1, %v770_v33  ;;  %v765_v36 = vpop.permute.xlu0 %764  ;;  %v767_v37 = vpop.permute.xlu1 %766  ;;  %v5570_v33 = vld [vmem:[%s7196_s0 + $0x50] sm:$0xff]  }
  0xab   : > { %3156 = vrot.lane.b32.xlu0 %v5848_v54, %s5608_s19  ;;  %v776_v50 = vsel %vm768_vm4, %v763_v32, %v765_v36  ;;  %v777_v61 = vsel %vm768_vm4, %v765_v36, %v767_v37  ;;  %v5312_v36 = vld [vmem:[%s5648_s17 + $0x80] sm:$0xff] }
  0xac   : > { %5157 = vmatmul.mubr.msk.bf16.vlgmr.msra.gmra.mxu1 %vm247_vm2, %v5563_v30  ;;  %3158 = vrot.lane.b32.xlu1 %v5851_v56, %s5608_s19  ;;  %v806_v1 = vsel %vm251_vm1, %v777_v61, 0 }
  0xad   : > { %5435 = vmatpush3.bf16.msra.mxu1 %v525_v12  ;;  %5436 = vmatprep.mubr.msk.bf16.mxu1 %vm5611_vm3, %v5610_v62 }
  0xae   : > { %5166 = vmatprep.subr.msk.bf16.mxu1 %vm251_vm1, %v772_v39  ;;  %v1048_v40 = vpop.permute.xlu0 %1047  ;;  %v1050_v41 = vpop.permute.xlu1 %1049 }
  0xaf   : > { %3160 = vrot.lane.b32.xlu0 %v5867_v2, %s5608_s19  ;;  %v1068_v15 = vsel %vm1067_vm5, %v1048_v40, %v1050_v41  ;;  %v6046_v40 = vcombine.high %v5312_v36, %v5312_v36 }
  0xb0   : > { %5159 = vmatmul.mubr.msk.bf16.vlgmr.msra.gmra.mxu0 %vm247_vm2, %v5563_v30  ;;  %3162 = vrot.lane.b32.xlu1 %v5874_v13, %s5608_s19  ;;  %v1081_v19 = vsel %vm251_vm1, %v1068_v15, 0 }
  0xb1   : > { %823 = vmatpush1.bf16.msra.mxu0 %v782_v14  ;;  %840 = vmatprep.mubr.bf16.mxu0 %v5606_v0 }
  0xb2   : > { %5168 = vmatprep.subr.msk.bf16.mxu0 %vm251_vm1, %v774_v43  ;;  %v1052_v45 = vpop.permute.xlu0 %1051  ;;  %v1054_v48 = vpop.permute.xlu1 %1053 }
  0xb3   : > { %3164 = vrot.lane.b32.xlu0 %v5887_v25, %s5608_s19  ;;  %v1069_v63 = vsel %vm1067_vm5, %v1050_v41, %v1052_v45  ;;  %v1070_v5 = vsel %vm1067_vm5, %v1052_v45, %v1054_v48  ;;  %v5313_v41 = vld [vmem:[%s5648_s17 + $0x88] sm:$0xff] }
  0xb4   : > { %5437 = vmatmul.mubr.msk.bf16.vlgmr.msra.gmra.mxu1 %vm247_vm2, %v5563_v30  ;;  %3166 = vrot.lane.b32.xlu1 %v5893_v6, %s5608_s19  ;;  %v5311_v30 = vld [vmem:[%s5648_s17 + $0x78] sm:$0xff]  ;;  %v1087_v3 = vsel %vm251_vm1, %v1070_v5, 0  ;;  %v6064_v49 = vcombine.high %v5313_v41, %v5313_v41 }
  0xb5   : > { %866 = vmatpush1.bf16.msra.mxu1 %v788_v44  ;;  %883 = vmatprep.mubr.bf16.mxu1 %v5606_v0  ;;  %v6020_v32 = vcombine.low %v5311_v30, %v5311_v30  ;;  %v6028_v12 = vcombine.high %v5311_v30, %v5311_v30 }
  0xb6   : > { %5170 = vmatprep.subr.msk.bf16.mxu1 %vm251_vm1, %v776_v50  ;;  %v1056_v53 = vpop.permute.xlu0 %1055  ;;  %v1058_v55 = vpop.permute.xlu1 %1057  ;;  %v5314_v50 = vld [vmem:[%s5648_s17 + $0x90] sm:$0xff] }
  0xb7   : > { %3446 = vrot.lane.b32.xlu0 %v5813_v34, %s5609_s20  ;;  %v1071_v16 = vsel %vm1067_vm5, %v1054_v48, %v1056_v53  ;;  %v1072_v10 = vsel %vm1067_vm5, %v1056_v53, %v1058_v55  ;;  %v6059_v48 = vcombine.low %v5313_v41, %v5313_v41  ;;  %v6082_v57 = vcombine.high %v5314_v50, %v5314_v50 }
  0xb8   : > { %5165 = vmatmul.mubr.msk.bf16.vlgmr.msra.gmra.mxu0 %vm247_vm2, %v5564_v51  ;;  %3448 = vrot.lane.b32.xlu1 %v5815_v35, %s5609_s20  ;;  %v1093_v37 = vsel %vm251_vm1, %v1072_v10, 0 }
  0xb9   : > { %909 = vmatpush1.bf16.msra.mxu0 %v794_v52  ;;  %926 = vmatprep.mubr.bf16.mxu0 %v5606_v0 }
  0xba   : > { %5440 = vmatprep.subr.bf16.mxu0 %v5610_v62  ;;  %v1060_v59 = vpop.permute.xlu0 %1059  ;;  %v1062_v60 = vpop.permute.xlu1 %1061 }
  0xbb   : > { %3450 = vrot.lane.b32.xlu0 %v5832_v46, %s5609_s20  ;;  %v1073_v28 = vsel %vm1067_vm5, %v1058_v55, %v1060_v59  ;;  %v1074_v14 = vsel %vm1067_vm5, %v1060_v59, %v1062_v60  ;;  %v6077_v55 = vcombine.low %v5314_v50, %v5314_v50 }
  0xbc   : > { %5167 = vmatmul.mubr.msk.bf16.vlgmr.msra.gmra.mxu1 %vm247_vm2, %v5564_v51  ;;  %3452 = vrot.lane.b32.xlu1 %v5834_v47, %s5609_s20  ;;  %v1099_v42 = vsel %vm251_vm1, %v1074_v14, 0 }
  0xbd   : > { %952 = vmatpush1.bf16.msra.mxu1 %v800_v58  ;;  %969 = vmatprep.mubr.bf16.mxu1 %v5606_v0  ;;  %v5315_v58 = vld [vmem:[%s5648_s17 + $0x98] sm:$0xff] }
  0xbe   : > { %5176 = vmatprep.subr.msk.bf16.mxu1 %vm251_vm1, %v1069_v63  ;;  %v1064_v7 = vpop.permute.xlu0 %1063  ;;  %v1066_v8 = vpop.permute.xlu1 %1065  ;;  %v6097_v61 = vcombine.low %v5315_v58, %v5315_v58  ;;  %v6102_v63 = vcombine.high %v5315_v58, %v5315_v58 }
  0xbf   : > { %3454 = vrot.lane.b32.xlu0 %v5848_v54, %s5609_s20  ;;  %v1075_v11 = vsel %vm1067_vm5, %v1062_v60, %v1064_v7  ;;  %v1076_v45 = vsel %vm1067_vm5, %v1064_v7, %v1066_v8  ;;  %v1393_v8 = vsel %vm251_vm1, %v5760_v26, 0  ;;  %v1399_v26 = vsel %vm251_vm1, %v5769_v29, 0 }
  0xc0   : > { %5169 = vmatmul.mubr.msk.bf16.vlgmr.msra.gmra.mxu0 %vm247_vm2, %v5564_v51  ;;  %3456 = vrot.lane.b32.xlu1 %v5851_v56, %s5609_s20 }
  0xc1   : > { %5441 = vmatpush3.bf16.msra.mxu0 %v806_v1  ;;  %5442 = vmatprep.mubr.msk.bf16.mxu0 %vm5611_vm3, %v5610_v62  ;;  %v5576_v1 = vld [vmem:[%s7196_s0 + $0x8] sm:$0xff]  }
  0xc2   : > { %5178 = vmatprep.subr.msk.bf16.mxu0 %vm251_vm1, %v1071_v16  ;;  %v5997_v22 = vpop.permute.xlu0 %1651  ;;  %v5999_v4 = vpop.permute.xlu1 %1653 }
  0xc3   : > { %3458 = vrot.lane.b32.xlu0 %v5867_v2, %s5609_s20 }
  0xc4   : > { %5171 = vmatmul.mubr.msk.bf16.vlgmr.msra.gmra.mxu1 %vm247_vm2, %v5564_v51  ;;  %3460 = vrot.lane.b32.xlu1 %v5874_v13, %s5609_s20 }
  0xc5   : > { %1122 = vmatpush1.bf16.msra.mxu1 %v1081_v19  ;;  %1139 = vmatprep.mubr.bf16.mxu1 %v5606_v0  ;;  %v1671_v19 = vsel %vm237_vm0, %v5997_v22, %v5999_v4 }
  0xc6   : > { %5180 = vmatprep.subr.msk.bf16.mxu1 %vm251_vm1, %v1073_v28  ;;  %v6012_v9 = vpop.permute.xlu0 %1655  ;;  %v6014_v31 = vpop.permute.xlu1 %1657  ;;  %v1684_v22 = vsel %vm251_vm1, %v1671_v19, 0 }
  0xc7   : > { %3462 = vrot.lane.b32.xlu0 %v5887_v25, %s5609_s20 }
  0xc8   : > { %5443 = vmatmul.mubr.msk.bf16.vlgmr.msra.gmra.mxu0 %vm247_vm2, %v5564_v51  ;;  %3464 = vrot.lane.b32.xlu1 %v5893_v6, %s5609_s20  ;;  %v6041_v6 = vcombine.low %v5312_v36, %v5312_v36  ;;  %v1105_v51 = vsel %vm251_vm1, %v1076_v45, 0 }
  0xc9   : > { %1165 = vmatpush1.bf16.msra.mxu0 %v1087_v3  ;;  %1182 = vmatprep.mubr.bf16.mxu0 %v5606_v0 }
  0xca   : > { %5182 = vmatprep.subr.msk.bf16.mxu0 %vm251_vm1, %v1075_v11  ;;  %v6034_v38 = vpop.permute.xlu0 %1659  ;;  %v6036_v39 = vpop.permute.xlu1 %1661  ;;  %v5577_v11 = vld [vmem:[%s7196_s0 + $0x18] sm:$0xff]  }
  0xcb   : > { %4049 = vrot.lane.b32.xlu0 %v6020_v32, %s5607_s18  ;;  %v1674_v5 = vsel %vm237_vm0, %v6014_v31, %v6034_v38 }
  0xcc   : > { %5177 = vmatmul.mubr.msk.bf16.vlgmr.msra.gmra.mxu1 %vm247_vm2, %v5570_v33  ;;  %4051 = vrot.lane.b32.xlu1 %v6028_v12, %s5607_s18 }
  0xcd   : > { %1208 = vmatpush1.bf16.msra.mxu1 %v1093_v37  ;;  %1225 = vmatprep.mubr.bf16.mxu1 %v5606_v0 }
  0xce   : > { %5446 = vmatprep.subr.bf16.mxu1 %v5610_v62  ;;  %v6052_v43 = vpop.permute.xlu0 %1663  ;;  %v6054_v44 = vpop.permute.xlu1 %1665 }
  0xcf   : > { %4053 = vrot.lane.b32.xlu0 %v6041_v6, %s5607_s18  ;;  %v1676_v28 = vsel %vm237_vm0, %v6036_v39, %v6052_v43  ;;  %v1677_v37 = vsel %vm237_vm0, %v6052_v43, %v6054_v44 }
  0xd0   : > { %5179 = vmatmul.mubr.msk.bf16.vlgmr.msra.gmra.mxu0 %vm247_vm2, %v5570_v33  ;;  %4055 = vrot.lane.b32.xlu1 %v6046_v40, %s5607_s18 }
  0xd1   : > { %1251 = vmatpush1.bf16.msra.mxu0 %v1099_v42  ;;  %1268 = vmatprep.mubr.bf16.mxu0 %v5606_v0 }
  0xd2   : > { %5202 = vmatprep.subr.msk.bf16.mxu0 %vm251_vm1, %v5735_v18  ;;  %v6071_v52 = vpop.permute.xlu0 %1667  ;;  %v6073_v53 = vpop.permute.xlu1 %1669  ;;  %v1375_v18 = vsel %vm251_vm1, %v5733_v17, 0  ;;  %v1381_v17 = vsel %vm251_vm1, %v5742_v20, 0 }
  0xd3   : > { %4057 = vrot.lane.b32.xlu0 %v6059_v48, %s5607_s18  ;;  %v1679_v14 = vsel %vm237_vm0, %v6071_v52, %v6073_v53 }
  0xd4   : > { %5181 = vmatmul.mubr.msk.bf16.vlgmr.msra.gmra.mxu1 %vm247_vm2, %v5570_v33  ;;  %4059 = vrot.lane.b32.xlu1 %v6064_v49, %s5607_s18  ;;  %v1708_v43 = vsel %vm251_vm1, %v1679_v14, 0 }
  0xd5   : > { %5447 = vmatpush3.bf16.msra.mxu1 %v1105_v51  ;;  %5448 = vmatprep.mubr.msk.bf16.mxu1 %vm5611_vm3, %v5610_v62 }
  0xd6   : > { %5204 = vmatprep.subr.msk.bf16.mxu1 %vm251_vm1, %v5744_v21  ;;  %v6091_v59 = vpop.permute.xlu0 %1949  ;;  %v6093_v60 = vpop.permute.xlu1 %1951 }
  0xd7   : > { %4061 = vrot.lane.b32.xlu0 %v6077_v55, %s5607_s18 }
  0xd8   : > { %5183 = vmatmul.mubr.msk.bf16.vlgmr.msra.gmra.mxu0 %vm247_vm2, %v5570_v33  ;;  %4063 = vrot.lane.b32.xlu1 %v6082_v57, %s5607_s18 }
  0xd9   : > { %1416 = vmatpush1.bf16.msra.mxu0 %v1375_v18  ;;  %1433 = vmatprep.mubr.bf16.mxu0 %v5606_v0 }
  0xda   : > { %5206 = vmatprep.subr.msk.bf16.mxu0 %vm251_vm1, %v5753_v24  ;;  %v6109_v21 = vpop.permute.xlu0 %1953  ;;  %v6120_v20 = vpop.permute.xlu1 %1955  ;;  %v1387_v24 = vsel %vm251_vm1, %v5751_v23, 0 }
  0xdb   : > { %4065 = vrot.lane.b32.xlu0 %v6097_v61, %s5607_s18  ;;  %v1970_v41 = vsel %vm768_vm4, %v6093_v60, %v6109_v21  ;;  %v1971_v53 = vsel %vm768_vm4, %v6109_v21, %v6120_v20 }
  0xdc   : > { %5449 = vmatmul.mubr.msk.bf16.vlgmr.msra.gmra.mxu1 %vm247_vm2, %v5570_v33  ;;  %4067 = vrot.lane.b32.xlu1 %v6102_v63, %s5607_s18 }
  0xdd   : > { %1459 = vmatpush1.bf16.msra.mxu1 %v1381_v17  ;;  %1476 = vmatprep.mubr.bf16.mxu1 %v5606_v0 }
  0xde   : > { %5208 = vmatprep.subr.msk.bf16.mxu1 %vm251_vm1, %v5762_v27  ;;  %v6126_v7 = vpop.permute.xlu0 %1957  ;;  %v1672_v27 = vsel %vm237_vm0, %v5999_v4, %v6012_v9  ;;  %v6142_v15 = vpop.permute.xlu1 %1959  ;;  %v1673_v4 = vsel %vm237_vm0, %v6012_v9, %v6014_v31  ;;  %v1675_v9 = vsel %vm237_vm0, %v6034_v38, %v6036_v39  ;;  %v1678_v31 = vsel %vm237_vm0, %v6054_v44, %v6071_v52 }
  0xdf   : > { %4347 = vrot.lane.b32.xlu0 %v6020_v32, %s5608_s19  ;;  %v1690_v3 = vsel %vm251_vm1, %v1673_v4, 0  ;;  %v1696_v36 = vsel %vm251_vm1, %v1675_v9, 0  ;;  %v1702_v39 = vsel %vm251_vm1, %v1677_v37, 0  ;;  %v1969_v44 = vsel %vm768_vm4, %v6091_v59, %v6093_v60 }
  0xe0   : > { %5203 = vmatmul.mubr.msk.bf16.vlgmr.msra.gmra.mxu0 %vm247_vm2, %v5576_v1  ;;  %4349 = vrot.lane.b32.xlu1 %v6028_v12, %s5608_s19  ;;  %v1972_v45 = vsel %vm768_vm4, %v6120_v20, %v6126_v7  ;;  %v1982_v52 = vsel %vm251_vm1, %v1969_v44, 0  ;;  %v1988_v59 = vsel %vm251_vm1, %v1971_v53, 0  ;;  %v1973_v60 = vsel %vm768_vm4, %v6126_v7, %v6142_v15 }
  0xe1   : > { %1502 = vmatpush1.bf16.msra.mxu0 %v1387_v24  ;;  %1519 = vmatprep.mubr.bf16.mxu0 %v5606_v0  ;;  %v1994_v20 = vsel %vm251_vm1, %v1973_v60, 0 }
  0xe2   : > { %5452 = vmatprep.subr.bf16.mxu0 %v5610_v62  ;;  %v6137_v23 = vpop.permute.xlu0 %1961  ;;  %v6168_v29 = vpop.permute.xlu1 %1963 }
  0xe3   : > { %4351 = vrot.lane.b32.xlu0 %v6041_v6, %s5608_s19  ;;  %v1974_v58 = vsel %vm768_vm4, %v6142_v15, %v6137_v23  ;;  %v1975_v24 = vsel %vm768_vm4, %v6137_v23, %v6168_v29 }
  0xe4   : > { %5205 = vmatmul.mubr.msk.bf16.vlgmr.msra.gmra.mxu1 %vm247_vm2, %v5576_v1  ;;  %4353 = vrot.lane.b32.xlu1 %v6046_v40, %s5608_s19 }
  0xe5   : > { %1545 = vmatpush1.bf16.msra.mxu1 %v1393_v8  ;;  %1562 = vmatprep.mubr.bf16.mxu1 %v5606_v0 }
  0xe6   : > { %5215 = vmatprep.subr.msk.bf16.mxu1 %vm251_vm1, %v1672_v27  ;;  %v6153_v16 = vpop.permute.xlu0 %1965  ;;  %v6194_v10 = vpop.permute.xlu1 %1967 }
  0xe7   : > { %4355 = vrot.lane.b32.xlu0 %v6059_v48, %s5608_s19  ;;  %v1976_v17 = vsel %vm768_vm4, %v6168_v29, %v6153_v16  ;;  %v1977_v27 = vsel %vm768_vm4, %v6153_v16, %v6194_v10 }
  0xe8   : > { %5207 = vmatmul.mubr.msk.bf16.vlgmr.msra.gmra.mxu0 %vm247_vm2, %v5576_v1  ;;  %4357 = vrot.lane.b32.xlu1 %v6064_v49, %s5608_s19  ;;  %v2006_v19 = vsel %vm251_vm1, %v1977_v27, 0 }
  0xe9   : > { %5453 = vmatpush3.bf16.msra.mxu0 %v1399_v26  ;;  %5454 = vmatprep.mubr.msk.bf16.mxu0 %vm5611_vm3, %v5610_v62 }
  0xea   : > { %5217 = vmatprep.subr.msk.bf16.mxu0 %vm251_vm1, %v1674_v5  ;;  %v6178_v30 = vpop.permute.xlu0 %2247  ;;  %v6218_v38 = vpop.permute.xlu1 %2249 }
  0xeb   : > { %4359 = vrot.lane.b32.xlu0 %v6077_v55, %s5608_s19  ;;  %v2267_v16 = vsel %vm1067_vm5, %v6178_v30, %v6218_v38 }
  0xec   : > { %5209 = vmatmul.mubr.msk.bf16.vlgmr.msra.gmra.mxu1 %vm247_vm2, %v5576_v1  ;;  %4361 = vrot.lane.b32.xlu1 %v6082_v57, %s5608_s19 }
  0xed   : > { %1725 = vmatpush1.bf16.msra.mxu1 %v1684_v22  ;;  %1742 = vmatprep.mubr.bf16.mxu1 %v5606_v0  ;;  %v2280_v22 = vsel %vm251_vm1, %v2267_v16, 0 }
  0xee   : > { %5219 = vmatprep.subr.msk.bf16.mxu1 %vm251_vm1, %v1676_v28  ;;  %v6205_v33 = vpop.permute.xlu0 %2251  ;;  %v2254_v50 = vpop.permute.xlu1 %2253 }
  0xef   : > { %4363 = vrot.lane.b32.xlu0 %v6097_v61, %s5608_s19  ;;  %v2268_v23 = vsel %vm1067_vm5, %v6218_v38, %v6205_v33  ;;  %v2269_v4 = vsel %vm1067_vm5, %v6205_v33, %v2254_v50 }
  0xf0   : > { %5455 = vmatmul.mubr.msk.bf16.vlgmr.msra.gmra.mxu0 %vm247_vm2, %v5576_v1  ;;  %4365 = vrot.lane.b32.xlu1 %v6102_v63, %s5608_s19  ;;  %v5578_v1 = vld [vmem:[%s7196_s0 + $0x48] sm:$0xff]   ;;  %v2286_v9 = vsel %vm251_vm1, %v2269_v4, 0 }
  0xf1   : > { %1768 = vmatpush1.bf16.msra.mxu0 %v1690_v3  ;;  %1785 = vmatprep.mubr.bf16.mxu0 %v5606_v0 }
  0xf2   : > { %5221 = vmatprep.subr.msk.bf16.mxu0 %vm251_vm1, %v1678_v31  ;;  %v6228_v42 = vpop.permute.xlu0 %2255  ;;  %v2258_v18 = vpop.permute.xlu1 %2257 }
  0xf3   : > { %4645 = vrot.lane.b32.xlu0 %v6020_v32, %s5609_s20  ;;  %v2270_v5 = vsel %vm1067_vm5, %v2254_v50, %v6228_v42  ;;  %v2271_v31 = vsel %vm1067_vm5, %v6228_v42, %v2258_v18 }
  0xf4   : > { %5216 = vmatmul.mubr.msk.bf16.vlgmr.msra.gmra.mxu1 %vm247_vm2, %v5577_v11  ;;  %4647 = vrot.lane.b32.xlu1 %v6028_v12, %s5609_s20 }
  0xf5   : > { %1811 = vmatpush1.bf16.msra.mxu1 %v1696_v36  ;;  %1828 = vmatprep.mubr.bf16.mxu1 %v5606_v0  ;;  %v2292_v36 = vsel %vm251_vm1, %v2271_v31, 0 }
  0xf6   : > { %5458 = vmatprep.subr.bf16.mxu1 %v5610_v62  ;;  %v6251_v51 = vpop.permute.xlu0 %2259  ;;  %v2262_v7 = vpop.permute.xlu1 %2261 }
  0xf7   : > { %4649 = vrot.lane.b32.xlu0 %v6041_v6, %s5609_s20  ;;  %v2272_v28 = vsel %vm1067_vm5, %v2258_v18, %v6251_v51  ;;  %v2273_v37 = vsel %vm1067_vm5, %v6251_v51, %v2262_v7 }
  0xf8   : > { %5218 = vmatmul.mubr.msk.bf16.vlgmr.msra.gmra.mxu0 %vm247_vm2, %v5577_v11  ;;  %4651 = vrot.lane.b32.xlu1 %v6046_v40, %s5609_s20 }
  0xf9   : > { %1854 = vmatpush1.bf16.msra.mxu0 %v1702_v39  ;;  %1871 = vmatprep.mubr.bf16.mxu0 %v5606_v0  ;;  %v2298_v39 = vsel %vm251_vm1, %v2273_v37, 0 }
  0xfa   : > { %5227 = vmatprep.subr.msk.bf16.mxu0 %vm251_vm1, %v1970_v41  ;;  %v2264_v21 = vpop.permute.xlu0 %2263  ;;  %v2266_v15 = vpop.permute.xlu1 %2265 }
  0xfb   : > { %4653 = vrot.lane.b32.xlu0 %v6059_v48, %s5609_s20  ;;  %v2274_v10 = vsel %vm1067_vm5, %v2262_v7, %v2264_v21  ;;  %v2275_v14 = vsel %vm1067_vm5, %v2264_v21, %v2266_v15 }
  0xfc   : > { %5220 = vmatmul.mubr.msk.bf16.vlgmr.msra.gmra.mxu1 %vm247_vm2, %v5577_v11  ;;  %4655 = vrot.lane.b32.xlu1 %v6064_v49, %s5609_s20 }
  0xfd   : > { %5459 = vmatpush3.bf16.msra.mxu1 %v1708_v43  ;;  %5460 = vmatprep.mubr.msk.bf16.mxu1 %vm5611_vm3, %v5610_v62  ;;  %v2304_v43 = vsel %vm251_vm1, %v2275_v14, 0 }
  0xfe   : > { %5229 = vmatprep.subr.msk.bf16.mxu1 %vm251_vm1, %v1972_v45  ;;  %v6289_v8 = vpop.permute.xlu0 %2850  ;;  %v2574_v45 = vsel %vm251_vm1, %v5813_v34, 0  ;;  %v5590_v34 = vld [vmem:[%s7196_s0 + $0x20] sm:$0xff]  }
  0xff   : > { %4657 = vrot.lane.b32.xlu0 %v6077_v55, %s5609_s20  ;;  %v6312_v29 = vpop.permute.xlu1 %2852 }
 0x100   : > { %5222 = vmatmul.mubr.msk.bf16.vlgmr.msra.gmra.mxu0 %vm247_vm2, %v5577_v11  ;;  %4659 = vrot.lane.b32.xlu1 %v6082_v57, %s5609_s20 }
 0x101   : > { %2023 = vmatpush1.bf16.msra.mxu0 %v1982_v52  ;;  %2040 = vmatprep.mubr.bf16.mxu0 %v5606_v0  ;;  %v2586_v52 = vsel %vm251_vm1, %v5848_v54, 0 }
 0x102   : > { %5231 = vmatprep.subr.msk.bf16.mxu0 %vm251_vm1, %v1974_v58 }
 0x103   : > { %4661 = vrot.lane.b32.xlu0 %v6097_v61, %s5609_s20 }
 0x104   : > { %5461 = vmatmul.mubr.msk.bf16.vlgmr.msra.gmra.mxu1 %vm247_vm2, %v5577_v11  ;;  %4663 = vrot.lane.b32.xlu1 %v6102_v63, %s5609_s20  ;;  %v2000_v63 = vsel %vm251_vm1, %v1975_v24, 0  ;;  %v6303_v26 = vpop.permute.xlu0 %2854  ;;  %v6327_v3 = vpop.permute.xlu1 %2856  ;;  %v5584_v11 = vld [vmem:[%s7196_s0 + $0x58] sm:$0xff]  }
 0x105   : > { %2066 = vmatpush1.bf16.msra.mxu1 %v1988_v59  ;;  %2083 = vmatprep.mubr.bf16.mxu1 %v5606_v0  ;;  %v2871_v53 = vsel %vm237_vm0, %v6312_v29, %v6303_v26 }
 0x106   : > { %5233 = vmatprep.subr.msk.bf16.mxu1 %vm251_vm1, %v1976_v17 }
 0x108   : > { %5228 = vmatmul.mubr.msk.bf16.vlgmr.msra.gmra.mxu0 %vm247_vm2, %v5578_v1  ;;  %v6323_v30 = vpop.permute.xlu0 %2858 }
 0x109   : > { %2109 = vmatpush1.bf16.msra.mxu0 %v1994_v20  ;;  %2126 = vmatprep.mubr.bf16.mxu0 %v5606_v0  ;;  %v6345_v38 = vpop.permute.xlu1 %2860  ;;  %v2873_v58 = vsel %vm237_vm0, %v6327_v3, %v6323_v30 }
 0x10a   : > { %5464 = vmatprep.subr.bf16.mxu0 %v5610_v62  ;;  %v2874_v20 = vsel %vm237_vm0, %v6323_v30, %v6345_v38 }
 0x10c   : > { %5230 = vmatmul.mubr.msk.bf16.vlgmr.msra.gmra.mxu1 %vm247_vm2, %v5578_v1 }
 0x10d   : > { %2152 = vmatpush1.bf16.msra.mxu1 %v2000_v63  ;;  %2169 = vmatprep.mubr.bf16.mxu1 %v5606_v0  ;;  %v6339_v33 = vpop.permute.xlu0 %2862  ;;  %v2895_v63 = vsel %vm251_vm1, %v2874_v20, 0 }
 0x10e   : > { %5239 = vmatprep.subr.msk.bf16.mxu1 %vm251_vm1, %v2268_v23  ;;  %v6356_v42 = vpop.permute.xlu1 %2864  ;;  %v2875_v17 = vsel %vm237_vm0, %v6345_v38, %v6339_v33 }
 0x10f   : > { %v2876_v27 = vsel %vm237_vm0, %v6339_v33, %v6356_v42 }
 0x110   : > { %5232 = vmatmul.mubr.msk.bf16.vlgmr.msra.gmra.mxu0 %vm247_vm2, %v5578_v1 }
 0x111   : > { %5465 = vmatpush3.bf16.msra.mxu0 %v2006_v19  ;;  %5466 = vmatprep.mubr.msk.bf16.mxu0 %vm5611_vm3, %v5610_v62  ;;  %v6352_v41 = vpop.permute.xlu0 %2866 }
 0x112   : > { %5241 = vmatprep.subr.msk.bf16.mxu0 %vm251_vm1, %v2270_v5  ;;  %v2869_v50 = vpop.permute.xlu1 %2868  ;;  %v2877_v24 = vsel %vm237_vm0, %v6356_v42, %v6352_v41 }
 0x113   : > { %v2878_v19 = vsel %vm237_vm0, %v6352_v41, %v2869_v50  ;;  %v6494_v41 = vld [vmem:[%s7196_s0 + $0x60] sm:$0xff]  }
 0x114   : > { %5234 = vmatmul.mubr.msk.bf16.vlgmr.msra.gmra.mxu1 %vm247_vm2, %v5578_v1 }
 0x115   : > { %2321 = vmatpush1.bf16.msra.mxu1 %v2280_v22  ;;  %2338 = vmatprep.mubr.bf16.mxu1 %v5606_v0  ;;  %v6364_v44 = vpop.permute.xlu0 %3148 }
 0x116   : > { %5243 = vmatprep.subr.msk.bf16.mxu1 %vm251_vm1, %v2272_v28 }
 0x118   : > { %5467 = vmatmul.mubr.msk.bf16.vlgmr.msra.gmra.mxu0 %vm247_vm2, %v5578_v1 }
 0x119   : > { %2364 = vmatpush1.bf16.msra.mxu0 %v2286_v9  ;;  %2381 = vmatprep.mubr.bf16.mxu0 %v5606_v0  ;;  %v6376_v51 = vpop.permute.xlu0 %3152 }
 0x11a   : > { %5245 = vmatprep.subr.msk.bf16.mxu0 %vm251_vm1, %v2274_v10 }
 0x11c   : > { %5240 = vmatmul.mubr.msk.bf16.vlgmr.msra.gmra.mxu1 %vm247_vm2, %v5584_v11 }
 0x11d   : > { %2407 = vmatpush1.bf16.msra.mxu1 %v2292_v36  ;;  %2424 = vmatprep.mubr.bf16.mxu1 %v5606_v0 }
 0x11e   : > { %5470 = vmatprep.subr.bf16.mxu1 %v5610_v62 }
 0x120   : > { %5242 = vmatmul.mubr.msk.bf16.vlgmr.msra.gmra.mxu0 %vm247_vm2, %v5584_v11 }
 0x121   : > { %2450 = vmatpush1.bf16.msra.mxu0 %v2298_v39  ;;  %2467 = vmatprep.mubr.bf16.mxu0 %v5606_v0 }
 0x122   : > { %5265 = vmatprep.subr.msk.bf16.mxu0 %vm251_vm1, %v5815_v35  ;;  %v2580_v35 = vsel %vm251_vm1, %v5832_v46, 0  ;;  %v6389_v46 = vpop.permute.xlu0 %3156 }
 0x124   : > { %5244 = vmatmul.mubr.msk.bf16.vlgmr.msra.gmra.mxu1 %vm247_vm2, %v5584_v11 }
 0x125   : > { %5471 = vmatpush3.bf16.msra.mxu1 %v2304_v43  ;;  %5472 = vmatprep.mubr.msk.bf16.mxu1 %vm5611_vm3, %v5610_v62 }
 0x126   : > { %5267 = vmatprep.subr.msk.bf16.mxu1 %vm251_vm1, %v5834_v47  ;;  %v3151_v47 = vpop.permute.xlu1 %3150  ;;  %v6408_v18 = vpop.permute.xlu0 %3160 }
 0x127   : > { %v3169_v16 = vsel %vm768_vm4, %v3151_v47, %v6376_v51  ;;  %v3168_v22 = vsel %vm768_vm4, %v6364_v44, %v3151_v47 }
 0x128   : > { %5246 = vmatmul.mubr.msk.bf16.vlgmr.msra.gmra.mxu0 %vm247_vm2, %v5584_v11  ;;  %v3181_v30 = vsel %vm251_vm1, %v3168_v22, 0 }
 0x129   : > { %2615 = vmatpush1.bf16.msra.mxu0 %v2574_v45  ;;  %2632 = vmatprep.mubr.bf16.mxu0 %v5606_v0 }
 0x12a   : > { %5269 = vmatprep.subr.msk.bf16.mxu0 %vm251_vm1, %v5851_v56  ;;  %v2592_v56 = vsel %vm251_vm1, %v5867_v2, 0  ;;  %v3155_v54 = vpop.permute.xlu1 %3154  ;;  %v2870_v2 = vsel %vm237_vm0, %v6289_v8, %v6312_v29  ;;  %v6423_v21 = vpop.permute.xlu0 %3164  ;;  %v5591_v8 = vld [vmem:[%s7196_s0 + $0x30] sm:$0xff]   ;;  %v2907_v29 = vsel %vm251_vm1, %v2878_v19, 0 }
 0x12b   : > { %v2883_v60 = vsel %vm251_vm1, %v2870_v2, 0  ;;  %v3171_v4 = vsel %vm768_vm4, %v3155_v54, %v6389_v46 }
 0x12c   : > { %5473 = vmatmul.mubr.msk.bf16.vlgmr.msra.gmra.mxu1 %vm247_vm2, %v5584_v11 }
 0x12d   : > { %2658 = vmatpush1.bf16.msra.mxu1 %v2580_v35  ;;  %2675 = vmatprep.mubr.bf16.mxu1 %v5606_v0 }
 0x12e   : > { %5271 = vmatprep.subr.msk.bf16.mxu1 %vm251_vm1, %v5874_v13  ;;  %v2598_v13 = vsel %vm251_vm1, %v5887_v25, 0  ;;  %v3159_v59 = vpop.permute.xlu1 %3158  ;;  %v2872_v25 = vsel %vm237_vm0, %v6303_v26, %v6327_v3  ;;  %v6443_v23 = vpop.permute.xlu0 %3446  ;;  %v2901_v26 = vsel %vm251_vm1, %v2876_v27, 0  ;;  %v3170_v3 = vsel %vm768_vm4, %v6376_v51, %v3155_v54 }
 0x12f   : > { %v2889_v1 = vsel %vm251_vm1, %v2872_v25, 0  ;;  %v3173_v9 = vsel %vm768_vm4, %v3159_v59, %v6408_v18  ;;  %v3187_v33 = vsel %vm251_vm1, %v3170_v3, 0  ;;  %v3172_v37 = vsel %vm768_vm4, %v6389_v46, %v3159_v59 }
 0x130   : > { %5266 = vmatmul.mubr.msk.bf16.vlgmr.msra.gmra.mxu0 %vm247_vm2, %v5590_v34  ;;  %v3193_v43 = vsel %vm251_vm1, %v3172_v37, 0 }
 0x131   : > { %2701 = vmatpush1.bf16.msra.mxu0 %v2586_v52  ;;  %2718 = vmatprep.mubr.bf16.mxu0 %v5606_v0 }
 0x132   : > { %5476 = vmatprep.subr.bf16.mxu0 %v5610_v62  ;;  %v3163_v7 = vpop.permute.xlu1 %3162  ;;  %v6455_v5 = vpop.permute.xlu0 %3450 }
 0x133   : > { %v3175_v38 = vsel %vm768_vm4, %v3163_v7, %v6423_v21  ;;  %v3174_v50 = vsel %vm768_vm4, %v6408_v18, %v3163_v7 }
 0x134   : > { %5268 = vmatmul.mubr.msk.bf16.vlgmr.msra.gmra.mxu1 %vm247_vm2, %v5590_v34  ;;  %v3199_v47 = vsel %vm251_vm1, %v3174_v50, 0 }
 0x135   : > { %2744 = vmatpush1.bf16.msra.mxu1 %v2592_v56  ;;  %2761 = vmatprep.mubr.bf16.mxu1 %v5606_v0 }
 0x136   : > { %5278 = vmatprep.subr.msk.bf16.mxu1 %vm251_vm1, %v2871_v53  ;;  %v3167_v15 = vpop.permute.xlu1 %3166  ;;  %v6472_v31 = vpop.permute.xlu0 %3454 }
 0x137   : > { %v3176_v56 = vsel %vm768_vm4, %v6423_v21, %v3167_v15 }
 0x138   : > { %5270 = vmatmul.mubr.msk.bf16.vlgmr.msra.gmra.mxu0 %vm247_vm2, %v5590_v34  ;;  %v3205_v18 = vsel %vm251_vm1, %v3176_v56, 0 }
 0x139   : > { %5477 = vmatpush3.bf16.msra.mxu0 %v2598_v13  ;;  %5478 = vmatprep.mubr.msk.bf16.mxu0 %vm5611_vm3, %v5610_v62 }
 0x13a   : > { %5280 = vmatprep.subr.msk.bf16.mxu0 %vm251_vm1, %v2873_v58  ;;  %v3449_v28 = vpop.permute.xlu1 %3448  ;;  %v6497_v42 = vpop.permute.xlu0 %3458 }
 0x13b   : > { %v3467_v53 = vsel %vm1067_vm5, %v3449_v28, %v6455_v5  ;;  %v3466_v25 = vsel %vm1067_vm5, %v6443_v23, %v3449_v28 }
 0x13c   : > { %5272 = vmatmul.mubr.msk.bf16.vlgmr.msra.gmra.mxu1 %vm247_vm2, %v5590_v34  ;;  %v3479_v7 = vsel %vm251_vm1, %v3466_v25, 0 }
 0x13d   : > { %2924 = vmatpush1.bf16.msra.mxu1 %v2883_v60  ;;  %2941 = vmatprep.mubr.bf16.mxu1 %v5606_v0 }
 0x13e   : > { %5282 = vmatprep.subr.msk.bf16.mxu1 %vm251_vm1, %v2875_v17  ;;  %v3453_v11 = vpop.permute.xlu1 %3452  ;;  %v6524_v54 = vpop.permute.xlu0 %3462 }
 0x13f   : > { %v3469_v17 = vsel %vm1067_vm5, %v3453_v11, %v6472_v31  ;;  %v3468_v27 = vsel %vm1067_vm5, %v6455_v5, %v3453_v11  ;;  %v6587_v11 = vld [vmem:[%s7196_s0 + $0x70] sm:$0xff]  }
 0x140   : > { %5479 = vmatmul.mubr.msk.bf16.vlgmr.msra.gmra.mxu0 %vm247_vm2, %v5590_v34  ;;  %v3485_v5 = vsel %vm251_vm1, %v3468_v27, 0 }
 0x141   : > { %2967 = vmatpush1.bf16.msra.mxu0 %v2889_v1  ;;  %2984 = vmatprep.mubr.bf16.mxu0 %v5606_v0 }
 0x142   : > { %5284 = vmatprep.subr.msk.bf16.mxu0 %vm251_vm1, %v2877_v24  ;;  %v3457_v35 = vpop.permute.xlu1 %3456  ;;  %v6543_v21 = vpop.permute.xlu0 %4049 }
 0x143   : > { %v3471_v23 = vsel %vm1067_vm5, %v3457_v35, %v6497_v42 }
 0x144   : > { %5279 = vmatmul.mubr.msk.bf16.vlgmr.msra.gmra.mxu1 %vm247_vm2, %v5591_v8 }
 0x145   : > { %3010 = vmatpush1.bf16.msra.mxu1 %v2895_v63  ;;  %3027 = vmatprep.mubr.bf16.mxu1 %v5606_v0 }
 0x146   : > { %5482 = vmatprep.subr.bf16.mxu1 %v5610_v62  ;;  %v3461_v58 = vpop.permute.xlu1 %3460 }
 0x147   : > { %v3473_v3 = vsel %vm1067_vm5, %v3461_v58, %v6524_v54 }
 0x148   : > { %5281 = vmatmul.mubr.msk.bf16.vlgmr.msra.gmra.mxu0 %vm247_vm2, %v5591_v8 }
 0x149   : > { %3053 = vmatpush1.bf16.msra.mxu0 %v2901_v26  ;;  %3070 = vmatprep.mubr.bf16.mxu0 %v5606_v0 }
 0x14a   : > { %5290 = vmatprep.subr.msk.bf16.mxu0 %vm251_vm1, %v3169_v16  ;;  %v3465_v24 = vpop.permute.xlu1 %3464 }
 0x14c   : > { %5283 = vmatmul.mubr.msk.bf16.vlgmr.msra.gmra.mxu1 %vm247_vm2, %v5591_v8 }
 0x14d   : > { %5483 = vmatpush3.bf16.msra.mxu1 %v2907_v29  ;;  %5484 = vmatprep.mubr.msk.bf16.mxu1 %vm5611_vm3, %v5610_v62  ;;  %v6571_v29 = vpop.permute.xlu0 %4053 }
 0x14e   : > { %5292 = vmatprep.subr.msk.bf16.mxu1 %vm251_vm1, %v3171_v4  ;;  %v6569_v16 = vpop.permute.xlu1 %4051 }
 0x150   : > { %v6474_v10 = vpop.f32.mrf.mxu0  ;;  %5285 = vmatmul.mubr.msk.bf16.vlgmr.msra.gmra.mxu0 %vm247_vm2, %v5591_v8 }
 0x151   : > { %3222 = vmatpush1.bf16.msra.mxu0 %v3181_v30  ;;  %3239 = vmatprep.mubr.bf16.mxu0 %v5606_v0  ;;  %v3470_v30 = vsel %vm1067_vm5, %v6472_v31, %v3457_v35  ;;  %v6608_v50 = vpop.permute.xlu0 %4057 }
 0x152   : > { %v6479_v36 = vpop.f32.mrf.mxu0  ;;  %5294 = vmatprep.subr.msk.bf16.mxu0 %vm251_vm1, %v3173_v9  ;;  %v3491_v31 = vsel %vm251_vm1, %v3470_v30, 0 }
 0x154   : > { %v6486_v39 = vpop.f32.mrf.mxu0  ;;  %v6488_v14 = vpop.f32.mrf.mxu1  ;;  %5485 = vmatmul.mubr.msk.bf16.vlgmr.msra.gmra.mxu1 %vm247_vm2, %v5591_v8 }
 0x155   : > { %3265 = vmatpush1.bf16.msra.mxu1 %v3187_v33  ;;  %3282 = vmatprep.mubr.bf16.mxu1 %v5606_v0 }
 0x156   : > { %v6500_v44 = vpop.f32.mrf.mxu0  ;;  %v6502_v45 = vpop.f32.mrf.mxu1  ;;  %5296 = vmatprep.subr.msk.bf16.mxu1 %vm251_vm1, %v3175_v38 }
 0x158   : > { %v6507_v51 = vpop.f32.mrf.mxu1  ;;  %v6509_v34 = vpop.f32.mrf.mxu0  ;;  %5291 = vmatmul.mubr.msk.bf16.vlgmr.msra.gmra.mxu0 %vm247_vm2, %v6494_v41 }
 0x159   : > { %3308 = vmatpush1.bf16.msra.mxu0 %v3193_v43  ;;  %3325 = vmatprep.mubr.bf16.mxu0 %v5606_v0 }
 0x15a   : > { %v6515_v52 = vpop.f32.mrf.mxu1  ;;  %v6517_v46 = vpop.f32.mrf.mxu0  ;;  %5488 = vmatprep.subr.bf16.mxu0 %v5610_v62 }
 0x15c   : > { %v6526_v13 = vpop.f32.mrf.mxu0  ;;  %v6528_v2 = vpop.f32.mrf.mxu1  ;;  %5293 = vmatmul.mubr.msk.bf16.vlgmr.msra.gmra.mxu1 %vm247_vm2, %v6494_v41 }
 0x15d   : > { %3351 = vmatpush1.bf16.msra.mxu1 %v3199_v47  ;;  %3368 = vmatprep.mubr.bf16.mxu1 %v5606_v0 }
 0x15e   : > { %v6534_v59 = vpop.f32.mrf.mxu0  ;;  %v6536_v60 = vpop.f32.mrf.mxu1  ;;  %5302 = vmatprep.subr.msk.bf16.mxu1 %vm251_vm1, %v3467_v53 }
 0x160   : > { %v6545_v1 = vpop.f32.mrf.mxu1  ;;  %v6547_v20 = vpop.f32.mrf.mxu0  ;;  %5295 = vmatmul.mubr.msk.bf16.vlgmr.msra.gmra.mxu0 %vm247_vm2, %v6494_v41 }
 0x161   : > { %5489 = vmatpush3.bf16.msra.mxu0 %v3205_v18  ;;  %5490 = vmatprep.mubr.msk.bf16.mxu0 %vm5611_vm3, %v5610_v62 }
 0x162   : > { %v6554_v8 = vpop.f32.mrf.mxu1  ;;  %v5432_v63 = vpop.f32.mrf.mxu0  ;;  %5304 = vmatprep.subr.msk.bf16.mxu0 %vm251_vm1, %v3469_v17 }
 0x164   : > { %v6561_v15 = vpop.f32.mrf.mxu0  ;;  %v561_v26 = vpop.f32.mrf.mxu1  ;;  %5297 = vmatmul.mubr.msk.bf16.vlgmr.msra.gmra.mxu1 %vm247_vm2, %v6494_v41 }
 0x165   : > { %v6566_v19 = vadd.f32 %v561_v26, %v6474_v10  ;;  %3520 = vmatpush1.bf16.msra.mxu1 %v3479_v7  ;;  %3537 = vmatprep.mubr.bf16.mxu1 %v5606_v0 }
 0x166   : > { %v5433_v22 = vpop.f32.mrf.mxu0  ;;  %v563_v4 = vpop.f32.mrf.mxu1  ;;  %5306 = vmatprep.subr.msk.bf16.mxu1 %vm251_vm1, %v3471_v23 }
 0x167   : > { %v6576_v28 = vadd.f32 %v563_v4, %v6479_v36 }
 0x168   : > { %v565_v9 = vpop.f32.mrf.mxu1  ;;  %v604_v10 = vpop.f32.mrf.mxu0  ;;  %5491 = vmatmul.mubr.msk.bf16.vlgmr.msra.gmra.mxu0 %vm247_vm2, %v6494_v41 }
 0x169   : > { %v6590_v33 = vadd.f32 %v565_v9, %v6486_v39  ;;  %v6593_v36 = vadd.f32 %v604_v10, %v6488_v14  ;;  %3563 = vmatpush1.bf16.msra.mxu0 %v3485_v5  ;;  %3580 = vmatprep.mubr.bf16.mxu0 %v5606_v0  ;;  %v3472_v39 = vsel %vm1067_vm5, %v6497_v42, %v3461_v58  ;;  %v6606_v14 = vpop.permute.xlu1 %4055  ;;  %v3779_v9 = vsel %vm251_vm1, %v6041_v6, 0 }
 0x16a   : > { %v606_v37 = vpop.f32.mrf.mxu0  ;;  %v567_v38 = vpop.f32.mrf.mxu1  ;;  %5308 = vmatprep.subr.msk.bf16.mxu0 %vm251_vm1, %v3473_v3  ;;  %v3497_v42 = vsel %vm251_vm1, %v3472_v39, 0  ;;  %v3785_v39 = vsel %vm251_vm1, %v6059_v48, 0 }
 0x16b   : > { %v6599_v41 = vadd.f32 %v606_v37, %v6502_v45  ;;  %v6602_v43 = vadd.f32 %v567_v38, %v6500_v44 }
 0x16c   : > { %v608_v35 = vpop.f32.mrf.mxu0  ;;  %v647_v47 = vpop.f32.mrf.mxu1  ;;  %5303 = vmatmul.mubr.msk.bf16.vlgmr.msra.gmra.mxu1 %vm247_vm2, %v6587_v11 }
 0x16d   : > { %v6613_v56 = vadd.f32 %v608_v35, %v6507_v51  ;;  %v6616_v45 = vadd.f32 %v647_v47, %v6509_v34  ;;  %3606 = vmatpush1.bf16.msra.mxu1 %v3491_v31  ;;  %3623 = vmatprep.mubr.bf16.mxu1 %v5606_v0  ;;  %v3474_v51 = vsel %vm1067_vm5, %v6524_v54, %v3465_v24 }
 0x16e   : > { %v610_v44 = vpop.f32.mrf.mxu0  ;;  %v649_v53 = vpop.f32.mrf.mxu1  ;;  %5494 = vmatprep.subr.bf16.mxu1 %v5610_v62  ;;  %v3503_v24 = vsel %vm251_vm1, %v3474_v51, 0 }
 0x16f   : > { %v6622_v58 = vadd.f32 %v610_v44, %v6515_v52  ;;  %v6625_v18 = vadd.f32 %v649_v53, %v6517_v46  ;;  %v6638_v52 = vpop.permute.xlu1 %4059  ;;  %v6640_v46 = vpop.permute.xlu0 %4061  ;;  %v4070_v53 = vsel %vm237_vm0, %v6569_v16, %v6571_v29 }
 0x170   : > { %v651_v34 = vpop.f32.mrf.mxu1  ;;  %v690_v25 = vpop.f32.mrf.mxu0  ;;  %5305 = vmatmul.mubr.msk.bf16.vlgmr.msra.gmra.mxu0 %vm247_vm2, %v6587_v11 }
 0x171   : > { %v6632_v17 = vadd.f32 %v651_v34, %v6526_v13  ;;  %v6635_v7 = vadd.f32 %v690_v25, %v6528_v2  ;;  %3649 = vmatpush1.bf16.msra.mxu0 %v3497_v42  ;;  %3666 = vmatprep.mubr.bf16.mxu0 %v5606_v0 }
 0x172   : > { %v653_v63 = vpop.f32.mrf.mxu1  ;;  %v692_v54 = vpop.f32.mrf.mxu0  ;;  %5328 = vmatprep.subr.msk.bf16.mxu0 %vm251_vm1, %v6028_v12 }
 0x173   : > { %v6646_v13 = vadd.f32 %v653_v63, %v6534_v59  ;;  %v6649_v2 = vadd.f32 %v692_v54, %v6536_v60  ;;  %v3773_v60 = vsel %vm251_vm1, %v6020_v32, 0  ;;  %v6670_v4 = vpop.permute.xlu0 %4065 }
 0x174   : > { %v694_v27 = vpop.f32.mrf.mxu0  ;;  %v733_v23 = vpop.f32.mrf.mxu1  ;;  %5307 = vmatmul.mubr.msk.bf16.vlgmr.msra.gmra.mxu1 %vm247_vm2, %v6587_v11 }
 0x175   : > { %v6654_v26 = vadd.f32 %v694_v27, %v6545_v1  ;;  %v6657_v5 = vadd.f32 %v733_v23, %v6547_v20  ;;  %5495 = vmatpush3.bf16.msra.mxu1 %v3503_v24  ;;  %5496 = vmatprep.mubr.msk.bf16.mxu1 %vm5611_vm3, %v5610_v62  ;;  %v6668_v1 = vpop.permute.xlu1 %4063  ;;  %v3797_v24 = vsel %vm251_vm1, %v6097_v61, 0  ;;  %v4936_v27 = vld [vmem:[%s7198_s2 + $0x8] sm:$0xff]  ;;  %v4069_v23 = vsel %vm237_vm0, %v6543_v21, %v6569_v16 }
 0x176   : > { %v696_v12 = vpop.f32.mrf.mxu0  ;;  %v5438_v59 = vpop.f32.mrf.mxu1  ;;  %5330 = vmatprep.subr.msk.bf16.mxu1 %vm251_vm1, %v6046_v40  ;;  %4944 = vperm.xlu1 %5541, %v4936_v27  }
 0x177   : > { %v6666_v22 = vadd.f32 %v696_v12, %v6554_v8  ;;  %v4072_v12 = vsel %vm237_vm0, %v6606_v14, %v6608_v50 }
 0x178   : > { %v736_v20 = vpop.f32.mrf.mxu1  ;;  %v842_v30 = vpop.f32.mrf.mxu0  ;;  %5309 = vmatmul.mubr.msk.bf16.vlgmr.msra.gmra.mxu0 %vm247_vm2, %v6587_v11 }
 0x179   : > { %v6675_v3 = vadd.f32 %v736_v20, %v6561_v15  ;;  %v6678_v32 = vadd.f32 %v842_v30, %v6566_v19  ;;  %3814 = vmatpush1.bf16.msra.mxu0 %v3773_v60  ;;  %3831 = vmatprep.mubr.bf16.mxu0 %v5606_v0  ;;  %v6693_v19 = vld [vmem:[%s7196_s0 + $0x28] sm:$0xff]   ;;  %v4082_v60 = vsel %vm251_vm1, %v4069_v23, 0 }
 0x17a   : > { %v5439_v40 = vpop.f32.mrf.mxu1  ;;  %v844_v8 = vpop.f32.mrf.mxu0  ;;  %5332 = vmatprep.subr.msk.bf16.mxu0 %vm251_vm1, %v6064_v49 }
 0x17b   : > { %v6686_v10 = vadd.f32 %v844_v8, %v6576_v28  ;;  %v6702_v49 = vpop.permute.xlu1 %4067  ;;  %v6704_v28 = vpop.permute.xlu0 %4347  ;;  %v4074_v40 = vsel %vm237_vm0, %v6638_v52, %v6640_v46 }
 0x17c   : > { %v846_v31 = vpop.f32.mrf.mxu0  ;;  %v885_v15 = vpop.f32.mrf.mxu1  ;;  %5497 = vmatmul.mubr.msk.bf16.vlgmr.msra.gmra.mxu1 %vm247_vm2, %v6587_v11 }
 0x17d   : > { %v6696_v37 = vadd.f32 %v846_v31, %v6590_v33  ;;  %v6699_v6 = vadd.f32 %v885_v15, %v6593_v36  ;;  %3857 = vmatpush1.bf16.msra.mxu1 %v3779_v9  ;;  %3874 = vmatprep.mubr.bf16.mxu1 %v5606_v0 }
 0x17e   : > { %v848_v38 = vpop.f32.mrf.mxu0  ;;  %v887_v11 = vpop.f32.mrf.mxu1  ;;  %5334 = vmatprep.subr.msk.bf16.mxu1 %vm251_vm1, %v6082_v57 }
 0x17f   : > { %v6711_v33 = vadd.f32 %v848_v38, %v6602_v43  ;;  %v6714_v36 = vadd.f32 %v887_v11, %v6599_v41  ;;  %v3791_v41 = vsel %vm251_vm1, %v6077_v55, 0  ;;  %v4935_v43 = vld [vmem:[%s7198_s2] sm:$0xff]  ;;  %v6740_v51 = vpop.permute.xlu1 %4349  ;;  %v6742_v34 = vpop.permute.xlu0 %4351 }
 0x180   : > { %v889_v35 = vpop.f32.mrf.mxu1  ;;  %v928_v47 = vpop.f32.mrf.mxu0  ;;  %5329 = vmatmul.mubr.msk.bf16.vlgmr.msra.gmra.mxu0 %vm247_vm2, %v6693_v19  ;;  %4939 = vperm.xlu0 %5540, %v4935_v43  }
 0x181   : > { %v6719_v42 = vadd.f32 %v889_v35, %v6613_v56  ;;  %v6722_v44 = vadd.f32 %v928_v47, %v6616_v45  ;;  %3900 = vmatpush1.bf16.msra.mxu0 %v3785_v39  ;;  %3917 = vmatprep.mubr.bf16.mxu0 %v5606_v0 }
 0x182   : > { %v891_v48 = vpop.f32.mrf.mxu1  ;;  %v930_v57 = vpop.f32.mrf.mxu0  ;;  %5500 = vmatprep.subr.bf16.mxu0 %v5610_v62 }
 0x183   : > { %v6732_v56 = vadd.f32 %v891_v48, %v6622_v58  ;;  %v6735_v45 = vadd.f32 %v930_v57, %v6625_v18  ;;  %v6781_v21 = vpop.permute.xlu1 %4353  ;;  %v6783_v16 = vpop.permute.xlu0 %4355 }
 0x184   : > { %v932_v55 = vpop.f32.mrf.mxu0  ;;  %v971_v25 = vpop.f32.mrf.mxu1  ;;  %5331 = vmatmul.mubr.msk.bf16.vlgmr.msra.gmra.mxu1 %vm247_vm2, %v6693_v19 }
 0x185   : > { %v6747_v58 = vadd.f32 %v932_v55, %v6632_v17  ;;  %v6750_v18 = vadd.f32 %v971_v25, %v6635_v7  ;;  %3943 = vmatpush1.bf16.msra.mxu1 %v3791_v41  ;;  %3960 = vmatprep.mubr.bf16.mxu1 %v5606_v0 }
 0x186   : > { %v934_v63 = vpop.f32.mrf.mxu0  ;;  %v973_v54 = vpop.f32.mrf.mxu1  ;;  %5341 = vmatprep.subr.msk.bf16.mxu1 %vm251_vm1, %v4070_v53 }
 0x187   : > { %v6760_v17 = vadd.f32 %v934_v63, %v6646_v13  ;;  %v6763_v7 = vadd.f32 %v973_v54, %v6649_v2  ;;  %v6816_v11 = vpop.permute.xlu1 %4357  ;;  %v6818_v39 = vpop.permute.xlu0 %4359 }
 0x188   : > { %v975_v61 = vpop.f32.mrf.mxu1  ;;  %v1014_v59 = vpop.f32.mrf.mxu0  ;;  %5333 = vmatmul.mubr.msk.bf16.vlgmr.msra.gmra.mxu0 %vm247_vm2, %v6693_v19 }
 0x189   : > { %v6774_v13 = vadd.f32 %v975_v61, %v6654_v26  ;;  %v6777_v2 = vadd.f32 %v1014_v59, %v6657_v5  ;;  %5501 = vmatpush3.bf16.msra.mxu0 %v3797_v24  ;;  %5502 = vmatprep.mubr.msk.bf16.mxu0 %vm5611_vm3, %v5610_v62  ;;  %v4071_v5 = vsel %vm237_vm0, %v6571_v29, %v6606_v14 }
 0x18a   : > { %v5444_v20 = vpop.f32.mrf.mxu0  ;;  %v977_v30 = vpop.f32.mrf.mxu1  ;;  %5343 = vmatprep.subr.msk.bf16.mxu0 %vm251_vm1, %v4072_v12  ;;  %v4088_v29 = vsel %vm251_vm1, %v4071_v5, 0  ;;  %v4368_v24 = vsel %vm768_vm4, %v6740_v51, %v6742_v34 }
 0x18b   : > { %v6788_v26 = vadd.f32 %v977_v30, %v6666_v22 }
 0x18c   : > { %v1017_v8 = vpop.f32.mrf.mxu0  ;;  %v1141_v9 = vpop.f32.mrf.mxu1  ;;  %5335 = vmatmul.mubr.msk.bf16.vlgmr.msra.gmra.mxu1 %vm247_vm2, %v6693_v19 }
 0x18d   : > { %v6799_v31 = vadd.f32 %v1017_v8, %v6675_v3  ;;  %v6802_v15 = vadd.f32 %v1141_v9, %v6678_v32  ;;  %4123 = vmatpush1.bf16.msra.mxu1 %v4082_v60  ;;  %4140 = vmatprep.mubr.bf16.mxu1 %v5606_v0  ;;  %v4073_v3 = vsel %vm237_vm0, %v6608_v50, %v6638_v52 }
 0x18e   : > { %v5445_v14 = vpop.f32.mrf.mxu0  ;;  %v1143_v22 = vpop.f32.mrf.mxu1  ;;  %5345 = vmatprep.subr.msk.bf16.mxu1 %vm251_vm1, %v4074_v40  ;;  %v4076_v32 = vsel %vm237_vm0, %v6668_v1, %v6670_v4  ;;  %v4094_v48 = vsel %vm251_vm1, %v4073_v3, 0 }
 0x18f   : > { %v6808_v38 = vadd.f32 %v1143_v22, %v6686_v10  ;;  %v6825_v10 = vld [vmem:[%s7196_s0 + $0x38] sm:$0xff]  }
 0x190   : > { %v1145_v35 = vpop.f32.mrf.mxu1  ;;  %v1184_v47 = vpop.f32.mrf.mxu0  ;;  %5503 = vmatmul.mubr.msk.bf16.vlgmr.msra.gmra.mxu0 %vm247_vm2, %v6693_v19 }
 0x191   : > { %v6828_v50 = vadd.f32 %v1145_v35, %v6696_v37  ;;  %v6831_v52 = vadd.f32 %v1184_v47, %v6699_v6  ;;  %4166 = vmatpush1.bf16.msra.mxu0 %v4088_v29  ;;  %4183 = vmatprep.mubr.bf16.mxu0 %v5606_v0  ;;  %v4075_v37 = vsel %vm237_vm0, %v6640_v46, %v6668_v1 }
 0x192   : > { %v1186_v57 = vpop.f32.mrf.mxu0  ;;  %v1147_v41 = vpop.f32.mrf.mxu1  ;;  %5347 = vmatprep.subr.msk.bf16.mxu0 %vm251_vm1, %v4076_v32  ;;  %v4100_v46 = vsel %vm251_vm1, %v4075_v37, 0 }
 0x193   : > { %v6837_v19 = vadd.f32 %v1186_v57, %v6714_v36  ;;  %v6840_v43 = vadd.f32 %v1147_v41, %v6711_v33  ;;  %v6854_v33 = vpop.permute.xlu1 %4361  ;;  %v6856_v36 = vpop.permute.xlu0 %4363  ;;  %v6947_v57 = vld [vmem:[%s7196_s0 + $0x68] sm:$0xff]  }
 0x194   : > { %v1188_v6 = vpop.f32.mrf.mxu0  ;;  %v1227_v53 = vpop.f32.mrf.mxu1  ;;  %5342 = vmatmul.mubr.msk.bf16.vlgmr.msra.gmra.mxu1 %vm247_vm2, %v6825_v10 }
 0x195   : > { %v6848_v55 = vadd.f32 %v1188_v6, %v6719_v42  ;;  %v6851_v25 = vadd.f32 %v1227_v53, %v6722_v44  ;;  %4209 = vmatpush1.bf16.msra.mxu1 %v4094_v48  ;;  %4226 = vmatprep.mubr.bf16.mxu1 %v5606_v0  ;;  %v4077_v44 = vsel %vm237_vm0, %v6670_v4, %v6702_v49 }
 0x196   : > { %v1190_v1 = vpop.f32.mrf.mxu0  ;;  %v1229_v63 = vpop.f32.mrf.mxu1  ;;  %5506 = vmatprep.subr.bf16.mxu1 %v5610_v62  ;;  %v4106_v4 = vsel %vm251_vm1, %v4077_v44, 0 }
 0x197   : > { %v6861_v54 = vadd.f32 %v1190_v1, %v6732_v56  ;;  %v6864_v42 = vadd.f32 %v1229_v63, %v6735_v45  ;;  %v6895_v60 = vpop.permute.xlu1 %4365  ;;  %v6897_v20 = vpop.permute.xlu0 %4645 }
 0x198   : > { %v1231_v27 = vpop.f32.mrf.mxu1  ;;  %v1270_v23 = vpop.f32.mrf.mxu0  ;;  %5344 = vmatmul.mubr.msk.bf16.vlgmr.msra.gmra.mxu0 %vm247_vm2, %v6825_v10 }
 0x199   : > { %v6875_v12 = vadd.f32 %v1231_v27, %v6747_v58  ;;  %v6878_v56 = vadd.f32 %v1270_v23, %v6750_v18  ;;  %4252 = vmatpush1.bf16.msra.mxu0 %v4100_v46  ;;  %4269 = vmatprep.mubr.bf16.mxu0 %v5606_v0  ;;  %v4367_v58 = vsel %vm768_vm4, %v6704_v28, %v6740_v51 }
 0x19a   : > { %v1272_v49 = vpop.f32.mrf.mxu0  ;;  %v1233_v45 = vpop.f32.mrf.mxu1  ;;  %5353 = vmatprep.subr.msk.bf16.mxu0 %vm251_vm1, %v4368_v24  ;;  %v4370_v18 = vsel %vm768_vm4, %v6781_v21, %v6783_v16  ;;  %v4380_v28 = vsel %vm251_vm1, %v4367_v58, 0 }
 0x19b   : > { %v6884_v61 = vadd.f32 %v1272_v49, %v6763_v7  ;;  %v6887_v59 = vadd.f32 %v1233_v45, %v6760_v17 }
 0x19c   : > { %v1274_v30 = vpop.f32.mrf.mxu0  ;;  %v1313_v5 = vpop.f32.mrf.mxu1  ;;  %5346 = vmatmul.mubr.msk.bf16.vlgmr.msra.gmra.mxu1 %vm247_vm2, %v6825_v10 }
 0x19d   : > { %v6902_v17 = vadd.f32 %v1274_v30, %v6774_v13  ;;  %v6905_v7 = vadd.f32 %v1313_v5, %v6777_v2  ;;  %5507 = vmatpush3.bf16.msra.mxu1 %v4106_v4  ;;  %5508 = vmatprep.mubr.msk.bf16.mxu1 %vm5611_vm3, %v5610_v62  ;;  %v4369_v13 = vsel %vm768_vm4, %v6742_v34, %v6781_v21  ;;  %v6929_v34 = vpop.permute.xlu0 %4649 }
 0x19e   : > { %v1276_v51 = vpop.f32.mrf.mxu0  ;;  %v5450_v40 = vpop.f32.mrf.mxu1  ;;  %5355 = vmatprep.subr.msk.bf16.mxu1 %vm251_vm1, %v4370_v18  ;;  %v4372_v2 = vsel %vm768_vm4, %v6816_v11, %v6818_v39  ;;  %v4386_v21 = vsel %vm251_vm1, %v4369_v13, 0 }
 0x19f   : > { %v6912_v8 = vadd.f32 %v1276_v51, %v6788_v26  ;;  %v4648_v26 = vpop.permute.xlu1 %4647 }
 0x1a0   : > { %v1316_v9 = vpop.f32.mrf.mxu1  ;;  %v1435_v29 = vpop.f32.mrf.mxu0  ;;  %5348 = vmatmul.mubr.msk.bf16.vlgmr.msra.gmra.mxu0 %vm247_vm2, %v6825_v10 }
 0x1a1   : > { %v6923_v14 = vadd.f32 %v1316_v9, %v6799_v31  ;;  %v6926_v22 = vadd.f32 %v1435_v29, %v6802_v15  ;;  %4421 = vmatpush1.bf16.msra.mxu0 %v4380_v28  ;;  %4438 = vmatprep.mubr.bf16.mxu0 %v5606_v0  ;;  %v4371_v31 = vsel %vm768_vm4, %v6783_v16, %v6816_v11  ;;  %v4654_v53 = vpop.permute.xlu0 %4653 }
 0x1a2   : > { %v1437_v3 = vpop.f32.mrf.mxu0  ;;  %v5451_v32 = vpop.f32.mrf.mxu1  ;;  %5357 = vmatprep.subr.msk.bf16.mxu0 %vm251_vm1, %v4372_v2  ;;  %v4374_v15 = vsel %vm768_vm4, %v6854_v33, %v6856_v36  ;;  %v4392_v16 = vsel %vm251_vm1, %v4371_v31, 0 }
 0x1a3   : > { %v6934_v35 = vadd.f32 %v1437_v3, %v6808_v38 }
 0x1a4   : > { %v1439_v47 = vpop.f32.mrf.mxu0  ;;  %v1478_v48 = vpop.f32.mrf.mxu1  ;;  %5509 = vmatmul.mubr.msk.bf16.vlgmr.msra.gmra.mxu1 %vm247_vm2, %v6825_v10 }
 0x1a5   : > { %v6950_v38 = vadd.f32 %v1439_v47, %v6828_v50  ;;  %v6953_v41 = vadd.f32 %v1478_v48, %v6831_v52  ;;  %4464 = vmatpush1.bf16.msra.mxu1 %v4386_v21  ;;  %4481 = vmatprep.mubr.bf16.mxu1 %v5606_v0  ;;  %v4373_v50 = vsel %vm768_vm4, %v6818_v39, %v6854_v33  ;;  %v4652_v52 = vpop.permute.xlu1 %4651  ;;  %v4658_v49 = vpop.permute.xlu0 %4657 }
 0x1a6   : > { %v1441_v11 = vpop.f32.mrf.mxu0  ;;  %v1480_v37 = vpop.f32.mrf.mxu1  ;;  %5359 = vmatprep.subr.msk.bf16.mxu1 %vm251_vm1, %v4374_v15 }
 0x1a7   : > { %v6959_v10 = vadd.f32 %v1441_v11, %v6840_v43  ;;  %v6962_v6 = vadd.f32 %v1480_v37, %v6837_v19  ;;  %v4398_v19 = vsel %vm251_vm1, %v4373_v50, 0 }
 0x1a8   : > { %v1482_v46 = vpop.f32.mrf.mxu1  ;;  %v1521_v1 = vpop.f32.mrf.mxu0  ;;  %5354 = vmatmul.mubr.msk.bf16.vlgmr.msra.gmra.mxu0 %vm247_vm2, %v6947_v57 }
 0x1a9   : > { %v6970_v63 = vadd.f32 %v1482_v46, %v6848_v55  ;;  %v6973_v43 = vadd.f32 %v1521_v1, %v6851_v25  ;;  %4507 = vmatpush1.bf16.msra.mxu0 %v4392_v16  ;;  %4524 = vmatprep.mubr.bf16.mxu0 %v5606_v0  ;;  %v4375_v55 = vsel %vm768_vm4, %v6856_v36, %v6895_v60  ;;  %v4662_v2 = vpop.permute.xlu0 %4661 }
 0x1aa   : > { %v1523_v44 = vpop.f32.mrf.mxu0  ;;  %v1484_v39 = vpop.f32.mrf.mxu1  ;;  %5512 = vmatprep.subr.bf16.mxu0 %v5610_v62  ;;  %v4666_v25 = vsel %vm1067_vm5, %v4648_v26, %v6929_v34  ;;  %v4404_v36 = vsel %vm251_vm1, %v4375_v55, 0  ;;  %v4668_v60 = vsel %vm1067_vm5, %v4652_v52, %v4654_v53 }
 0x1ab   : > { %v6979_v33 = vadd.f32 %v1523_v44, %v6864_v42  ;;  %v6982_v24 = vadd.f32 %v1484_v39, %v6861_v54  ;;  %v4656_v54 = vpop.permute.xlu1 %4655 }
 0x1ac   : > { %v1525_v27 = vpop.f32.mrf.mxu0  ;;  %v1564_v23 = vpop.f32.mrf.mxu1  ;;  %5356 = vmatmul.mubr.msk.bf16.vlgmr.msra.gmra.mxu1 %vm247_vm2, %v6947_v57  ;;  %v4670_v13 = vsel %vm1067_vm5, %v4656_v54, %v4658_v49  ;;  %v4669_v31 = vsel %vm1067_vm5, %v4654_v53, %v4656_v54 }
 0x1ad   : > { %v6992_v4 = vadd.f32 %v1525_v27, %v6875_v12  ;;  %v6995_v42 = vadd.f32 %v1564_v23, %v6878_v56  ;;  %4550 = vmatpush1.bf16.msra.mxu1 %v4398_v19  ;;  %4567 = vmatprep.mubr.bf16.mxu1 %v5606_v0  ;;  %v4665_v56 = vsel %vm1067_vm5, %v6897_v20, %v4648_v26 }
 0x1ae   : > { %v1527_v45 = vpop.f32.mrf.mxu0  ;;  %v1566_v58 = vpop.f32.mrf.mxu1  ;;  %5365 = vmatprep.subr.msk.bf16.mxu1 %vm251_vm1, %v4666_v25 }
 0x1af   : > { %v7001_v18 = vadd.f32 %v1527_v45, %v6887_v59  ;;  %v7004_v12 = vadd.f32 %v1566_v58, %v6884_v61  ;;  %v4678_v61 = vsel %vm251_vm1, %v4665_v56, 0 }
 0x1b0   : > { %v1568_v30 = vpop.f32.mrf.mxu1  ;;  %v1607_v5 = vpop.f32.mrf.mxu0  ;;  %5358 = vmatmul.mubr.msk.bf16.vlgmr.msra.gmra.mxu0 %vm247_vm2, %v6947_v57 }
 0x1b1   : > { %v7012_v28 = vadd.f32 %v1568_v30, %v6902_v17  ;;  %v7015_v51 = vadd.f32 %v1607_v5, %v6905_v7  ;;  %5513 = vmatpush3.bf16.msra.mxu0 %v4404_v36  ;;  %5514 = vmatprep.mubr.msk.bf16.mxu0 %vm5611_vm3, %v5610_v62  ;;  %v4667_v17 = vsel %vm1067_vm5, %v6929_v34, %v4652_v52  ;;  %v4660_v7 = vpop.permute.xlu1 %4659 }
 0x1b2   : > { %v5456_v59 = vpop.f32.mrf.mxu0  ;;  %v1570_v20 = vpop.f32.mrf.mxu1  ;;  %5367 = vmatprep.subr.msk.bf16.mxu0 %vm251_vm1, %v4668_v60  ;;  %v4672_v15 = vsel %vm1067_vm5, %v4660_v7, %v4662_v2  ;;  %v4671_v52 = vsel %vm1067_vm5, %v4658_v49, %v4660_v7 }
 0x1b3   : > { %v7022_v40 = vadd.f32 %v1570_v20, %v6912_v8  ;;  %v4684_v8 = vsel %vm251_vm1, %v4667_v17, 0  ;;  %v4696_v19 = vsel %vm251_vm1, %v4671_v52, 0 }
 0x1b4   : > { %v1610_v9 = vpop.f32.mrf.mxu0  ;;  %v1744_v29 = vpop.f32.mrf.mxu1  ;;  %5360 = vmatmul.mubr.msk.bf16.vlgmr.msra.gmra.mxu1 %vm247_vm2, %v6947_v57 }
 0x1b5   : > { %v7030_v26 = vadd.f32 %v1610_v9, %v6923_v14  ;;  %v7033_v21 = vadd.f32 %v1744_v29, %v6926_v22  ;;  %4719 = vmatpush1.bf16.msra.mxu1 %v4678_v61  ;;  %4736 = vmatprep.mubr.bf16.mxu1 %v5606_v0  ;;  %v5597_v22 = vld [vmem:[%s7196_s0 + $0x78] sm:$0xff]   ;;  %v4664_v53 = vpop.permute.xlu1 %4663 }
 0x1b6   : > { %v5457_v34 = vpop.f32.mrf.mxu0  ;;  %v1746_v3 = vpop.f32.mrf.mxu1  ;;  %5369 = vmatprep.subr.msk.bf16.mxu1 %vm251_vm1, %v4670_v13  ;;  %v4673_v55 = vsel %vm1067_vm5, %v4662_v2, %v4664_v53 }
 0x1b7   : > { %v1924_v32 = vadd.f32 %v1746_v3, %v6934_v35  ;;  %v4690_v35 = vsel %vm251_vm1, %v4669_v31, 0  ;;  %v4702_v49 = vsel %vm251_vm1, %v4673_v55, 0 }
 0x1b8   : > { %v1748_v14 = vpop.f32.mrf.mxu1  ;;  %v1787_v47 = vpop.f32.mrf.mxu0  ;;  %5515 = vmatmul.mubr.msk.bf16.vlgmr.msra.gmra.mxu0 %vm247_vm2, %v6947_v57 }
 0x1b9   : > { %v1932_v48 = vadd.f32 %v1748_v14, %v6950_v38  ;;  %v1925_v16 = vadd.f32 %v1787_v47, %v6953_v41  ;;  %4762 = vmatpush1.bf16.msra.mxu0 %v4684_v8  ;;  %4779 = vmatprep.mubr.bf16.mxu0 %v5606_v0 }
 0x1ba   : > { %v1789_v11 = vpop.f32.mrf.mxu0  ;;  %v1750_v37 = vpop.f32.mrf.mxu1  ;;  %5371 = vmatprep.subr.msk.bf16.mxu0 %vm251_vm1, %v4672_v15 }
 0x1bb   : > { %v1926_v50 = vadd.f32 %v1789_v11, %v6962_v6  ;;  %v1933_v57 = vadd.f32 %v1750_v37, %v6959_v10 }
 0x1bc   : > { %v1791_v46 = vpop.f32.mrf.mxu0  ;;  %v1830_v38 = vpop.f32.mrf.mxu1  ;;  %5366 = vmatmul.mubr.msk.bf16.vlgmr.msra.gmra.mxu1 %vm247_vm2, %v5597_v22 }
 0x1bd   : > { %v1934_v41 = vadd.f32 %v1791_v46, %v6970_v63  ;;  %v1927_v1 = vadd.f32 %v1830_v38, %v6973_v43  ;;  %4805 = vmatpush1.bf16.msra.mxu1 %v4690_v35  ;;  %4822 = vmatprep.mubr.bf16.mxu1 %v5606_v0 }
 0x1be   : > { %v1793_v44 = vpop.f32.mrf.mxu0  ;;  %v1832_v6 = vpop.f32.mrf.mxu1  ;;  %5518 = vmatprep.subr.bf16.mxu1 %v5610_v62 }
 0x1bf   : > { %v1935_v10 = vadd.f32 %v1793_v44, %v6982_v24  ;;  %v1928_v39 = vadd.f32 %v1832_v6, %v6979_v33 }
 0x1c0   : > { %v1834_v25 = vpop.f32.mrf.mxu1  ;;  %v1873_v27 = vpop.f32.mrf.mxu0  ;;  %5368 = vmatmul.mubr.msk.bf16.vlgmr.msra.gmra.mxu0 %vm247_vm2, %v5597_v22 }
 0x1c1   : > { %v1936_v63 = vadd.f32 %v1834_v25, %v6992_v4  ;;  %v1929_v43 = vadd.f32 %v1873_v27, %v6995_v42  ;;  %4848 = vmatpush1.bf16.msra.mxu0 %v4696_v19  ;;  %4865 = vmatprep.mubr.bf16.mxu0 %v5606_v0 }
 0x1c2   : > { %v1836_v23 = vpop.f32.mrf.mxu1  ;;  %v1875_v54 = vpop.f32.mrf.mxu0 }
 0x1c3   : > { %v1937_v24 = vadd.f32 %v1836_v23, %v7001_v18  ;;  %v1930_v33 = vadd.f32 %v1875_v54, %v7004_v12 }
 0x1c4   : > { %v1877_v36 = vpop.f32.mrf.mxu0  ;;  %v1916_v45 = vpop.f32.mrf.mxu1  ;;  %5370 = vmatmul.mubr.msk.bf16.vlgmr.msra.gmra.mxu1 %vm247_vm2, %v5597_v22 }
 0x1c5   : > { %v1938_v58 = vadd.f32 %v1877_v36, %v7012_v28  ;;  %v1931_v4 = vadd.f32 %v1916_v45, %v7015_v51  ;;  %5519 = vmatpush3.bf16.msra.mxu1 %v4702_v49  ;;  %5520 = vmatprep.mubr.msk.bf16.mxu1 %vm5611_vm3, %v5610_v62 }
 0x1c6   : > { %v1879_v0 = vpop.f32.mrf.mxu0  ;;  %v5462_v42 = vpop.f32.mrf.mxu1 }
 0x1c7   : > { %v1939_v56 = vadd.f32 %v1879_v0, %v7022_v40 }
 0x1c8   : > { %v1919_v60 = vpop.f32.mrf.mxu1  ;;  %v2042_v18 = vpop.f32.mrf.mxu0  ;;  %5372 = vmatmul.mubr.msk.bf16.vlgmr.msra.gmra.mxu0 %vm247_vm2, %v5597_v22 }
 0x1c9   : > { %v1940_v12 = vadd.f32 %v1919_v60, %v7030_v26  ;;  %v2221_v30 = vadd.f32 %v2042_v18, %v7033_v21 }
 0x1ca   : > { %v5463_v5 = vpop.f32.mrf.mxu1  ;;  %v2044_v28 = vpop.f32.mrf.mxu0 }
 0x1cb   : > { %v2222_v61 = vadd.f32 %v2044_v28, %v1924_v32 }
 0x1cc   : > { %v2046_v51 = vpop.f32.mrf.mxu0  ;;  %v2085_v59 = vpop.f32.mrf.mxu1  ;;  %5521 = vmatmul.mubr.msk.bf16.vlgmr.msra.gmra.mxu1 %vm247_vm2, %v5597_v22 }
 0x1cd   : > { %v2230_v62 = vadd.f32 %v2046_v51, %v1932_v48  ;;  %v2223_v20 = vadd.f32 %v2085_v59, %v1925_v16 }
 0x1ce   : > { %v2048_v17 = vpop.f32.mrf.mxu0  ;;  %v2087_v13 = vpop.f32.mrf.mxu1 }
 0x1cf   : > { %v2231_v40 = vadd.f32 %v2048_v17, %v1933_v57  ;;  %v2224_v7 = vadd.f32 %v2087_v13, %v1926_v50 }
 0x1d0   : > { %v2089_v2 = vpop.f32.mrf.mxu1  ;;  %v2128_v9 = vpop.f32.mrf.mxu0 }
 0x1d1   : > { %v2232_v29 = vadd.f32 %v2089_v2, %v1934_v41  ;;  %v2225_v8 = vadd.f32 %v2128_v9, %v1927_v1 }
 0x1d2   : > { %v2091_v26 = vpop.f32.mrf.mxu1  ;;  %v2130_v34 = vpop.f32.mrf.mxu0 }
 0x1d3   : > { %v2233_v21 = vadd.f32 %v2091_v26, %v1935_v10  ;;  %v2226_v3 = vadd.f32 %v2130_v34, %v1928_v39 }
 0x1d4   : > { %v2132_v31 = vpop.f32.mrf.mxu0  ;;  %v2171_v32 = vpop.f32.mrf.mxu1 }
 0x1d5   : > { %v2234_v15 = vadd.f32 %v2132_v31, %v1936_v63  ;;  %v2227_v14 = vadd.f32 %v2171_v32, %v1929_v43 }
 0x1d6   : > { %v2134_v47 = vpop.f32.mrf.mxu0  ;;  %v2173_v22 = vpop.f32.mrf.mxu1 }
 0x1d7   : > { %v2235_v48 = vadd.f32 %v2134_v47, %v1937_v24  ;;  %v2228_v16 = vadd.f32 %v2173_v22, %v1930_v33 }
 0x1d8   : > { %v2175_v35 = vpop.f32.mrf.mxu1  ;;  %v2214_v11 = vpop.f32.mrf.mxu0 }
 0x1d9   : > { %v2236_v37 = vadd.f32 %v2175_v35, %v1938_v58  ;;  %v2229_v50 = vadd.f32 %v2214_v11, %v1931_v4 }
 0x1da   : > { %v2177_v57 = vpop.f32.mrf.mxu1  ;;  %v5468_v52 = vpop.f32.mrf.mxu0 }
 0x1db   : > { %v2237_v53 = vadd.f32 %v2177_v57, %v1939_v56 }
 0x1dc   : > { %v2217_v46 = vpop.f32.mrf.mxu0  ;;  %v2340_v38 = vpop.f32.mrf.mxu1 }
 0x1dd   : > { %v2238_v41 = vadd.f32 %v2217_v46, %v1940_v12  ;;  %v2519_v1 = vadd.f32 %v2340_v38, %v2221_v30 }
 0x1de   : > { %v5469_v19 = vpop.f32.mrf.mxu0  ;;  %v2342_v44 = vpop.f32.mrf.mxu1 }
 0x1df   : > { %v2520_v6 = vadd.f32 %v2342_v44, %v2222_v61 }
 0x1e0   : > { %v2344_v10 = vpop.f32.mrf.mxu1  ;;  %v2383_v39 = vpop.f32.mrf.mxu0 }
 0x1e1   : > { %v2528_v55 = vadd.f32 %v2344_v10, %v2230_v62  ;;  %v2521_v25 = vadd.f32 %v2383_v39, %v2223_v20 }
 0x1e2   : > { %v2346_v27 = vpop.f32.mrf.mxu1  ;;  %v2385_v63 = vpop.f32.mrf.mxu0 }
 0x1e3   : > { %v2529_v43 = vadd.f32 %v2346_v27, %v2231_v40  ;;  %v2522_v23 = vadd.f32 %v2385_v63, %v2224_v7 }
 0x1e4   : > { %v2387_v54 = vpop.f32.mrf.mxu0  ;;  %v2426_v49 = vpop.f32.mrf.mxu1 }
 0x1e5   : > { %v2530_v24 = vadd.f32 %v2387_v54, %v2232_v29  ;;  %v2523_v33 = vadd.f32 %v2426_v49, %v2225_v8 }
 0x1e6   : > { %v2389_v36 = vpop.f32.mrf.mxu0  ;;  %v2428_v45 = vpop.f32.mrf.mxu1 }
 0x1e7   : > { %v2531_v58 = vadd.f32 %v2389_v36, %v2233_v21  ;;  %v2524_v4 = vadd.f32 %v2428_v45, %v2226_v3 }
 0x1e8   : > { %v2430_v0 = vpop.f32.mrf.mxu1  ;;  %v2469_v42 = vpop.f32.mrf.mxu0 }
 0x1e9   : > { %v2532_v56 = vadd.f32 %v2430_v0, %v2234_v15  ;;  %v2525_v60 = vadd.f32 %v2469_v42, %v2227_v14 }
 0x1ea   : > { %v2432_v18 = vpop.f32.mrf.mxu1  ;;  %v2471_v12 = vpop.f32.mrf.mxu0 }
 0x1eb   : > { %v2533_v30 = vadd.f32 %v2432_v18, %v2235_v48  ;;  %v2526_v5 = vadd.f32 %v2471_v12, %v2228_v16 }
 0x1ec   : > { %v2473_v28 = vpop.f32.mrf.mxu0  ;;  %v2512_v61 = vpop.f32.mrf.mxu1 }
 0x1ed   : > { %v2534_v51 = vadd.f32 %v2473_v28, %v2236_v37  ;;  %v2527_v59 = vadd.f32 %v2512_v61, %v2229_v50 }
 0x1ee   : > { %v2475_v62 = vpop.f32.mrf.mxu0  ;;  %v5474_v20 = vpop.f32.mrf.mxu1 }
 0x1ef   : > { %v2535_v17 = vadd.f32 %v2475_v62, %v2237_v53 }
 0x1f0   : > { %v2515_v13 = vpop.f32.mrf.mxu1  ;;  %v2634_v40 = vpop.f32.mrf.mxu0 }
 0x1f1   : > { %v2536_v7 = vadd.f32 %v2515_v13, %v2238_v41  ;;  %v2813_v2 = vadd.f32 %v2634_v40, %v2519_v1 }
 0x1f2   : > { %v5475_v9 = vpop.f32.mrf.mxu1  ;;  %v2636_v29 = vpop.f32.mrf.mxu0 }
 0x1f3   : > { %v2814_v8 = vadd.f32 %v2636_v29, %v2520_v6 }
 0x1f4   : > { %v2638_v26 = vpop.f32.mrf.mxu0  ;;  %v2677_v34 = vpop.f32.mrf.mxu1 }
 0x1f5   : > { %v2822_v21 = vadd.f32 %v2638_v26, %v2528_v55  ;;  %v2815_v3 = vadd.f32 %v2677_v34, %v2521_v25 }
 0x1f6   : > { %v2640_v31 = vpop.f32.mrf.mxu0  ;;  %v2679_v32 = vpop.f32.mrf.mxu1 }
 0x1f7   : > { %v2823_v15 = vadd.f32 %v2640_v31, %v2529_v43  ;;  %v2816_v14 = vadd.f32 %v2679_v32, %v2522_v23 }
 0x1f8   : > { %v2681_v47 = vpop.f32.mrf.mxu1  ;;  %v2720_v22 = vpop.f32.mrf.mxu0 }
 0x1f9   : > { %v2824_v48 = vadd.f32 %v2681_v47, %v2530_v24  ;;  %v2817_v16 = vadd.f32 %v2720_v22, %v2523_v33 }
 0x1fa   : > { %v2683_v35 = vpop.f32.mrf.mxu1  ;;  %v2722_v11 = vpop.f32.mrf.mxu0 }
 0x1fb   : > { %v2825_v37 = vadd.f32 %v2683_v35, %v2531_v58  ;;  %v2818_v50 = vadd.f32 %v2722_v11, %v2524_v4 }
 0x1fc   : > { %v2724_v57 = vpop.f32.mrf.mxu0  ;;  %v2763_v52 = vpop.f32.mrf.mxu1 }
 0x1fd   : > { %v2826_v53 = vadd.f32 %v2724_v57, %v2532_v56  ;;  %v2819_v46 = vadd.f32 %v2763_v52, %v2525_v60 }
 0x1fe   : > { %v2726_v38 = vpop.f32.mrf.mxu0  ;;  %v2765_v41 = vpop.f32.mrf.mxu1 }
 0x1ff   : > { %v2827_v1 = vadd.f32 %v2726_v38, %v2533_v30  ;;  %v2820_v19 = vadd.f32 %v2765_v41, %v2526_v5 }
 0x200   : > { %v2767_v44 = vpop.f32.mrf.mxu1  ;;  %v2806_v6 = vpop.f32.mrf.mxu0 }
 0x201   : > { %v2828_v10 = vadd.f32 %v2767_v44, %v2534_v51  ;;  %v2821_v39 = vadd.f32 %v2806_v6, %v2527_v59 }
 0x202   : > { %v2769_v55 = vpop.f32.mrf.mxu1  ;;  %v5480_v25 = vpop.f32.mrf.mxu0 }
 0x203   : > { %v2829_v27 = vadd.f32 %v2769_v55, %v2535_v17 }
 0x204   : > { %v2809_v63 = vpop.f32.mrf.mxu0  ;;  %v2943_v43 = vpop.f32.mrf.mxu1 }
 0x205   : > { %v2830_v23 = vadd.f32 %v2809_v63, %v2536_v7  ;;  %v3122_v54 = vadd.f32 %v2943_v43, %v2813_v2 }
 0x206   : > { %v5481_v49 = vpop.f32.mrf.mxu0  ;;  %v2945_v24 = vpop.f32.mrf.mxu1 }
 0x207   : > { %v3123_v33 = vadd.f32 %v2945_v24, %v2814_v8 }
 0x208   : > { %v2947_v36 = vpop.f32.mrf.mxu1  ;;  %v2986_v45 = vpop.f32.mrf.mxu0 }
 0x209   : > { %v3131_v58 = vadd.f32 %v2947_v36, %v2822_v21  ;;  %v3124_v4 = vadd.f32 %v2986_v45, %v2815_v3 }
 0x20a   : > { %v2949_v0 = vpop.f32.mrf.mxu1  ;;  %v2988_v42 = vpop.f32.mrf.mxu0 }
 0x20b   : > { %v3132_v56 = vadd.f32 %v2949_v0, %v2823_v15  ;;  %v3125_v60 = vadd.f32 %v2988_v42, %v2816_v14 }
 0x20c   : > { %v2990_v18 = vpop.f32.mrf.mxu0  ;;  %v3029_v12 = vpop.f32.mrf.mxu1 }
 0x20d   : > { %v3133_v30 = vadd.f32 %v2990_v18, %v2824_v48  ;;  %v3126_v5 = vadd.f32 %v3029_v12, %v2817_v16 }
 0x20e   : > { %v2992_v28 = vpop.f32.mrf.mxu0  ;;  %v3031_v61 = vpop.f32.mrf.mxu1 }
 0x20f   : > { %v3134_v51 = vadd.f32 %v2992_v28, %v2825_v37  ;;  %v3127_v59 = vadd.f32 %v3031_v61, %v2818_v50 }
 0x210   : > { %v3033_v62 = vpop.f32.mrf.mxu1  ;;  %v3072_v20 = vpop.f32.mrf.mxu0 }
 0x211   : > { %v3135_v17 = vadd.f32 %v3033_v62, %v2826_v53  ;;  %v3128_v13 = vadd.f32 %v3072_v20, %v2819_v46 }
 0x212   : > { %v3035_v40 = vpop.f32.mrf.mxu1  ;;  %v3074_v7 = vpop.f32.mrf.mxu0 }
 0x213   : > { %v3136_v2 = vadd.f32 %v3035_v40, %v2827_v1  ;;  %v3129_v9 = vadd.f32 %v3074_v7, %v2820_v19 }
 0x214   : > { %v3076_v29 = vpop.f32.mrf.mxu0  ;;  %v3115_v8 = vpop.f32.mrf.mxu1 }
 0x215   : > { %v3137_v26 = vadd.f32 %v3076_v29, %v2828_v10  ;;  %v3130_v34 = vadd.f32 %v3115_v8, %v2821_v39 }
 0x216   : > { %v3078_v21 = vpop.f32.mrf.mxu0  ;;  %v5486_v3 = vpop.f32.mrf.mxu1 }
 0x217   : > { %v3138_v31 = vadd.f32 %v3078_v21, %v2829_v27 }
 0x218   : > { %v3118_v32 = vpop.f32.mrf.mxu1  ;;  %v3241_v15 = vpop.f32.mrf.mxu0 }
 0x219   : > { %v3139_v14 = vadd.f32 %v3118_v32, %v2830_v23  ;;  %v3420_v47 = vadd.f32 %v3241_v15, %v3122_v54 }
 0x21a   : > { %v5487_v22 = vpop.f32.mrf.mxu1  ;;  %v3243_v48 = vpop.f32.mrf.mxu0 }
 0x21b   : > { %v3421_v16 = vadd.f32 %v3243_v48, %v3123_v33 }
 0x21c   : > { %v3245_v35 = vpop.f32.mrf.mxu0  ;;  %v3284_v11 = vpop.f32.mrf.mxu1 }
 0x21d   : > { %v3429_v37 = vadd.f32 %v3245_v35, %v3131_v58  ;;  %v3422_v50 = vadd.f32 %v3284_v11, %v3124_v4 }
 0x21e   : > { %v3247_v57 = vpop.f32.mrf.mxu0  ;;  %v3286_v52 = vpop.f32.mrf.mxu1 }
 0x21f   : > { %v3430_v53 = vadd.f32 %v3247_v57, %v3132_v56  ;;  %v3423_v46 = vadd.f32 %v3286_v52, %v3125_v60 }
 0x220   : > { %v3288_v38 = vpop.f32.mrf.mxu1  ;;  %v3327_v41 = vpop.f32.mrf.mxu0 }
 0x221   : > { %v3431_v1 = vadd.f32 %v3288_v38, %v3133_v30  ;;  %v3424_v19 = vadd.f32 %v3327_v41, %v3126_v5 }
 0x222   : > { %v3290_v44 = vpop.f32.mrf.mxu1  ;;  %v3329_v6 = vpop.f32.mrf.mxu0 }
 0x223   : > { %v3432_v10 = vadd.f32 %v3290_v44, %v3134_v51  ;;  %v3425_v39 = vadd.f32 %v3329_v6, %v3127_v59 }
 0x224   : > { %v3331_v55 = vpop.f32.mrf.mxu0  ;;  %v3370_v25 = vpop.f32.mrf.mxu1 }
 0x225   : > { %v3433_v27 = vadd.f32 %v3331_v55, %v3135_v17  ;;  %v3426_v63 = vadd.f32 %v3370_v25, %v3128_v13 }
 0x226   : > { %v3333_v43 = vpop.f32.mrf.mxu0  ;;  %v3372_v23 = vpop.f32.mrf.mxu1 }
 0x227   : > { %v3434_v54 = vadd.f32 %v3333_v43, %v3136_v2  ;;  %v3427_v49 = vadd.f32 %v3372_v23, %v3129_v9 }
 0x228   : > { %v3374_v24 = vpop.f32.mrf.mxu1  ;;  %v3413_v33 = vpop.f32.mrf.mxu0 }
 0x229   : > { %v3435_v36 = vadd.f32 %v3374_v24, %v3137_v26  ;;  %v3428_v45 = vadd.f32 %v3413_v33, %v3130_v34 }
 0x22a   : > { %v3376_v58 = vpop.f32.mrf.mxu1  ;;  %v5492_v4 = vpop.f32.mrf.mxu0 }
 0x22b   : > { %v3436_v0 = vadd.f32 %v3376_v58, %v3138_v31 }
 0x22c   : > { %v3416_v42 = vpop.f32.mrf.mxu0  ;;  %v3539_v56 = vpop.f32.mrf.mxu1 }
 0x22d   : > { %v3437_v60 = vadd.f32 %v3416_v42, %v3139_v14  ;;  %v7080_v18 = vadd.f32 %v3539_v56, %v3420_v47 }
 0x22e   : > { %v5493_v12 = vpop.f32.mrf.mxu0  ;;  %v3541_v30 = vpop.f32.mrf.mxu1 }
 0x22f   : > { %v7082_v5 = vadd.f32 %v3541_v30, %v3421_v16 }
 0x230   : > { %v3543_v28 = vpop.f32.mrf.mxu1  ;;  %v3582_v61 = vpop.f32.mrf.mxu0 }
 0x231   : > { %v7084_v51 = vadd.f32 %v3543_v28, %v3429_v37  ;;  %v7086_v59 = vadd.f32 %v3582_v61, %v3422_v50 }
 0x232   : > { %v3545_v62 = vpop.f32.mrf.mxu1  ;;  %v3584_v20 = vpop.f32.mrf.mxu0 }
 0x233   : > { %v7088_v17 = vadd.f32 %v3545_v62, %v3430_v53  ;;  %v7090_v13 = vadd.f32 %v3584_v20, %v3423_v46 }
 0x234   : > { %v3586_v40 = vpop.f32.mrf.mxu0  ;;  %v3625_v7 = vpop.f32.mrf.mxu1 }
 0x235   : > { %v7092_v2 = vadd.f32 %v3586_v40, %v3431_v1  ;;  %v7094_v9 = vadd.f32 %v3625_v7, %v3424_v19 }
 0x236   : > { %v3588_v29 = vpop.f32.mrf.mxu0  ;;  %v3627_v8 = vpop.f32.mrf.mxu1 }
 0x237   : > { %v7096_v26 = vadd.f32 %v3588_v29, %v3432_v10  ;;  %v7098_v34 = vadd.f32 %v3627_v8, %v3425_v39 }
 0x238   : > { %v3629_v21 = vpop.f32.mrf.mxu1  ;;  %v3668_v3 = vpop.f32.mrf.mxu0 }
 0x239   : > { %7200 = vst [vmem:[#allocation2_spill] sm:$0xff] %v7096_v26  ;;  %7201 = vst [vmem:[#allocation3_spill] sm:$0xff] %v7098_v34  ;;  %v7100_v31 = vadd.f32 %v3629_v21, %v3433_v27  ;;  %v7102_v32 = vadd.f32 %v3668_v3, %v3426_v63 }
 0x23a   : > { %v3631_v15 = vpop.f32.mrf.mxu1  ;;  %v3670_v14 = vpop.f32.mrf.mxu0 }
 0x23b   : > { %7202 = vst [vmem:[#allocation4_spill] sm:$0xff] %v7100_v31  ;;  %7203 = vst [vmem:[#allocation5_spill] sm:$0xff] %v7102_v32  ;;  %v7104_v47 = vadd.f32 %v3631_v15, %v3434_v54  ;;  %v7106_v22 = vadd.f32 %v3670_v14, %v3427_v49 }
 0x23c   : > { %v3672_v48 = vpop.f32.mrf.mxu0  ;;  %v3711_v16 = vpop.f32.mrf.mxu1 }
 0x23d   : > { %7204 = vst [vmem:[#allocation6_spill] sm:$0xff] %v7104_v47  ;;  %7205 = vst [vmem:[#allocation7_spill] sm:$0xff] %v7106_v22  ;;  %v7108_v35 = vadd.f32 %v3672_v48, %v3435_v36  ;;  %v7110_v11 = vadd.f32 %v3711_v16, %v3428_v45 }
 0x23e   : > { %v3674_v37 = vpop.f32.mrf.mxu0  ;;  %v5498_v50 = vpop.f32.mrf.mxu1 }
 0x23f   : > { %7206 = vst [vmem:[#allocation8_spill] sm:$0xff] %v7108_v35  ;;  %7207 = vst [vmem:[#allocation9_spill] sm:$0xff] %v7110_v11  ;;  %v7112_v57 = vadd.f32 %v3674_v37, %v3436_v0 }
 0x240   : > { %v3714_v52 = vpop.f32.mrf.mxu1  ;;  %v3833_v53 = vpop.f32.mrf.mxu0 }
 0x241   : > { %7208 = vst [vmem:[#allocation10_spill] sm:$0xff] %v7112_v57  ;;  %v7114_v46 = vadd.f32 %v3714_v52, %v3437_v60  ;;  %v4012_v22 = vadd.f32 %v3833_v53, %v7080_v18  ;;  %v7215_v53 = vld [vmem:[#allocation3_spill] sm:$0xff] }
 0x242   : > { %v5499_v38 = vpop.f32.mrf.mxu1  ;;  %v3835_v41 = vpop.f32.mrf.mxu0 }
 0x243   : > { %7209 = vst [vmem:[#allocation11_spill] sm:$0xff] %v7114_v46 }
 0x244   : > { %v3837_v1 = vpop.f32.mrf.mxu0  ;;  %v3876_v19 = vpop.f32.mrf.mxu1 }
 0x245   : > { %v4014_v47 = vadd.f32 %v3876_v19, %v7086_v59  ;;  %v7218_v59 = vld [vmem:[#allocation6_spill] sm:$0xff] }
 0x246   : > { %v3839_v44 = vpop.f32.mrf.mxu0  ;;  %v3878_v6 = vpop.f32.mrf.mxu1 }
 0x247   : > { %v4022_v32 = vadd.f32 %v3839_v44, %v7088_v17  ;;  %v4015_v31 = vadd.f32 %v3878_v6, %v7090_v13  ;;  %v7219_v44 = vld [vmem:[#allocation7_spill] sm:$0xff]  ;;  %v7220_v13 = vld [vmem:[#allocation8_spill] sm:$0xff] }
 0x248   : > { %v3880_v10 = vpop.f32.mrf.mxu1  ;;  %v3919_v39 = vpop.f32.mrf.mxu0 }
 0x249   : > { %v4023_v34 = vadd.f32 %v3880_v10, %v7092_v2  ;;  %v7221_v10 = vld [vmem:[#allocation9_spill] sm:$0xff] }
 0x24a   : > { %v3882_v55 = vpop.f32.mrf.mxu1  ;;  %v3921_v25 = vpop.f32.mrf.mxu0 }
 0x24c   : > { %v3923_v27 = vpop.f32.mrf.mxu0  ;;  %v3962_v63 = vpop.f32.mrf.mxu1 }
 0x24e   : > { %v3925_v43 = vpop.f32.mrf.mxu0  ;;  %v3964_v23 = vpop.f32.mrf.mxu1 }
 0x24f   : > { %v4026_v17 = vadd.f32 %v3925_v43, %v7218_v59  ;;  %v4019_v6 = vadd.f32 %v3964_v23, %v7219_v44 }
 0x250   : > { %v3966_v54 = vpop.f32.mrf.mxu1  ;;  %v4005_v49 = vpop.f32.mrf.mxu0 }
 0x251   : > { %v4027_v2 = vadd.f32 %v3966_v54, %v7220_v13 }
 0x252   : > { %v3968_v24 = vpop.f32.mrf.mxu1  ;;  %v5504_v33 = vpop.f32.mrf.mxu0 }
 0x254   : > { %v4008_v36 = vpop.f32.mrf.mxu0  ;;  %v4142_v45 = vpop.f32.mrf.mxu1 }
 0x256   : > { %v5505_v58 = vpop.f32.mrf.mxu0  ;;  %v4144_v4 = vpop.f32.mrf.mxu1 }
 0x258   : > { %v4146_v0 = vpop.f32.mrf.mxu1  ;;  %v4185_v42 = vpop.f32.mrf.mxu0 }
 0x25a   : > { %v4148_v56 = vpop.f32.mrf.mxu1  ;;  %v4187_v60 = vpop.f32.mrf.mxu0 }
 0x25b   : > { %v4331_v43 = vadd.f32 %v4148_v56, %v4022_v32  ;;  %v4324_v59 = vadd.f32 %v4187_v60, %v4015_v31 }
 0x25c   : > { %v4189_v12 = vpop.f32.mrf.mxu0  ;;  %v4228_v30 = vpop.f32.mrf.mxu1 }
 0x25d   : > { %v4332_v13 = vadd.f32 %v4189_v12, %v4023_v34 }
 0x25e   : > { %v4191_v28 = vpop.f32.mrf.mxu0  ;;  %v4230_v61 = vpop.f32.mrf.mxu1 }
 0x260   : > { %v4232_v62 = vpop.f32.mrf.mxu1  ;;  %v4271_v20 = vpop.f32.mrf.mxu0 }
 0x262   : > { %v4234_v40 = vpop.f32.mrf.mxu1  ;;  %v4273_v7 = vpop.f32.mrf.mxu0 }
 0x264   : > { %v4275_v29 = vpop.f32.mrf.mxu0  ;;  %v4314_v8 = vpop.f32.mrf.mxu1 }
 0x266   : > { %v4277_v21 = vpop.f32.mrf.mxu0  ;;  %v5510_v3 = vpop.f32.mrf.mxu1 }
 0x267   : > { %v4013_v3 = vadd.f32 %v3835_v41, %v7082_v5  ;;  %v4017_v5 = vadd.f32 %v3921_v25, %v7215_v53  ;;  %v7216_v41 = vld [vmem:[#allocation4_spill] sm:$0xff]  ;;  %v7223_v25 = vld [vmem:[#allocation11_spill] sm:$0xff] }
 0x268   : > { %v4317_v15 = vpop.f32.mrf.mxu1  ;;  %v4440_v14 = vpop.f32.mrf.mxu0  ;;  %v4029_v53 = vadd.f32 %v4008_v36, %v7223_v25 }
 0x26a   : > { %v5511_v48 = vpop.f32.mrf.mxu1  ;;  %v4442_v16 = vpop.f32.mrf.mxu0  ;;  %v7148_v60 = vadd.f32 %v4317_v15, %v4029_v53 }
 0x26b   : > { %v4021_v48 = vadd.f32 %v3837_v1, %v7084_v51  ;;  %v4025_v1 = vadd.f32 %v3923_v27, %v7216_v41  ;;  %v7217_v51 = vld [vmem:[#allocation5_spill] sm:$0xff]  ;;  %v4321_v27 = vadd.f32 %v4142_v45, %v4012_v22  ;;  %v4322_v41 = vadd.f32 %v4144_v4, %v4013_v3 }
 0x26c   : > { %v4444_v37 = vpop.f32.mrf.mxu0  ;;  %v4483_v50 = vpop.f32.mrf.mxu1  ;;  %v4018_v19 = vadd.f32 %v3962_v63, %v7217_v51  ;;  %v4323_v63 = vadd.f32 %v4185_v42, %v4014_v47  ;;  %v4335_v22 = vadd.f32 %v4234_v40, %v4026_v17  ;;  %v4336_v47 = vadd.f32 %v4275_v29, %v4027_v2 }
 0x26d   : > { %v4330_v51 = vadd.f32 %v4146_v0, %v4021_v48  ;;  %v4334_v25 = vadd.f32 %v4232_v62, %v4025_v1  ;;  %v4328_v0 = vadd.f32 %v4273_v7, %v4019_v6  ;;  %v4620_v32 = vadd.f32 %v4442_v16, %v4322_v41 }
 0x26e   : > { %v4446_v52 = vpop.f32.mrf.mxu0  ;;  %v4485_v38 = vpop.f32.mrf.mxu1  ;;  %v4327_v36 = vadd.f32 %v4271_v20, %v4018_v19 }
 0x26f   : > { %v4628_v34 = vadd.f32 %v4444_v37, %v4330_v51  ;;  %v4622_v20 = vadd.f32 %v4485_v38, %v4324_v59  ;;  %v7152_v37 = vpop.permute.xlu1 %4944 }
 0x270   : > { %v4487_v33 = vpop.f32.mrf.mxu1  ;;  %v4526_v58 = vpop.f32.mrf.mxu0 }
 0x271   : > { %v4630_v40 = vadd.f32 %v4487_v33, %v4332_v13 }
 0x272   : > { %v4489_v46 = vpop.f32.mrf.mxu1  ;;  %v7116_v57 = vpop.f32.mrf.mxu0 }
 0x273   : > { %7210 = vst [vmem:[#allocation12_spill] sm:$0xff] %v7116_v57  ;;  %v4016_v57 = vadd.f32 %v3919_v39, %v7094_v9  ;;  %v4020_v9 = vadd.f32 %v4005_v49, %v7221_v10  ;;  %v4619_v49 = vadd.f32 %v4440_v14, %v4321_v27 }
 0x274   : > { %v7118_v11 = vpop.f32.mrf.mxu0  ;;  %v7120_v35 = vpop.f32.mrf.mxu1 }
 0x275   : > { %7211 = vst [vmem:[#allocation13_spill] sm:$0xff] %v7118_v11  ;;  %7212 = vst [vmem:[#allocation14_spill] sm:$0xff] %v7120_v35  ;;  %v7214_v35 = vld [vmem:[#allocation2_spill] sm:$0xff]  ;;  %v4325_v54 = vadd.f32 %v4228_v30, %v4016_v57  ;;  %v4329_v42 = vadd.f32 %v4314_v8, %v4020_v9  ;;  %v4621_v30 = vadd.f32 %v4483_v50, %v4323_v63 }
 0x276   : > { %v4532_v26 = vpop.f32.mrf.mxu0  ;;  %v7130_v11 = vpop.f32.mrf.mxu1  ;;  %v4024_v18 = vadd.f32 %v3882_v55, %v7214_v35  ;;  %v7222_v35 = vld [vmem:[#allocation10_spill] sm:$0xff] }
 0x277   : > { %7213 = vst [vmem:[#allocation15_spill] sm:$0xff] %v7130_v11  ;;  %v4028_v55 = vadd.f32 %v3968_v24, %v7222_v35  ;;  %v7144_v24 = vpop.permute.xlu0 %4939  ;;  %v4326_v35 = vadd.f32 %v4230_v61, %v4017_v5  ;;  %v4623_v14 = vadd.f32 %v4526_v58, %v4325_v54  ;;  %v4633_v19 = vadd.f32 %v4532_v26, %v4335_v22 }
 0x278   : > { %v4573_v39 = vpop.f32.mrf.mxu1  ;;  %v4612_v11 = vpop.f32.mrf.mxu0  ;;  %v4333_v10 = vadd.f32 %v4191_v28, %v4024_v18  ;;  %v4629_v28 = vadd.f32 %v4446_v52, %v4331_v43 }
 0x279   : > { %v4337_v56 = vadd.f32 %v4277_v21, %v4028_v55  ;;  %v4634_v9 = vadd.f32 %v4573_v39, %v4336_v47  ;;  %v4627_v55 = vadd.f32 %v4612_v11, %v4329_v42 }
 0x27a   : > { %v7142_v23 = vpop.f32.mrf.mxu1  ;;  %v5516_v44 = vpop.f32.mrf.mxu0  ;;  %v4631_v7 = vadd.f32 %v4489_v46, %v4333_v10  ;;  %v7224_v48 = vld [vmem:[#allocation12_spill] sm:$0xff] }
 0x27b   : > { %v4624_v50 = vadd.f32 %v7224_v48, %v4326_v35 }
 0x27c   : > { %v7146_v45 = vpop.f32.mrf.mxu0  ;;  %v4738_v4 = vpop.f32.mrf.mxu1  ;;  %v7225_v52 = vld [vmem:[#allocation13_spill] sm:$0xff]  ;;  %v7226_v5 = vld [vmem:[#allocation14_spill] sm:$0xff] }
 0x27d   : > { %v4917_v31 = vadd.f32 %v4738_v4, %v4619_v49  ;;  %v4632_v18 = vadd.f32 %v7225_v52, %v4334_v25  ;;  %v4625_v1 = vadd.f32 %v7226_v5, %v4327_v36  ;;  %v4635_v49 = vadd.f32 %v7142_v23, %v4337_v56 }
 0x27e   : > { %v5517_v57 = vpop.f32.mrf.mxu0  ;;  %v4740_v12 = vpop.f32.mrf.mxu1  ;;  %v7227_v46 = vld [vmem:[#allocation15_spill] sm:$0xff] }
 0x27f   : > { %v4918_v61 = vadd.f32 %v4740_v12, %v4620_v32  ;;  %v4947_v62 = vadd.f32 %v7144_v24, %v4917_v31  ;;  %v4626_v58 = vadd.f32 %v7227_v46, %v4328_v0 }
 0x280   : > { %v4742_v29 = vpop.f32.mrf.mxu1  ;;  %v4781_v16 = vpop.f32.mrf.mxu0 }
 0x281   : > { %v4948_v8 = vadd.f32 %v7144_v24, %v4918_v61  ;;  %v4965_v21 = vmul.f32 0.1, %v4947_v62  ;;  %v4926_v15 = vadd.f32 %v4742_v29, %v4628_v34  ;;  %v4919_v3 = vadd.f32 %v4781_v16, %v4621_v30 }
 0x282   : > { %v4744_v38 = vpop.f32.mrf.mxu1  ;;  %v4783_v33 = vpop.f32.mrf.mxu0 }
 0x283   : > { %v4966_v17 = vmul.f32 0.1, %v4948_v8  ;;  %v4949_v6 = vadd.f32 %v7144_v24, %v4919_v3  ;;  %v4927_v2 = vadd.f32 %v4744_v38, %v4629_v28  ;;  %v4956_v53 = vadd.f32 %v7152_v37, %v4926_v15 }
 0x284   : > { %v4920_v27 = vadd.f32 %v4783_v33, %v4622_v20  ;;  %v4785_v41 = vpop.f32.mrf.mxu0  ;;  %v4824_v51 = vpop.f32.mrf.mxu1  ;;  %v4983_v63 = vmax.f32 %v4947_v62, %v4965_v21 }
 0x285   : > { %v4984_v43 = vmax.f32 %v4948_v8, %v4966_v17  ;;  %v4957_v26 = vadd.f32 %v7152_v37, %v4927_v2  ;;  %v4928_v59 = vadd.f32 %v4785_v41, %v4630_v40  ;;  %v4967_v44 = vmul.f32 0.1, %v4949_v6 }
 0x286   : > { %v4974_v13 = vmul.f32 0.1, %v4956_v53  ;;  %v4950_v11 = vadd.f32 %v7144_v24, %v4920_v27  ;;  %v4921_v39 = vadd.f32 %v4824_v51, %v4623_v14  ;;  %v4787_v54 = vpop.f32.mrf.mxu0  ;;  %v4826_v10 = vpop.f32.mrf.mxu1  ;;  %v4636_v41 = vadd.f32 %v7146_v45, %v7148_v60 }
 0x287   : > { %v5386_v35 = vpack.c.bf16 %v4984_v43, %v4983_v63  ;;  %v4975_v25 = vmul.f32 0.1, %v4957_v26  ;;  %v4958_v36 = vadd.f32 %v7152_v37, %v4928_v59  ;;  %v4929_v47 = vadd.f32 %v4787_v54, %v4631_v7 }
 0x288   : > { %v4992_v22 = vmax.f32 %v4956_v53, %v4974_v13  ;;  %v4968_v4 = vmul.f32 0.1, %v4950_v11  ;;  %v4951_v0 = vadd.f32 %v7144_v24, %v4921_v39  ;;  %v4828_v32 = vpop.f32.mrf.mxu1  ;;  %v4867_v31 = vpop.f32.mrf.mxu0  ;;  %v4922_v57 = vadd.f32 %v4826_v10, %v4624_v50 }
 0x289   : > { %5057 = vst [vmem:[%s7165_s7] sm:$0xff] %v5386_v35  ;;  %v4993_v42 = vmax.f32 %v4957_v26, %v4975_v25  ;;  %v4976_v34 = vmul.f32 0.1, %v4958_v36  ;;  %v4930_v12 = vadd.f32 %v4828_v32, %v4632_v18  ;;  %v4985_v30 = vmax.f32 %v4949_v6, %v4967_v44 }
 0x28a   : > { %v4986_v28 = vmax.f32 %v4950_v11, %v4968_v4  ;;  %v4959_v23 = vadd.f32 %v7152_v37, %v4929_v47  ;;  %v4923_v56 = vadd.f32 %v4867_v31, %v4625_v1  ;;  %v4830_v61 = vpop.f32.mrf.mxu1  ;;  %v4869_v62 = vpop.f32.mrf.mxu0  ;;  %v4969_v40 = vmul.f32 0.1, %v4951_v0 }
 0x28b   : > { %v5391_v20 = vpack.c.bf16 %v4993_v42, %v4992_v22  ;;  %v4952_v14 = vadd.f32 %v7144_v24, %v4922_v57  ;;  %v4960_v7 = vadd.f32 %v7152_v37, %v4930_v12  ;;  %v4994_v16 = vmax.f32 %v4958_v36, %v4976_v34 }
 0x28c   : > { %v5387_v29 = vpack.c.bf16 %v4986_v28, %v4985_v30  ;;  %v4977_v8 = vmul.f32 0.1, %v4959_v23  ;;  %v4953_v21 = vadd.f32 %v7144_v24, %v4923_v56  ;;  %v4871_v15 = vpop.f32.mrf.mxu0  ;;  %v4910_v3 = vpop.f32.mrf.mxu1  ;;  %v4931_v52 = vadd.f32 %v4830_v61, %v4633_v19 }
 0x28d   : > { %5062 = vst [vmem:[%s7165_s7 + $0x24] sm:$0xff] %v5391_v20  ;;  %v4970_v48 = vmul.f32 0.1, %v4952_v14  ;;  %v4978_v50 = vmul.f32 0.1, %v4960_v7  ;;  %v4924_v18 = vadd.f32 %v4869_v62, %v4626_v58  ;;  %v4932_v38 = vadd.f32 %v4871_v15, %v4634_v9 }
 0x28e   : > { %5058 = vst [vmem:[%s7165_s7 + $0x8] sm:$0xff] %v5387_v29  ;;  %v4995_v5 = vmax.f32 %v4959_v23, %v4977_v8  ;;  %v4971_v1 = vmul.f32 0.1, %v4953_v21  ;;  %v4925_v33 = vadd.f32 %v4910_v3, %v4627_v55  ;;  %v4873_v46 = vpop.f32.mrf.mxu0  ;;  %v5522_v17 = vpop.f32.mrf.mxu1  ;;  %v4987_v6 = vmax.f32 %v4951_v0, %v4969_v40 }
 0x28f   : > { %v4988_v2 = vmax.f32 %v4952_v14, %v4970_v48  ;;  %v4961_v53 = vadd.f32 %v7152_v37, %v4931_v52  ;;  %v4954_v27 = vadd.f32 %v7144_v24, %v4924_v18  ;;  %v4962_v58 = vadd.f32 %v7152_v37, %v4932_v38 }
 0x290   : > { %v5392_v19 = vpack.c.bf16 %v4995_v5, %v4994_v16  ;;  %v4955_v51 = vadd.f32 %v7144_v24, %v4925_v33  ;;  %v4913_v9 = vpop.f32.mrf.mxu1  ;;  %v4933_v26 = vadd.f32 %v4873_v46, %v4635_v49  ;;  %v4996_v59 = vmax.f32 %v4960_v7, %v4978_v50 }
 0x291   : > { %v5388_v55 = vpack.c.bf16 %v4988_v2, %v4987_v6  ;;  %v4979_v63 = vmul.f32 0.1, %v4961_v53  ;;  %v4972_v43 = vmul.f32 0.1, %v4954_v27  ;;  %v4989_v44 = vmax.f32 %v4953_v21, %v4971_v1 }
 0x292   : > { %5063 = vst [vmem:[%s7165_s7 + $0x2c] sm:$0xff] %v5392_v19  ;;  %v4973_v13 = vmul.f32 0.1, %v4955_v51  ;;  %v4934_v11 = vadd.f32 %v4913_v9, %v4636_v41  ;;  %v5523_v39 = vpop.f32.mrf.mxu1  ;;  %v4980_v54 = vmul.f32 0.1, %v4962_v58  ;;  %v4963_v24 = vadd.f32 %v7152_v37, %v4933_v26 }
 0x293   : > { %5059 = vst [vmem:[%s7165_s7 + $0x10] sm:$0xff] %v5388_v55  ;;  %v4997_v45 = vmax.f32 %v4961_v53, %v4979_v63  ;;  %v4990_v60 = vmax.f32 %v4954_v27, %v4972_v43 }
 0x294   : > { %v4991_v10 = vmax.f32 %v4955_v51, %v4973_v13  ;;  %v4964_v49 = vadd.f32 %v7152_v37, %v4934_v11  ;;  %v4981_v36 = vmul.f32 0.1, %v4963_v24  ;;  %v4998_v0 = vmax.f32 %v4962_v58, %v4980_v54 }
 0x295   : > { %v5393_v35 = vpack.c.bf16 %v4997_v45, %v4996_v59  ;;  %v5389_v25 = vpack.c.bf16 %v4990_v60, %v4989_v44 }
 0x296   : > { %v5390_v22 = vpack.c.bf16 %v4991_v10, %v4991_v10  ;;  %v4982_v4 = vmul.f32 0.1, %v4964_v49  ;;  %v4999_v47 = vmax.f32 %v4963_v24, %v4981_v36 }
 0x297   : > { %5064 = vst [vmem:[%s7165_s7 + $0x34] sm:$0xff] %v5393_v35  ;;  %5060 = vst [vmem:[%s7165_s7 + $0x18] sm:$0xff] %v5389_v25 }
 0x298   : > { %5061 = vst [vmem:[%s7165_s7 + $0x20] sm:$0xf] %v5390_v22  ;;  %v5000_v32 = vmax.f32 %v4964_v49, %v4982_v4  ;;  %v5394_v31 = vpack.c.bf16 %v4999_v47, %v4998_v0 }
 0x29a   : > { %v5395_v42 = vpack.c.bf16 %v5000_v32, %v5000_v32  ;;  %5065 = vst [vmem:[%s7165_s7 + $0x3c] sm:$0xff] %v5394_v31 }
 0x29c   : > { %5066 = vst [vmem:[%s7165_s7 + $0x44] sm:$0xf] %v5395_v42 }
 0x29d PF: > { %s13_s12 = sadd.s32 1, %s5604_s12  }
 0x29e   : > { %p10_p4 = scmp.ge.s32.totalorder %s13_s12, 4  }
 0x2a0   :  { %12 = sbr.rel (!%p10_p4) target bundleno = 1 (0x1), region = 80 }

// kernel: discriminator_forward.5
= control target key start
LH: loop header
LB: loop body
LE: loop exit
PB: predicated region body
PF: predicated region fallthrough
CT: control target
= control target key end

     0   :  { %s3183_s12 = smov 0   ;;  %s3789_s0 = inlined_call_operand.vmem [shape: bf16[16,32,16], index: 0, kind: input, shape index: {}]   ;;  %s3790_s1 = inlined_call_operand.vmem [shape: bf16[2,4,16,512], index: 1, kind: input, shape index: {}]   ;;  %s3791_s2 = inlined_call_operand.vmem [shape: f32[32,1], index: 2, kind: input, shape index: {}]   ;;  %s3792_s3 = inlined_call_operand.vmem [shape: bf16[2,32,384], index: 3, kind: output, shape index: {}]  }
   0x1 LB: > { %s2725_s13 = sadd.s32 4294967295, %s3157_s12   ;;  %p2729_p0 = scmp.ge.s32.totalorder %s3157_s12, 1  ;;  %s3157_s12 = sphi %s3183_s12, %s13_s12  }
   0x2   : > { %p137_p1 = scmp.lt.s32.totalorder %s3157_s12, 3 }
   0x4   : > { %p138_p2 = pnand %p2729_p0, %p137_p1 }
   0x6   : > { %141 = sbr.rel (%p138_p2) target bundleno = 537 (0x219), region = 32 }
   0xb   : > { %p161_p3 = scmp.lt.s32.totalorder %s2725_s13, 1  ;;  %v3196_v0 = vld [vmem:[%s3789_s0 + $0x20] sm:$0xff]   ;;  %vm226_vm0 = vcmask 130048   ;;  %v3159_v1 = vmov 0   ;;  %s3160_s20 = smov 127   ;;  %vm219_vm1 = vcmask 1039360  }
   0xc   : > { %265 = vmatprep.mubr.bf16.mxu0 %v3159_v1  ;;  %3093 = vset.pattern.permute.xlu0 %v3159_v1  ;;  %s3161_s21 = smov 111   ;;  %s3162_s22 = smov 110   ;;  %v3114_v26 = vld [vmem:[%s3789_s0 + $0x28] sm:$0xff]   ;;  %vm476_vm2 = vcmask 908288   ;;  %v3115_v32 = vld [vmem:[%s3789_s0] sm:$0xff]   ;;  %vm626_vm3 = vcmask 900096  }
   0xd   : > { %s3826_s13 = smov (!%p161_p3, %s2725_s13), 1  ;;  %2986 = vmatprep.mubr.msk.bf16.mxu1 %vm226_vm0, %v3196_v0  ;;  %3094 = vset.pattern.permute.xlu1 %v3159_v1  ;;  %v3116_v36 = vld [vmem:[%s3789_s0 + $0x8] sm:$0xff]   ;;  %v3121_v39 = vld [vmem:[%s3789_s0 + $0x80] sm:$0xff]   ;;  %v3127_v51 = vld [vmem:[%s3789_s0 + $0x10] sm:$0xff]  }
   0xe   : > { %s2927_s16 = sshll.u32 %s3826_s13, 7  ;;  %v3124_v42 = vld [vmem:[%s3789_s0 + $0x88] sm:$0xff]   ;;  %v3125_v44 = vld [vmem:[%s3789_s0 + $0xa0] sm:$0xff]   ;;  %v3128_v55 = vld [vmem:[%s3789_s0 + $0x18] sm:$0xff]   ;;  %s3080_s18 = smul.u32 48, %s3826_s13 }
   0xf   : > { %s3204_s19 = scalar_lea.vmem %s3790_s1, %s2927_s16  ;;  %v3126_v49 = vld [vmem:[%s3789_s0 + $0xa8] sm:$0xff]   ;;  %v3129_v61 = vld [vmem:[%s3789_s0 + $0x30] sm:$0xff]  }
  0x10   : > { %v3095_v2 = vld [vmem:[%s3204_s19 + $0xc] ss:$16 sps:$4 sm:$0xff]   ;;  %v3212_v3 = vld [vmem:[%s3204_s19 + $0x4] ss:$16 sps:$4 sm:$0xff]   ;;  %v3215_v4 = vld [vmem:[%s3204_s19] ss:$16 sps:$4 sm:$0xff]  }
  0x11   : > { %217 = vrot.lane.b32.xlu1 %v3095_v2, %s3160_s20  ;;  %v3218_v5 = vld [vmem:[%s3204_s19 + $0x8] ss:$16 sps:$4 sm:$0xff]   ;;  %213 = vrot.lane.b32.xlu0 %v3212_v3, %s3160_s20  ;;  %v3242_v7 = vld [vmem:[%s3204_s19 + $0x24] ss:$16 sps:$4 sm:$0xff]  }
  0x12   : > { %v3238_v6 = vld [vmem:[%s3204_s19 + $0x28] ss:$16 sps:$4 sm:$0xff]   ;;  %v3106_v8 = vld [vmem:[%s3204_s19 + $0x2c] ss:$16 sps:$4 sm:$0xff]   ;;  %v3250_v9 = vld [vmem:[%s3204_s19 + $0x20] ss:$16 sps:$4 sm:$0xff]  }
  0x13   : > { %v3270_v10 = vld [vmem:[%s3204_s19 + $0x48] ss:$16 sps:$4 sm:$0xff]   ;;  %v3275_v11 = vld [vmem:[%s3204_s19 + $0x44] ss:$16 sps:$4 sm:$0xff]   ;;  %v3112_v12 = vld [vmem:[%s3204_s19 + $0x4c] ss:$16 sps:$4 sm:$0xff]  }
  0x14   : > { %v3283_v13 = vld [vmem:[%s3204_s19 + $0x40] ss:$16 sps:$4 sm:$0xff]   ;;  %v3301_v14 = vld [vmem:[%s3204_s19 + $0x68] ss:$16 sps:$4 sm:$0xff]   ;;  %v3306_v15 = vld [vmem:[%s3204_s19 + $0x64] ss:$16 sps:$4 sm:$0xff]  }
  0x15   : > { %211 = vrot.lane.b32.xlu1 %v3215_v4, %s3160_s20  ;;  %215 = vrot.lane.b32.xlu0 %v3218_v5, %s3160_s20  ;;  %v3123_v16 = vld [vmem:[%s3204_s19 + $0x6c] ss:$16 sps:$4 sm:$0xff]   ;;  %v3314_v17 = vld [vmem:[%s3204_s19 + $0x60] ss:$16 sps:$4 sm:$0xff]  }
  0x19   : > { %472 = vrot.lane.b32.xlu1 %v3218_v5, %s3161_s21  ;;  %470 = vrot.lane.b32.xlu0 %v3212_v3, %s3161_s21 }
  0x1d   : > { %468 = vrot.lane.b32.xlu1 %v3215_v4, %s3161_s21  ;;  %474 = vrot.lane.b32.xlu0 %v3095_v2, %s3161_s21 }
  0x21   : > { %622 = vrot.lane.b32.xlu1 %v3218_v5, %s3162_s22  ;;  %620 = vrot.lane.b32.xlu0 %v3212_v3, %s3162_s22 }
  0x25   : > { %624 = vrot.lane.b32.xlu1 %v3095_v2, %s3162_s22  ;;  %618 = vrot.lane.b32.xlu0 %v3215_v4, %s3162_s22  ;;  %v3130_v2 = vld [vmem:[%s3789_s0 + $0x38] sm:$0xff]  }
  0x29   : > { %928 = vrot.lane.b32.xlu1 %v3238_v6, %s3160_s20  ;;  %926 = vrot.lane.b32.xlu0 %v3242_v7, %s3160_s20 }
  0x2d   : > { %930 = vrot.lane.b32.xlu1 %v3106_v8, %s3160_s20  ;;  %924 = vrot.lane.b32.xlu0 %v3250_v9, %s3160_s20 }
  0x31   : > { %1077 = vrot.lane.b32.xlu1 %v3238_v6, %s3161_s21  ;;  %1075 = vrot.lane.b32.xlu0 %v3242_v7, %s3161_s21 }
  0x35   : > { %1073 = vrot.lane.b32.xlu1 %v3250_v9, %s3161_s21  ;;  %1079 = vrot.lane.b32.xlu0 %v3106_v8, %s3161_s21 }
  0x39   : > { %1226 = vrot.lane.b32.xlu1 %v3238_v6, %s3162_s22  ;;  %1224 = vrot.lane.b32.xlu0 %v3242_v7, %s3162_s22 }
  0x3d   : > { %1228 = vrot.lane.b32.xlu1 %v3106_v8, %s3162_s22  ;;  %1222 = vrot.lane.b32.xlu0 %v3250_v9, %s3162_s22  ;;  %v3132_v8 = vld [vmem:[%s3789_s0 + $0x98] sm:$0xff]  }
  0x41   : > { %1531 = vrot.lane.b32.xlu1 %v3270_v10, %s3160_s20  ;;  %1529 = vrot.lane.b32.xlu0 %v3275_v11, %s3160_s20 }
  0x45   : > { %1533 = vrot.lane.b32.xlu1 %v3112_v12, %s3160_s20  ;;  %1527 = vrot.lane.b32.xlu0 %v3283_v13, %s3160_s20 }
  0x49   : > { %1680 = vrot.lane.b32.xlu1 %v3270_v10, %s3161_s21  ;;  %1678 = vrot.lane.b32.xlu0 %v3275_v11, %s3161_s21 }
  0x4d   : > { %1676 = vrot.lane.b32.xlu1 %v3283_v13, %s3161_s21  ;;  %1682 = vrot.lane.b32.xlu0 %v3112_v12, %s3161_s21 }
  0x51   : > { %1829 = vrot.lane.b32.xlu1 %v3270_v10, %s3162_s22  ;;  %1827 = vrot.lane.b32.xlu0 %v3275_v11, %s3162_s22 }
  0x55   : > { %1831 = vrot.lane.b32.xlu1 %v3112_v12, %s3162_s22  ;;  %1825 = vrot.lane.b32.xlu0 %v3283_v13, %s3162_s22  ;;  %v3133_v12 = vld [vmem:[%s3789_s0 + $0xb0] sm:$0xff]  }
  0x59   : > { %2134 = vrot.lane.b32.xlu1 %v3301_v14, %s3160_s20  ;;  %2132 = vrot.lane.b32.xlu0 %v3306_v15, %s3160_s20 }
  0x5d   : > { %2136 = vrot.lane.b32.xlu1 %v3123_v16, %s3160_s20  ;;  %2130 = vrot.lane.b32.xlu0 %v3314_v17, %s3160_s20  ;;  %s3772_s20 = scalar_lea.vmem %s3792_s3, %s3080_s18 }
  0x61   : > { %2283 = vrot.lane.b32.xlu1 %v3301_v14, %s3161_s21  ;;  %2281 = vrot.lane.b32.xlu0 %v3306_v15, %s3161_s21 }
  0x65   : > { %2279 = vrot.lane.b32.xlu1 %v3314_v17, %s3161_s21  ;;  %2285 = vrot.lane.b32.xlu0 %v3123_v16, %s3161_s21 }
  0x69   : > { %2432 = vrot.lane.b32.xlu1 %v3301_v14, %s3162_s22  ;;  %2430 = vrot.lane.b32.xlu0 %v3306_v15, %s3162_s22 }
  0x6d   : > { %2434 = vrot.lane.b32.xlu1 %v3123_v16, %s3162_s22  ;;  %2428 = vrot.lane.b32.xlu0 %v3314_v17, %s3162_s22 }
  0x83   : > { %v218_v18 = vpop.permute.xlu1 %217  ;;  %v214_v19 = vpop.permute.xlu0 %213 }
  0x87   : > { %v212_v20 = vpop.permute.xlu1 %211  ;;  %v216_v21 = vpop.permute.xlu0 %215 }
  0x88   : > { %v220_v22 = vsel %vm219_vm1, %v212_v20, %v214_v19  ;;  %v221_v23 = vsel %vm219_vm1, %v214_v19, %v216_v21  ;;  %v222_v24 = vsel %vm219_vm1, %v216_v21, %v218_v18  ;;  %v3134_v20 = vld [vmem:[%s3789_s0 + $0xb8] sm:$0xff]  }
  0x89   : > { %247 = vmatprep.subr.bf16.mxu0 %v221_v23  ;;  %2984 = vmatprep.subr.bf16.mxu1 %v222_v24 }
  0x8a   : > { %2985 = vmatpush3.bf16.msra.mxu1 %v222_v24  ;;  %248 = vmatpush1.bf16.msra.mxu0 %v220_v22  ;;  %v3135_v22 = vld [vmem:[%s3789_s0 + $0x40] sm:$0xff]  }
  0x8b   : > { %v473_v25 = vpop.permute.xlu1 %472  ;;  %365 = vmatprep.subr.bf16.mxu1 %v3212_v3  ;;  %2990 = vmatprep.subr.bf16.mxu0 %v3218_v5  ;;  %v471_v27 = vpop.permute.xlu0 %470 }
  0x8c   : > { %v478_v28 = vsel %vm476_vm2, %v471_v27, %v473_v25 }
  0x8d   : > { %2987 = vmatmul.mubr.msk.bf16.vlgmr.msra.gmra.mxu1 %vm226_vm0, %v3114_v26  ;;  %2743 = vmatmul.mubr.msk.bf16.vlgmr.msra.gmra.mxu0 %vm226_vm0, %v3196_v0 }
  0x8e   : > { %366 = vmatpush1.bf16.msra.mxu1 %v3215_v4  ;;  %2991 = vmatpush3.bf16.msra.mxu0 %v3218_v5  ;;  %v3131_v5 = vld [vmem:[%s3789_s0 + $0x90] sm:$0xff]  }
  0x8f   : > { %v469_v29 = vpop.permute.xlu1 %468  ;;  %503 = vmatprep.subr.bf16.mxu0 %v478_v28  ;;  %v475_v30 = vpop.permute.xlu0 %474  ;;  %275 = vmatprep.mubr.bf16.mxu0 %v3159_v1 }
  0x90   : > { %383 = vmatprep.mubr.bf16.mxu1 %v3159_v1  ;;  %v479_v31 = vsel %vm476_vm2, %v473_v25, %v475_v30  ;;  %v477_v38 = vsel %vm476_vm2, %v469_v29, %v471_v27  ;;  %v3136_v25 = vld [vmem:[%s3789_s0 + $0x48] sm:$0xff]   ;;  %v3137_v30 = vld [vmem:[%s3789_s0 + $0x60] sm:$0xff]  }
  0x91   : > { %2996 = vmatprep.subr.bf16.mxu1 %v479_v31 }
  0x93   : > { %v623_v33 = vpop.permute.xlu1 %622  ;;  %v621_v34 = vpop.permute.xlu0 %620 }
  0x94   : > { %v628_v35 = vsel %vm626_vm3, %v621_v34, %v623_v33 }
  0x95   : > { %2744 = vmatmul.mubr.msk.bf16.gmra.mxu0 %vm226_vm0, %v3114_v26  ;;  %2749 = vmatmul.mubr.msk.bf16.vlgmr.msra.gmra.mxu1 %vm226_vm0, %v3115_v32 }
  0x96   : > { %2997 = vmatpush3.bf16.msra.mxu1 %v479_v31  ;;  %393 = vmatprep.mubr.bf16.mxu1 %v3159_v1 }
  0x97   : > { %2992 = vmatprep.mubr.msk.bf16.mxu0 %vm226_vm0, %v3115_v32  ;;  %653 = vmatprep.subr.bf16.mxu1 %v628_v35  ;;  %v625_v37 = vpop.permute.xlu1 %624  ;;  %v619_v41 = vpop.permute.xlu0 %618 }
  0x98   : > { %v629_v40 = vsel %vm626_vm3, %v623_v33, %v625_v37  ;;  %v627_v43 = vsel %vm626_vm3, %v619_v41, %v621_v34  ;;  %v3138_v34 = vld [vmem:[%s3789_s0 + $0x68] sm:$0xff]   ;;  %v3139_v37 = vld [vmem:[%s3789_s0 + $0xc0] sm:$0xff]  }
  0x9b   : > { %v929_v45 = vpop.permute.xlu1 %928  ;;  %v927_v46 = vpop.permute.xlu0 %926 }
  0x9c   : > { %v933_v47 = vsel %vm219_vm1, %v927_v46, %v929_v45 }
  0x9d   : > { %2750 = vmatmul.mubr.msk.bf16.gmra.mxu1 %vm226_vm0, %v3116_v36  ;;  %2993 = vmatmul.mubr.msk.bf16.vlgmr.msra.gmra.mxu0 %vm226_vm0, %v3116_v36 }
  0x9e   : > { %504 = vmatpush1.bf16.msra.mxu0 %v477_v38  ;;  %521 = vmatprep.mubr.bf16.mxu0 %v3159_v1 }
  0x9f   : > { %3002 = vmatprep.subr.bf16.mxu0 %v629_v40  ;;  %2998 = vmatprep.mubr.msk.bf16.mxu1 %vm226_vm0, %v3121_v39  ;;  %v925_v48 = vpop.permute.xlu0 %924  ;;  %v931_v50 = vpop.permute.xlu1 %930 }
  0xa0   : > { %v934_v52 = vsel %vm219_vm1, %v929_v45, %v931_v50  ;;  %v932_v57 = vsel %vm219_vm1, %v925_v48, %v927_v46  ;;  %v2565_v48 = vld [vmem:[%s3791_s2 + $0x18] sm:$0xff]  ;;  %v3142_v50 = vld [vmem:[%s3789_s0 + $0xe8] sm:$0xff]  }
  0xa3   : > { %v1076_v53 = vpop.permute.xlu0 %1075  ;;  %v1078_v54 = vpop.permute.xlu1 %1077 }
  0xa4   : > { %v1082_v58 = vsel %vm476_vm2, %v1076_v53, %v1078_v54 }
  0xa5   : > { %2759 = vmatmul.mubr.msk.bf16.vlgmr.msra.gmra.mxu0 %vm226_vm0, %v3121_v39  ;;  %2999 = vmatmul.mubr.msk.bf16.vlgmr.msra.gmra.mxu1 %vm226_vm0, %v3124_v42 }
  0xa6   : > { %654 = vmatpush1.bf16.msra.mxu1 %v627_v43  ;;  %3003 = vmatpush3.bf16.msra.mxu0 %v629_v40  ;;  %v3140_v40 = vld [vmem:[%s3789_s0 + $0xc8] sm:$0xff]  }
  0xa7   : > { %531 = vmatprep.mubr.bf16.mxu0 %v3159_v1  ;;  %671 = vmatprep.mubr.bf16.mxu1 %v3159_v1  ;;  %v1080_v56 = vpop.permute.xlu0 %1079  ;;  %v1074_v59 = vpop.permute.xlu1 %1073  ;;  %v2563_v43 = vld [vmem:[%s3791_s2 + $0x8] sm:$0xff] }
  0xa8   : > { %3008 = vmatprep.subr.bf16.mxu1 %v3238_v6  ;;  %804 = vmatprep.subr.bf16.mxu0 %v3242_v7  ;;  %v1083_v60 = vsel %vm476_vm2, %v1078_v54, %v1080_v56  ;;  %v1081_v4 = vsel %vm476_vm2, %v1074_v59, %v1076_v53 }
  0xa9   : > { %2573 = vperm.xlu1 %3094, %v2563_v43  }
  0xab   : > { %v1227_v62 = vpop.permute.xlu1 %1226  ;;  %v1225_v63 = vpop.permute.xlu0 %1224 }
  0xac   : > { %v1231_v0 = vsel %vm626_vm3, %v1225_v63, %v1227_v62 }
  0xad   : > { %2760 = vmatmul.mubr.msk.bf16.gmra.mxu0 %vm226_vm0, %v3124_v42  ;;  %2769 = vmatmul.mubr.msk.bf16.vlgmr.msra.gmra.mxu1 %vm226_vm0, %v3125_v44  ;;  %v2562_v42 = vld [vmem:[%s3791_s2] sm:$0xff] }
  0xae   : > { %3009 = vmatpush3.bf16.msra.mxu1 %v3238_v6  ;;  %681 = vmatprep.mubr.bf16.mxu1 %v3159_v1 }
  0xaf   : > { %3004 = vmatprep.mubr.msk.bf16.mxu0 %vm226_vm0, %v3125_v44  ;;  %958 = vmatprep.subr.bf16.mxu1 %v933_v47  ;;  %v1229_v3 = vpop.permute.xlu1 %1228  ;;  %v1223_v7 = vpop.permute.xlu0 %1222  ;;  %v3141_v44 = vld [vmem:[%s3789_s0 + $0xe0] sm:$0xff]  }
  0xb0   : > { %v1232_v6 = vsel %vm626_vm3, %v1227_v62, %v1229_v3  ;;  %2568 = vperm.xlu0 %3093, %v2562_v42  }
  0xb3   : > { %v1532_v16 = vpop.permute.xlu1 %1531  ;;  %v1530_v18 = vpop.permute.xlu0 %1529 }
  0xb4   : > { %v1536_v19 = vsel %vm219_vm1, %v1530_v18, %v1532_v16  ;;  %2583 = vperm.xlu0 %3093, %v2565_v48  }
  0xb5   : > { %2770 = vmatmul.mubr.msk.bf16.gmra.mxu1 %vm226_vm0, %v3126_v49  ;;  %3005 = vmatmul.mubr.msk.bf16.vlgmr.msra.gmra.mxu0 %vm226_vm0, %v3126_v49 }
  0xb6   : > { %805 = vmatpush1.bf16.msra.mxu0 %v3250_v9  ;;  %822 = vmatprep.mubr.bf16.mxu0 %v3159_v1  ;;  %v1230_v9 = vsel %vm626_vm3, %v1223_v7, %v1225_v63  ;;  %v3148_v7 = vld [vmem:[%s3789_s0 + $0xd8] sm:$0xff]  }
  0xb7   : > { %3014 = vmatprep.subr.bf16.mxu0 %v934_v52  ;;  %3010 = vmatprep.mubr.msk.bf16.mxu1 %vm226_vm0, %v3127_v51  ;;  %v1534_v21 = vpop.permute.xlu1 %1533 }
  0xb8   : > { %v1537_v23 = vsel %vm219_vm1, %v1532_v16, %v1534_v21 }
  0xbd   : > { %2786 = vmatmul.mubr.msk.bf16.vlgmr.msra.gmra.mxu0 %vm226_vm0, %v3127_v51  ;;  %3011 = vmatmul.mubr.msk.bf16.vlgmr.msra.gmra.mxu1 %vm226_vm0, %v3128_v55 }
  0xbe   : > { %959 = vmatpush1.bf16.msra.mxu1 %v932_v57  ;;  %3015 = vmatpush3.bf16.msra.mxu0 %v934_v52 }
  0xbf   : > { %1107 = vmatprep.subr.bf16.mxu0 %v1082_v58  ;;  %832 = vmatprep.mubr.bf16.mxu0 %v3159_v1 }
  0xc0   : > { %976 = vmatprep.mubr.bf16.mxu1 %v3159_v1  ;;  %3020 = vmatprep.subr.bf16.mxu1 %v1083_v60 }
  0xc5   : > { %2787 = vmatmul.mubr.msk.bf16.gmra.mxu0 %vm226_vm0, %v3128_v55  ;;  %2797 = vmatmul.mubr.msk.bf16.vlgmr.msra.gmra.mxu1 %vm226_vm0, %v3129_v61  ;;  %v3144_v55 = vld [vmem:[%s3789_s0 + $0x58] sm:$0xff]  }
  0xc6   : > { %3021 = vmatpush3.bf16.msra.mxu1 %v1083_v60  ;;  %986 = vmatprep.mubr.bf16.mxu1 %v3159_v1  ;;  %v3145_v60 = vld [vmem:[%s3789_s0 + $0x70] sm:$0xff]  }
  0xc7   : > { %3016 = vmatprep.mubr.msk.bf16.mxu0 %vm226_vm0, %v3129_v61  ;;  %1256 = vmatprep.subr.bf16.mxu1 %v1231_v0  ;;  %v3146_v0 = vld [vmem:[%s3789_s0 + $0x78] sm:$0xff]  }
  0xcd   : > { %2798 = vmatmul.mubr.msk.bf16.gmra.mxu1 %vm226_vm0, %v3130_v2  ;;  %3017 = vmatmul.mubr.msk.bf16.vlgmr.msra.gmra.mxu0 %vm226_vm0, %v3130_v2 }
  0xce   : > { %1108 = vmatpush1.bf16.msra.mxu0 %v1081_v4  ;;  %1125 = vmatprep.mubr.bf16.mxu0 %v3159_v1  ;;  %v3147_v4 = vld [vmem:[%s3789_s0 + $0xd0] sm:$0xff]  }
  0xcf   : > { %3026 = vmatprep.subr.bf16.mxu0 %v1232_v6  ;;  %3022 = vmatprep.mubr.msk.bf16.mxu1 %vm226_vm0, %v3131_v5 }
  0xd5   : > { %2807 = vmatmul.mubr.msk.bf16.vlgmr.msra.gmra.mxu0 %vm226_vm0, %v3131_v5  ;;  %3023 = vmatmul.mubr.msk.bf16.vlgmr.msra.gmra.mxu1 %vm226_vm0, %v3132_v8 }
  0xd6   : > { %1257 = vmatpush1.bf16.msra.mxu1 %v1230_v9  ;;  %3027 = vmatpush3.bf16.msra.mxu0 %v1232_v6  ;;  %v3149_v9 = vld [vmem:[%s3789_s0 + $0xf0] sm:$0xff]  }
  0xd7   : > { %1135 = vmatprep.mubr.bf16.mxu0 %v3159_v1  ;;  %1274 = vmatprep.mubr.bf16.mxu1 %v3159_v1 }
  0xd8   : > { %3032 = vmatprep.subr.bf16.mxu1 %v3270_v10  ;;  %1407 = vmatprep.subr.bf16.mxu0 %v3275_v11  ;;  %v1528_v11 = vpop.permute.xlu0 %1527 }
  0xd9   : > { %v1535_v27 = vsel %vm219_vm1, %v1528_v11, %v1530_v18 }
  0xdc   : > { %v1679_v24 = vpop.permute.xlu0 %1678 }
  0xdd   : > { %2808 = vmatmul.mubr.msk.bf16.gmra.mxu0 %vm226_vm0, %v3132_v8  ;;  %2817 = vmatmul.mubr.msk.bf16.vlgmr.msra.gmra.mxu1 %vm226_vm0, %v3133_v12 }
  0xde   : > { %3033 = vmatpush3.bf16.msra.mxu1 %v3270_v10  ;;  %1284 = vmatprep.mubr.bf16.mxu1 %v3159_v1  ;;  %v1681_v10 = vpop.permute.xlu1 %1680 }
  0xdf   : > { %3028 = vmatprep.mubr.msk.bf16.mxu0 %vm226_vm0, %v3133_v12  ;;  %1561 = vmatprep.subr.bf16.mxu1 %v1536_v19  ;;  %v1685_v28 = vsel %vm476_vm2, %v1679_v24, %v1681_v10  ;;  %v3150_v12 = vld [vmem:[%s3789_s0 + $0xf8] sm:$0xff]  }
  0xe0   : > { %v1683_v26 = vpop.permute.xlu0 %1682 }
  0xe1   : > { %v1686_v29 = vsel %vm476_vm2, %v1681_v10, %v1683_v26 }
  0xe4   : > { %v1828_v32 = vpop.permute.xlu0 %1827 }
  0xe5   : > { %2818 = vmatmul.mubr.msk.bf16.gmra.mxu1 %vm226_vm0, %v3134_v20  ;;  %3029 = vmatmul.mubr.msk.bf16.vlgmr.msra.gmra.mxu0 %vm226_vm0, %v3134_v20 }
  0xe6   : > { %1408 = vmatpush1.bf16.msra.mxu0 %v3283_v13  ;;  %1425 = vmatprep.mubr.bf16.mxu0 %v3159_v1  ;;  %v1677_v13 = vpop.permute.xlu1 %1676 }
  0xe7   : > { %3038 = vmatprep.subr.bf16.mxu0 %v1537_v23  ;;  %3034 = vmatprep.mubr.msk.bf16.mxu1 %vm226_vm0, %v3135_v22  ;;  %v1684_v36 = vsel %vm476_vm2, %v1677_v13, %v1679_v24 }
  0xe8   : > { %v1826_v39 = vpop.permute.xlu0 %1825 }
  0xe9   : > { %v1833_v41 = vsel %vm626_vm3, %v1826_v39, %v1828_v32 }
  0xea   : > { %v1830_v31 = vpop.permute.xlu1 %1829 }
  0xeb   : > { %v1834_v33 = vsel %vm626_vm3, %v1828_v32, %v1830_v31 }
  0xec   : > { %v2133_v46 = vpop.permute.xlu0 %2132 }
  0xed   : > { %2834 = vmatmul.mubr.msk.bf16.vlgmr.msra.gmra.mxu0 %vm226_vm0, %v3135_v22  ;;  %3035 = vmatmul.mubr.msk.bf16.vlgmr.msra.gmra.mxu1 %vm226_vm0, %v3136_v25 }
  0xee   : > { %1562 = vmatpush1.bf16.msra.mxu1 %v1535_v27  ;;  %3039 = vmatpush3.bf16.msra.mxu0 %v1537_v23  ;;  %v1832_v35 = vpop.permute.xlu1 %1831 }
  0xef   : > { %1710 = vmatprep.subr.bf16.mxu0 %v1685_v28  ;;  %1435 = vmatprep.mubr.bf16.mxu0 %v3159_v1  ;;  %v1835_v38 = vsel %vm626_vm3, %v1830_v31, %v1832_v35 }
  0xf0   : > { %1579 = vmatprep.mubr.bf16.mxu1 %v3159_v1  ;;  %3044 = vmatprep.subr.bf16.mxu1 %v1686_v29  ;;  %v2131_v49 = vpop.permute.xlu0 %2130 }
  0xf1   : > { %v2138_v57 = vsel %vm219_vm1, %v2131_v49, %v2133_v46 }
  0xf2   : > { %v2135_v45 = vpop.permute.xlu1 %2134 }
  0xf3   : > { %v2139_v47 = vsel %vm219_vm1, %v2133_v46, %v2135_v45 }
  0xf4   : > { %v2282_v53 = vpop.permute.xlu0 %2281 }
  0xf5   : > { %2835 = vmatmul.mubr.msk.bf16.gmra.mxu0 %vm226_vm0, %v3136_v25  ;;  %2845 = vmatmul.mubr.msk.bf16.vlgmr.msra.gmra.mxu1 %vm226_vm0, %v3137_v30 }
  0xf6   : > { %3045 = vmatpush3.bf16.msra.mxu1 %v1686_v29  ;;  %1589 = vmatprep.mubr.bf16.mxu1 %v3159_v1  ;;  %v2137_v51 = vpop.permute.xlu1 %2136 }
  0xf7   : > { %3040 = vmatprep.mubr.msk.bf16.mxu0 %vm226_vm0, %v3137_v30  ;;  %1859 = vmatprep.subr.bf16.mxu1 %v1834_v33  ;;  %v2140_v52 = vsel %vm219_vm1, %v2135_v45, %v2137_v51 }
  0xf8   : > { %v2286_v56 = vpop.permute.xlu0 %2285 }
  0xfa   : > { %v2284_v54 = vpop.permute.xlu1 %2283 }
  0xfb   : > { %v2288_v58 = vsel %vm476_vm2, %v2282_v53, %v2284_v54  ;;  %v2289_v59 = vsel %vm476_vm2, %v2284_v54, %v2286_v56 }
  0xfc   : > { %v2431_v62 = vpop.permute.xlu0 %2430 }
  0xfd   : > { %2846 = vmatmul.mubr.msk.bf16.gmra.mxu1 %vm226_vm0, %v3138_v34  ;;  %3041 = vmatmul.mubr.msk.bf16.vlgmr.msra.gmra.mxu0 %vm226_vm0, %v3138_v34 }
  0xfe   : > { %1711 = vmatpush1.bf16.msra.mxu0 %v1684_v36  ;;  %1728 = vmatprep.mubr.bf16.mxu0 %v3159_v1 }
  0xff   : > { %3050 = vmatprep.subr.bf16.mxu0 %v1835_v38  ;;  %3046 = vmatprep.mubr.msk.bf16.mxu1 %vm226_vm0, %v3139_v37 }
 0x100   : > { %v2429_v6 = vpop.permute.xlu0 %2428 }
 0x101   : > { %v2436_v8 = vsel %vm626_vm3, %v2429_v6, %v2431_v62 }
 0x105   : > { %2855 = vmatmul.mubr.msk.bf16.vlgmr.msra.gmra.mxu0 %vm226_vm0, %v3139_v37  ;;  %3047 = vmatmul.mubr.msk.bf16.vlgmr.msra.gmra.mxu1 %vm226_vm0, %v3140_v40 }
 0x106   : > { %1860 = vmatpush1.bf16.msra.mxu1 %v1833_v41  ;;  %3051 = vmatpush3.bf16.msra.mxu0 %v1835_v38 }
 0x107   : > { %1738 = vmatprep.mubr.bf16.mxu0 %v3159_v1  ;;  %1877 = vmatprep.mubr.bf16.mxu1 %v3159_v1 }
 0x108   : > { %3056 = vmatprep.subr.bf16.mxu1 %v3301_v14  ;;  %2010 = vmatprep.subr.bf16.mxu0 %v3306_v15  ;;  %v2564_v15 = vld [vmem:[%s3791_s2 + $0x10] sm:$0xff] }
 0x109   : > { %2578 = vperm.xlu1 %3094, %v2564_v15  }
 0x10d   : > { %2856 = vmatmul.mubr.msk.bf16.gmra.mxu0 %vm226_vm0, %v3140_v40  ;;  %2865 = vmatmul.mubr.msk.bf16.vlgmr.msra.gmra.mxu1 %vm226_vm0, %v3141_v44 }
 0x10e   : > { %3057 = vmatpush3.bf16.msra.mxu1 %v3301_v14  ;;  %1887 = vmatprep.mubr.bf16.mxu1 %v3159_v1  ;;  %v3143_v14 = vld [vmem:[%s3789_s0 + $0x50] sm:$0xff]  }
 0x10f   : > { %3052 = vmatprep.mubr.msk.bf16.mxu0 %vm226_vm0, %v3141_v44  ;;  %2164 = vmatprep.subr.bf16.mxu1 %v2139_v47 }
 0x115   : > { %2866 = vmatmul.mubr.msk.bf16.gmra.mxu1 %vm226_vm0, %v3142_v50  ;;  %3053 = vmatmul.mubr.msk.bf16.vlgmr.msra.gmra.mxu0 %vm226_vm0, %v3142_v50 }
 0x116   : > { %2011 = vmatpush1.bf16.msra.mxu0 %v3314_v17  ;;  %2028 = vmatprep.mubr.bf16.mxu0 %v3159_v1  ;;  %v2280_v17 = vpop.permute.xlu1 %2279 }
 0x117   : > { %3062 = vmatprep.subr.bf16.mxu0 %v2140_v52  ;;  %3058 = vmatprep.mubr.msk.bf16.mxu1 %vm226_vm0, %v3143_v14  ;;  %v2287_v3 = vsel %vm476_vm2, %v2280_v17, %v2282_v53 }
 0x11a   : > { %v2433_v61 = vpop.permute.xlu1 %2432 }
 0x11b   : > { %v2437_v63 = vsel %vm626_vm3, %v2431_v62, %v2433_v61 }
 0x11d   : > { %2882 = vmatmul.mubr.msk.bf16.vlgmr.msra.gmra.mxu0 %vm226_vm0, %v3143_v14  ;;  %3059 = vmatmul.mubr.msk.bf16.vlgmr.msra.gmra.mxu1 %vm226_vm0, %v3144_v55 }
 0x11e   : > { %2165 = vmatpush1.bf16.msra.mxu1 %v2138_v57  ;;  %3063 = vmatpush3.bf16.msra.mxu0 %v2140_v52  ;;  %v2435_v2 = vpop.permute.xlu1 %2434 }
 0x11f   : > { %2313 = vmatprep.subr.bf16.mxu0 %v2288_v58  ;;  %2038 = vmatprep.mubr.bf16.mxu0 %v3159_v1  ;;  %v2438_v5 = vsel %vm626_vm3, %v2433_v61, %v2435_v2 }
 0x120   : > { %2182 = vmatprep.mubr.bf16.mxu1 %v3159_v1  ;;  %3068 = vmatprep.subr.bf16.mxu1 %v2289_v59 }
 0x125   : > { %2883 = vmatmul.mubr.msk.bf16.gmra.mxu0 %vm226_vm0, %v3144_v55  ;;  %2893 = vmatmul.mubr.msk.bf16.vlgmr.msra.gmra.mxu1 %vm226_vm0, %v3145_v60 }
 0x126   : > { %3069 = vmatpush3.bf16.msra.mxu1 %v2289_v59  ;;  %2192 = vmatprep.mubr.bf16.mxu1 %v3159_v1 }
 0x127   : > { %3064 = vmatprep.mubr.msk.bf16.mxu0 %vm226_vm0, %v3145_v60  ;;  %2462 = vmatprep.subr.bf16.mxu1 %v2437_v63 }
 0x12d   : > { %2894 = vmatmul.mubr.msk.bf16.gmra.mxu1 %vm226_vm0, %v3146_v0  ;;  %3065 = vmatmul.mubr.msk.bf16.vlgmr.msra.gmra.mxu0 %vm226_vm0, %v3146_v0 }
 0x12e   : > { %2314 = vmatpush1.bf16.msra.mxu0 %v2287_v3  ;;  %2331 = vmatprep.mubr.bf16.mxu0 %v3159_v1 }
 0x12f   : > { %3074 = vmatprep.subr.bf16.mxu0 %v2438_v5  ;;  %3070 = vmatprep.mubr.msk.bf16.mxu1 %vm226_vm0, %v3147_v4 }
 0x135   : > { %2903 = vmatmul.mubr.msk.bf16.vlgmr.msra.gmra.mxu0 %vm226_vm0, %v3147_v4  ;;  %3071 = vmatmul.mubr.msk.bf16.vlgmr.msra.gmra.mxu1 %vm226_vm0, %v3148_v7 }
 0x136   : > { %2463 = vmatpush1.bf16.msra.mxu1 %v2436_v8  ;;  %3075 = vmatpush3.bf16.msra.mxu0 %v2438_v5 }
 0x137   : > { %2341 = vmatprep.mubr.bf16.mxu0 %v3159_v1  ;;  %2480 = vmatprep.mubr.bf16.mxu1 %v3159_v1 }
 0x13d   : > { %2904 = vmatmul.mubr.msk.bf16.gmra.mxu0 %vm226_vm0, %v3148_v7  ;;  %2913 = vmatmul.mubr.msk.bf16.vlgmr.msra.gmra.mxu1 %vm226_vm0, %v3149_v9 }
 0x13e   : > { %2490 = vmatprep.mubr.bf16.mxu1 %v3159_v1  ;;  %3076 = vmatprep.mubr.msk.bf16.mxu0 %vm226_vm0, %v3149_v9 }
 0x145   : > { %2914 = vmatmul.mubr.msk.bf16.gmra.mxu1 %vm226_vm0, %v3150_v12  ;;  %3077 = vmatmul.mubr.msk.bf16.vlgmr.msra.gmra.mxu0 %vm226_vm0, %v3150_v12 }
 0x14d   : > { %v267_v16 = vpop.f32.mrf.mxu0  ;;  %v2988_v18 = vpop.f32.mrf.mxu1 }
 0x14f   : > { %v269_v19 = vpop.f32.mrf.mxu0  ;;  %v320_v11 = vpop.f32.mrf.mxu1 }
 0x151   : > { %v271_v20 = vpop.f32.mrf.mxu0  ;;  %v2989_v21 = vpop.f32.mrf.mxu1 }
 0x153   : > { %v273_v22 = vpop.f32.mrf.mxu0  ;;  %v323_v23 = vpop.f32.mrf.mxu1 }
 0x155   : > { %v277_v24 = vpop.f32.mrf.mxu0  ;;  %v385_v1 = vpop.f32.mrf.mxu1 }
 0x156   : > { %v386_v10 = vadd.f32 %v385_v1, %v267_v16 }
 0x157   : > { %v279_v25 = vpop.f32.mrf.mxu0  ;;  %v387_v26 = vpop.f32.mrf.mxu1 }
 0x158   : > { %v388_v27 = vadd.f32 %v387_v26, %v269_v19 }
 0x159   : > { %v281_v28 = vpop.f32.mrf.mxu0  ;;  %v389_v13 = vpop.f32.mrf.mxu1 }
 0x15a   : > { %v390_v29 = vadd.f32 %v389_v13, %v271_v20 }
 0x15b   : > { %v283_v30 = vpop.f32.mrf.mxu0  ;;  %v391_v31 = vpop.f32.mrf.mxu1 }
 0x15c   : > { %v392_v32 = vadd.f32 %v391_v31, %v273_v22 }
 0x15d   : > { %v395_v33 = vpop.f32.mrf.mxu1  ;;  %v2994_v34 = vpop.f32.mrf.mxu0 }
 0x15e   : > { %v396_v35 = vadd.f32 %v395_v33, %v277_v24  ;;  %v447_v36 = vadd.f32 %v2994_v34, %v2988_v18 }
 0x15f   : > { %v397_v37 = vpop.f32.mrf.mxu1  ;;  %v438_v38 = vpop.f32.mrf.mxu0 }
 0x160   : > { %v398_v39 = vadd.f32 %v397_v37, %v279_v25  ;;  %v439_v40 = vadd.f32 %v438_v38, %v320_v11 }
 0x161   : > { %v399_v41 = vpop.f32.mrf.mxu1  ;;  %v2995_v42 = vpop.f32.mrf.mxu0 }
 0x162   : > { %v400_v43 = vadd.f32 %v399_v41, %v281_v28  ;;  %v450_v44 = vadd.f32 %v2995_v42, %v2989_v21 }
 0x163   : > { %v401_v45 = vpop.f32.mrf.mxu1  ;;  %v441_v46 = vpop.f32.mrf.mxu0 }
 0x164   : > { %v402_v47 = vadd.f32 %v401_v45, %v283_v30  ;;  %v442_v15 = vadd.f32 %v441_v46, %v323_v23 }
 0x165   : > { %v523_v48 = vpop.f32.mrf.mxu0  ;;  %v3000_v49 = vpop.f32.mrf.mxu1 }
 0x166   : > { %v591_v50 = vadd.f32 %v523_v48, %v386_v10  ;;  %v599_v51 = vadd.f32 %v3000_v49, %v447_v36 }
 0x167   : > { %v525_v14 = vpop.f32.mrf.mxu0  ;;  %v576_v52 = vpop.f32.mrf.mxu1 }
 0x168   : > { %v592_v53 = vadd.f32 %v525_v14, %v388_v27  ;;  %v593_v54 = vadd.f32 %v576_v52, %v439_v40 }
 0x169   : > { %v527_v55 = vpop.f32.mrf.mxu0  ;;  %v3001_v56 = vpop.f32.mrf.mxu1 }
 0x16a   : > { %v594_v57 = vadd.f32 %v527_v55, %v390_v29  ;;  %v602_v58 = vadd.f32 %v3001_v56, %v450_v44 }
 0x16b   : > { %v529_v17 = vpop.f32.mrf.mxu0  ;;  %v579_v59 = vpop.f32.mrf.mxu1 }
 0x16c   : > { %v595_v60 = vadd.f32 %v529_v17, %v392_v32  ;;  %v596_v61 = vadd.f32 %v579_v59, %v442_v15 }
 0x16d   : > { %v533_v62 = vpop.f32.mrf.mxu0  ;;  %v673_v63 = vpop.f32.mrf.mxu1 }
 0x16e   : > { %v597_v0 = vadd.f32 %v533_v62, %v396_v35  ;;  %v741_v2 = vadd.f32 %v673_v63, %v591_v50 }
 0x16f   : > { %v535_v3 = vpop.f32.mrf.mxu0  ;;  %v675_v4 = vpop.f32.mrf.mxu1 }
 0x170   : > { %v598_v5 = vadd.f32 %v535_v3, %v398_v39  ;;  %v742_v6 = vadd.f32 %v675_v4, %v592_v53 }
 0x171   : > { %v537_v7 = vpop.f32.mrf.mxu0  ;;  %v677_v8 = vpop.f32.mrf.mxu1 }
 0x172   : > { %v600_v9 = vadd.f32 %v537_v7, %v400_v43  ;;  %v744_v12 = vadd.f32 %v677_v8, %v594_v57 }
 0x173   : > { %v539_v16 = vpop.f32.mrf.mxu0  ;;  %v679_v18 = vpop.f32.mrf.mxu1 }
 0x174   : > { %v601_v19 = vadd.f32 %v539_v16, %v402_v47  ;;  %v745_v11 = vadd.f32 %v679_v18, %v595_v60 }
 0x175   : > { %v683_v20 = vpop.f32.mrf.mxu1  ;;  %v3006_v21 = vpop.f32.mrf.mxu0 }
 0x176   : > { %v747_v22 = vadd.f32 %v683_v20, %v597_v0  ;;  %v749_v23 = vadd.f32 %v3006_v21, %v599_v51 }
 0x177   : > { %v685_v24 = vpop.f32.mrf.mxu1  ;;  %v726_v1 = vpop.f32.mrf.mxu0 }
 0x178   : > { %v748_v10 = vadd.f32 %v685_v24, %v598_v5  ;;  %v743_v25 = vadd.f32 %v726_v1, %v593_v54 }
 0x179   : > { %v687_v26 = vpop.f32.mrf.mxu1  ;;  %v3007_v27 = vpop.f32.mrf.mxu0 }
 0x17a   : > { %v750_v28 = vadd.f32 %v687_v26, %v600_v9  ;;  %v752_v13 = vadd.f32 %v3007_v27, %v602_v58 }
 0x17b   : > { %v689_v29 = vpop.f32.mrf.mxu1  ;;  %v729_v30 = vpop.f32.mrf.mxu0 }
 0x17c   : > { %v751_v31 = vadd.f32 %v689_v29, %v601_v19  ;;  %v746_v32 = vadd.f32 %v729_v30, %v596_v61 }
 0x17d   : > { %v824_v33 = vpop.f32.mrf.mxu0  ;;  %v3012_v34 = vpop.f32.mrf.mxu1 }
 0x17e   : > { %v892_v35 = vadd.f32 %v824_v33, %v741_v2  ;;  %v900_v36 = vadd.f32 %v3012_v34, %v749_v23 }
 0x17f   : > { %v826_v37 = vpop.f32.mrf.mxu0  ;;  %v877_v38 = vpop.f32.mrf.mxu1 }
 0x180   : > { %v893_v39 = vadd.f32 %v826_v37, %v742_v6  ;;  %v894_v40 = vadd.f32 %v877_v38, %v743_v25 }
 0x181   : > { %v828_v41 = vpop.f32.mrf.mxu0  ;;  %v3013_v42 = vpop.f32.mrf.mxu1 }
 0x182   : > { %v895_v43 = vadd.f32 %v828_v41, %v744_v12  ;;  %v903_v44 = vadd.f32 %v3013_v42, %v752_v13 }
 0x183   : > { %v830_v45 = vpop.f32.mrf.mxu0  ;;  %v880_v46 = vpop.f32.mrf.mxu1 }
 0x184   : > { %v896_v47 = vadd.f32 %v830_v45, %v745_v11  ;;  %v897_v15 = vadd.f32 %v880_v46, %v746_v32 }
 0x185   : > { %v834_v48 = vpop.f32.mrf.mxu0  ;;  %v978_v49 = vpop.f32.mrf.mxu1 }
 0x186   : > { %v898_v50 = vadd.f32 %v834_v48, %v747_v22  ;;  %v1046_v51 = vadd.f32 %v978_v49, %v892_v35 }
 0x187   : > { %v836_v14 = vpop.f32.mrf.mxu0  ;;  %v980_v52 = vpop.f32.mrf.mxu1 }
 0x188   : > { %v899_v53 = vadd.f32 %v836_v14, %v748_v10  ;;  %v1047_v54 = vadd.f32 %v980_v52, %v893_v39 }
 0x189   : > { %v838_v55 = vpop.f32.mrf.mxu0  ;;  %v982_v56 = vpop.f32.mrf.mxu1 }
 0x18a   : > { %v901_v57 = vadd.f32 %v838_v55, %v750_v28  ;;  %v1049_v58 = vadd.f32 %v982_v56, %v895_v43 }
 0x18b   : > { %v840_v17 = vpop.f32.mrf.mxu0  ;;  %v984_v59 = vpop.f32.mrf.mxu1 }
 0x18c   : > { %v902_v60 = vadd.f32 %v840_v17, %v751_v31  ;;  %v1050_v61 = vadd.f32 %v984_v59, %v896_v47 }
 0x18d   : > { %v988_v62 = vpop.f32.mrf.mxu1  ;;  %v3018_v63 = vpop.f32.mrf.mxu0 }
 0x18e   : > { %v1052_v0 = vadd.f32 %v988_v62, %v898_v50  ;;  %v1054_v2 = vadd.f32 %v3018_v63, %v900_v36 }
 0x18f   : > { %v990_v3 = vpop.f32.mrf.mxu1  ;;  %v1031_v4 = vpop.f32.mrf.mxu0 }
 0x190   : > { %v1053_v5 = vadd.f32 %v990_v3, %v899_v53  ;;  %v1048_v6 = vadd.f32 %v1031_v4, %v894_v40 }
 0x191   : > { %v992_v7 = vpop.f32.mrf.mxu1  ;;  %v3019_v8 = vpop.f32.mrf.mxu0 }
 0x192   : > { %v1055_v9 = vadd.f32 %v992_v7, %v901_v57  ;;  %v1057_v12 = vadd.f32 %v3019_v8, %v903_v44 }
 0x193   : > { %v994_v16 = vpop.f32.mrf.mxu1  ;;  %v1034_v18 = vpop.f32.mrf.mxu0 }
 0x194   : > { %v1056_v19 = vadd.f32 %v994_v16, %v902_v60  ;;  %v1051_v11 = vadd.f32 %v1034_v18, %v897_v15 }
 0x195   : > { %v1127_v20 = vpop.f32.mrf.mxu0  ;;  %v3024_v21 = vpop.f32.mrf.mxu1 }
 0x196   : > { %v1195_v22 = vadd.f32 %v1127_v20, %v1046_v51  ;;  %v1203_v23 = vadd.f32 %v3024_v21, %v1054_v2 }
 0x197   : > { %v1129_v24 = vpop.f32.mrf.mxu0  ;;  %v1180_v1 = vpop.f32.mrf.mxu1 }
 0x198   : > { %v1196_v10 = vadd.f32 %v1129_v24, %v1047_v54  ;;  %v1197_v25 = vadd.f32 %v1180_v1, %v1048_v6 }
 0x199   : > { %v1131_v26 = vpop.f32.mrf.mxu0  ;;  %v3025_v27 = vpop.f32.mrf.mxu1 }
 0x19a   : > { %v1198_v28 = vadd.f32 %v1131_v26, %v1049_v58  ;;  %v1206_v13 = vadd.f32 %v3025_v27, %v1057_v12 }
 0x19b   : > { %v1133_v29 = vpop.f32.mrf.mxu0  ;;  %v1183_v30 = vpop.f32.mrf.mxu1 }
 0x19c   : > { %v1199_v31 = vadd.f32 %v1133_v29, %v1050_v61  ;;  %v1200_v32 = vadd.f32 %v1183_v30, %v1051_v11 }
 0x19d   : > { %v1137_v33 = vpop.f32.mrf.mxu0  ;;  %v1276_v34 = vpop.f32.mrf.mxu1 }
 0x19e   : > { %v1201_v35 = vadd.f32 %v1137_v33, %v1052_v0  ;;  %v1344_v36 = vadd.f32 %v1276_v34, %v1195_v22 }
 0x19f   : > { %v1139_v37 = vpop.f32.mrf.mxu0  ;;  %v1278_v38 = vpop.f32.mrf.mxu1 }
 0x1a0   : > { %v1202_v39 = vadd.f32 %v1139_v37, %v1053_v5  ;;  %v1345_v40 = vadd.f32 %v1278_v38, %v1196_v10 }
 0x1a1   : > { %v1141_v41 = vpop.f32.mrf.mxu0  ;;  %v1280_v42 = vpop.f32.mrf.mxu1 }
 0x1a2   : > { %v1204_v43 = vadd.f32 %v1141_v41, %v1055_v9  ;;  %v1347_v44 = vadd.f32 %v1280_v42, %v1198_v28 }
 0x1a3   : > { %v1143_v45 = vpop.f32.mrf.mxu0  ;;  %v1282_v46 = vpop.f32.mrf.mxu1 }
 0x1a4   : > { %v1205_v47 = vadd.f32 %v1143_v45, %v1056_v19  ;;  %v1348_v15 = vadd.f32 %v1282_v46, %v1199_v31 }
 0x1a5   : > { %v1286_v48 = vpop.f32.mrf.mxu1  ;;  %v3030_v49 = vpop.f32.mrf.mxu0 }
 0x1a6   : > { %v1350_v50 = vadd.f32 %v1286_v48, %v1201_v35  ;;  %v1352_v51 = vadd.f32 %v3030_v49, %v1203_v23 }
 0x1a7   : > { %v1288_v14 = vpop.f32.mrf.mxu1  ;;  %v1329_v52 = vpop.f32.mrf.mxu0 }
 0x1a8   : > { %v1351_v53 = vadd.f32 %v1288_v14, %v1202_v39  ;;  %v1346_v54 = vadd.f32 %v1329_v52, %v1197_v25 }
 0x1a9   : > { %v1290_v55 = vpop.f32.mrf.mxu1  ;;  %v3031_v56 = vpop.f32.mrf.mxu0 }
 0x1aa   : > { %v1353_v57 = vadd.f32 %v1290_v55, %v1204_v43  ;;  %v1355_v58 = vadd.f32 %v3031_v56, %v1206_v13 }
 0x1ab   : > { %v1292_v17 = vpop.f32.mrf.mxu1  ;;  %v1332_v59 = vpop.f32.mrf.mxu0 }
 0x1ac   : > { %v1354_v60 = vadd.f32 %v1292_v17, %v1205_v47  ;;  %v1349_v61 = vadd.f32 %v1332_v59, %v1200_v32 }
 0x1ad   : > { %v1427_v62 = vpop.f32.mrf.mxu0  ;;  %v3036_v63 = vpop.f32.mrf.mxu1 }
 0x1ae   : > { %v3585_v0 = vadd.f32 %v1427_v62, %v1344_v36  ;;  %v3587_v2 = vadd.f32 %v3036_v63, %v1352_v51 }
 0x1af   : > { %v1429_v3 = vpop.f32.mrf.mxu0  ;;  %v1480_v4 = vpop.f32.mrf.mxu1 }
 0x1b0   : > { %v3589_v5 = vadd.f32 %v1429_v3, %v1345_v40  ;;  %v3591_v6 = vadd.f32 %v1480_v4, %v1346_v54 }
 0x1b1   : > { %v1431_v7 = vpop.f32.mrf.mxu0  ;;  %v3037_v8 = vpop.f32.mrf.mxu1 }
 0x1b2   : > { %v3593_v9 = vadd.f32 %v1431_v7, %v1347_v44  ;;  %v3595_v12 = vadd.f32 %v3037_v8, %v1355_v58 }
 0x1b3   : > { %v1433_v16 = vpop.f32.mrf.mxu0  ;;  %v1483_v18 = vpop.f32.mrf.mxu1 }
 0x1b4   : > { %v3597_v19 = vadd.f32 %v1433_v16, %v1348_v15  ;;  %v3599_v11 = vadd.f32 %v1483_v18, %v1349_v61 }
 0x1b5   : > { %v1437_v20 = vpop.f32.mrf.mxu0  ;;  %v3601_v21 = vpop.f32.mrf.mxu1 }
 0x1b6   : > { %v3603_v22 = vadd.f32 %v1437_v20, %v1350_v50 }
 0x1b7   : > { %v1439_v23 = vpop.f32.mrf.mxu0  ;;  %v3605_v24 = vpop.f32.mrf.mxu1 }
 0x1b8   : > { %v3607_v1 = vadd.f32 %v1439_v23, %v1351_v53 }
 0x1b9   : > { %v1441_v10 = vpop.f32.mrf.mxu0  ;;  %v1585_v25 = vpop.f32.mrf.mxu1 }
 0x1ba   : > { %v3609_v26 = vadd.f32 %v1441_v10, %v1353_v57 }
 0x1bb   : > { %v1443_v27 = vpop.f32.mrf.mxu0  ;;  %v1587_v28 = vpop.f32.mrf.mxu1 }
 0x1bc   : > { %v3611_v13 = vadd.f32 %v1443_v27, %v1354_v60 }
 0x1bd   : > { %v1591_v29 = vpop.f32.mrf.mxu1  ;;  %v3042_v30 = vpop.f32.mrf.mxu0 }
 0x1bf   : > { %v1593_v31 = vpop.f32.mrf.mxu1  ;;  %v1634_v32 = vpop.f32.mrf.mxu0 }
 0x1c1   : > { %v1595_v33 = vpop.f32.mrf.mxu1  ;;  %v3043_v34 = vpop.f32.mrf.mxu0 }
 0x1c3   : > { %v1597_v35 = vpop.f32.mrf.mxu1  ;;  %v3613_v36 = vpop.f32.mrf.mxu0 }
 0x1c5   : > { %v1730_v37 = vpop.f32.mrf.mxu0  ;;  %v3048_v38 = vpop.f32.mrf.mxu1 }
 0x1c7   : > { %v1732_v39 = vpop.f32.mrf.mxu0  ;;  %v3615_v40 = vpop.f32.mrf.mxu1 }
 0x1c9   : > { %v3617_v41 = vpop.f32.mrf.mxu0  ;;  %v3619_v42 = vpop.f32.mrf.mxu1 }
 0x1cb   : > { %v3621_v43 = vpop.f32.mrf.mxu0  ;;  %v3623_v44 = vpop.f32.mrf.mxu1 }
 0x1cd   : > { %v3625_v45 = vpop.f32.mrf.mxu0  ;;  %v1879_v46 = vpop.f32.mrf.mxu1 }
 0x1cf   : > { %v3627_v47 = vpop.f32.mrf.mxu0  ;;  %v3629_v15 = vpop.f32.mrf.mxu1 }
 0x1d1   : > { %v3631_v48 = vpop.f32.mrf.mxu0  ;;  %v3633_v49 = vpop.f32.mrf.mxu1 }
 0x1d3   : > { %v3635_v50 = vpop.f32.mrf.mxu0  ;;  %v3637_v51 = vpop.f32.mrf.mxu1 }
 0x1d5   : > { %v3639_v14 = vpop.f32.mrf.mxu1  ;;  %v3641_v52 = vpop.f32.mrf.mxu0 }
 0x1d7   : > { %v3643_v53 = vpop.f32.mrf.mxu1  ;;  %v3645_v54 = vpop.f32.mrf.mxu0 }
 0x1d9   : > { %v3647_v55 = vpop.f32.mrf.mxu1  ;;  %v3649_v56 = vpop.f32.mrf.mxu0 }
 0x1db   : > { %v3651_v57 = vpop.f32.mrf.mxu1  ;;  %v3653_v58 = vpop.f32.mrf.mxu0 }
 0x1dd   : > { %v2030_v17 = vpop.f32.mrf.mxu0  ;;  %v3655_v59 = vpop.f32.mrf.mxu1 }
 0x1df   : > { %v2032_v60 = vpop.f32.mrf.mxu0  ;;  %v3657_v61 = vpop.f32.mrf.mxu1 }
 0x1e0   : > { %3793 = vst [vmem:[#allocation2_spill] sm:$0xff] %v3657_v61 }
 0x1e1   : > { %v3659_v62 = vpop.f32.mrf.mxu0  ;;  %v3661_v63 = vpop.f32.mrf.mxu1 }
 0x1e2   : > { %3794 = vst [vmem:[#allocation3_spill] sm:$0xff] %v3661_v63 }
 0x1e3   : > { %v3663_v3 = vpop.f32.mrf.mxu0  ;;  %v3665_v4 = vpop.f32.mrf.mxu1 }
 0x1e4   : > { %3795 = vst [vmem:[#allocation4_spill] sm:$0xff] %v3663_v3  ;;  %3796 = vst [vmem:[#allocation5_spill] sm:$0xff] %v3665_v4 }
 0x1e5   : > { %v3667_v7 = vpop.f32.mrf.mxu0  ;;  %v2184_v8 = vpop.f32.mrf.mxu1 }
 0x1e6   : > { %3797 = vst [vmem:[#allocation6_spill] sm:$0xff] %v3667_v7 }
 0x1e7   : > { %v3669_v16 = vpop.f32.mrf.mxu0  ;;  %v2186_v18 = vpop.f32.mrf.mxu1 }
 0x1e8   : > { %3798 = vst [vmem:[#allocation7_spill] sm:$0xff] %v3669_v16 }
 0x1e9   : > { %v3671_v20 = vpop.f32.mrf.mxu0  ;;  %v3673_v23 = vpop.f32.mrf.mxu1 }
 0x1ea   : > { %3799 = vst [vmem:[#allocation8_spill] sm:$0xff] %v3671_v20  ;;  %3800 = vst [vmem:[#allocation9_spill] sm:$0xff] %v3673_v23  ;;  %v1649_v20 = vadd.f32 %v3601_v21, %v3585_v0  ;;  %v1651_v0 = vadd.f32 %v1634_v32, %v3591_v6  ;;  %v1658_v21 = vadd.f32 %v1595_v33, %v3609_v26 }
 0x1eb   : > { %v3675_v10 = vpop.f32.mrf.mxu0  ;;  %v3677_v27 = vpop.f32.mrf.mxu1 }
 0x1ec   : > { %3801 = vst [vmem:[#allocation10_spill] sm:$0xff] %v3675_v10  ;;  %3802 = vst [vmem:[#allocation11_spill] sm:$0xff] %v3677_v27  ;;  %v1650_v10 = vadd.f32 %v3605_v24, %v3589_v5  ;;  %v1652_v27 = vadd.f32 %v1585_v25, %v3593_v9  ;;  %v1660_v5 = vadd.f32 %v3043_v34, %v3595_v12 }
 0x1ed   : > { %v3679_v61 = vpop.f32.mrf.mxu1  ;;  %v3681_v63 = vpop.f32.mrf.mxu0  ;;  %v1659_v9 = vadd.f32 %v1597_v35, %v3611_v13  ;;  %v1654_v25 = vadd.f32 %v3613_v36, %v3599_v11  ;;  %v1807_v34 = vadd.f32 %v3631_v48, %v1658_v21 }
 0x1ee   : > { %3803 = vst [vmem:[#allocation12_spill] sm:$0xff] %v3679_v61  ;;  %3804 = vst [vmem:[#allocation13_spill] sm:$0xff] %v3681_v63  ;;  %v1653_v61 = vadd.f32 %v1587_v28, %v3597_v19  ;;  %v1799_v28 = vadd.f32 %v1732_v39, %v1650_v10  ;;  %v1809_v6 = vadd.f32 %v3619_v42, %v1660_v5  ;;  %v3813_v10 = vld [vmem:[#allocation5_spill] sm:$0xff] }
 0x1ef   : > { %v3683_v3 = vpop.f32.mrf.mxu1  ;;  %v3685_v4 = vpop.f32.mrf.mxu0  ;;  %v1803_v13 = vadd.f32 %v3623_v44, %v1654_v25  ;;  %v1808_v36 = vadd.f32 %v3635_v50, %v1659_v9 }
 0x1f0   : > { %3805 = vst [vmem:[#allocation14_spill] sm:$0xff] %v3683_v3  ;;  %3806 = vst [vmem:[#allocation15_spill] sm:$0xff] %v3685_v4  ;;  %v1655_v4 = vadd.f32 %v1591_v29, %v3603_v22  ;;  %v1798_v3 = vadd.f32 %v1730_v37, %v1649_v20  ;;  %v1801_v29 = vadd.f32 %v3617_v41, %v1652_v27  ;;  %v3814_v27 = vld [vmem:[#allocation6_spill] sm:$0xff] }
 0x1f1   : > { %v3687_v7 = vpop.f32.mrf.mxu1  ;;  %v3689_v16 = vpop.f32.mrf.mxu0  ;;  %v1802_v26 = vadd.f32 %v3621_v43, %v1653_v61  ;;  %v1948_v11 = vadd.f32 %v3629_v15, %v1799_v28  ;;  %v1958_v48 = vadd.f32 %v3649_v56, %v1809_v6  ;;  %v3816_v9 = vld [vmem:[#allocation8_spill] sm:$0xff] }
 0x1f2   : > { %3807 = vst [vmem:[#allocation16_spill] sm:$0xff] %v3687_v7  ;;  %3808 = vst [vmem:[#allocation17_spill] sm:$0xff] %v3689_v16  ;;  %v1657_v7 = vadd.f32 %v3042_v30, %v3587_v2  ;;  %v1656_v16 = vadd.f32 %v1593_v31, %v3607_v1  ;;  %v1947_v2 = vadd.f32 %v1879_v46, %v1798_v3  ;;  %v3810_v3 = vld [vmem:[#allocation3_spill] sm:$0xff] }
 0x1f3   : > { %v3697_v23 = vpop.f32.mrf.mxu1  ;;  %v3699_v63 = vpop.f32.mrf.mxu0  ;;  %v1800_v1 = vadd.f32 %v3615_v40, %v1651_v0  ;;  %v1804_v31 = vadd.f32 %v3625_v45, %v1655_v4  ;;  %v1950_v35 = vadd.f32 %v3633_v49, %v1801_v29  ;;  %v1951_v39 = vadd.f32 %v3637_v51, %v1802_v26  ;;  %v3815_v0 = vld [vmem:[#allocation7_spill] sm:$0xff] }
 0x1f4   : > { %v1806_v22 = vadd.f32 %v3048_v38, %v1657_v7  ;;  %v2098_v32 = vadd.f32 %v2030_v17, %v1947_v2  ;;  %v1805_v33 = vadd.f32 %v3627_v47, %v1656_v16  ;;  %v2099_v41 = vadd.f32 %v2032_v60, %v1948_v11  ;;  %v3811_v7 = vld [vmem:[#allocation9_spill] sm:$0xff]  ;;  %v3745_v16 = vpop.permute.xlu1 %2573  ;;  %v3817_v2 = vld [vmem:[#allocation10_spill] sm:$0xff]  ;;  %v3818_v29 = vld [vmem:[#allocation11_spill] sm:$0xff] }
 0x1f5   : > { %v2333_v19 = vpop.f32.mrf.mxu0  ;;  %v3708_v24 = vpop.f32.mrf.mxu1  ;;  %v1953_v40 = vadd.f32 %v3639_v14, %v1804_v31  ;;  %v1949_v45 = vadd.f32 %v3645_v54, %v1800_v1  ;;  %v1956_v46 = vadd.f32 %v3647_v55, %v1807_v34  ;;  %v2101_v49 = vadd.f32 %v3659_v62, %v1950_v35  ;;  %v3809_v54 = vld [vmem:[#allocation2_spill] sm:$0xff]  ;;  %v3819_v26 = vld [vmem:[#allocation12_spill] sm:$0xff] }
 0x1f6   : > { %v2252_v42 = vadd.f32 %v2184_v8, %v2098_v32  ;;  %v1955_v43 = vadd.f32 %v3641_v52, %v1806_v22  ;;  %v1954_v44 = vadd.f32 %v3643_v53, %v1805_v33  ;;  %v2253_v50 = vadd.f32 %v2186_v18, %v2099_v41  ;;  %v3737_v14 = vpop.permute.xlu0 %2568  ;;  %v3812_v18 = vld [vmem:[#allocation4_spill] sm:$0xff] }
 0x1f7   : > { %v2335_v12 = vpop.f32.mrf.mxu0  ;;  %v3716_v30 = vpop.f32.mrf.mxu1  ;;  %v1957_v17 = vadd.f32 %v3651_v57, %v1808_v36  ;;  %v1952_v52 = vadd.f32 %v3653_v58, %v1803_v13  ;;  %v2100_v60 = vadd.f32 %v3809_v54, %v1949_v45  ;;  %v2109_v4 = vadd.f32 %v3810_v3, %v1958_v48  ;;  %v3820_v13 = vld [vmem:[#allocation13_spill] sm:$0xff]  ;;  %v3821_v33 = vld [vmem:[#allocation14_spill] sm:$0xff] }
 0x1f8   : > { %v2401_v51 = vadd.f32 %v2333_v19, %v2252_v42  ;;  %v2106_v53 = vadd.f32 %v3655_v59, %v1955_v43  ;;  %v2255_v56 = vadd.f32 %v3811_v7, %v2101_v49  ;;  %v2402_v8 = vadd.f32 %v2335_v12, %v2253_v50 }
 0x1f9   : > { %v2337_v37 = vpop.f32.mrf.mxu0  ;;  %v3725_v38 = vpop.f32.mrf.mxu1  ;;  %v2102_v20 = vadd.f32 %v3812_v18, %v1951_v39  ;;  %v2103_v57 = vadd.f32 %v3813_v10, %v1952_v52  ;;  %v2104_v58 = vadd.f32 %v3814_v27, %v1953_v40  ;;  %v2105_v59 = vadd.f32 %v3815_v0, %v1954_v44  ;;  %v3822_v39 = vld [vmem:[#allocation15_spill] sm:$0xff]  ;;  %v3823_v41 = vld [vmem:[#allocation16_spill] sm:$0xff]  ;;  %v3824_v43 = vld [vmem:[#allocation17_spill] sm:$0xff] }
 0x1fa   : > { %v2107_v19 = vadd.f32 %v3816_v9, %v1956_v46  ;;  %v2404_v25 = vadd.f32 %v2337_v37, %v2255_v56  ;;  %v2108_v1 = vadd.f32 %v3817_v2, %v1957_v17  ;;  %v2260_v31 = vadd.f32 %v3820_v13, %v2106_v53  ;;  %v2579_v52 = vpop.permute.xlu1 %2578 }
 0x1fb   : > { %v2339_v47 = vpop.f32.mrf.mxu0  ;;  %v3733_v15 = vpop.f32.mrf.mxu1  ;;  %v2256_v6 = vadd.f32 %v3818_v29, %v2102_v20  ;;  %v2258_v12 = vadd.f32 %v3819_v26, %v2104_v58  ;;  %v2259_v34 = vadd.f32 %v3821_v33, %v2105_v59  ;;  %v2254_v40 = vadd.f32 %v3822_v39, %v2100_v60 }
 0x1fc   : > { %v2261_v42 = vadd.f32 %v3823_v41, %v2107_v19  ;;  %v2263_v44 = vadd.f32 %v3824_v43, %v2109_v4  ;;  %v2409_v49 = vadd.f32 %v3708_v24, %v2260_v31  ;;  %v2262_v53 = vadd.f32 %v3697_v23, %v2108_v1 }
 0x1fd   : > { %v2343_v55 = vpop.f32.mrf.mxu0  ;;  %v2482_v61 = vpop.f32.mrf.mxu1  ;;  %v2405_v45 = vadd.f32 %v2339_v47, %v2256_v6  ;;  %v2257_v54 = vadd.f32 %v3699_v63, %v2103_v57  ;;  %v2403_v60 = vadd.f32 %v3716_v30, %v2254_v40 }
 0x1fe   : > { %v2550_v62 = vadd.f32 %v2482_v61, %v2401_v51  ;;  %v2407_v50 = vadd.f32 %v2343_v55, %v2258_v12  ;;  %v2412_v24 = vadd.f32 %v3725_v38, %v2263_v44 }
 0x1ff   : > { %v2345_v21 = vpop.f32.mrf.mxu0  ;;  %v2484_v5 = vpop.f32.mrf.mxu1  ;;  %v2406_v12 = vadd.f32 %v3733_v15, %v2257_v54 }
 0x200   : > { %v2586_v22 = vadd.f32 %v3737_v14, %v2550_v62  ;;  %v2551_v28 = vadd.f32 %v2484_v5, %v2402_v8  ;;  %v2408_v55 = vadd.f32 %v2345_v21, %v2259_v34 }
 0x201   : > { %v2347_v11 = vpop.f32.mrf.mxu0  ;;  %v2486_v32 = vpop.f32.mrf.mxu1 }
 0x202   : > { %v2598_v35 = vmul.f32 0.1, %v2586_v22  ;;  %v2587_v36 = vadd.f32 %v3737_v14, %v2551_v28  ;;  %v2553_v37 = vadd.f32 %v2486_v32, %v2404_v25  ;;  %v2410_v20 = vadd.f32 %v2347_v11, %v2261_v42 }
 0x203   : > { %v2349_v46 = vpop.f32.mrf.mxu0  ;;  %v2488_v48 = vpop.f32.mrf.mxu1 }
 0x204   : > { %v2599_v51 = vmul.f32 0.1, %v2587_v36  ;;  %v2589_v17 = vadd.f32 %v3745_v16, %v2553_v37  ;;  %v2554_v61 = vadd.f32 %v2488_v48, %v2405_v45  ;;  %v2610_v47 = vmax.f32 %v2586_v22, %v2598_v35  ;;  %v2584_v22 = vpop.permute.xlu0 %2583 }
 0x205   : > { %v2492_v3 = vpop.f32.mrf.mxu1  ;;  %v3078_v4 = vpop.f32.mrf.mxu0  ;;  %v2411_v27 = vadd.f32 %v2349_v46, %v2262_v53 }
 0x206   : > { %v2611_v7 = vmax.f32 %v2587_v36, %v2599_v51  ;;  %v2556_v56 = vadd.f32 %v2492_v3, %v2407_v50  ;;  %v2558_v8 = vadd.f32 %v3078_v4, %v2409_v49  ;;  %v2601_v23 = vmul.f32 0.1, %v2589_v17 }
 0x207   : > { %v2590_v63 = vadd.f32 %v3745_v16, %v2554_v61  ;;  %v2535_v30 = vpop.f32.mrf.mxu0  ;;  %v2494_v62 = vpop.f32.mrf.mxu1 }
 0x208   : > { %v2928_v18 = vpack.c.bf16 %v2611_v7, %v2610_v47  ;;  %v2552_v10 = vadd.f32 %v2535_v30, %v2403_v60  ;;  %v2592_v57 = vadd.f32 %v2579_v52, %v2556_v56  ;;  %v2594_v0 = vadd.f32 %v2579_v52, %v2558_v8 }
 0x209   : > { %v2602_v58 = vmul.f32 0.1, %v2590_v63  ;;  %v2557_v38 = vadd.f32 %v2494_v62, %v2408_v55  ;;  %v2496_v59 = vpop.f32.mrf.mxu1  ;;  %v3079_v21 = vpop.f32.mrf.mxu0  ;;  %v2613_v28 = vmax.f32 %v2589_v17, %v2601_v23 }
 0x20a   : > { %2662 = vst [vmem:[%s3772_s20] sm:$0xff] %v2928_v18  ;;  %v2588_v5 = vadd.f32 %v3737_v14, %v2552_v10  ;;  %v2604_v9 = vmul.f32 0.1, %v2592_v57  ;;  %v2559_v19 = vadd.f32 %v2496_v59, %v2410_v20  ;;  %v2561_v25 = vadd.f32 %v3079_v21, %v2412_v24 }
 0x20b   : > { %v2614_v2 = vmax.f32 %v2590_v63, %v2602_v58  ;;  %v2606_v1 = vmul.f32 0.1, %v2594_v0  ;;  %v2593_v29 = vadd.f32 %v2579_v52, %v2557_v38  ;;  %v2498_v6 = vpop.f32.mrf.mxu1  ;;  %v2538_v26 = vpop.f32.mrf.mxu0 }
 0x20c   : > { %v2600_v13 = vmul.f32 0.1, %v2588_v5  ;;  %v2595_v31 = vadd.f32 %v2584_v22, %v2559_v19  ;;  %v2597_v11 = vadd.f32 %v2584_v22, %v2561_v25  ;;  %v2560_v34 = vadd.f32 %v2498_v6, %v2411_v27 }
 0x20d   : > { %v2930_v32 = vpack.c.bf16 %v2614_v2, %v2613_v28  ;;  %v2618_v33 = vmax.f32 %v2594_v0, %v2606_v1  ;;  %v2605_v14 = vmul.f32 0.1, %v2593_v29  ;;  %v2616_v36 = vmax.f32 %v2592_v57, %v2604_v9 }
 0x20e   : > { %v2612_v35 = vmax.f32 %v2588_v5, %v2600_v13  ;;  %v2609_v37 = vmul.f32 0.1, %v2597_v11  ;;  %v2555_v39 = vadd.f32 %v2538_v26, %v2406_v12  ;;  %v2607_v42 = vmul.f32 0.1, %v2595_v31 }
 0x20f   : > { %2664 = vst [vmem:[%s3772_s20 + $0xc] sm:$0xff] %v2930_v32  ;;  %v2933_v40 = vpack.c.bf16 %v2618_v33, %v2618_v33  ;;  %v2617_v41 = vmax.f32 %v2593_v29, %v2605_v14  ;;  %v2596_v15 = vadd.f32 %v2584_v22, %v2560_v34 }
 0x210   : > { %v2929_v43 = vpack.c.bf16 %v2612_v35, %v2612_v35  ;;  %v2621_v44 = vmax.f32 %v2597_v11, %v2609_v37  ;;  %v2591_v45 = vadd.f32 %v3745_v16, %v2555_v39  ;;  %v2619_v51 = vmax.f32 %v2595_v31, %v2607_v42 }
 0x211   : > { %2667 = vst [vmem:[%s3772_s20 + $0x20] sm:$0xf] %v2933_v40  ;;  %v2932_v46 = vpack.c.bf16 %v2617_v41, %v2616_v36  ;;  %v2608_v48 = vmul.f32 0.1, %v2596_v15 }
 0x212   : > { %2663 = vst [vmem:[%s3772_s20 + $0x8] sm:$0xf] %v2929_v43  ;;  %v2935_v49 = vpack.c.bf16 %v2621_v44, %v2621_v44  ;;  %v2603_v50 = vmul.f32 0.1, %v2591_v45 }
 0x213   : > { %2666 = vst [vmem:[%s3772_s20 + $0x18] sm:$0xff] %v2932_v46  ;;  %v2620_v17 = vmax.f32 %v2596_v15, %v2608_v48 }
 0x214   : > { %2669 = vst [vmem:[%s3772_s20 + $0x2c] sm:$0xf] %v2935_v49  ;;  %v2615_v52 = vmax.f32 %v2591_v45, %v2603_v50 }
 0x215   : > { %v2934_v53 = vpack.c.bf16 %v2620_v17, %v2619_v51 }
 0x216   : > { %v2931_v54 = vpack.c.bf16 %v2615_v52, %v2615_v52 }
 0x217   : > { %2668 = vst [vmem:[%s3772_s20 + $0x24] sm:$0xff] %v2934_v53 }
 0x218   : > { %2665 = vst [vmem:[%s3772_s20 + $0x14] sm:$0xf] %v2931_v54 }
 0x219 PF: > { %s13_s12 = sadd.s32 1, %s3157_s12  }
 0x21a   : > { %p10_p4 = scmp.ge.s32.totalorder %s13_s12, 4  }
 0x21c   :  { %12 = sbr.rel (!%p10_p4) target bundleno = 1 (0x1), region = 80 }

// kernel: discriminator_forward.6
= control target key start
LH: loop header
LB: loop body
LE: loop exit
PB: predicated region body
PF: predicated region fallthrough
CT: control target
= control target key end

     0   :  { %s3127_s12 = smov 0   ;;  %s3704_s0 = inlined_call_operand.vmem [shape: bf16[16,64,32], index: 0, kind: input, shape index: {}]   ;;  %s3705_s1 = inlined_call_operand.vmem [shape: bf16[2,4,32,256], index: 1, kind: input, shape index: {}]   ;;  %s3706_s2 = inlined_call_operand.vmem [shape: f32[64,1], index: 2, kind: input, shape index: {}]   ;;  %s3707_s3 = inlined_call_operand.vmem [shape: bf16[2,64,128], index: 3, kind: output, shape index: {}]  }
   0x1 LB: > { %s2377_s13 = sadd.s32 4294967295, %s3101_s12   ;;  %p2381_p0 = scmp.ge.s32.totalorder %s3101_s12, 1  ;;  %s3101_s12 = sphi %s3127_s12, %s13_s12  }
   0x2   : > { %p137_p1 = scmp.lt.s32.totalorder %s3101_s12, 3 }
   0x4   : > { %p138_p2 = pnand %p2381_p0, %p137_p1 }
   0x6   : > { %141 = sbr.rel (%p138_p2) target bundleno = 478 (0x1de), region = 32 }
   0xb   : > { %p161_p3 = scmp.lt.s32.totalorder %s2377_s13, 1  ;;  %v3031_v0 = vld [vmem:[%s3704_s0] sm:$0xff]   ;;  %vm242_vm0 = vcmask 261120   ;;  %s3103_s20 = smov 127   ;;  %v3032_v5 = vld [vmem:[%s3704_s0 + $0x8] sm:$0xff]   ;;  %v3035_v7 = vld [vmem:[%s3704_s0 + $0x10] sm:$0xff]  }
   0xc   : > { %2817 = vmatprep.mubr.msk.bf16.mxu1 %vm242_vm0, %v3031_v0  ;;  %s3104_s23 = smov 119   ;;  %v3033_v6 = vld [vmem:[%s3704_s0 + $0x40] sm:$0xff]   ;;  %s3105_s28 = smov 118   ;;  %v3036_v8 = vld [vmem:[%s3704_s0 + $0x18] sm:$0xff]   ;;  %vm237_vm1 = vcmask 1039360   ;;  %v2211_v28 = vld [vmem:[%s3706_s2 + $0x8] sm:$0xff] }
   0xd   : > { %s3725_s13 = smov (!%p161_p3, %s2377_s13), 1  ;;  %2805 = vmatprep.mubr.msk.bf16.mxu0 %vm242_vm0, %v3033_v6  ;;  %v3039_v9 = vld [vmem:[%s3704_s0 + $0x140] sm:$0xff]   ;;  %vm454_vm2 = vcmask 973824   ;;  %v3106_v30 = vmov 0   ;;  %v3034_v34 = vld [vmem:[%s3704_s0 + $0x48] sm:$0xff]   ;;  %v2213_v35 = vld [vmem:[%s3706_s2 + $0x18] sm:$0xff] }
   0xe   : > { %s2672_s16 = sshll.u32 %s3725_s13, 7  ;;  %v2210_v27 = vld [vmem:[%s3706_s2] sm:$0xff]  ;;  %3006 = vset.pattern.permute.xlu1 %v3106_v30  ;;  %3005 = vset.pattern.permute.xlu0 %v3106_v30  ;;  %v2212_v36 = vld [vmem:[%s3706_s2 + $0x10] sm:$0xff]  ;;  %vm581_vm3 = vcmask 965632   ;;  %v2215_v41 = vld [vmem:[%s3706_s2 + $0x28] sm:$0xff]  ;;  %s2673_s15 = sshll.u32 %s3725_s13, 5 }
   0xf   : > { %s3145_s19 = scalar_lea.vmem %s3705_s1, %s2672_s16  ;;  %v3037_v38 = vld [vmem:[%s3704_s0 + $0x50] sm:$0xff]   ;;  %v2214_v42 = vld [vmem:[%s3706_s2 + $0x20] sm:$0xff]  ;;  %v3038_v46 = vld [vmem:[%s3704_s0 + $0x58] sm:$0xff]   ;;  %s170_s18 = scalar_lea.vmem %s3707_s3, %s2673_s15 }
  0x10   : > { %v3007_v1 = vld [vmem:[%s3145_s19 + $0x10] ss:$8 sps:$4 sm:$0xff]   ;;  %v3009_v2 = vld [vmem:[%s3145_s19] ss:$8 sps:$4 sm:$0xff]   ;;  %v3011_v3 = vld [vmem:[%s3145_s19 + $0x14] ss:$8 sps:$4 sm:$0xff]  }
  0x11   : > { %233 = vrot.lane.b32.xlu0 %v3007_v1, %s3103_s20  ;;  %2813 = vmatprep.subr.bf16.mxu1 %v3007_v1  ;;  %v3012_v4 = vld [vmem:[%s3145_s19 + $0x4] ss:$8 sps:$4 sm:$0xff]   ;;  %v3182_v10 = vld [vmem:[%s3145_s19 + $0x30] ss:$8 sps:$4 sm:$0xff]   ;;  %v3015_v11 = vld [vmem:[%s3145_s19 + $0x34] ss:$8 sps:$4 sm:$0xff]  }
  0x12   : > { %229 = vrot.lane.b32.xlu1 %v3009_v2, %s3103_s20  ;;  %2814 = vmatpush3.bf16.msra.mxu1 %v3007_v1  ;;  %v3190_v12 = vld [vmem:[%s3145_s19 + $0x20] ss:$8 sps:$4 sm:$0xff]   ;;  %v3018_v13 = vld [vmem:[%s3145_s19 + $0x24] ss:$8 sps:$4 sm:$0xff]   ;;  %v3207_v14 = vld [vmem:[%s3145_s19 + $0x50] ss:$8 sps:$4 sm:$0xff]  }
  0x13   : > { %2815 = vmatprep.subr.bf16.mxu1 %v3009_v2  ;;  %v3021_v15 = vld [vmem:[%s3145_s19 + $0x54] ss:$8 sps:$4 sm:$0xff]   ;;  %v3214_v16 = vld [vmem:[%s3145_s19 + $0x40] ss:$8 sps:$4 sm:$0xff]   ;;  %v3024_v17 = vld [vmem:[%s3145_s19 + $0x44] ss:$8 sps:$4 sm:$0xff]  }
  0x14   : > { %v3235_v18 = vld [vmem:[%s3145_s19 + $0x70] ss:$8 sps:$4 sm:$0xff]   ;;  %v3027_v19 = vld [vmem:[%s3145_s19 + $0x74] ss:$8 sps:$4 sm:$0xff]   ;;  %v3242_v20 = vld [vmem:[%s3145_s19 + $0x60] ss:$8 sps:$4 sm:$0xff]  }
  0x15   : > { %235 = vrot.lane.b32.xlu0 %v3011_v3, %s3103_s20  ;;  %v3030_v21 = vld [vmem:[%s3145_s19 + $0x64] ss:$8 sps:$4 sm:$0xff]   ;;  %v2217_v47 = vld [vmem:[%s3706_s2 + $0x38] sm:$0xff]  ;;  %v2216_v49 = vld [vmem:[%s3706_s2 + $0x30] sm:$0xff] }
  0x16   : > { %231 = vrot.lane.b32.xlu1 %v3012_v4, %s3103_s20  ;;  %2816 = vmatpush3.bf16.msra.mxu1 %v3009_v2  ;;  %v3041_v48 = vld [vmem:[%s3704_s0 + $0x100] sm:$0xff]   ;;  %v3040_v53 = vld [vmem:[%s3704_s0 + $0x148] sm:$0xff]   ;;  %v3043_v55 = vld [vmem:[%s3704_s0 + $0x150] sm:$0xff]  }
  0x17   : > { %v3042_v57 = vld [vmem:[%s3704_s0 + $0x108] sm:$0xff]   ;;  %v3045_v59 = vld [vmem:[%s3704_s0 + $0x110] sm:$0xff]   ;;  %v3044_v63 = vld [vmem:[%s3704_s0 + $0x158] sm:$0xff]  }
  0x19   : > { %450 = vrot.lane.b32.xlu0 %v3007_v1, %s3104_s23  ;;  %2818 = vmatmul.mubr.msk.bf16.vlgmr.msra.gmra.mxu1 %vm242_vm0, %v3032_v5  ;;  %v3049_v5 = vld [vmem:[%s3704_s0 + $0x20] sm:$0xff]  }
  0x1a   : > { %452 = vrot.lane.b32.xlu1 %v3011_v3, %s3104_s23  ;;  %2821 = vmatprep.mubr.msk.bf16.mxu1 %vm242_vm0, %v3035_v7 }
  0x1d   : > { %577 = vrot.lane.b32.xlu0 %v3007_v1, %s3105_s28  ;;  %v3047_v1 = vld [vmem:[%s3704_s0 + $0x60] sm:$0xff]  }
  0x1e   : > { %579 = vrot.lane.b32.xlu1 %v3011_v3, %s3105_s28  ;;  %v3046_v3 = vld [vmem:[%s3704_s0 + $0x118] sm:$0xff]  }
  0x21   : > { %446 = vrot.lane.b32.xlu0 %v3009_v2, %s3104_s23  ;;  %2822 = vmatmul.mubr.msk.bf16.gmra.mxu1 %vm242_vm0, %v3036_v8 }
  0x22   : > { %448 = vrot.lane.b32.xlu1 %v3012_v4, %s3104_s23  ;;  %2841 = vmatprep.mubr.msk.bf16.mxu1 %vm242_vm0, %v3039_v9  ;;  %v3048_v9 = vld [vmem:[%s3704_s0 + $0x68] sm:$0xff]  }
  0x25   : > { %573 = vrot.lane.b32.xlu0 %v3009_v2, %s3105_s28 }
  0x26   : > { %575 = vrot.lane.b32.xlu1 %v3012_v4, %s3105_s28 }
  0x29   : > { %839 = vrot.lane.b32.xlu0 %v3182_v10, %s3103_s20 }
  0x2a   : > { %841 = vrot.lane.b32.xlu1 %v3015_v11, %s3103_s20 }
  0x2d   : > { %835 = vrot.lane.b32.xlu0 %v3190_v12, %s3103_s20 }
  0x2e   : > { %837 = vrot.lane.b32.xlu1 %v3018_v13, %s3103_s20 }
  0x31   : > { %965 = vrot.lane.b32.xlu0 %v3182_v10, %s3104_s23 }
  0x32   : > { %967 = vrot.lane.b32.xlu1 %v3015_v11, %s3104_s23 }
  0x35   : > { %1091 = vrot.lane.b32.xlu0 %v3182_v10, %s3105_s28 }
  0x36   : > { %1093 = vrot.lane.b32.xlu1 %v3015_v11, %s3105_s28  ;;  %v3051_v11 = vld [vmem:[%s3704_s0 + $0x70] sm:$0xff]  }
  0x39   : > { %961 = vrot.lane.b32.xlu0 %v3190_v12, %s3104_s23 }
  0x3a   : > { %963 = vrot.lane.b32.xlu1 %v3018_v13, %s3104_s23 }
  0x3d   : > { %1087 = vrot.lane.b32.xlu0 %v3190_v12, %s3105_s28 }
  0x3e   : > { %1089 = vrot.lane.b32.xlu1 %v3018_v13, %s3105_s28  ;;  %v3050_v13 = vld [vmem:[%s3704_s0 + $0x28] sm:$0xff]  }
  0x41   : > { %1352 = vrot.lane.b32.xlu0 %v3207_v14, %s3103_s20 }
  0x42   : > { %1354 = vrot.lane.b32.xlu1 %v3021_v15, %s3103_s20 }
  0x45   : > { %1348 = vrot.lane.b32.xlu0 %v3214_v16, %s3103_s20 }
  0x46   : > { %1350 = vrot.lane.b32.xlu1 %v3024_v17, %s3103_s20 }
  0x49   : > { %1478 = vrot.lane.b32.xlu0 %v3207_v14, %s3104_s23 }
  0x4a   : > { %1480 = vrot.lane.b32.xlu1 %v3021_v15, %s3104_s23 }
  0x4d   : > { %1604 = vrot.lane.b32.xlu0 %v3207_v14, %s3105_s28 }
  0x4e   : > { %1606 = vrot.lane.b32.xlu1 %v3021_v15, %s3105_s28  ;;  %v3053_v15 = vld [vmem:[%s3704_s0 + $0x30] sm:$0xff]  }
  0x51   : > { %1474 = vrot.lane.b32.xlu0 %v3214_v16, %s3104_s23 }
  0x52   : > { %1476 = vrot.lane.b32.xlu1 %v3024_v17, %s3104_s23 }
  0x55   : > { %1600 = vrot.lane.b32.xlu0 %v3214_v16, %s3105_s28 }
  0x56   : > { %1602 = vrot.lane.b32.xlu1 %v3024_v17, %s3105_s28 }
  0x59   : > { %1865 = vrot.lane.b32.xlu0 %v3235_v18, %s3103_s20 }
  0x5a   : > { %1867 = vrot.lane.b32.xlu1 %v3027_v19, %s3103_s20 }
  0x5d   : > { %1861 = vrot.lane.b32.xlu0 %v3242_v20, %s3103_s20 }
  0x5e   : > { %1863 = vrot.lane.b32.xlu1 %v3030_v21, %s3103_s20 }
  0x61   : > { %1991 = vrot.lane.b32.xlu0 %v3235_v18, %s3104_s23 }
  0x62   : > { %1993 = vrot.lane.b32.xlu1 %v3027_v19, %s3104_s23 }
  0x65   : > { %2117 = vrot.lane.b32.xlu0 %v3235_v18, %s3105_s28 }
  0x66   : > { %2119 = vrot.lane.b32.xlu1 %v3027_v19, %s3105_s28 }
  0x69   : > { %1987 = vrot.lane.b32.xlu0 %v3242_v20, %s3104_s23 }
  0x6a   : > { %1989 = vrot.lane.b32.xlu1 %v3030_v21, %s3104_s23 }
  0x6d   : > { %2113 = vrot.lane.b32.xlu0 %v3242_v20, %s3105_s28 }
  0x6e   : > { %2115 = vrot.lane.b32.xlu1 %v3030_v21, %s3105_s28 }
  0x71   : > { %2220 = vperm.xlu0 %3005, %v2210_v27   ;;  %v3054_v27 = vld [vmem:[%s3704_s0 + $0x38] sm:$0xff]  }
  0x72   : > { %2225 = vperm.xlu1 %3006, %v2211_v28  }
  0x75   : > { %2235 = vperm.xlu0 %3005, %v2213_v35  }
  0x76   : > { %2230 = vperm.xlu1 %3006, %v2212_v36   ;;  %v3058_v36 = vld [vmem:[%s3704_s0 + $0x128] sm:$0xff]  }
  0x79   : > { %2245 = vperm.xlu0 %3005, %v2215_v41  }
  0x7a   : > { %2240 = vperm.xlu1 %3006, %v2214_v42   ;;  %v3060_v42 = vld [vmem:[%s3704_s0 + $0x178] sm:$0xff]  }
  0x7d   : > { %2255 = vperm.xlu0 %3005, %v2217_v47   ;;  %v3065_v47 = vld [vmem:[%s3704_s0 + $0x80] sm:$0xff]  }
  0x7e   : > { %2250 = vperm.xlu1 %3006, %v2216_v49  }
  0x83   : > { %v234_v22 = vpop.permute.xlu0 %233 }
  0x84   : > { %v230_v23 = vpop.permute.xlu1 %229 }
  0x87   : > { %v236_v24 = vpop.permute.xlu0 %235 }
  0x88   : > { %v232_v25 = vpop.permute.xlu1 %231  ;;  %v239_v26 = vsel %vm237_vm1, %v234_v22, %v236_v24  ;;  %v3055_v24 = vld [vmem:[%s3704_s0 + $0x160] sm:$0xff]  }
  0x89   : > { %2801 = vmatprep.subr.bf16.mxu0 %v239_v26  ;;  %v238_v29 = vsel %vm237_vm1, %v230_v23, %v232_v25  ;;  %v3052_v23 = vld [vmem:[%s3704_s0 + $0x78] sm:$0xff]  }
  0x8a   : > { %2802 = vmatpush3.bf16.msra.mxu0 %v239_v26 }
  0x8b   : > { %2803 = vmatprep.subr.bf16.mxu0 %v238_v29  ;;  %v451_v31 = vpop.permute.xlu0 %450 }
  0x8c   : > { %v453_v32 = vpop.permute.xlu1 %452 }
  0x8d   : > { %v456_v33 = vsel %vm454_vm2, %v451_v31, %v453_v32  ;;  %v3056_v32 = vld [vmem:[%s3704_s0 + $0x168] sm:$0xff]  }
  0x8e   : > { %2804 = vmatpush3.bf16.msra.mxu0 %v238_v29  ;;  %v3057_v29 = vld [vmem:[%s3704_s0 + $0x120] sm:$0xff]  }
  0x8f   : > { %2825 = vmatprep.subr.bf16.mxu0 %v456_v33  ;;  %v578_v37 = vpop.permute.xlu0 %577 }
  0x90   : > { %v580_v39 = vpop.permute.xlu1 %579 }
  0x91   : > { %2806 = vmatmul.mubr.msk.bf16.vlgmr.msra.gmra.mxu0 %vm242_vm0, %v3034_v34  ;;  %v583_v40 = vsel %vm581_vm3, %v578_v37, %v580_v39 }
  0x92   : > { %2826 = vmatpush3.bf16.msra.mxu0 %v456_v33  ;;  %2837 = vmatprep.subr.bf16.mxu1 %v583_v40  ;;  %v3059_v33 = vld [vmem:[%s3704_s0 + $0x170] sm:$0xff]  }
  0x93   : > { %2838 = vmatpush3.bf16.msra.mxu1 %v583_v40  ;;  %v447_v43 = vpop.permute.xlu0 %446  ;;  %2809 = vmatprep.mubr.msk.bf16.mxu0 %vm242_vm0, %v3037_v38  ;;  %v3061_v38 = vld [vmem:[%s3704_s0 + $0x130] sm:$0xff]  }
  0x94   : > { %v449_v44 = vpop.permute.xlu1 %448 }
  0x95   : > { %v455_v45 = vsel %vm454_vm2, %v447_v43, %v449_v44  ;;  %v3063_v43 = vld [vmem:[%s3704_s0 + $0xc0] sm:$0xff]  }
  0x96   : > { %2827 = vmatprep.subr.bf16.mxu0 %v455_v45 }
  0x97   : > { %2828 = vmatpush3.bf16.msra.mxu0 %v455_v45  ;;  %v574_v50 = vpop.permute.xlu0 %573 }
  0x98   : > { %v576_v51 = vpop.permute.xlu1 %575  ;;  %2849 = vmatprep.subr.bf16.mxu0 %v3182_v10 }
  0x99   : > { %2810 = vmatmul.mubr.msk.bf16.gmra.mxu0 %vm242_vm0, %v3038_v46  ;;  %v582_v52 = vsel %vm581_vm3, %v574_v50, %v576_v51  ;;  %v3064_v50 = vld [vmem:[%s3704_s0 + $0xc8] sm:$0xff]  }
  0x9a   : > { %2839 = vmatprep.subr.bf16.mxu1 %v582_v52  ;;  %2829 = vmatprep.mubr.msk.bf16.mxu0 %vm242_vm0, %v3041_v48 }
  0x9b   : > { %2840 = vmatpush3.bf16.msra.mxu1 %v582_v52  ;;  %v840_v54 = vpop.permute.xlu0 %839 }
  0x9c   : > { %v842_v56 = vpop.permute.xlu1 %841 }
  0x9d   : > { %v844_v58 = vsel %vm237_vm1, %v840_v54, %v842_v56 }
  0x9e   : > { %2842 = vmatmul.mubr.msk.bf16.vlgmr.msra.gmra.mxu1 %vm242_vm0, %v3040_v53  ;;  %2861 = vmatprep.subr.bf16.mxu1 %v844_v58  ;;  %v3066_v53 = vld [vmem:[%s3704_s0 + $0x88] sm:$0xff]  }
  0x9f   : > { %2862 = vmatpush3.bf16.msra.mxu1 %v844_v58  ;;  %2845 = vmatprep.mubr.msk.bf16.mxu1 %vm242_vm0, %v3043_v55  ;;  %v836_v60 = vpop.permute.xlu0 %835  ;;  %v3069_v55 = vld [vmem:[%s3704_s0 + $0x90] sm:$0xff]   ;;  %v3068_v58 = vld [vmem:[%s3704_s0 + $0xd8] sm:$0xff]  }
  0xa0   : > { %v838_v61 = vpop.permute.xlu1 %837 }
  0xa1   : > { %2830 = vmatmul.mubr.msk.bf16.vlgmr.msra.gmra.mxu0 %vm242_vm0, %v3042_v57  ;;  %v843_v62 = vsel %vm237_vm1, %v836_v60, %v838_v61  ;;  %v3071_v61 = vld [vmem:[%s3704_s0 + $0x1c0] sm:$0xff]  }
  0xa2   : > { %2850 = vmatpush3.bf16.msra.mxu0 %v3182_v10  ;;  %2833 = vmatprep.mubr.msk.bf16.mxu0 %vm242_vm0, %v3045_v59 }
  0xa3   : > { %2851 = vmatprep.subr.bf16.mxu0 %v3190_v12  ;;  %2863 = vmatprep.subr.bf16.mxu1 %v843_v62  ;;  %v966_v0 = vpop.permute.xlu0 %965 }
  0xa4   : > { %2864 = vmatpush3.bf16.msra.mxu1 %v843_v62  ;;  %v968_v2 = vpop.permute.xlu1 %967  ;;  %v3070_v62 = vld [vmem:[%s3704_s0 + $0x98] sm:$0xff]  }
  0xa5   : > { %v970_v4 = vsel %vm454_vm2, %v966_v0, %v968_v2  ;;  %v3072_v2 = vld [vmem:[%s3704_s0 + $0x1c8] sm:$0xff]  }
  0xa6   : > { %2846 = vmatmul.mubr.msk.bf16.gmra.mxu1 %vm242_vm0, %v3044_v63  ;;  %2852 = vmatpush3.bf16.msra.mxu0 %v3190_v12  ;;  %v3073_v63 = vld [vmem:[%s3704_s0 + $0x180] sm:$0xff]  }
  0xa7   : > { %2865 = vmatprep.mubr.msk.bf16.mxu1 %vm242_vm0, %v3047_v1  ;;  %2873 = vmatprep.subr.bf16.mxu0 %v970_v4  ;;  %v1092_v6 = vpop.permute.xlu0 %1091 }
  0xa8   : > { %v1094_v7 = vpop.permute.xlu1 %1093 }
  0xa9   : > { %2834 = vmatmul.mubr.msk.bf16.gmra.mxu0 %vm242_vm0, %v3046_v3  ;;  %v1096_v8 = vsel %vm581_vm3, %v1092_v6, %v1094_v7  ;;  %v3075_v3 = vld [vmem:[%s3704_s0 + $0x1d0] sm:$0xff]  }
  0xaa   : > { %2853 = vmatprep.mubr.msk.bf16.mxu0 %vm242_vm0, %v3049_v5  ;;  %2885 = vmatprep.subr.bf16.mxu1 %v1096_v8  ;;  %v3077_v6 = vld [vmem:[%s3704_s0 + $0x190] sm:$0xff]  }
  0xab   : > { %v962_v10 = vpop.permute.xlu0 %961 }
  0xac   : > { %v964_v12 = vpop.permute.xlu1 %963 }
  0xad   : > { %v969_v19 = vsel %vm454_vm2, %v962_v10, %v964_v12  ;;  %v3076_v10 = vld [vmem:[%s3704_s0 + $0x1d8] sm:$0xff]  }
  0xae   : > { %2866 = vmatmul.mubr.msk.bf16.vlgmr.msra.gmra.mxu1 %vm242_vm0, %v3048_v9 }
  0xaf   : > { %2886 = vmatpush3.bf16.msra.mxu1 %v1096_v8  ;;  %2869 = vmatprep.mubr.msk.bf16.mxu1 %vm242_vm0, %v3051_v11  ;;  %v1088_v17 = vpop.permute.xlu0 %1087  ;;  %v3079_v11 = vld [vmem:[%s3704_s0 + $0xe0] sm:$0xff]  }
  0xb0   : > { %v1090_v21 = vpop.permute.xlu1 %1089 }
  0xb1   : > { %2854 = vmatmul.mubr.msk.bf16.vlgmr.msra.gmra.mxu0 %vm242_vm0, %v3050_v13  ;;  %v1095_v22 = vsel %vm581_vm3, %v1088_v17, %v1090_v21  ;;  %v3081_v17 = vld [vmem:[%s3704_s0 + $0xa0] sm:$0xff]  }
  0xb2   : > { %2874 = vmatpush3.bf16.msra.mxu0 %v970_v4  ;;  %2857 = vmatprep.mubr.msk.bf16.mxu0 %vm242_vm0, %v3053_v15  ;;  %v3074_v4 = vld [vmem:[%s3704_s0 + $0x188] sm:$0xff]  }
  0xb3   : > { %2875 = vmatprep.subr.bf16.mxu0 %v969_v19  ;;  %2887 = vmatprep.subr.bf16.mxu1 %v1095_v22  ;;  %v1353_v25 = vpop.permute.xlu0 %1352 }
  0xb4   : > { %2888 = vmatpush3.bf16.msra.mxu1 %v1095_v22  ;;  %v1355_v26 = vpop.permute.xlu1 %1354 }
  0xb5   : > { %v1357_v28 = vsel %vm237_vm1, %v1353_v25, %v1355_v26  ;;  %v3085_v25 = vld [vmem:[%s3704_s0 + $0xb0] sm:$0xff]  }
  0xb6   : > { %2870 = vmatmul.mubr.msk.bf16.gmra.mxu1 %vm242_vm0, %v3052_v23  ;;  %2876 = vmatpush3.bf16.msra.mxu0 %v969_v19  ;;  %v3080_v19 = vld [vmem:[%s3704_s0 + $0xe8] sm:$0xff]  }
  0xb7   : > { %2889 = vmatprep.mubr.msk.bf16.mxu1 %vm242_vm0, %v3055_v24  ;;  %2897 = vmatprep.subr.bf16.mxu0 %v3207_v14  ;;  %v1349_v30 = vpop.permute.xlu0 %1348  ;;  %v3082_v23 = vld [vmem:[%s3704_s0 + $0xa8] sm:$0xff]  }
  0xb8   : > { %2909 = vmatprep.subr.bf16.mxu1 %v1357_v28  ;;  %v1351_v31 = vpop.permute.xlu1 %1350 }
  0xb9   : > { %2858 = vmatmul.mubr.msk.bf16.gmra.mxu0 %vm242_vm0, %v3054_v27  ;;  %v1356_v37 = vsel %vm237_vm1, %v1349_v30, %v1351_v31  ;;  %v3084_v27 = vld [vmem:[%s3704_s0 + $0xf8] sm:$0xff]   ;;  %v3089_v30 = vld [vmem:[%s3704_s0 + $0x1a0] sm:$0xff]   ;;  %v3088_v31 = vld [vmem:[%s3704_s0 + $0x1e8] sm:$0xff]  }
  0xba   : > { %2877 = vmatprep.mubr.msk.bf16.mxu0 %vm242_vm0, %v3057_v29  ;;  %v3086_v29 = vld [vmem:[%s3704_s0 + $0xb8] sm:$0xff]  }
  0xbb   : > { %v1479_v34 = vpop.permute.xlu0 %1478 }
  0xbc   : > { %v1481_v35 = vpop.permute.xlu1 %1480 }
  0xbd   : > { %v1483_v45 = vsel %vm454_vm2, %v1479_v34, %v1481_v35  ;;  %v3093_v34 = vld [vmem:[%s3704_s0 + $0x1b0] sm:$0xff]   ;;  %v3092_v35 = vld [vmem:[%s3704_s0 + $0x1f8] sm:$0xff]  }
  0xbe   : > { %2890 = vmatmul.mubr.msk.bf16.vlgmr.msra.gmra.mxu1 %vm242_vm0, %v3056_v32  ;;  %v3091_v32 = vld [vmem:[%s3704_s0 + $0x1f0] sm:$0xff]  }
  0xbf   : > { %2910 = vmatpush3.bf16.msra.mxu1 %v1357_v28  ;;  %2893 = vmatprep.mubr.msk.bf16.mxu1 %vm242_vm0, %v3059_v33  ;;  %v1605_v39 = vpop.permute.xlu0 %1604  ;;  %v3087_v28 = vld [vmem:[%s3704_s0 + $0x1e0] sm:$0xff]   ;;  %v3090_v33 = vld [vmem:[%s3704_s0 + $0x1a8] sm:$0xff]  }
  0xc0   : > { %2911 = vmatprep.subr.bf16.mxu1 %v1356_v37  ;;  %v1607_v40 = vpop.permute.xlu1 %1606 }
  0xc1   : > { %2878 = vmatmul.mubr.msk.bf16.vlgmr.msra.gmra.mxu0 %vm242_vm0, %v3058_v36  ;;  %v1609_v41 = vsel %vm581_vm3, %v1605_v39, %v1607_v40  ;;  %v3094_v36 = vld [vmem:[%s3704_s0 + $0x1b8] sm:$0xff]  }
  0xc2   : > { %2898 = vmatpush3.bf16.msra.mxu0 %v3207_v14  ;;  %2881 = vmatprep.mubr.msk.bf16.mxu0 %vm242_vm0, %v3061_v38  ;;  %v3062_v14 = vld [vmem:[%s3704_s0 + $0x138] sm:$0xff]  }
  0xc3   : > { %2899 = vmatprep.subr.bf16.mxu0 %v3214_v16  ;;  %2912 = vmatpush3.bf16.msra.mxu1 %v1356_v37  ;;  %v1475_v44 = vpop.permute.xlu0 %1474 }
  0xc4   : > { %2933 = vmatprep.subr.bf16.mxu1 %v1609_v41  ;;  %v1477_v46 = vpop.permute.xlu1 %1476 }
  0xc5   : > { %v1482_v56 = vsel %vm454_vm2, %v1475_v44, %v1477_v46 }
  0xc6   : > { %2894 = vmatmul.mubr.msk.bf16.gmra.mxu1 %vm242_vm0, %v3060_v42  ;;  %2900 = vmatpush3.bf16.msra.mxu0 %v3214_v16  ;;  %v3067_v16 = vld [vmem:[%s3704_s0 + $0xd0] sm:$0xff]  }
  0xc7   : > { %2913 = vmatprep.mubr.msk.bf16.mxu1 %vm242_vm0, %v3063_v43  ;;  %2921 = vmatprep.subr.bf16.mxu0 %v1483_v45  ;;  %v1601_v48 = vpop.permute.xlu0 %1600 }
  0xc8   : > { %v1603_v49 = vpop.permute.xlu1 %1602 }
  0xc9   : > { %2882 = vmatmul.mubr.msk.bf16.gmra.mxu0 %vm242_vm0, %v3062_v14  ;;  %v1608_v54 = vsel %vm581_vm3, %v1601_v48, %v1603_v49 }
  0xca   : > { %2901 = vmatprep.mubr.msk.bf16.mxu0 %vm242_vm0, %v3065_v47 }
  0xcb   : > { %v1866_v51 = vpop.permute.xlu0 %1865 }
  0xcc   : > { %v1868_v52 = vpop.permute.xlu1 %1867 }
  0xcd   : > { %v1870_v57 = vsel %vm237_vm1, %v1866_v51, %v1868_v52 }
  0xce   : > { %2914 = vmatmul.mubr.msk.bf16.vlgmr.msra.gmra.mxu1 %vm242_vm0, %v3064_v50 }
  0xcf   : > { %2934 = vmatpush3.bf16.msra.mxu1 %v1609_v41  ;;  %2917 = vmatprep.mubr.msk.bf16.mxu1 %vm242_vm0, %v3067_v16  ;;  %v1862_v59 = vpop.permute.xlu0 %1861 }
  0xd0   : > { %2935 = vmatprep.subr.bf16.mxu1 %v1608_v54  ;;  %v1864_v60 = vpop.permute.xlu1 %1863 }
  0xd1   : > { %2902 = vmatmul.mubr.msk.bf16.vlgmr.msra.gmra.mxu0 %vm242_vm0, %v3066_v53  ;;  %v1869_v5 = vsel %vm237_vm1, %v1862_v59, %v1864_v60 }
  0xd2   : > { %2922 = vmatpush3.bf16.msra.mxu0 %v1483_v45  ;;  %2905 = vmatprep.mubr.msk.bf16.mxu0 %vm242_vm0, %v3069_v55 }
  0xd3   : > { %2923 = vmatprep.subr.bf16.mxu0 %v1482_v56  ;;  %2936 = vmatpush3.bf16.msra.mxu1 %v1608_v54  ;;  %v1992_v0 = vpop.permute.xlu0 %1991 }
  0xd4   : > { %2957 = vmatprep.subr.bf16.mxu1 %v1870_v57  ;;  %v1994_v1 = vpop.permute.xlu1 %1993 }
  0xd5   : > { %v1996_v12 = vsel %vm454_vm2, %v1992_v0, %v1994_v1 }
  0xd6   : > { %2918 = vmatmul.mubr.msk.bf16.gmra.mxu1 %vm242_vm0, %v3068_v58  ;;  %2924 = vmatpush3.bf16.msra.mxu0 %v1482_v56 }
  0xd7   : > { %2937 = vmatprep.mubr.msk.bf16.mxu1 %vm242_vm0, %v3071_v61  ;;  %2945 = vmatprep.subr.bf16.mxu0 %v3235_v18  ;;  %v2118_v7 = vpop.permute.xlu0 %2117 }
  0xd8   : > { %v2120_v8 = vpop.permute.xlu1 %2119 }
  0xd9   : > { %2906 = vmatmul.mubr.msk.bf16.gmra.mxu0 %vm242_vm0, %v3070_v62  ;;  %v2122_v9 = vsel %vm581_vm3, %v2118_v7, %v2120_v8  ;;  %v2819_v37 = vpop.f32.mrf.mxu1 }
  0xda   : > { %2925 = vmatprep.mubr.msk.bf16.mxu0 %vm242_vm0, %v3073_v63 }
  0xdb   : > { %v1988_v13 = vpop.permute.xlu0 %1987  ;;  %v386_v38 = vpop.f32.mrf.mxu1 }
  0xdc   : > { %v1990_v15 = vpop.permute.xlu1 %1989 }
  0xdd   : > { %v1995_v26 = vsel %vm454_vm2, %v1988_v13, %v1990_v15  ;;  %v2820_v39 = vpop.f32.mrf.mxu1 }
  0xde   : > { %2938 = vmatmul.mubr.msk.bf16.vlgmr.msra.gmra.mxu1 %vm242_vm0, %v3072_v2 }
  0xdf   : > { %2958 = vmatpush3.bf16.msra.mxu1 %v1870_v57  ;;  %2941 = vmatprep.mubr.msk.bf16.mxu1 %vm242_vm0, %v3075_v3  ;;  %v2114_v21 = vpop.permute.xlu0 %2113  ;;  %v389_v40 = vpop.f32.mrf.mxu1 }
  0xe0   : > { %2959 = vmatprep.subr.bf16.mxu1 %v1869_v5  ;;  %v2116_v22 = vpop.permute.xlu1 %2115 }
  0xe1   : > { %2926 = vmatmul.mubr.msk.bf16.vlgmr.msra.gmra.mxu0 %vm242_vm0, %v3074_v4  ;;  %v2121_v24 = vsel %vm581_vm3, %v2114_v21, %v2116_v22  ;;  %v2823_v41 = vpop.f32.mrf.mxu1 }
  0xe2   : > { %2946 = vmatpush3.bf16.msra.mxu0 %v3235_v18  ;;  %2929 = vmatprep.mubr.msk.bf16.mxu0 %vm242_vm0, %v3077_v6  ;;  %v3078_v18 = vld [vmem:[%s3704_s0 + $0x198] sm:$0xff]  }
  0xe3   : > { %2947 = vmatprep.subr.bf16.mxu0 %v3242_v20  ;;  %2960 = vmatpush3.bf16.msra.mxu1 %v1869_v5  ;;  %v402_v43 = vpop.f32.mrf.mxu1 }
  0xe4   : > { %2981 = vmatprep.subr.bf16.mxu1 %v2122_v9 }
  0xe5   : > { %v2824_v46 = vpop.f32.mrf.mxu1 }
  0xe6   : > { %2942 = vmatmul.mubr.msk.bf16.gmra.mxu1 %vm242_vm0, %v3076_v10  ;;  %2948 = vmatpush3.bf16.msra.mxu0 %v3242_v20  ;;  %v3083_v20 = vld [vmem:[%s3704_s0 + $0xf0] sm:$0xff]  }
  0xe7   : > { %2961 = vmatprep.mubr.msk.bf16.mxu1 %vm242_vm0, %v3079_v11  ;;  %2969 = vmatprep.subr.bf16.mxu0 %v1996_v12  ;;  %v405_v48 = vpop.f32.mrf.mxu1 }
  0xe9   : > { %2930 = vmatmul.mubr.msk.bf16.gmra.mxu0 %vm242_vm0, %v3078_v18 }
  0xea   : > { %2949 = vmatprep.mubr.msk.bf16.mxu0 %vm242_vm0, %v3081_v17 }
  0xee   : > { %2962 = vmatmul.mubr.msk.bf16.vlgmr.msra.gmra.mxu1 %vm242_vm0, %v3080_v19 }
  0xef   : > { %2982 = vmatpush3.bf16.msra.mxu1 %v2122_v9  ;;  %2965 = vmatprep.mubr.msk.bf16.mxu1 %vm242_vm0, %v3083_v20 }
  0xf0   : > { %2983 = vmatprep.subr.bf16.mxu1 %v2121_v24 }
  0xf1   : > { %2950 = vmatmul.mubr.msk.bf16.vlgmr.msra.gmra.mxu0 %vm242_vm0, %v3082_v23 }
  0xf2   : > { %2970 = vmatpush3.bf16.msra.mxu0 %v1996_v12  ;;  %2953 = vmatprep.mubr.msk.bf16.mxu0 %vm242_vm0, %v3085_v25 }
  0xf3   : > { %2971 = vmatprep.subr.bf16.mxu0 %v1995_v26  ;;  %2984 = vmatpush3.bf16.msra.mxu1 %v2121_v24 }
  0xf6   : > { %2966 = vmatmul.mubr.msk.bf16.gmra.mxu1 %vm242_vm0, %v3084_v27  ;;  %2972 = vmatpush3.bf16.msra.mxu0 %v1995_v26 }
  0xf7   : > { %2985 = vmatprep.mubr.msk.bf16.mxu1 %vm242_vm0, %v3087_v28 }
  0xf9   : > { %2954 = vmatmul.mubr.msk.bf16.gmra.mxu0 %vm242_vm0, %v3086_v29 }
  0xfa   : > { %2973 = vmatprep.mubr.msk.bf16.mxu0 %vm242_vm0, %v3089_v30 }
  0xfe   : > { %2986 = vmatmul.mubr.msk.bf16.vlgmr.msra.gmra.mxu1 %vm242_vm0, %v3088_v31 }
  0xff   : > { %2989 = vmatprep.mubr.msk.bf16.mxu1 %vm242_vm0, %v3091_v32 }
 0x101   : > { %2974 = vmatmul.mubr.msk.bf16.vlgmr.msra.gmra.mxu0 %vm242_vm0, %v3090_v33 }
 0x102   : > { %2977 = vmatprep.mubr.msk.bf16.mxu0 %vm242_vm0, %v3093_v34 }
 0x106   : > { %2990 = vmatmul.mubr.msk.bf16.gmra.mxu1 %vm242_vm0, %v3092_v35 }
 0x109   : > { %2978 = vmatmul.mubr.msk.bf16.gmra.mxu0 %vm242_vm0, %v3094_v36 }
 0x151   : > { %v2807_v42 = vpop.f32.mrf.mxu0 }
 0x152   : > { %v395_v52 = vadd.f32 %v2819_v37, %v2807_v42 }
 0x153   : > { %v289_v44 = vpop.f32.mrf.mxu0 }
 0x154   : > { %v387_v56 = vadd.f32 %v386_v38, %v289_v44 }
 0x155   : > { %v2808_v45 = vpop.f32.mrf.mxu0 }
 0x156   : > { %v398_v60 = vadd.f32 %v2820_v39, %v2808_v45 }
 0x157   : > { %v292_v14 = vpop.f32.mrf.mxu0 }
 0x158   : > { %v390_v1 = vadd.f32 %v389_v40, %v292_v14 }
 0x159   : > { %v2811_v47 = vpop.f32.mrf.mxu0 }
 0x15a   : > { %v411_v6 = vadd.f32 %v2823_v41, %v2811_v47 }
 0x15b   : > { %v305_v49 = vpop.f32.mrf.mxu0 }
 0x15c   : > { %v403_v11 = vadd.f32 %v402_v43, %v305_v49 }
 0x15d   : > { %v2812_v50 = vpop.f32.mrf.mxu0 }
 0x15e   : > { %v2843_v16 = vpop.f32.mrf.mxu1  ;;  %v414_v17 = vadd.f32 %v2824_v46, %v2812_v50 }
 0x15f   : > { %v308_v51 = vpop.f32.mrf.mxu0 }
 0x160   : > { %v406_v53 = vadd.f32 %v405_v48, %v308_v51  ;;  %v632_v54 = vpop.f32.mrf.mxu1 }
 0x161   : > { %v2831_v55 = vpop.f32.mrf.mxu0 }
 0x162   : > { %v538_v57 = vadd.f32 %v2831_v55, %v395_v52  ;;  %v2844_v58 = vpop.f32.mrf.mxu1 }
 0x163   : > { %v505_v59 = vpop.f32.mrf.mxu0 }
 0x164   : > { %v536_v61 = vadd.f32 %v505_v59, %v387_v56  ;;  %v635_v62 = vpop.f32.mrf.mxu1  ;;  %v665_v63 = vadd.f32 %v2843_v16, %v538_v57 }
 0x165   : > { %v2832_v0 = vpop.f32.mrf.mxu0 }
 0x166   : > { %v539_v2 = vadd.f32 %v2832_v0, %v398_v60  ;;  %v2847_v3 = vpop.f32.mrf.mxu1  ;;  %v663_v4 = vadd.f32 %v632_v54, %v536_v61 }
 0x167   : > { %v508_v5 = vpop.f32.mrf.mxu0 }
 0x168   : > { %v537_v7 = vadd.f32 %v508_v5, %v390_v1  ;;  %v648_v8 = vpop.f32.mrf.mxu1  ;;  %v3553_v9 = vadd.f32 %v2844_v58, %v539_v2 }
 0x169   : > { %v2835_v10 = vpop.f32.mrf.mxu0 }
 0x16a   : > { %v542_v12 = vadd.f32 %v2835_v10, %v411_v6  ;;  %v2848_v13 = vpop.f32.mrf.mxu1  ;;  %v3555_v15 = vadd.f32 %v635_v62, %v537_v7 }
 0x16b   : > { %v521_v18 = vpop.f32.mrf.mxu0 }
 0x16c   : > { %v540_v19 = vadd.f32 %v521_v18, %v403_v11  ;;  %v651_v21 = vpop.f32.mrf.mxu1  ;;  %v669_v22 = vadd.f32 %v2847_v3, %v542_v12 }
 0x16d   : > { %v2836_v20 = vpop.f32.mrf.mxu0 }
 0x16e   : > { %v543_v23 = vadd.f32 %v2836_v20, %v414_v17  ;;  %v2867_v24 = vpop.f32.mrf.mxu1  ;;  %v667_v25 = vadd.f32 %v648_v8, %v540_v19 }
 0x16f   : > { %v524_v26 = vpop.f32.mrf.mxu0 }
 0x170   : > { %v541_v27 = vadd.f32 %v524_v26, %v406_v53  ;;  %v893_v28 = vpop.f32.mrf.mxu1  ;;  %v3557_v29 = vadd.f32 %v2848_v13, %v543_v23 }
 0x171   : > { %v2855_v30 = vpop.f32.mrf.mxu0 }
 0x172   : > { %v794_v31 = vadd.f32 %v2855_v30, %v665_v63  ;;  %v3559_v32 = vpop.f32.mrf.mxu1  ;;  %v3561_v33 = vadd.f32 %v651_v21, %v541_v27 }
 0x173   : > { %v761_v34 = vpop.f32.mrf.mxu0 }
 0x174   : > { %v792_v35 = vadd.f32 %v761_v34, %v663_v4  ;;  %v3563_v36 = vpop.f32.mrf.mxu1  ;;  %v926_v37 = vadd.f32 %v2867_v24, %v794_v31 }
 0x175   : > { %v2856_v38 = vpop.f32.mrf.mxu0 }
 0x176   : > { %v2871_v39 = vpop.f32.mrf.mxu1  ;;  %v924_v40 = vadd.f32 %v893_v28, %v792_v35  ;;  %v795_v35 = vadd.f32 %v2856_v38, %v3553_v9 }
 0x177   : > { %v764_v41 = vpop.f32.mrf.mxu0 }
 0x178   : > { %v909_v42 = vpop.f32.mrf.mxu1 }
 0x179   : > { %v2859_v43 = vpop.f32.mrf.mxu0 }
 0x17a   : > { %v798_v44 = vadd.f32 %v2859_v43, %v669_v22  ;;  %v3565_v45 = vpop.f32.mrf.mxu1 }
 0x17b   : > { %v777_v46 = vpop.f32.mrf.mxu0 }
 0x17c   : > { %v796_v14 = vadd.f32 %v777_v46, %v667_v25  ;;  %v3567_v47 = vpop.f32.mrf.mxu1  ;;  %v3569_v48 = vadd.f32 %v2871_v39, %v798_v44 }
 0x17d   : > { %v2860_v49 = vpop.f32.mrf.mxu0 }
 0x17e   : > { %v2891_v50 = vpop.f32.mrf.mxu1  ;;  %v3571_v16 = vadd.f32 %v909_v42, %v796_v14  ;;  %v793_v42 = vadd.f32 %v764_v41, %v3555_v15  ;;  %v799_v15 = vadd.f32 %v2860_v49, %v3557_v29 }
 0x17f   : > { %v3573_v51 = vpop.f32.mrf.mxu0 }
 0x180   : > { %v1145_v52 = vpop.f32.mrf.mxu1 }
 0x181   : > { %v2879_v53 = vpop.f32.mrf.mxu0 }
 0x182   : > { %v2892_v54 = vpop.f32.mrf.mxu1  ;;  %v1052_v44 = vadd.f32 %v2879_v53, %v926_v37 }
 0x183   : > { %v1019_v55 = vpop.f32.mrf.mxu0 }
 0x184   : > { %v3575_v56 = vpop.f32.mrf.mxu1  ;;  %v1178_v38 = vadd.f32 %v2891_v50, %v1052_v44 }
 0x185   : > { %v2880_v57 = vpop.f32.mrf.mxu0 }
 0x186   : > { %v3577_v58 = vpop.f32.mrf.mxu1 }
 0x187   : > { %v1022_v59 = vpop.f32.mrf.mxu0 }
 0x188   : > { %v3579_v60 = vpop.f32.mrf.mxu1 }
 0x189   : > { %v2883_v61 = vpop.f32.mrf.mxu0 }
 0x18a   : > { %v3581_v62 = vpop.f32.mrf.mxu1  ;;  %v1056_v50 = vadd.f32 %v2883_v61, %v3569_v48 }
 0x18b   : > { %v1035_v63 = vpop.f32.mrf.mxu0 }
 0x18c   : > { %v3583_v0 = vpop.f32.mrf.mxu1 }
 0x18d   : > { %v2884_v1 = vpop.f32.mrf.mxu0 }
 0x18e   : > { %v2915_v2 = vpop.f32.mrf.mxu1 }
 0x18f   : > { %v3585_v3 = vpop.f32.mrf.mxu0 }
 0x190   : > { %v1406_v4 = vpop.f32.mrf.mxu1 }
 0x191   : > { %v2903_v5 = vpop.f32.mrf.mxu0 }
 0x192   : > { %v3587_v6 = vpop.f32.mrf.mxu1  ;;  %v1307_v53 = vadd.f32 %v2903_v5, %v1178_v38 }
 0x193   : > { %v1274_v7 = vpop.f32.mrf.mxu0 }
 0x194   : > { %v3589_v8 = vpop.f32.mrf.mxu1  ;;  %v1439_v5 = vadd.f32 %v2915_v2, %v1307_v53 }
 0x195   : > { %v2904_v10 = vpop.f32.mrf.mxu0 }
 0x196   : > { %v3591_v11 = vpop.f32.mrf.mxu1 }
 0x197   : > { %v1277_v12 = vpop.f32.mrf.mxu0 }
 0x198   : > { %v3593_v13 = vpop.f32.mrf.mxu1 }
 0x199   : > { %v3595_v18 = vpop.f32.mrf.mxu0 }
 0x19a   : > { %v3597_v17 = vpop.f32.mrf.mxu1 }
 0x19b   : > { %3708 = vst [vmem:[#allocation2_spill] sm:$0xff] %v3597_v17  ;;  %v3599_v19 = vpop.f32.mrf.mxu0 }
 0x19c   : > { %v3601_v21 = vpop.f32.mrf.mxu1 }
 0x19d   : > { %3709 = vst [vmem:[#allocation3_spill] sm:$0xff] %v3601_v21  ;;  %v3603_v22 = vpop.f32.mrf.mxu0  ;;  %v1050_v21 = vadd.f32 %v1019_v55, %v924_v40 }
 0x19e   : > { %v3605_v20 = vpop.f32.mrf.mxu1 }
 0x19f   : > { %v3607_v23 = vpop.f32.mrf.mxu0 }
 0x1a0   : > { %3710 = vst [vmem:[#allocation4_spill] sm:$0xff] %v3607_v23  ;;  %v3609_v24 = vpop.f32.mrf.mxu1 }
 0x1a1   : > { %v2927_v25 = vpop.f32.mrf.mxu0 }
 0x1a2   : > { %v3611_v26 = vpop.f32.mrf.mxu1 }
 0x1a3   : > { %v1532_v27 = vpop.f32.mrf.mxu0 }
 0x1a4   : > { %v3613_v28 = vpop.f32.mrf.mxu1 }
 0x1a5   : > { %3711 = vst [vmem:[#allocation5_spill] sm:$0xff] %v3613_v28  ;;  %v2928_v30 = vpop.f32.mrf.mxu0  ;;  %v927_v28 = vadd.f32 %v3559_v32, %v795_v35 }
 0x1a6   : > { %v3615_v31 = vpop.f32.mrf.mxu1 }
 0x1a7   : > { %3712 = vst [vmem:[#allocation6_spill] sm:$0xff] %v3615_v31  ;;  %v1535_v34 = vpop.f32.mrf.mxu0  ;;  %v925_v31 = vadd.f32 %v3563_v36, %v793_v42  ;;  %v1053_v9 = vadd.f32 %v2880_v57, %v927_v28  ;;  %v797_v36 = vadd.f32 %v3573_v51, %v3561_v33  ;;  %v931_v57 = vadd.f32 %v3565_v45, %v799_v15 }
 0x1a8   : > { %v3618_v39 = vpop.f32.mrf.mxu1  ;;  %v1182_v45 = vadd.f32 %v3577_v58, %v1056_v50 }
 0x1a9   : > { %3713 = vst [vmem:[#allocation7_spill] sm:$0xff] %v3618_v39  ;;  %v3621_v43 = vpop.f32.mrf.mxu0  ;;  %v1051_v37 = vadd.f32 %v1022_v59, %v925_v31  ;;  %v1179_v35 = vadd.f32 %v2892_v54, %v1053_v9  ;;  %v1054_v59 = vadd.f32 %v1035_v63, %v3571_v16  ;;  %v1565_v31 = vadd.f32 %v2927_v25, %v1439_v5  ;;  %v3719_v5 = vld [vmem:[#allocation3_spill] sm:$0xff] }
 0x1aa   : > { %v3623_v46 = vpop.f32.mrf.mxu1  ;;  %v929_v33 = vadd.f32 %v3567_v47, %v797_v36 }
 0x1ab   : > { %3714 = vst [vmem:[#allocation8_spill] sm:$0xff] %v3623_v46  ;;  %v3625_v14 = vpop.f32.mrf.mxu0  ;;  %v1176_v46 = vadd.f32 %v1145_v52, %v1050_v21  ;;  %v1177_v29 = vadd.f32 %v3575_v56, %v1051_v37  ;;  %v1308_v52 = vadd.f32 %v2904_v10, %v1179_v35  ;;  %v1180_v51 = vadd.f32 %v3579_v60, %v1054_v59  ;;  %v2221_v35 = vpop.permute.xlu0 %2220 }
 0x1ac   : > { %v3628_v17 = vpop.f32.mrf.mxu1  ;;  %v1055_v63 = vadd.f32 %v3585_v3, %v929_v33 }
 0x1ad   : > { %3715 = vst [vmem:[#allocation9_spill] sm:$0xff] %v3628_v17  ;;  %v3631_v23 = vpop.f32.mrf.mxu0  ;;  %v1305_v55 = vadd.f32 %v1274_v7, %v1176_v46  ;;  %v1057_v7 = vadd.f32 %v2884_v1, %v931_v57  ;;  %v1306_v54 = vadd.f32 %v1277_v12, %v1177_v29  ;;  %v1440_v16 = vadd.f32 %v3587_v6, %v1308_v52 }
 0x1ae   : > { %v3633_v39 = vpop.f32.mrf.mxu1  ;;  %v1311_v1 = vadd.f32 %v3595_v18, %v1182_v45  ;;  %v1309_v47 = vadd.f32 %v3599_v19, %v1180_v51  ;;  %v1691_v12 = vadd.f32 %v3605_v20, %v1565_v31  ;;  %v3668_v18 = vpop.permute.xlu1 %2225 }
 0x1af   : > { %v3636_v41 = vpop.f32.mrf.mxu0  ;;  %v1437_v42 = vadd.f32 %v1406_v4, %v1305_v55  ;;  %v1183_v2 = vadd.f32 %v3581_v62, %v1057_v7  ;;  %v1438_v4 = vadd.f32 %v3589_v8, %v1306_v54  ;;  %v1566_v58 = vadd.f32 %v2928_v30, %v1440_v16  ;;  %v3720_v54 = vld [vmem:[#allocation6_spill] sm:$0xff] }
 0x1b0   : > { %v3638_v40 = vpop.f32.mrf.mxu1  ;;  %v1181_v8 = vadd.f32 %v3583_v0, %v1055_v63  ;;  %v1443_v19 = vadd.f32 %v3591_v11, %v1311_v1  ;;  %v1441_v20 = vadd.f32 %v3593_v13, %v1309_v47  ;;  %v3721_v33 = vld [vmem:[#allocation7_spill] sm:$0xff]  ;;  %v2236_v63 = vpop.permute.xlu0 %2235 }
 0x1b1   : > { %v2951_v32 = vpop.f32.mrf.mxu0  ;;  %v1563_v56 = vadd.f32 %v1532_v27, %v1437_v42  ;;  %v1312_v6 = vadd.f32 %v3603_v22, %v1183_v2  ;;  %v1564_v25 = vadd.f32 %v1535_v34, %v1438_v4  ;;  %v1692_v38 = vadd.f32 %v3611_v26, %v1566_v58  ;;  %v3716_v34 = vld [vmem:[#allocation4_spill] sm:$0xff] }
 0x1b2   : > { %v3640_v17 = vpop.f32.mrf.mxu1  ;;  %v1820_v46 = vadd.f32 %v2951_v32, %v1691_v12  ;;  %v1310_v15 = vadd.f32 %v3716_v34, %v1181_v8  ;;  %v1569_v37 = vadd.f32 %v3621_v43, %v1443_v19  ;;  %v3718_v32 = vld [vmem:[#allocation5_spill] sm:$0xff]  ;;  %v1567_v0 = vadd.f32 %v3625_v14, %v1441_v20 }
 0x1b3   : > { %v1787_v49 = vpop.f32.mrf.mxu0  ;;  %v1689_v3 = vadd.f32 %v3609_v24, %v1563_v56  ;;  %v3717_v24 = vld [vmem:[#allocation2_spill] sm:$0xff]  ;;  %v1690_v55 = vadd.f32 %v3718_v32, %v1564_v25  ;;  %v3722_v56 = vld [vmem:[#allocation8_spill] sm:$0xff] }
 0x1b4   : > { %v3648_v21 = vpop.f32.mrf.mxu1  ;;  %v1444_v53 = vadd.f32 %v3717_v24, %v1312_v6  ;;  %v1952_v13 = vadd.f32 %v3633_v39, %v1820_v46  ;;  %v1442_v7 = vadd.f32 %v3719_v5, %v1310_v15  ;;  %v1695_v31 = vadd.f32 %v3720_v54, %v1569_v37  ;;  %v2246_v15 = vpop.permute.xlu0 %2245 }
 0x1b5   : > { %v2952_v28 = vpop.f32.mrf.mxu0  ;;  %v1818_v9 = vadd.f32 %v1787_v49, %v1689_v3  ;;  %v2231_v49 = vpop.permute.xlu1 %2230  ;;  %v1693_v14 = vadd.f32 %v3721_v33, %v1567_v0 }
 0x1b6   : > { %v3650_v44 = vpop.f32.mrf.mxu1  ;;  %v1821_v11 = vadd.f32 %v2952_v28, %v1692_v38  ;;  %v1570_v57 = vadd.f32 %v3631_v23, %v1444_v53  ;;  %v1568_v23 = vadd.f32 %v3636_v41, %v1442_v7  ;;  %v3723_v41 = vld [vmem:[#allocation9_spill] sm:$0xff] }
 0x1b7   : > { %v1790_v48 = vpop.f32.mrf.mxu0  ;;  %v1950_v43 = vadd.f32 %v3638_v40, %v1818_v9 }
 0x1b8   : > { %v3656_v61 = vpop.f32.mrf.mxu1  ;;  %v1819_v26 = vadd.f32 %v1790_v48, %v1690_v55  ;;  %v1953_v39 = vadd.f32 %v3640_v17, %v1821_v11  ;;  %v1696_v16 = vadd.f32 %v3722_v56, %v1570_v57  ;;  %v2256_v5 = vpop.permute.xlu0 %2255 }
 0x1b9   : > { %v2955_v10 = vpop.f32.mrf.mxu0  ;;  %v2241_v3 = vpop.permute.xlu1 %2240 }
 0x1ba   : > { %v3664_v60 = vpop.f32.mrf.mxu1  ;;  %v1824_v48 = vadd.f32 %v2955_v10, %v1695_v31  ;;  %v1951_v40 = vadd.f32 %v3648_v21, %v1819_v26  ;;  %v1694_v10 = vadd.f32 %v3723_v41, %v1568_v23 }
 0x1bb   : > { %v1803_v27 = vpop.f32.mrf.mxu0 }
 0x1bc   : > { %v3670_v62 = vpop.f32.mrf.mxu1  ;;  %v1822_v2 = vadd.f32 %v1803_v27, %v1693_v14  ;;  %v1956_v20 = vadd.f32 %v3650_v44, %v1824_v48 }
 0x1bd   : > { %v2956_v30 = vpop.f32.mrf.mxu0  ;;  %v2251_v57 = vpop.permute.xlu1 %2250 }
 0x1be   : > { %v2987_v22 = vpop.f32.mrf.mxu1  ;;  %v1825_v6 = vadd.f32 %v2956_v30, %v1696_v16 }
 0x1bf   : > { %v1806_v36 = vpop.f32.mrf.mxu0 }
 0x1c0   : > { %v2171_v50 = vpop.f32.mrf.mxu1  ;;  %v1823_v34 = vadd.f32 %v1806_v36, %v1694_v10  ;;  %v1957_v24 = vadd.f32 %v3664_v60, %v1825_v6 }
 0x1c1   : > { %v2975_v29 = vpop.f32.mrf.mxu0 }
 0x1c2   : > { %v2078_v59 = vadd.f32 %v2975_v29, %v1952_v13  ;;  %v2988_v52 = vpop.f32.mrf.mxu1  ;;  %v1955_v29 = vadd.f32 %v3670_v62, %v1823_v34 }
 0x1c3   : > { %v2045_v42 = vpop.f32.mrf.mxu0 }
 0x1c4   : > { %v2204_v28 = vadd.f32 %v2987_v22, %v2078_v59  ;;  %v2076_v45 = vadd.f32 %v2045_v42, %v1950_v43  ;;  %v2174_v51 = vpop.f32.mrf.mxu1  ;;  %v1954_v22 = vadd.f32 %v3656_v61, %v1822_v2 }
 0x1c5   : > { %v2976_v1 = vpop.f32.mrf.mxu0 }
 0x1c6   : > { %v2260_v4 = vadd.f32 %v2231_v49, %v2204_v28  ;;  %v2202_v47 = vadd.f32 %v2171_v50, %v2076_v45  ;;  %v2079_v58 = vadd.f32 %v2976_v1, %v1953_v39  ;;  %v2991_v12 = vpop.f32.mrf.mxu1 }
 0x1c7   : > { %v2048_v25 = vpop.f32.mrf.mxu0 }
 0x1c8   : > { %v2258_v46 = vadd.f32 %v2221_v35, %v2202_v47  ;;  %v2205_v8 = vadd.f32 %v2988_v52, %v2079_v58  ;;  %v2077_v17 = vadd.f32 %v2048_v25, %v1951_v40  ;;  %v2268_v19 = vmul.f32 0.1, %v2260_v4  ;;  %v2187_v27 = vpop.f32.mrf.mxu1 }
 0x1c9   : > { %v2979_v9 = vpop.f32.mrf.mxu0 }
 0x1ca   : > { %v2261_v38 = vadd.f32 %v2236_v63, %v2205_v8  ;;  %v2203_v21 = vadd.f32 %v2174_v51, %v2077_v17  ;;  %v2082_v30 = vadd.f32 %v2979_v9, %v1956_v20  ;;  %v2266_v53 = vmul.f32 0.1, %v2258_v46  ;;  %v2992_v26 = vpop.f32.mrf.mxu1 }
 0x1cb   : > { %v2061_v37 = vpop.f32.mrf.mxu0  ;;  %v2276_v0 = vmax.f32 %v2260_v4, %v2268_v19 }
 0x1cc   : > { %v2269_v32 = vmul.f32 0.1, %v2261_v38  ;;  %v2259_v55 = vadd.f32 %v3668_v18, %v2203_v21  ;;  %v2080_v35 = vadd.f32 %v2061_v37, %v1954_v22  ;;  %v2208_v44 = vadd.f32 %v2991_v12, %v2082_v30  ;;  %v2190_v33 = vpop.f32.mrf.mxu1 }
 0x1cd   : > { %v2980_v11 = vpop.f32.mrf.mxu0  ;;  %v2274_v59 = vmax.f32 %v2258_v46, %v2266_v53 }
 0x1ce   : > { %v2277_v50 = vmax.f32 %v2261_v38, %v2269_v32  ;;  %v2267_v13 = vmul.f32 0.1, %v2259_v55  ;;  %v2206_v61 = vadd.f32 %v2187_v27, %v2080_v35  ;;  %v2083_v36 = vadd.f32 %v2980_v11, %v1957_v24 }
 0x1cf   : > { %v2264_v60 = vadd.f32 %v2251_v57, %v2208_v44  ;;  %v2064_v49 = vpop.f32.mrf.mxu0 }
 0x1d0   : > { %v2690_v18 = vpack.c.bf16 %v2277_v50, %v2276_v0  ;;  %v2275_v52 = vmax.f32 %v2259_v55, %v2267_v13  ;;  %v2209_v43 = vadd.f32 %v2992_v26, %v2083_v36  ;;  %v2262_v7 = vadd.f32 %v2241_v3, %v2206_v61 }
 0x1d1   : > { %v2081_v54 = vadd.f32 %v2064_v49, %v1955_v29  ;;  %v2272_v42 = vmul.f32 0.1, %v2264_v60 }
 0x1d2   : > { %2702 = vst [vmem:[%s170_s18 + $0x8] sm:$0xff] %v2690_v18   ;;  %v2685_v31 = vpack.c.bf16 %v2275_v52, %v2274_v59  ;;  %v2265_v14 = vadd.f32 %v2256_v5, %v2209_v43  ;;  %v2270_v51 = vmul.f32 0.1, %v2262_v7 }
 0x1d3   : > { %v2207_v28 = vadd.f32 %v2190_v33, %v2081_v54  ;;  %v2280_v23 = vmax.f32 %v2264_v60, %v2272_v42 }
 0x1d4   : > { %2686 = vst [vmem:[%s170_s18] sm:$0xff] %v2685_v31   ;;  %v2273_v45 = vmul.f32 0.1, %v2265_v14  ;;  %v2278_v16 = vmax.f32 %v2262_v7, %v2270_v51 }
 0x1d5   : > { %v2263_v39 = vadd.f32 %v2246_v15, %v2207_v28 }
 0x1d6   : > { %v2281_v62 = vmax.f32 %v2265_v14, %v2273_v45 }
 0x1d7   : > { %v2271_v48 = vmul.f32 0.1, %v2263_v39 }
 0x1d8   : > { %v2700_v56 = vpack.c.bf16 %v2281_v62, %v2280_v23 }
 0x1d9   : > { %v2279_v63 = vmax.f32 %v2263_v39, %v2271_v48 }
 0x1da   : > { %2704 = vst [vmem:[%s170_s18 + $0x18] sm:$0xff] %v2700_v56  }
 0x1db   : > { %v2695_v1 = vpack.c.bf16 %v2279_v63, %v2278_v16 }
 0x1dd   : > { %2703 = vst [vmem:[%s170_s18 + $0x10] sm:$0xff] %v2695_v1  }
 0x1de PF: > { %s13_s12 = sadd.s32 1, %s3101_s12  }
 0x1df   : > { %p10_p4 = scmp.ge.s32.totalorder %s13_s12, 4  }
 0x1e1   :  { %12 = sbr.rel (!%p10_p4) target bundleno = 1 (0x1), region = 80 }

// kernel: discriminator_forward.7
= control target key start
LH: loop header
LB: loop body
LE: loop exit
PB: predicated region body
PF: predicated region fallthrough
CT: control target
= control target key end

     0   :  { %s5419_s12 = smov 0   ;;  %s6660_s0 = inlined_call_operand.vmem [shape: bf16[16,128,64], index: 0, kind: input, shape index: {}]   ;;  %s6661_s1 = inlined_call_operand.vmem [shape: bf16[2,4,64,256], index: 1, kind: input, shape index: {}]   ;;  %s6662_s2 = inlined_call_operand.vmem [shape: f32[128,1], index: 2, kind: input, shape index: {}]   ;;  %s6663_s3 = inlined_call_operand.vmem [shape: bf16[2,128,128], index: 3, kind: output, shape index: {}]  }
   0x1 LB: > { %s3977_s13 = sadd.s32 4294967295, %s5393_s12   ;;  %p3981_p0 = scmp.ge.s32.totalorder %s5393_s12, 1  ;;  %s5393_s12 = sphi %s5419_s12, %s13_s12  }
   0x2   : > { %p137_p1 = scmp.lt.s32.totalorder %s5393_s12, 3 }
   0x4   : > { %p138_p2 = pnand %p3981_p0, %p137_p1 }
   0x6   : > { %141 = sbr.rel (%p138_p2) target bundleno = 613 (0x265), region = 32 }
   0xb   : > { %p161_p3 = scmp.lt.s32.totalorder %s3977_s13, 1  ;;  %s5395_s18 = smov 127   ;;  %vm310_vm0 = vcmask 523264   ;;  %v5241_v8 = vld [vmem:[%s6660_s0] sm:$0xff]   ;;  %v5245_v9 = vld [vmem:[%s6660_s0 + $0x8] sm:$0xff]   ;;  %v5248_v11 = vld [vmem:[%s6660_s0 + $0x10] sm:$0xff]  }
   0xc   : > { %v5246_v10 = vld [vmem:[%s6660_s0 + $0x80] sm:$0xff]   ;;  %4845 = vmatprep.mubr.msk.bf16.mxu1 %vm310_vm0, %v5241_v8  ;;  %s5396_s27 = smov 123   ;;  %v5252_v12 = vld [vmem:[%s6660_s0 + $0x18] sm:$0xff]   ;;  %s5397_s5 = smov 122   ;;  %v5256_v14 = vld [vmem:[%s6660_s0 + $0x28] sm:$0xff]   ;;  %vm301_vm1 = vcmask 1039360  }
   0xd   : > { %s6713_s13 = smov (!%p161_p3, %s3977_s13), 1  ;;  %4821 = vmatprep.mubr.msk.bf16.mxu0 %vm310_vm0, %v5246_v10  ;;  %v5255_v13 = vld [vmem:[%s6660_s0 + $0x20] sm:$0xff]   ;;  %v5259_v15 = vld [vmem:[%s6660_s0 + $0x30] sm:$0xff]   ;;  %v5260_v16 = vld [vmem:[%s6660_s0 + $0x38] sm:$0xff]   ;;  %vm666_vm2 = vcmask 1006592   ;;  %vm885_vm3 = vcmask 998400  }
   0xe   : > { %s4556_s14 = sshll.u32 %s6713_s13, 8  ;;  %v5263_v17 = vld [vmem:[%s6660_s0 + $0x280] sm:$0xff]   ;;  %v5247_v49 = vld [vmem:[%s6660_s0 + $0x88] sm:$0xff]   ;;  %v5253_v51 = vld [vmem:[%s6660_s0 + $0x90] sm:$0xff]  }
   0xf   : > { %s5433_s17 = scalar_lea.vmem %s6661_s1, %s4556_s14  ;;  %v5254_v57 = vld [vmem:[%s6660_s0 + $0x98] sm:$0xff]   ;;  %v5257_v59 = vld [vmem:[%s6660_s0 + $0xa0] sm:$0xff]  }
  0x10   : > { %v5211_v0 = vld [vmem:[%s5433_s17 + $0x30] ss:$8 sps:$4 sm:$0xff]   ;;  %v5213_v1 = vld [vmem:[%s5433_s17 + $0x20] ss:$8 sps:$4 sm:$0xff]   ;;  %v5215_v2 = vld [vmem:[%s5433_s17 + $0x34] ss:$8 sps:$4 sm:$0xff]  }
  0x11   : > { %297 = vrot.lane.b32.xlu0 %v5211_v0, %s5395_s18  ;;  %4837 = vmatprep.subr.bf16.mxu1 %v5211_v0  ;;  %v5216_v3 = vld [vmem:[%s5433_s17 + $0x24] ss:$8 sps:$4 sm:$0xff]   ;;  %v5219_v4 = vld [vmem:[%s5433_s17 + $0x10] ss:$8 sps:$4 sm:$0xff]   ;;  %v5217_v5 = vld [vmem:[%s5433_s17 + $0x14] ss:$8 sps:$4 sm:$0xff]  }
  0x12   : > { %293 = vrot.lane.b32.xlu1 %v5213_v1, %s5395_s18  ;;  %4838 = vmatpush3.bf16.msra.mxu1 %v5211_v0  ;;  %v5222_v6 = vld [vmem:[%s5433_s17] ss:$8 sps:$4 sm:$0xff]   ;;  %v5220_v7 = vld [vmem:[%s5433_s17 + $0x4] ss:$8 sps:$4 sm:$0xff]   ;;  %v5506_v18 = vld [vmem:[%s5433_s17 + $0x70] ss:$8 sps:$4 sm:$0xff]  }
  0x13   : > { %4839 = vmatprep.subr.bf16.mxu1 %v5213_v1  ;;  %v5225_v19 = vld [vmem:[%s5433_s17 + $0x74] ss:$8 sps:$4 sm:$0xff]   ;;  %v5514_v20 = vld [vmem:[%s5433_s17 + $0x60] ss:$8 sps:$4 sm:$0xff]   ;;  %v5228_v21 = vld [vmem:[%s5433_s17 + $0x64] ss:$8 sps:$4 sm:$0xff]  }
  0x14   : > { %v5519_v22 = vld [vmem:[%s5433_s17 + $0x50] ss:$8 sps:$4 sm:$0xff]   ;;  %v5231_v23 = vld [vmem:[%s5433_s17 + $0x54] ss:$8 sps:$4 sm:$0xff]   ;;  %v5528_v24 = vld [vmem:[%s5433_s17 + $0x40] ss:$8 sps:$4 sm:$0xff]  }
  0x15   : > { %299 = vrot.lane.b32.xlu0 %v5215_v2, %s5395_s18  ;;  %v5234_v25 = vld [vmem:[%s5433_s17 + $0x44] ss:$8 sps:$4 sm:$0xff]   ;;  %v5557_v26 = vld [vmem:[%s5433_s17 + $0xb0] ss:$8 sps:$4 sm:$0xff]   ;;  %v5237_v27 = vld [vmem:[%s5433_s17 + $0xb4] ss:$8 sps:$4 sm:$0xff]  }
  0x16   : > { %295 = vrot.lane.b32.xlu1 %v5216_v3, %s5395_s18  ;;  %4840 = vmatpush3.bf16.msra.mxu1 %v5213_v1  ;;  %v5566_v28 = vld [vmem:[%s5433_s17 + $0xa0] ss:$8 sps:$4 sm:$0xff]   ;;  %v5240_v29 = vld [vmem:[%s5433_s17 + $0xa4] ss:$8 sps:$4 sm:$0xff]   ;;  %v5571_v30 = vld [vmem:[%s5433_s17 + $0x90] ss:$8 sps:$4 sm:$0xff]  }
  0x17   : > { %4841 = vmatprep.subr.bf16.mxu1 %v5219_v4  ;;  %v5244_v31 = vld [vmem:[%s5433_s17 + $0x94] ss:$8 sps:$4 sm:$0xff]   ;;  %v5578_v32 = vld [vmem:[%s5433_s17 + $0x80] ss:$8 sps:$4 sm:$0xff]   ;;  %v5584_v33 = vld [vmem:[%s5433_s17 + $0x84] ss:$8 sps:$4 sm:$0xff]  }
  0x18   : > { %v5633_v58 = vld [vmem:[%s5433_s17 + $0xf0] ss:$8 sps:$4 sm:$0xff]   ;;  %v5641_v62 = vld [vmem:[%s5433_s17 + $0xf4] ss:$8 sps:$4 sm:$0xff]  }
  0x19   : > { %289 = vrot.lane.b32.xlu0 %v5219_v4, %s5395_s18  ;;  %v5671_v10 = vld [vmem:[%s5433_s17 + $0xd4] ss:$8 sps:$4 sm:$0xff]  }
  0x1a   : > { %291 = vrot.lane.b32.xlu1 %v5217_v5, %s5395_s18  ;;  %4842 = vmatpush3.bf16.msra.mxu1 %v5219_v4 }
  0x1b   : > { %4843 = vmatprep.subr.bf16.mxu1 %v5222_v6 }
  0x1d   : > { %285 = vrot.lane.b32.xlu0 %v5222_v6, %s5395_s18 }
  0x1e   : > { %287 = vrot.lane.b32.xlu1 %v5220_v7, %s5395_s18  ;;  %4844 = vmatpush3.bf16.msra.mxu1 %v5222_v6 }
  0x21   : > { %662 = vrot.lane.b32.xlu0 %v5211_v0, %s5396_s27  ;;  %4846 = vmatmul.mubr.msk.bf16.vlgmr.msra.gmra.mxu1 %vm310_vm0, %v5245_v9 }
  0x22   : > { %664 = vrot.lane.b32.xlu1 %v5215_v2, %s5396_s27  ;;  %4849 = vmatprep.mubr.msk.bf16.mxu1 %vm310_vm0, %v5248_v11 }
  0x25   : > { %881 = vrot.lane.b32.xlu0 %v5211_v0, %s5397_s5  ;;  %v5648_v0 = vld [vmem:[%s5433_s17 + $0xe0] ss:$8 sps:$4 sm:$0xff]  }
  0x26   : > { %883 = vrot.lane.b32.xlu1 %v5215_v2, %s5397_s5 }
  0x29   : > { %658 = vrot.lane.b32.xlu0 %v5213_v1, %s5396_s27  ;;  %4850 = vmatmul.mubr.msk.bf16.gmra.mxu1 %vm310_vm0, %v5252_v12  ;;  %v5678_v12 = vld [vmem:[%s5433_s17 + $0xc0] ss:$8 sps:$4 sm:$0xff]  }
  0x2a   : > { %660 = vrot.lane.b32.xlu1 %v5216_v3, %s5396_s27  ;;  %4853 = vmatprep.mubr.msk.bf16.mxu1 %vm310_vm0, %v5255_v13 }
  0x2d   : > { %877 = vrot.lane.b32.xlu0 %v5213_v1, %s5397_s5 }
  0x2e   : > { %879 = vrot.lane.b32.xlu1 %v5216_v3, %s5397_s5  ;;  %v5654_v3 = vld [vmem:[%s5433_s17 + $0xe4] ss:$8 sps:$4 sm:$0xff]  }
  0x31   : > { %654 = vrot.lane.b32.xlu0 %v5219_v4, %s5396_s27  ;;  %4854 = vmatmul.mubr.msk.bf16.gmra.mxu1 %vm310_vm0, %v5256_v14 }
  0x32   : > { %656 = vrot.lane.b32.xlu1 %v5217_v5, %s5396_s27  ;;  %4857 = vmatprep.mubr.msk.bf16.mxu1 %vm310_vm0, %v5259_v15  ;;  %v5684_v15 = vld [vmem:[%s5433_s17 + $0xc4] ss:$8 sps:$4 sm:$0xff]  }
  0x35   : > { %873 = vrot.lane.b32.xlu0 %v5219_v4, %s5397_s5 }
  0x36   : > { %875 = vrot.lane.b32.xlu1 %v5217_v5, %s5397_s5  ;;  %v5258_v5 = vld [vmem:[%s6660_s0 + $0xa8] sm:$0xff]  }
  0x39   : > { %650 = vrot.lane.b32.xlu0 %v5222_v6, %s5396_s27  ;;  %4858 = vmatmul.mubr.msk.bf16.gmra.mxu1 %vm310_vm0, %v5260_v16 }
  0x3a   : > { %652 = vrot.lane.b32.xlu1 %v5220_v7, %s5396_s27  ;;  %4893 = vmatprep.mubr.msk.bf16.mxu1 %vm310_vm0, %v5263_v17  ;;  %v5262_v17 = vld [vmem:[%s6660_s0 + $0xb8] sm:$0xff]  }
  0x3d   : > { %869 = vrot.lane.b32.xlu0 %v5222_v6, %s5397_s5  ;;  %v5663_v6 = vld [vmem:[%s5433_s17 + $0xd0] ss:$8 sps:$4 sm:$0xff]  }
  0x3e   : > { %871 = vrot.lane.b32.xlu1 %v5220_v7, %s5397_s5  ;;  %v5261_v7 = vld [vmem:[%s6660_s0 + $0xb0] sm:$0xff]  }
  0x41   : > { %1335 = vrot.lane.b32.xlu0 %v5506_v18, %s5395_s18 }
  0x42   : > { %1337 = vrot.lane.b32.xlu1 %v5225_v19, %s5395_s18 }
  0x45   : > { %1331 = vrot.lane.b32.xlu0 %v5514_v20, %s5395_s18 }
  0x46   : > { %1333 = vrot.lane.b32.xlu1 %v5228_v21, %s5395_s18 }
  0x49   : > { %1327 = vrot.lane.b32.xlu0 %v5519_v22, %s5395_s18 }
  0x4a   : > { %1329 = vrot.lane.b32.xlu1 %v5231_v23, %s5395_s18 }
  0x4d   : > { %1323 = vrot.lane.b32.xlu0 %v5528_v24, %s5395_s18 }
  0x4e   : > { %1325 = vrot.lane.b32.xlu1 %v5234_v25, %s5395_s18 }
  0x51   : > { %1553 = vrot.lane.b32.xlu0 %v5506_v18, %s5396_s27 }
  0x52   : > { %1555 = vrot.lane.b32.xlu1 %v5225_v19, %s5396_s27 }
  0x55   : > { %1771 = vrot.lane.b32.xlu0 %v5506_v18, %s5397_s5 }
  0x56   : > { %1773 = vrot.lane.b32.xlu1 %v5225_v19, %s5397_s5  ;;  %v5265_v19 = vld [vmem:[%s6660_s0 + $0x200] sm:$0xff]  }
  0x59   : > { %1549 = vrot.lane.b32.xlu0 %v5514_v20, %s5396_s27 }
  0x5a   : > { %1551 = vrot.lane.b32.xlu1 %v5228_v21, %s5396_s27 }
  0x5d   : > { %1767 = vrot.lane.b32.xlu0 %v5514_v20, %s5397_s5 }
  0x5e   : > { %1769 = vrot.lane.b32.xlu1 %v5228_v21, %s5397_s5 }
  0x61   : > { %1545 = vrot.lane.b32.xlu0 %v5519_v22, %s5396_s27 }
  0x62   : > { %1547 = vrot.lane.b32.xlu1 %v5231_v23, %s5396_s27 }
  0x65   : > { %1763 = vrot.lane.b32.xlu0 %v5519_v22, %s5397_s5 }
  0x66   : > { %1765 = vrot.lane.b32.xlu1 %v5231_v23, %s5397_s5 }
  0x69   : > { %1541 = vrot.lane.b32.xlu0 %v5528_v24, %s5396_s27 }
  0x6a   : > { %1543 = vrot.lane.b32.xlu1 %v5234_v25, %s5396_s27 }
  0x6d   : > { %1759 = vrot.lane.b32.xlu0 %v5528_v24, %s5397_s5 }
  0x6e   : > { %1761 = vrot.lane.b32.xlu1 %v5234_v25, %s5397_s5 }
  0x71   : > { %2224 = vrot.lane.b32.xlu0 %v5557_v26, %s5395_s18 }
  0x72   : > { %2226 = vrot.lane.b32.xlu1 %v5237_v27, %s5395_s18 }
  0x75   : > { %2220 = vrot.lane.b32.xlu0 %v5566_v28, %s5395_s18 }
  0x76   : > { %2222 = vrot.lane.b32.xlu1 %v5240_v29, %s5395_s18 }
  0x79   : > { %2216 = vrot.lane.b32.xlu0 %v5571_v30, %s5395_s18 }
  0x7a   : > { %2218 = vrot.lane.b32.xlu1 %v5244_v31, %s5395_s18 }
  0x7d   : > { %2212 = vrot.lane.b32.xlu0 %v5578_v32, %s5395_s18 }
  0x7e   : > { %2214 = vrot.lane.b32.xlu1 %v5584_v33, %s5395_s18 }
  0x81   : > { %2442 = vrot.lane.b32.xlu0 %v5557_v26, %s5396_s27 }
  0x82   : > { %2444 = vrot.lane.b32.xlu1 %v5237_v27, %s5396_s27 }
  0x83   : > { %v298_v34 = vpop.permute.xlu0 %297 }
  0x84   : > { %v294_v35 = vpop.permute.xlu1 %293 }
  0x85   : > { %2660 = vrot.lane.b32.xlu0 %v5557_v26, %s5397_s5 }
  0x86   : > { %2662 = vrot.lane.b32.xlu1 %v5237_v27, %s5397_s5  ;;  %v5264_v27 = vld [vmem:[%s6660_s0 + $0x288] sm:$0xff]  }
  0x87   : > { %v300_v36 = vpop.permute.xlu0 %299 }
  0x88   : > { %v296_v37 = vpop.permute.xlu1 %295  ;;  %v305_v38 = vsel %vm301_vm1, %v298_v34, %v300_v36  ;;  %v5266_v34 = vld [vmem:[%s6660_s0 + $0x208] sm:$0xff]   ;;  %v5269_v36 = vld [vmem:[%s6660_s0 + $0x210] sm:$0xff]  }
  0x89   : > { %4813 = vmatprep.subr.bf16.mxu0 %v305_v38  ;;  %2438 = vrot.lane.b32.xlu0 %v5566_v28, %s5396_s27  ;;  %v304_v39 = vsel %vm301_vm1, %v294_v35, %v296_v37 }
  0x8a   : > { %4814 = vmatpush3.bf16.msra.mxu0 %v305_v38  ;;  %2440 = vrot.lane.b32.xlu1 %v5240_v29, %s5396_s27 }
  0x8b   : > { %4815 = vmatprep.subr.bf16.mxu0 %v304_v39  ;;  %v290_v40 = vpop.permute.xlu0 %289 }
  0x8c   : > { %v292_v41 = vpop.permute.xlu1 %291 }
  0x8d   : > { %v303_v42 = vsel %vm301_vm1, %v290_v40, %v292_v41  ;;  %2656 = vrot.lane.b32.xlu0 %v5566_v28, %s5397_s5  ;;  %v5268_v40 = vld [vmem:[%s6660_s0 + $0x298] sm:$0xff]   ;;  %v5271_v41 = vld [vmem:[%s6660_s0 + $0x2a0] sm:$0xff]  }
  0x8e   : > { %4816 = vmatpush3.bf16.msra.mxu0 %v304_v39  ;;  %2658 = vrot.lane.b32.xlu1 %v5240_v29, %s5397_s5 }
  0x8f   : > { %4817 = vmatprep.subr.bf16.mxu0 %v303_v42  ;;  %v286_v43 = vpop.permute.xlu0 %285 }
  0x90   : > { %v288_v44 = vpop.permute.xlu1 %287 }
  0x91   : > { %v302_v45 = vsel %vm301_vm1, %v286_v43, %v288_v44  ;;  %2434 = vrot.lane.b32.xlu0 %v5571_v30, %s5396_s27 }
  0x92   : > { %4818 = vmatpush3.bf16.msra.mxu0 %v303_v42  ;;  %2436 = vrot.lane.b32.xlu1 %v5244_v31, %s5396_s27 }
  0x93   : > { %4819 = vmatprep.subr.bf16.mxu0 %v302_v45  ;;  %v663_v46 = vpop.permute.xlu0 %662 }
  0x94   : > { %v665_v47 = vpop.permute.xlu1 %664 }
  0x95   : > { %v670_v48 = vsel %vm666_vm2, %v663_v46, %v665_v47  ;;  %2652 = vrot.lane.b32.xlu0 %v5571_v30, %s5397_s5 }
  0x96   : > { %4820 = vmatpush3.bf16.msra.mxu0 %v302_v45  ;;  %2654 = vrot.lane.b32.xlu1 %v5244_v31, %s5397_s5  ;;  %v5267_v31 = vld [vmem:[%s6660_s0 + $0x290] sm:$0xff]   ;;  %v5276_v45 = vld [vmem:[%s6660_s0 + $0x220] sm:$0xff]  }
  0x97   : > { %4861 = vmatprep.subr.bf16.mxu0 %v670_v48  ;;  %v882_v50 = vpop.permute.xlu0 %881 }
  0x98   : > { %v884_v52 = vpop.permute.xlu1 %883 }
  0x99   : > { %4822 = vmatmul.mubr.msk.bf16.vlgmr.msra.gmra.mxu0 %vm310_vm0, %v5247_v49  ;;  %v889_v53 = vsel %vm885_vm3, %v882_v50, %v884_v52  ;;  %2430 = vrot.lane.b32.xlu0 %v5578_v32, %s5396_s27  ;;  %v5278_v49 = vld [vmem:[%s6660_s0 + $0x2b0] sm:$0xff]   ;;  %v5277_v52 = vld [vmem:[%s6660_s0 + $0x228] sm:$0xff]  }
  0x9a   : > { %4862 = vmatpush3.bf16.msra.mxu0 %v670_v48  ;;  %4885 = vmatprep.subr.bf16.mxu1 %v889_v53 }
  0x9b   : > { %4886 = vmatpush3.bf16.msra.mxu1 %v889_v53  ;;  %v659_v54 = vpop.permute.xlu0 %658  ;;  %4825 = vmatprep.mubr.msk.bf16.mxu0 %vm310_vm0, %v5253_v51  ;;  %v5283_v53 = vld [vmem:[%s6660_s0 + $0x230] sm:$0xff]  }
  0x9c   : > { %v661_v55 = vpop.permute.xlu1 %660  ;;  %2432 = vrot.lane.b32.xlu1 %v5584_v33, %s5396_s27 }
  0x9d   : > { %v669_v56 = vsel %vm666_vm2, %v659_v54, %v661_v55  ;;  %2648 = vrot.lane.b32.xlu0 %v5578_v32, %s5397_s5 }
  0x9e   : > { %4863 = vmatprep.subr.bf16.mxu0 %v669_v56 }
  0x9f   : > { %4864 = vmatpush3.bf16.msra.mxu0 %v669_v56  ;;  %v878_v60 = vpop.permute.xlu0 %877 }
  0xa0   : > { %v880_v61 = vpop.permute.xlu1 %879  ;;  %2650 = vrot.lane.b32.xlu1 %v5584_v33, %s5397_s5 }
  0xa1   : > { %4826 = vmatmul.mubr.msk.bf16.gmra.mxu0 %vm310_vm0, %v5254_v57  ;;  %v888_v63 = vsel %vm885_vm3, %v878_v60, %v880_v61  ;;  %3113 = vrot.lane.b32.xlu0 %v5633_v58, %s5395_s18  ;;  %v5282_v57 = vld [vmem:[%s6660_s0 + $0x2b8] sm:$0xff]  }
  0xa2   : > { %4887 = vmatprep.subr.bf16.mxu1 %v888_v63  ;;  %4829 = vmatprep.mubr.msk.bf16.mxu0 %vm310_vm0, %v5257_v59  ;;  %v5284_v61 = vld [vmem:[%s6660_s0 + $0x238] sm:$0xff]  }
  0xa3   : > { %4888 = vmatpush3.bf16.msra.mxu1 %v888_v63  ;;  %v655_v1 = vpop.permute.xlu0 %654 }
  0xa4   : > { %v657_v2 = vpop.permute.xlu1 %656  ;;  %3115 = vrot.lane.b32.xlu1 %v5641_v62, %s5395_s18 }
  0xa5   : > { %v668_v4 = vsel %vm666_vm2, %v655_v1, %v657_v2  ;;  %3109 = vrot.lane.b32.xlu0 %v5648_v0, %s5395_s18  ;;  %v5289_v2 = vld [vmem:[%s6660_s0 + $0xc8] sm:$0xff]  }
  0xa6   : > { %4865 = vmatprep.subr.bf16.mxu0 %v668_v4 }
  0xa7   : > { %4866 = vmatpush3.bf16.msra.mxu0 %v668_v4  ;;  %v874_v8 = vpop.permute.xlu0 %873 }
  0xa8   : > { %v876_v9 = vpop.permute.xlu1 %875  ;;  %3111 = vrot.lane.b32.xlu1 %v5654_v3, %s5395_s18 }
  0xa9   : > { %4830 = vmatmul.mubr.msk.bf16.gmra.mxu0 %vm310_vm0, %v5258_v5  ;;  %v887_v11 = vsel %vm885_vm3, %v874_v8, %v876_v9  ;;  %3105 = vrot.lane.b32.xlu0 %v5663_v6, %s5395_s18  ;;  %v5297_v9 = vld [vmem:[%s6660_s0 + $0x50] sm:$0xff]  }
  0xaa   : > { %4889 = vmatprep.subr.bf16.mxu1 %v887_v11  ;;  %4833 = vmatprep.mubr.msk.bf16.mxu0 %vm310_vm0, %v5261_v7  ;;  %v5291_v7 = vld [vmem:[%s6660_s0 + $0x48] sm:$0xff]  }
  0xab   : > { %4890 = vmatpush3.bf16.msra.mxu1 %v887_v11  ;;  %v651_v13 = vpop.permute.xlu0 %650 }
  0xac   : > { %v653_v14 = vpop.permute.xlu1 %652  ;;  %3107 = vrot.lane.b32.xlu1 %v5671_v10, %s5395_s18 }
  0xad   : > { %v667_v16 = vsel %vm666_vm2, %v651_v13, %v653_v14  ;;  %3101 = vrot.lane.b32.xlu0 %v5678_v12, %s5395_s18 }
  0xae   : > { %4867 = vmatprep.subr.bf16.mxu0 %v667_v16 }
  0xaf   : > { %4868 = vmatpush3.bf16.msra.mxu0 %v667_v16  ;;  %v870_v21 = vpop.permute.xlu0 %869  ;;  %v5299_v16 = vld [vmem:[%s6660_s0 + $0xe0] sm:$0xff]  }
  0xb0   : > { %v872_v23 = vpop.permute.xlu1 %871  ;;  %4909 = vmatprep.subr.bf16.mxu0 %v5506_v18  ;;  %3103 = vrot.lane.b32.xlu1 %v5684_v15, %s5395_s18  ;;  %s4557_s18 = sshll.u32 %s6713_s13, 6 }
  0xb1   : > { %4834 = vmatmul.mubr.msk.bf16.gmra.mxu0 %vm310_vm0, %v5262_v17  ;;  %v886_v25 = vsel %vm885_vm3, %v870_v21, %v872_v23  ;;  %3331 = vrot.lane.b32.xlu0 %v5633_v58, %s5396_s27  ;;  %v5298_v23 = vld [vmem:[%s6660_s0 + $0x58] sm:$0xff]   ;;  %s6624_s15 = scalar_lea.vmem %s6663_s3, %s4557_s18 }
  0xb2   : > { %4891 = vmatprep.subr.bf16.mxu1 %v886_v25  ;;  %4869 = vmatprep.mubr.msk.bf16.mxu0 %vm310_vm0, %v5265_v19 }
  0xb3   : > { %4892 = vmatpush3.bf16.msra.mxu1 %v886_v25  ;;  %v1336_v29 = vpop.permute.xlu0 %1335  ;;  %v5301_v25 = vld [vmem:[%s6660_s0 + $0x60] sm:$0xff]  }
  0xb4   : > { %v1338_v33 = vpop.permute.xlu1 %1337  ;;  %3333 = vrot.lane.b32.xlu1 %v5641_v62, %s5396_s27 }
  0xb5   : > { %v1342_v35 = vsel %vm301_vm1, %v1336_v29, %v1338_v33  ;;  %3549 = vrot.lane.b32.xlu0 %v5633_v58, %s5397_s5 }
  0xb6   : > { %4894 = vmatmul.mubr.msk.bf16.vlgmr.msra.gmra.mxu1 %vm310_vm0, %v5264_v27  ;;  %4933 = vmatprep.subr.bf16.mxu1 %v1342_v35 }
  0xb7   : > { %4934 = vmatpush3.bf16.msra.mxu1 %v1342_v35  ;;  %4897 = vmatprep.mubr.msk.bf16.mxu1 %vm310_vm0, %v5267_v31  ;;  %v1332_v37 = vpop.permute.xlu0 %1331  ;;  %v5303_v35 = vld [vmem:[%s6660_s0 + $0xf0] sm:$0xff]  }
  0xb8   : > { %v1334_v38 = vpop.permute.xlu1 %1333  ;;  %3551 = vrot.lane.b32.xlu1 %v5641_v62, %s5397_s5  ;;  %v5290_v62 = vld [vmem:[%s6660_s0 + $0x40] sm:$0xff]  }
  0xb9   : > { %4870 = vmatmul.mubr.msk.bf16.vlgmr.msra.gmra.mxu0 %vm310_vm0, %v5266_v34  ;;  %v1341_v39 = vsel %vm301_vm1, %v1332_v37, %v1334_v38  ;;  %3327 = vrot.lane.b32.xlu0 %v5648_v0, %s5396_s27  ;;  %v5300_v34 = vld [vmem:[%s6660_s0 + $0xe8] sm:$0xff]  }
  0xba   : > { %4910 = vmatpush3.bf16.msra.mxu0 %v5506_v18  ;;  %4873 = vmatprep.mubr.msk.bf16.mxu0 %vm310_vm0, %v5269_v36  ;;  %v5270_v18 = vld [vmem:[%s6660_s0 + $0x218] sm:$0xff]   ;;  %v5302_v38 = vld [vmem:[%s6660_s0 + $0x68] sm:$0xff]  }
  0xbb   : > { %4911 = vmatprep.subr.bf16.mxu0 %v5514_v20  ;;  %4935 = vmatprep.subr.bf16.mxu1 %v1341_v39  ;;  %v1328_v42 = vpop.permute.xlu0 %1327 }
  0xbc   : > { %4936 = vmatpush3.bf16.msra.mxu1 %v1341_v39  ;;  %v1330_v43 = vpop.permute.xlu1 %1329  ;;  %3329 = vrot.lane.b32.xlu1 %v5654_v3, %s5396_s27 }
  0xbd   : > { %v1340_v44 = vsel %vm301_vm1, %v1328_v42, %v1330_v43  ;;  %3545 = vrot.lane.b32.xlu0 %v5648_v0, %s5397_s5  ;;  %v5304_v43 = vld [vmem:[%s6660_s0 + $0xf8] sm:$0xff]  }
  0xbe   : > { %4898 = vmatmul.mubr.msk.bf16.gmra.mxu1 %vm310_vm0, %v5268_v40  ;;  %4912 = vmatpush3.bf16.msra.mxu0 %v5514_v20  ;;  %v5275_v20 = vld [vmem:[%s6660_s0 + $0x2a8] sm:$0xff]   ;;  %v5305_v40 = vld [vmem:[%s6660_s0 + $0x70] sm:$0xff]  }
  0xbf   : > { %4901 = vmatprep.mubr.msk.bf16.mxu1 %vm310_vm0, %v5271_v41  ;;  %4913 = vmatprep.subr.bf16.mxu0 %v5519_v22  ;;  %v1324_v46 = vpop.permute.xlu0 %1323 }
  0xc0   : > { %4937 = vmatprep.subr.bf16.mxu1 %v1340_v44  ;;  %v1326_v47 = vpop.permute.xlu1 %1325  ;;  %3547 = vrot.lane.b32.xlu1 %v5654_v3, %s5397_s5  ;;  %v5292_v3 = vld [vmem:[%s6660_s0 + $0xd0] sm:$0xff]  }
  0xc1   : > { %4874 = vmatmul.mubr.msk.bf16.gmra.mxu0 %vm310_vm0, %v5270_v18  ;;  %4938 = vmatpush3.bf16.msra.mxu1 %v1340_v44  ;;  %v1339_v48 = vsel %vm301_vm1, %v1324_v46, %v1326_v47  ;;  %v5307_v18 = vld [vmem:[%s6660_s0 + $0x2c0] sm:$0xff]   ;;  %v5306_v46 = vld [vmem:[%s6660_s0 + $0x78] sm:$0xff]  }
  0xc2   : > { %4877 = vmatprep.mubr.msk.bf16.mxu0 %vm310_vm0, %v5276_v45  ;;  %4914 = vmatpush3.bf16.msra.mxu0 %v5519_v22  ;;  %v5309_v47 = vld [vmem:[%s6660_s0 + $0x240] sm:$0xff]  }
  0xc3   : > { %4915 = vmatprep.subr.bf16.mxu0 %v5528_v24  ;;  %4939 = vmatprep.subr.bf16.mxu1 %v1339_v48  ;;  %v1554_v50 = vpop.permute.xlu0 %1553 }
  0xc4   : > { %v1556_v51 = vpop.permute.xlu1 %1555  ;;  %3325 = vrot.lane.b32.xlu1 %v5671_v10, %s5396_s27  ;;  %3323 = vrot.lane.b32.xlu0 %v5663_v6, %s5396_s27 }
  0xc5   : > { %4940 = vmatpush3.bf16.msra.mxu1 %v1339_v48  ;;  %v1560_v22 = vsel %vm666_vm2, %v1554_v50, %v1556_v51  ;;  %v5311_v50 = vld [vmem:[%s6660_s0 + $0x2d0] sm:$0xff]  }
  0xc6   : > { %4902 = vmatmul.mubr.msk.bf16.gmra.mxu1 %vm310_vm0, %v5275_v20  ;;  %4916 = vmatpush3.bf16.msra.mxu0 %v5528_v24  ;;  %v5285_v24 = vld [vmem:[%s6660_s0 + $0xc0] sm:$0xff]  }
  0xc7   : > { %4905 = vmatprep.mubr.msk.bf16.mxu1 %vm310_vm0, %v5278_v49  ;;  %4957 = vmatprep.subr.bf16.mxu0 %v1560_v22  ;;  %v1772_v54 = vpop.permute.xlu0 %1771  ;;  %v5308_v49 = vld [vmem:[%s6660_s0 + $0x2c8] sm:$0xff]  }
  0xc8   : > { %v1774_v55 = vpop.permute.xlu1 %1773  ;;  %3543 = vrot.lane.b32.xlu1 %v5671_v10, %s5397_s5  ;;  %3541 = vrot.lane.b32.xlu0 %v5663_v6, %s5397_s5 }
  0xc9   : > { %4878 = vmatmul.mubr.msk.bf16.gmra.mxu0 %vm310_vm0, %v5277_v52  ;;  %v1778_v56 = vsel %vm885_vm3, %v1772_v54, %v1774_v55  ;;  %v5313_v54 = vld [vmem:[%s6660_s0 + $0x250] sm:$0xff]  }
  0xca   : > { %4881 = vmatprep.mubr.msk.bf16.mxu0 %vm310_vm0, %v5283_v53  ;;  %4981 = vmatprep.subr.bf16.mxu1 %v1778_v56 }
  0xcb   : > { %v1550_v59 = vpop.permute.xlu0 %1549 }
  0xcc   : > { %v1552_v60 = vpop.permute.xlu1 %1551  ;;  %3321 = vrot.lane.b32.xlu1 %v5684_v15, %s5396_s27  ;;  %3319 = vrot.lane.b32.xlu0 %v5678_v12, %s5396_s27 }
  0xcd   : > { %v1559_v11 = vsel %vm666_vm2, %v1550_v59, %v1552_v60  ;;  %v5315_v59 = vld [vmem:[%s6660_s0 + $0x2e0] sm:$0xff]  }
  0xce   : > { %4906 = vmatmul.mubr.msk.bf16.gmra.mxu1 %vm310_vm0, %v5282_v57 }
  0xcf   : > { %4941 = vmatprep.mubr.msk.bf16.mxu1 %vm310_vm0, %v5285_v24  ;;  %v1768_v63 = vpop.permute.xlu0 %1767  ;;  %v5312_v24 = vld [vmem:[%s6660_s0 + $0x2d8] sm:$0xff]  }
  0xd0   : > { %v1770_v1 = vpop.permute.xlu1 %1769  ;;  %3539 = vrot.lane.b32.xlu1 %v5684_v15, %s5397_s5  ;;  %3537 = vrot.lane.b32.xlu0 %v5678_v12, %s5397_s5  ;;  %v5296_v15 = vld [vmem:[%s6660_s0 + $0xd8] sm:$0xff]  }
  0xd1   : > { %4882 = vmatmul.mubr.msk.bf16.gmra.mxu0 %vm310_vm0, %v5284_v61  ;;  %v1777_v8 = vsel %vm885_vm3, %v1768_v63, %v1770_v1 }
  0xd2   : > { %4917 = vmatprep.mubr.msk.bf16.mxu0 %vm310_vm0, %v5290_v62  ;;  %v5317_v62 = vld [vmem:[%s6660_s0 + $0x260] sm:$0xff]  }
  0xd3   : > { %v1546_v4 = vpop.permute.xlu0 %1545 }
  0xd4   : > { %v1548_v5 = vpop.permute.xlu1 %1547 }
  0xd5   : > { %v1558_v19 = vsel %vm666_vm2, %v1546_v4, %v1548_v5  ;;  %v5319_v4 = vld [vmem:[%s6660_s0 + $0x2f0] sm:$0xff]  }
  0xd6   : > { %4942 = vmatmul.mubr.msk.bf16.vlgmr.msra.gmra.mxu1 %vm310_vm0, %v5289_v2 }
  0xd7   : > { %4982 = vmatpush3.bf16.msra.mxu1 %v1778_v56  ;;  %4945 = vmatprep.mubr.msk.bf16.mxu1 %vm310_vm0, %v5292_v3  ;;  %v1764_v10 = vpop.permute.xlu0 %1763 }
  0xd8   : > { %4983 = vmatprep.subr.bf16.mxu1 %v1777_v8  ;;  %v1766_v13 = vpop.permute.xlu1 %1765 }
  0xd9   : > { %4918 = vmatmul.mubr.msk.bf16.vlgmr.msra.gmra.mxu0 %vm310_vm0, %v5291_v7  ;;  %v1776_v14 = vsel %vm885_vm3, %v1764_v10, %v1766_v13  ;;  %v5320_v13 = vld [vmem:[%s6660_s0 + $0x2f8] sm:$0xff]  }
  0xda   : > { %4958 = vmatpush3.bf16.msra.mxu0 %v1560_v22  ;;  %4921 = vmatprep.mubr.msk.bf16.mxu0 %vm310_vm0, %v5297_v9  ;;  %v5310_v22 = vld [vmem:[%s6660_s0 + $0x248] sm:$0xff]  }
  0xdb   : > { %4959 = vmatprep.subr.bf16.mxu0 %v1559_v11  ;;  %4984 = vmatpush3.bf16.msra.mxu1 %v1777_v8  ;;  %v1542_v17 = vpop.permute.xlu0 %1541  ;;  %v5318_v9 = vld [vmem:[%s6660_s0 + $0x268] sm:$0xff]  }
  0xdc   : > { %4985 = vmatprep.subr.bf16.mxu1 %v1776_v14  ;;  %v1544_v21 = vpop.permute.xlu1 %1543 }
  0xdd   : > { %v1557_v29 = vsel %vm666_vm2, %v1542_v17, %v1544_v21  ;;  %v5327_v21 = vld [vmem:[%s6660_s0 + $0x190] sm:$0xff]  }
  0xde   : > { %4946 = vmatmul.mubr.msk.bf16.gmra.mxu1 %vm310_vm0, %v5296_v15  ;;  %4960 = vmatpush3.bf16.msra.mxu0 %v1559_v11  ;;  %v5325_v15 = vld [vmem:[%s6660_s0 + $0x100] sm:$0xff]  }
  0xdf   : > { %4949 = vmatprep.mubr.msk.bf16.mxu1 %vm310_vm0, %v5299_v16  ;;  %4961 = vmatprep.subr.bf16.mxu0 %v1558_v19  ;;  %v1760_v27 = vpop.permute.xlu0 %1759 }
  0xe0   : > { %4986 = vmatpush3.bf16.msra.mxu1 %v1776_v14  ;;  %v1762_v31 = vpop.permute.xlu1 %1761  ;;  %v5323_v14 = vld [vmem:[%s6660_s0 + $0x180] sm:$0xff]  }
  0xe1   : > { %4922 = vmatmul.mubr.msk.bf16.gmra.mxu0 %vm310_vm0, %v5298_v23  ;;  %v1775_v33 = vsel %vm885_vm3, %v1760_v27, %v1762_v31  ;;  %v5329_v31 = vld [vmem:[%s6660_s0 + $0x110] sm:$0xff]  }
  0xe2   : > { %4962 = vmatpush3.bf16.msra.mxu0 %v1558_v19  ;;  %4925 = vmatprep.mubr.msk.bf16.mxu0 %vm310_vm0, %v5301_v25  ;;  %v5324_v19 = vld [vmem:[%s6660_s0 + $0x188] sm:$0xff]  }
  0xe3   : > { %4963 = vmatprep.subr.bf16.mxu0 %v1557_v29  ;;  %4987 = vmatprep.subr.bf16.mxu1 %v1775_v33  ;;  %v2225_v36 = vpop.permute.xlu0 %2224  ;;  %v5326_v25 = vld [vmem:[%s6660_s0 + $0x108] sm:$0xff]  }
  0xe4   : > { %4988 = vmatpush3.bf16.msra.mxu1 %v1775_v33  ;;  %v2227_v37 = vpop.permute.xlu1 %2226 }
  0xe5   : > { %v2231_v39 = vsel %vm301_vm1, %v2225_v36, %v2227_v37  ;;  %v5328_v37 = vld [vmem:[%s6660_s0 + $0x198] sm:$0xff]  }
  0xe6   : > { %4950 = vmatmul.mubr.msk.bf16.gmra.mxu1 %vm310_vm0, %v5300_v34  ;;  %4964 = vmatpush3.bf16.msra.mxu0 %v1557_v29 }
  0xe7   : > { %4953 = vmatprep.mubr.msk.bf16.mxu1 %vm310_vm0, %v5303_v35  ;;  %5005 = vmatprep.subr.bf16.mxu0 %v5557_v26  ;;  %v2221_v41 = vpop.permute.xlu0 %2220 }
  0xe8   : > { %5029 = vmatprep.subr.bf16.mxu1 %v2231_v39  ;;  %v2223_v42 = vpop.permute.xlu1 %2222 }
  0xe9   : > { %4926 = vmatmul.mubr.msk.bf16.gmra.mxu0 %vm310_vm0, %v5302_v38  ;;  %v2230_v53 = vsel %vm301_vm1, %v2221_v41, %v2223_v42  ;;  %v5331_v38 = vld [vmem:[%s6660_s0 + $0x1a0] sm:$0xff]  }
  0xea   : > { %4929 = vmatprep.mubr.msk.bf16.mxu0 %vm310_vm0, %v5305_v40  ;;  %v5330_v40 = vld [vmem:[%s6660_s0 + $0x118] sm:$0xff]   ;;  %v5333_v41 = vld [vmem:[%s6660_s0 + $0x120] sm:$0xff]  }
  0xeb   : > { %v2217_v44 = vpop.permute.xlu0 %2216 }
  0xec   : > { %v2219_v45 = vpop.permute.xlu1 %2218 }
  0xed   : > { %v2229_v57 = vsel %vm301_vm1, %v2217_v44, %v2219_v45  ;;  %v5332_v45 = vld [vmem:[%s6660_s0 + $0x1a8] sm:$0xff]  }
  0xee   : > { %4954 = vmatmul.mubr.msk.bf16.gmra.mxu1 %vm310_vm0, %v5304_v43 }
  0xef   : > { %4989 = vmatprep.mubr.msk.bf16.mxu1 %vm310_vm0, %v5307_v18  ;;  %v2213_v48 = vpop.permute.xlu0 %2212 }
  0xf0   : > { %v2215_v20 = vpop.permute.xlu1 %2214 }
  0xf1   : > { %4930 = vmatmul.mubr.msk.bf16.gmra.mxu0 %vm310_vm0, %v5306_v46  ;;  %v2228_v63 = vsel %vm301_vm1, %v2213_v48, %v2215_v20  ;;  %v5334_v20 = vld [vmem:[%s6660_s0 + $0x128] sm:$0xff]  }
  0xf2   : > { %4965 = vmatprep.mubr.msk.bf16.mxu0 %vm310_vm0, %v5309_v47  ;;  %v5335_v47 = vld [vmem:[%s6660_s0 + $0x1b0] sm:$0xff]  }
  0xf3   : > { %v2443_v51 = vpop.permute.xlu0 %2442 }
  0xf4   : > { %v2445_v52 = vpop.permute.xlu1 %2444 }
  0xf5   : > { %v2449_v7 = vsel %vm666_vm2, %v2443_v51, %v2445_v52  ;;  %v5398_v51 = vmov 0   ;;  %v3699_v52 = vld [vmem:[%s6662_s2 + $0x8] sm:$0xff] }
  0xf6   : > { %4990 = vmatmul.mubr.msk.bf16.vlgmr.msra.gmra.mxu1 %vm310_vm0, %v5308_v49  ;;  %5210 = vset.pattern.permute.xlu1 %v5398_v51 }
  0xf7   : > { %5030 = vmatpush3.bf16.msra.mxu1 %v2231_v39  ;;  %4993 = vmatprep.mubr.msk.bf16.mxu1 %vm310_vm0, %v5311_v50  ;;  %v2661_v55 = vpop.permute.xlu0 %2660  ;;  %v5337_v50 = vld [vmem:[%s6660_s0 + $0x130] sm:$0xff]  }
  0xf8   : > { %5031 = vmatprep.subr.bf16.mxu1 %v2230_v53  ;;  %v2663_v56 = vpop.permute.xlu1 %2662  ;;  %5209 = vset.pattern.permute.xlu0 %v5398_v51 }
  0xf9   : > { %4966 = vmatmul.mubr.msk.bf16.vlgmr.msra.gmra.mxu0 %vm310_vm0, %v5310_v22  ;;  %v2667_v3 = vsel %vm885_vm3, %v2661_v55, %v2663_v56  ;;  %v3698_v22 = vld [vmem:[%s6662_s2] sm:$0xff]  ;;  %3721 = vperm.xlu1 %5210, %v3699_v52   ;;  %v5359_v52 = vld [vmem:[%s6660_s0 + $0x1d0] sm:$0xff]  }
  0xfa   : > { %5006 = vmatpush3.bf16.msra.mxu0 %v5557_v26  ;;  %4969 = vmatprep.mubr.msk.bf16.mxu0 %vm310_vm0, %v5313_v54  ;;  %v5314_v26 = vld [vmem:[%s6660_s0 + $0x258] sm:$0xff]   ;;  %v5339_v55 = vld [vmem:[%s6660_s0 + $0x380] sm:$0xff]  }
  0xfb   : > { %5007 = vmatprep.subr.bf16.mxu0 %v5566_v28  ;;  %5032 = vmatpush3.bf16.msra.mxu1 %v2230_v53  ;;  %v2439_v60 = vpop.permute.xlu0 %2438  ;;  %v5336_v53 = vld [vmem:[%s6660_s0 + $0x1b8] sm:$0xff]  }
  0xfc   : > { %5033 = vmatprep.subr.bf16.mxu1 %v2229_v57  ;;  %v2441_v61 = vpop.permute.xlu1 %2440  ;;  %3716 = vperm.xlu0 %5209, %v3698_v22  }
  0xfd   : > { %v2448_v33 = vsel %vm666_vm2, %v2439_v60, %v2441_v61  ;;  %v5341_v60 = vld [vmem:[%s6660_s0 + $0x300] sm:$0xff]  }
  0xfe   : > { %4994 = vmatmul.mubr.msk.bf16.gmra.mxu1 %vm310_vm0, %v5312_v24  ;;  %5008 = vmatpush3.bf16.msra.mxu0 %v5566_v28  ;;  %v5316_v28 = vld [vmem:[%s6660_s0 + $0x2e8] sm:$0xff]   ;;  %v3701_v24 = vld [vmem:[%s6662_s2 + $0x18] sm:$0xff] }
  0xff   : > { %4997 = vmatprep.mubr.msk.bf16.mxu1 %vm310_vm0, %v5315_v59  ;;  %5009 = vmatprep.subr.bf16.mxu0 %v5571_v30  ;;  %v2657_v1 = vpop.permute.xlu0 %2656  ;;  %v5338_v59 = vld [vmem:[%s6660_s0 + $0x138] sm:$0xff]  }
 0x100   : > { %5034 = vmatpush3.bf16.msra.mxu1 %v2229_v57  ;;  %v2659_v2 = vpop.permute.xlu1 %2658  ;;  %v3700_v57 = vld [vmem:[%s6662_s2 + $0x10] sm:$0xff]  ;;  %3731 = vperm.xlu0 %5209, %v3701_v24  }
 0x101   : > { %4970 = vmatmul.mubr.msk.bf16.gmra.mxu0 %vm310_vm0, %v5314_v26  ;;  %5035 = vmatprep.subr.bf16.mxu1 %v2228_v63  ;;  %v2666_v27 = vsel %vm885_vm3, %v2657_v1, %v2659_v2  ;;  %v3702_v26 = vld [vmem:[%s6662_s2 + $0x20] sm:$0xff]  ;;  %v5340_v1 = vld [vmem:[%s6660_s0 + $0x388] sm:$0xff]   ;;  %v5343_v2 = vld [vmem:[%s6660_s0 + $0x390] sm:$0xff]  }
 0x102   : > { %4973 = vmatprep.mubr.msk.bf16.mxu0 %vm310_vm0, %v5317_v62  ;;  %5010 = vmatpush3.bf16.msra.mxu0 %v5571_v30  ;;  %v5321_v30 = vld [vmem:[%s6660_s0 + $0x270] sm:$0xff]   ;;  %v3703_v62 = vld [vmem:[%s6662_s2 + $0x28] sm:$0xff] }
 0x103   : > { %5011 = vmatprep.subr.bf16.mxu0 %v5578_v32  ;;  %v2435_v5 = vpop.permute.xlu0 %2434  ;;  %3726 = vperm.xlu1 %5210, %v3700_v57  }
 0x104   : > { %5036 = vmatpush3.bf16.msra.mxu1 %v2228_v63  ;;  %v2437_v8 = vpop.permute.xlu1 %2436  ;;  %3741 = vperm.xlu0 %5209, %v3703_v62  }
 0x105   : > { %5077 = vmatprep.subr.bf16.mxu1 %v2667_v3  ;;  %v2447_v39 = vsel %vm666_vm2, %v2435_v5, %v2437_v8  ;;  %v6072_v8 = vpop.f32.mrf.mxu1 }
 0x106   : > { %4998 = vmatmul.mubr.msk.bf16.gmra.mxu1 %vm310_vm0, %v5316_v28  ;;  %5012 = vmatpush3.bf16.msra.mxu0 %v5578_v32  ;;  %v5322_v32 = vld [vmem:[%s6660_s0 + $0x278] sm:$0xff]   ;;  %v3704_v28 = vld [vmem:[%s6662_s2 + $0x30] sm:$0xff] }
 0x107   : > { %5001 = vmatprep.mubr.msk.bf16.mxu1 %vm310_vm0, %v5319_v4  ;;  %5053 = vmatprep.subr.bf16.mxu0 %v2449_v7  ;;  %v2653_v11 = vpop.permute.xlu0 %2652  ;;  %v5342_v4 = vld [vmem:[%s6660_s0 + $0x308] sm:$0xff]  }
 0x108   : > { %v2655_v10 = vpop.permute.xlu1 %2654  ;;  %3736 = vperm.xlu1 %5210, %v3702_v26  }
 0x109   : > { %4974 = vmatmul.mubr.msk.bf16.gmra.mxu0 %vm310_vm0, %v5318_v9  ;;  %v2665_v35 = vsel %vm885_vm3, %v2653_v11, %v2655_v10  ;;  %v3706_v10 = vld [vmem:[%s6662_s2 + $0x40] sm:$0xff] }
 0x10a   : > { %4977 = vmatprep.mubr.msk.bf16.mxu0 %vm310_vm0, %v5321_v30 }
 0x10b   : > { %v2431_v17 = vpop.permute.xlu0 %2430 }
 0x10c   : > { %3746 = vperm.xlu1 %5210, %v3704_v28  }
 0x10e   : > { %5002 = vmatmul.mubr.msk.bf16.gmra.mxu1 %vm310_vm0, %v5320_v13  ;;  %v2433_v16 = vpop.permute.xlu1 %2432  ;;  %v3707_v13 = vld [vmem:[%s6662_s2 + $0x48] sm:$0xff] }
 0x10f   : > { %5037 = vmatprep.mubr.msk.bf16.mxu1 %vm310_vm0, %v5323_v14  ;;  %v2649_v29 = vpop.permute.xlu0 %2648  ;;  %v2446_v44 = vsel %vm666_vm2, %v2431_v17, %v2433_v16  ;;  %v5344_v14 = vld [vmem:[%s6660_s0 + $0x398] sm:$0xff]  }
 0x110   : > { %3756 = vperm.xlu1 %5210, %v3706_v10   ;;  %v5346_v17 = vld [vmem:[%s6660_s0 + $0x318] sm:$0xff]  }
 0x111   : > { %4978 = vmatmul.mubr.msk.bf16.gmra.mxu0 %vm310_vm0, %v5322_v32  ;;  %v6088_v32 = vpop.f32.mrf.mxu1 }
 0x112   : > { %5013 = vmatprep.mubr.msk.bf16.mxu0 %vm310_vm0, %v5325_v15  ;;  %v2651_v23 = vpop.permute.xlu1 %2650  ;;  %v5347_v15 = vld [vmem:[%s6660_s0 + $0x3a0] sm:$0xff]  }
 0x113   : > { %v3114_v36 = vpop.permute.xlu0 %3113  ;;  %v2664_v42 = vsel %vm885_vm3, %v2649_v29, %v2651_v23  ;;  %v5349_v23 = vld [vmem:[%s6660_s0 + $0x320] sm:$0xff]  }
 0x114   : > { %v3710_v29 = vld [vmem:[%s6662_s2 + $0x60] sm:$0xff] }
 0x116   : > { %5038 = vmatmul.mubr.msk.bf16.vlgmr.msra.gmra.mxu1 %vm310_vm0, %v5324_v19  ;;  %v3116_v34 = vpop.permute.xlu1 %3115 }
 0x117   : > { %5078 = vmatpush3.bf16.msra.mxu1 %v2667_v3  ;;  %5041 = vmatprep.mubr.msk.bf16.mxu1 %vm310_vm0, %v5327_v21  ;;  %v3110_v18 = vpop.permute.xlu0 %3109  ;;  %v3120_v46 = vsel %vm301_vm1, %v3114_v36, %v3116_v34  ;;  %v3705_v3 = vld [vmem:[%s6662_s2 + $0x38] sm:$0xff]  ;;  %v5351_v36 = vld [vmem:[%s6660_s0 + $0x3b0] sm:$0xff]  }
 0x118   : > { %5079 = vmatprep.subr.bf16.mxu1 %v2666_v27  ;;  %3751 = vperm.xlu0 %5209, %v3705_v3   ;;  %v3709_v21 = vld [vmem:[%s6662_s2 + $0x58] sm:$0xff] }
 0x119   : > { %5014 = vmatmul.mubr.msk.bf16.vlgmr.msra.gmra.mxu0 %vm310_vm0, %v5326_v25 }
 0x11a   : > { %5054 = vmatpush3.bf16.msra.mxu0 %v2449_v7  ;;  %5017 = vmatprep.mubr.msk.bf16.mxu0 %vm310_vm0, %v5329_v31  ;;  %v3112_v43 = vpop.permute.xlu1 %3111  ;;  %v5345_v7 = vld [vmem:[%s6660_s0 + $0x310] sm:$0xff]   ;;  %v5348_v31 = vld [vmem:[%s6660_s0 + $0x3a8] sm:$0xff]  }
 0x11b   : > { %5055 = vmatprep.subr.bf16.mxu0 %v2448_v33  ;;  %5080 = vmatpush3.bf16.msra.mxu1 %v2666_v27  ;;  %v3106_v49 = vpop.permute.xlu0 %3105  ;;  %v3119_v5 = vsel %vm301_vm1, %v3110_v18, %v3112_v43  ;;  %v6113_v27 = vpop.f32.mrf.mxu1 }
 0x11c   : > { %5081 = vmatprep.subr.bf16.mxu1 %v2665_v35  ;;  %3761 = vperm.xlu0 %5209, %v3707_v13   ;;  %v5364_v13 = vld [vmem:[%s6660_s0 + $0x1e8] sm:$0xff]  }
 0x11d   : > { %v6130_v34 = vpop.f32.mrf.mxu1 }
 0x11e   : > { %5042 = vmatmul.mubr.msk.bf16.gmra.mxu1 %vm310_vm0, %v5328_v37  ;;  %5056 = vmatpush3.bf16.msra.mxu0 %v2448_v33  ;;  %v3108_v48 = vpop.permute.xlu1 %3107 }
 0x11f   : > { %5045 = vmatprep.mubr.msk.bf16.mxu1 %vm310_vm0, %v5331_v38  ;;  %5057 = vmatprep.subr.bf16.mxu0 %v2447_v39  ;;  %v3102_v56 = vpop.permute.xlu0 %3101  ;;  %v3118_v11 = vsel %vm301_vm1, %v3106_v49, %v3108_v48 }
 0x120   : > { %5082 = vmatpush3.bf16.msra.mxu1 %v2665_v35  ;;  %3771 = vperm.xlu0 %5209, %v3709_v21   ;;  %v5369_v21 = vld [vmem:[%s6660_s0 + $0x170] sm:$0xff]  }
 0x121   : > { %5018 = vmatmul.mubr.msk.bf16.gmra.mxu0 %vm310_vm0, %v5330_v40  ;;  %5083 = vmatprep.subr.bf16.mxu1 %v2664_v42  ;;  %v3713_v40 = vld [vmem:[%s6662_s2 + $0x78] sm:$0xff] }
 0x122   : > { %5058 = vmatpush3.bf16.msra.mxu0 %v2447_v39  ;;  %5021 = vmatprep.mubr.msk.bf16.mxu0 %vm310_vm0, %v5333_v41  ;;  %v3104_v54 = vpop.permute.xlu1 %3103  ;;  %v3712_v39 = vld [vmem:[%s6662_s2 + $0x70] sm:$0xff] }
 0x123   : > { %5059 = vmatprep.subr.bf16.mxu0 %v2446_v44  ;;  %v6049_v63 = vpop.permute.xlu0 %3331  ;;  %v3117_v25 = vsel %vm301_vm1, %v3102_v56, %v3104_v54  ;;  %v5353_v41 = vld [vmem:[%s6660_s0 + $0x330] sm:$0xff]  }
 0x124   : > { %5084 = vmatpush3.bf16.msra.mxu1 %v2664_v42  ;;  %v6153_v42 = vpop.f32.mrf.mxu1  ;;  %v5361_v56 = vld [vmem:[%s6660_s0 + $0x150] sm:$0xff]  }
 0x125   : > { %5125 = vmatprep.subr.bf16.mxu1 %v3120_v46 }
 0x126   : > { %5046 = vmatmul.mubr.msk.bf16.gmra.mxu1 %vm310_vm0, %v5332_v45  ;;  %5060 = vmatpush3.bf16.msra.mxu0 %v2446_v44  ;;  %v6040_v61 = vpop.permute.xlu1 %3333  ;;  %v5352_v44 = vld [vmem:[%s6660_s0 + $0x3b8] sm:$0xff]   ;;  %v6161_v45 = vpop.f32.mrf.mxu1 }
 0x127   : > { %5049 = vmatprep.mubr.msk.bf16.mxu1 %vm310_vm0, %v5335_v47  ;;  %5101 = vmatprep.subr.bf16.mxu0 %v5633_v58  ;;  %v3550_v30 = vpop.permute.xlu0 %3549  ;;  %v3338_v38 = vsel %vm666_vm2, %v6049_v63, %v6040_v61  ;;  %v5357_v47 = vld [vmem:[%s6660_s0 + $0x140] sm:$0xff]   ;;  %v5360_v61 = vld [vmem:[%s6660_s0 + $0x1d8] sm:$0xff]  }
 0x128   : > { %v6173_v48 = vpop.f32.mrf.mxu1 }
 0x129   : > { %5022 = vmatmul.mubr.msk.bf16.gmra.mxu0 %vm310_vm0, %v5334_v20 }
 0x12a   : > { %5025 = vmatprep.mubr.msk.bf16.mxu0 %vm310_vm0, %v5337_v50  ;;  %v3552_v9 = vpop.permute.xlu1 %3551  ;;  %v5356_v50 = vld [vmem:[%s6660_s0 + $0x1c8] sm:$0xff]   ;;  %v6181_v51 = vpop.f32.mrf.mxu1 }
 0x12b   : > { %v6102_v19 = vpop.permute.xlu0 %3327  ;;  %v3556_v33 = vsel %vm885_vm3, %v3550_v30, %v3552_v9 }
 0x12c   : > { %v6194_v57 = vpop.f32.mrf.mxu1 }
 0x12e   : > { %5050 = vmatmul.mubr.msk.bf16.gmra.mxu1 %vm310_vm0, %v5336_v53  ;;  %v6094_v16 = vpop.permute.xlu1 %3329  ;;  %v5358_v53 = vld [vmem:[%s6660_s0 + $0x148] sm:$0xff]   ;;  %v6208_v26 = vpop.f32.mrf.mxu1 }
 0x12f   : > { %5085 = vmatprep.mubr.msk.bf16.mxu1 %vm310_vm0, %v5339_v55  ;;  %v3546_v37 = vpop.permute.xlu0 %3545  ;;  %v3337_v24 = vsel %vm666_vm2, %v6102_v19, %v6094_v16  ;;  %v5367_v16 = vld [vmem:[%s6660_s0 + $0x1f0] sm:$0xff]  }
 0x131   : > { %5026 = vmatmul.mubr.msk.bf16.gmra.mxu0 %vm310_vm0, %v5338_v59 }
 0x132   : > { %5061 = vmatprep.mubr.msk.bf16.mxu0 %vm310_vm0, %v5341_v60  ;;  %v3548_v35 = vpop.permute.xlu1 %3547 }
 0x133   : > { %v3555_v54 = vsel %vm885_vm3, %v3546_v37, %v3548_v35 }
 0x136   : > { %5086 = vmatmul.mubr.msk.bf16.vlgmr.msra.gmra.mxu1 %vm310_vm0, %v5340_v1  ;;  %v3326_v43 = vpop.permute.xlu1 %3325  ;;  %v3324_v18 = vpop.permute.xlu0 %3323  ;;  %v5363_v1 = vld [vmem:[%s6660_s0 + $0x1e0] sm:$0xff]  }
 0x137   : > { %5126 = vmatpush3.bf16.msra.mxu1 %v3120_v46  ;;  %5089 = vmatprep.mubr.msk.bf16.mxu1 %vm310_vm0, %v5343_v2  ;;  %v5354_v46 = vld [vmem:[%s6660_s0 + $0x338] sm:$0xff]   ;;  %v3336_v28 = vsel %vm666_vm2, %v3324_v18, %v3326_v43  ;;  %v5375_v18 = vld [vmem:[%s6660_s0 + $0x3d0] sm:$0xff]  }
 0x138   : > { %5127 = vmatprep.subr.bf16.mxu1 %v3119_v5 }
 0x139   : > { %5062 = vmatmul.mubr.msk.bf16.vlgmr.msra.gmra.mxu0 %vm310_vm0, %v5342_v4  ;;  %v5362_v4 = vld [vmem:[%s6660_s0 + $0x158] sm:$0xff]  }
 0x13a   : > { %5102 = vmatpush3.bf16.msra.mxu0 %v5633_v58  ;;  %5065 = vmatprep.mubr.msk.bf16.mxu0 %vm310_vm0, %v5345_v7  ;;  %v3708_v58 = vld [vmem:[%s6662_s2 + $0x50] sm:$0xff]  ;;  %v3544_v20 = vpop.permute.xlu1 %3543  ;;  %v3542_v49 = vpop.permute.xlu0 %3541 }
 0x13b   : > { %5103 = vmatprep.subr.bf16.mxu0 %v5648_v0  ;;  %5128 = vmatpush3.bf16.msra.mxu1 %v3119_v5  ;;  %v3554_v60 = vsel %vm885_vm3, %v3542_v49, %v3544_v20  ;;  %v5365_v5 = vld [vmem:[%s6660_s0 + $0x160] sm:$0xff]   ;;  %v6225_v7 = vpop.f32.mrf.mxu1 }
 0x13c   : > { %5129 = vmatprep.subr.bf16.mxu1 %v3118_v11  ;;  %3766 = vperm.xlu1 %5210, %v3708_v58  }
 0x13e   : > { %5090 = vmatmul.mubr.msk.bf16.gmra.mxu1 %vm310_vm0, %v5344_v14  ;;  %5104 = vmatpush3.bf16.msra.mxu0 %v5648_v0  ;;  %v3711_v0 = vld [vmem:[%s6662_s2 + $0x68] sm:$0xff]  ;;  %v3322_v22 = vpop.permute.xlu1 %3321  ;;  %v3320_v55 = vpop.permute.xlu0 %3319 }
 0x13f   : > { %5093 = vmatprep.mubr.msk.bf16.mxu1 %vm310_vm0, %v5347_v15  ;;  %5105 = vmatprep.subr.bf16.mxu0 %v5663_v6  ;;  %v3335_v10 = vsel %vm666_vm2, %v3320_v55, %v3322_v22  ;;  %v6239_v14 = vpop.f32.mrf.mxu1 }
 0x140   : > { %5130 = vmatpush3.bf16.msra.mxu1 %v3118_v11  ;;  %3776 = vperm.xlu1 %5210, %v3710_v29   ;;  %v5368_v29 = vld [vmem:[%s6660_s0 + $0x1f8] sm:$0xff]  }
 0x141   : > { %5066 = vmatmul.mubr.msk.bf16.gmra.mxu0 %vm310_vm0, %v5346_v17  ;;  %5131 = vmatprep.subr.bf16.mxu1 %v3117_v25  ;;  %v5366_v17 = vld [vmem:[%s6660_s0 + $0x168] sm:$0xff]   ;;  %v6252_v19 = vpop.f32.mrf.mxu1 }
 0x142   : > { %5069 = vmatprep.mubr.msk.bf16.mxu0 %vm310_vm0, %v5349_v23  ;;  %5106 = vmatpush3.bf16.msra.mxu0 %v5663_v6  ;;  %v5350_v6 = vld [vmem:[%s6660_s0 + $0x328] sm:$0xff]   ;;  %v3540_v62 = vpop.permute.xlu1 %3539  ;;  %v3538_v2 = vpop.permute.xlu0 %3537 }
 0x143   : > { %5107 = vmatprep.subr.bf16.mxu0 %v5678_v12  ;;  %3781 = vperm.xlu0 %5209, %v3711_v0   ;;  %v3553_v9 = vsel %vm885_vm3, %v3538_v2, %v3540_v62  ;;  %v6267_v0 = vpop.f32.mrf.mxu1 }
 0x144   : > { %5132 = vmatpush3.bf16.msra.mxu1 %v3117_v25  ;;  %3786 = vperm.xlu1 %5210, %v3712_v39  }
 0x145   : > { %5173 = vmatprep.subr.bf16.mxu1 %v3556_v33  ;;  %v6280_v37 = vpop.f32.mrf.mxu1 }
 0x146   : > { %5094 = vmatmul.mubr.msk.bf16.gmra.mxu1 %vm310_vm0, %v5348_v31  ;;  %5108 = vmatpush3.bf16.msra.mxu0 %v5678_v12  ;;  %v5355_v12 = vld [vmem:[%s6660_s0 + $0x1c0] sm:$0xff]  }
 0x147   : > { %5097 = vmatprep.mubr.msk.bf16.mxu1 %vm310_vm0, %v5351_v36  ;;  %5149 = vmatprep.subr.bf16.mxu0 %v3338_v38  ;;  %v5370_v36 = vld [vmem:[%s6660_s0 + $0x178] sm:$0xff]  }
 0x148   : > { %3791 = vperm.xlu0 %5209, %v3713_v40   ;;  %v581_v40 = vpop.f32.mrf.mxu1 }
 0x149   : > { %5070 = vmatmul.mubr.msk.bf16.gmra.mxu0 %vm310_vm0, %v5350_v6 }
 0x14a   : > { %5073 = vmatprep.mubr.msk.bf16.mxu0 %vm310_vm0, %v5353_v41  ;;  %v5372_v41 = vld [vmem:[%s6660_s0 + $0x3c8] sm:$0xff]  }
 0x14e   : > { %5098 = vmatmul.mubr.msk.bf16.gmra.mxu1 %vm310_vm0, %v5352_v44 }
 0x14f   : > { %5133 = vmatprep.mubr.msk.bf16.mxu1 %vm310_vm0, %v5355_v12  ;;  %v5374_v12 = vld [vmem:[%s6660_s0 + $0x348] sm:$0xff]  }
 0x151   : > { %5074 = vmatmul.mubr.msk.bf16.gmra.mxu0 %vm310_vm0, %v5354_v46 }
 0x152   : > { %5109 = vmatprep.mubr.msk.bf16.mxu0 %vm310_vm0, %v5357_v47  ;;  %v5377_v47 = vld [vmem:[%s6660_s0 + $0x350] sm:$0xff]  }
 0x156   : > { %5134 = vmatmul.mubr.msk.bf16.vlgmr.msra.gmra.mxu1 %vm310_vm0, %v5356_v50 }
 0x157   : > { %5174 = vmatpush3.bf16.msra.mxu1 %v3556_v33  ;;  %5137 = vmatprep.mubr.msk.bf16.mxu1 %vm310_vm0, %v5359_v52  ;;  %v5371_v33 = vld [vmem:[%s6660_s0 + $0x3c0] sm:$0xff]  }
 0x158   : > { %5175 = vmatprep.subr.bf16.mxu1 %v3555_v54 }
 0x159   : > { %v6200_v59 = vpop.f32.mrf.mxu0  ;;  %5110 = vmatmul.mubr.msk.bf16.vlgmr.msra.gmra.mxu0 %vm310_vm0, %v5358_v53 }
 0x15a   : > { %5150 = vmatpush3.bf16.msra.mxu0 %v3338_v38  ;;  %5113 = vmatprep.mubr.msk.bf16.mxu0 %vm310_vm0, %v5361_v56  ;;  %v5373_v38 = vld [vmem:[%s6660_s0 + $0x340] sm:$0xff]   ;;  %v539_v49 = vadd.f32 %v6072_v8, %v6200_v59  ;;  %v5376_v56 = vld [vmem:[%s6660_s0 + $0x3d8] sm:$0xff]  }
 0x15b   : > { %v6210_v63 = vpop.f32.mrf.mxu0  ;;  %5151 = vmatprep.subr.bf16.mxu0 %v3337_v24  ;;  %5176 = vmatpush3.bf16.msra.mxu1 %v3555_v54  ;;  %v5379_v8 = vld [vmem:[%s6660_s0 + $0x3e0] sm:$0xff]  }
 0x15c   : > { %5177 = vmatprep.subr.bf16.mxu1 %v3554_v60  ;;  %v531_v53 = vadd.f32 %v6088_v32, %v6210_v63  ;;  %v5378_v63 = vld [vmem:[%s6660_s0 + $0x358] sm:$0xff]  }
 0x15d   : > { %v6216_v3 = vpop.f32.mrf.mxu0 }
 0x15e   : > { %5138 = vmatmul.mubr.msk.bf16.gmra.mxu1 %vm310_vm0, %v5360_v61  ;;  %5152 = vmatpush3.bf16.msra.mxu0 %v3337_v24  ;;  %v542_v59 = vadd.f32 %v6113_v27, %v6216_v3  ;;  %v5381_v27 = vld [vmem:[%s6660_s0 + $0x360] sm:$0xff]  }
 0x15f   : > { %v6228_v30 = vpop.f32.mrf.mxu0  ;;  %5141 = vmatprep.mubr.msk.bf16.mxu1 %vm310_vm0, %v5363_v1  ;;  %5153 = vmatprep.subr.bf16.mxu0 %v3336_v28 }
 0x160   : > { %5178 = vmatpush3.bf16.msra.mxu1 %v3554_v60  ;;  %v534_v1 = vadd.f32 %v6130_v34, %v6228_v30 }
 0x161   : > { %v6232_v11 = vpop.f32.mrf.mxu0  ;;  %5114 = vmatmul.mubr.msk.bf16.gmra.mxu0 %vm310_vm0, %v5362_v4  ;;  %5179 = vmatprep.subr.bf16.mxu1 %v3553_v9 }
 0x162   : > { %5154 = vmatpush3.bf16.msra.mxu0 %v3336_v28  ;;  %5117 = vmatprep.mubr.msk.bf16.mxu0 %vm310_vm0, %v5365_v5  ;;  %v555_v5 = vadd.f32 %v6153_v42, %v6232_v11  ;;  %v5383_v11 = vld [vmem:[%s6660_s0 + $0x3f0] sm:$0xff]  }
 0x163   : > { %v6241_v15 = vpop.f32.mrf.mxu0  ;;  %5155 = vmatprep.subr.bf16.mxu0 %v3335_v10 }
 0x164   : > { %5180 = vmatpush3.bf16.msra.mxu1 %v3553_v9  ;;  %v547_v30 = vadd.f32 %v6161_v45, %v6241_v15 }
 0x165   : > { %v6246_v58 = vpop.f32.mrf.mxu0 }
 0x166   : > { %5142 = vmatmul.mubr.msk.bf16.gmra.mxu1 %vm310_vm0, %v5364_v13  ;;  %5156 = vmatpush3.bf16.msra.mxu0 %v3335_v10 }
 0x167   : > { %v6257_v23 = vpop.f32.mrf.mxu0  ;;  %5145 = vmatprep.mubr.msk.bf16.mxu1 %vm310_vm0, %v5367_v16 }
 0x169   : > { %v6260_v25 = vpop.f32.mrf.mxu0  ;;  %5118 = vmatmul.mubr.msk.bf16.gmra.mxu0 %vm310_vm0, %v5366_v17 }
 0x16a   : > { %5121 = vmatprep.mubr.msk.bf16.mxu0 %vm310_vm0, %v5369_v21  ;;  %v5380_v21 = vld [vmem:[%s6660_s0 + $0x3e8] sm:$0xff]  }
 0x16b   : > { %v6269_v31 = vpop.f32.mrf.mxu0 }
 0x16d   : > { %v6274_v35 = vpop.f32.mrf.mxu0 }
 0x16e   : > { %5146 = vmatmul.mubr.msk.bf16.gmra.mxu1 %vm310_vm0, %v5368_v29 }
 0x16f   : > { %v6285_v6 = vpop.f32.mrf.mxu0  ;;  %5181 = vmatprep.mubr.msk.bf16.mxu1 %vm310_vm0, %v5371_v33  ;;  %v558_v33 = vadd.f32 %v6173_v48, %v6246_v58  ;;  %v5385_v48 = vld [vmem:[%s6660_s0 + $0x370] sm:$0xff]  }
 0x171   : > { %v6288_v39 = vpop.f32.mrf.mxu0  ;;  %5122 = vmatmul.mubr.msk.bf16.gmra.mxu0 %vm310_vm0, %v5370_v36 }
 0x172   : > { %5157 = vmatprep.mubr.msk.bf16.mxu0 %vm310_vm0, %v5373_v38 }
 0x173   : > { %v6295_v43 = vpop.f32.mrf.mxu0 }
 0x175   : > { %v6300_v44 = vpop.f32.mrf.mxu0 }
 0x176   : > { %v4895_v46 = vpop.f32.mrf.mxu1  ;;  %5182 = vmatmul.mubr.msk.bf16.vlgmr.msra.gmra.mxu1 %vm310_vm0, %v5372_v41  ;;  %v550_v41 = vadd.f32 %v6181_v51, %v6257_v23  ;;  %v563_v23 = vadd.f32 %v6208_v26, %v6269_v31  ;;  %v5386_v26 = vld [vmem:[%s6660_s0 + $0x378] sm:$0xff]   ;;  %v566_v31 = vadd.f32 %v6239_v14, %v6285_v6 }
 0x177   : > { %v420_v20 = vpop.f32.mrf.mxu0  ;;  %5185 = vmatprep.mubr.msk.bf16.mxu1 %vm310_vm0, %v5375_v18 }
 0x178   : > { %v6312_v50 = vadd.f32 %v581_v40, %v420_v20  ;;  %v952_v52 = vpop.f32.mrf.mxu1  ;;  %v5382_v40 = vld [vmem:[%s6660_s0 + $0x368] sm:$0xff]  }
 0x179   : > { %v4871_v22 = vpop.f32.mrf.mxu0  ;;  %5158 = vmatmul.mubr.msk.bf16.vlgmr.msra.gmra.mxu0 %vm310_vm0, %v5374_v12 }
 0x17a   : > { %v798_v54 = vadd.f32 %v4871_v22, %v539_v49  ;;  %v4896_v55 = vpop.f32.mrf.mxu1  ;;  %5161 = vmatprep.mubr.msk.bf16.mxu0 %vm310_vm0, %v5377_v47  ;;  %v571_v47 = vadd.f32 %v6194_v57, %v6260_v25  ;;  %v574_v25 = vadd.f32 %v6225_v7, %v6274_v35  ;;  %v587_v7 = vadd.f32 %v6252_v19, %v6288_v39 }
 0x17b   : > { %v733_v24 = vpop.f32.mrf.mxu0 }
 0x17c   : > { %v796_v60 = vadd.f32 %v733_v24, %v531_v53  ;;  %v955_v61 = vpop.f32.mrf.mxu1  ;;  %v6326_v62 = vadd.f32 %v4895_v46, %v798_v54  ;;  %v5384_v54 = vld [vmem:[%s6660_s0 + $0x3f8] sm:$0xff]  }
 0x17d   : > { %v4872_v32 = vpop.f32.mrf.mxu0 }
 0x17e   : > { %v799_v2 = vadd.f32 %v4872_v32, %v542_v59  ;;  %v4899_v28 = vpop.f32.mrf.mxu1  ;;  %5186 = vmatmul.mubr.msk.bf16.gmra.mxu1 %vm310_vm0, %v5376_v56  ;;  %v6337_v3 = vadd.f32 %v952_v52, %v796_v60 }
 0x17f   : > { %v736_v4 = vpop.f32.mrf.mxu0  ;;  %5189 = vmatprep.mubr.msk.bf16.mxu1 %vm310_vm0, %v5379_v8 }
 0x180   : > { %v797_v9 = vadd.f32 %v736_v4, %v534_v1  ;;  %v968_v10 = vpop.f32.mrf.mxu1  ;;  %v6342_v13 = vadd.f32 %v4896_v55, %v799_v2 }
 0x181   : > { %v4875_v34 = vpop.f32.mrf.mxu0  ;;  %5162 = vmatmul.mubr.msk.bf16.gmra.mxu0 %vm310_vm0, %v5378_v63 }
 0x182   : > { %v802_v16 = vadd.f32 %v4875_v34, %v555_v5  ;;  %v4900_v17 = vpop.f32.mrf.mxu1  ;;  %5165 = vmatprep.mubr.msk.bf16.mxu0 %vm310_vm0, %v5381_v27  ;;  %v6351_v29 = vadd.f32 %v955_v61, %v797_v9  ;;  %v579_v27 = vadd.f32 %v6267_v0, %v6295_v43  ;;  %v590_v9 = vadd.f32 %v6280_v37, %v6300_v44 }
 0x183   : > { %v749_v42 = vpop.f32.mrf.mxu0 }
 0x184   : > { %v800_v36 = vadd.f32 %v749_v42, %v547_v30  ;;  %v971_v45 = vpop.f32.mrf.mxu1  ;;  %v6358_v15 = vadd.f32 %v4899_v28, %v802_v16 }
 0x185   : > { %v4876_v38 = vpop.f32.mrf.mxu0 }
 0x186   : > { %v803_v18 = vadd.f32 %v4876_v38, %v558_v33  ;;  %v4903_v12 = vpop.f32.mrf.mxu1  ;;  %5190 = vmatmul.mubr.msk.bf16.gmra.mxu1 %vm310_vm0, %v5380_v21  ;;  %v6369_v58 = vadd.f32 %v968_v10, %v800_v36 }
 0x187   : > { %v752_v46 = vpop.f32.mrf.mxu0  ;;  %5193 = vmatprep.mubr.msk.bf16.mxu1 %vm310_vm0, %v5383_v11 }
 0x188   : > { %v801_v20 = vadd.f32 %v752_v46, %v550_v41  ;;  %v984_v49 = vpop.f32.mrf.mxu1  ;;  %v6374_v52 = vadd.f32 %v4900_v17, %v803_v18 }
 0x189   : > { %v4879_v51 = vpop.f32.mrf.mxu0  ;;  %5166 = vmatmul.mubr.msk.bf16.gmra.mxu0 %vm310_vm0, %v5382_v40 }
 0x18a   : > { %v806_v22 = vadd.f32 %v4879_v51, %v571_v47  ;;  %v4904_v53 = vpop.f32.mrf.mxu1  ;;  %5169 = vmatprep.mubr.msk.bf16.mxu0 %vm310_vm0, %v5385_v48  ;;  %v6383_v55 = vadd.f32 %v971_v45, %v801_v20 }
 0x18b   : > { %v765_v57 = vpop.f32.mrf.mxu0 }
 0x18c   : > { %v804_v56 = vadd.f32 %v765_v57, %v563_v23  ;;  %v987_v24 = vpop.f32.mrf.mxu1  ;;  %v6387_v8 = vadd.f32 %v4903_v12, %v806_v22 }
 0x18d   : > { %v4880_v59 = vpop.f32.mrf.mxu0 }
 0x18e   : > { %v807_v60 = vadd.f32 %v4880_v59, %v574_v25  ;;  %v4907_v61 = vpop.f32.mrf.mxu1  ;;  %5194 = vmatmul.mubr.msk.bf16.gmra.mxu1 %vm310_vm0, %v5384_v54  ;;  %v1023_v32 = vadd.f32 %v984_v49, %v804_v56 }
 0x18f   : > { %v768_v63 = vpop.f32.mrf.mxu0 }
 0x190   : > { %v805_v35 = vadd.f32 %v768_v63, %v566_v31  ;;  %v1000_v1 = vpop.f32.mrf.mxu1  ;;  %v1026_v2 = vadd.f32 %v4904_v53, %v807_v60 }
 0x191   : > { %v4883_v28 = vpop.f32.mrf.mxu0  ;;  %5170 = vmatmul.mubr.msk.bf16.gmra.mxu0 %vm310_vm0, %v5386_v26 }
 0x192   : > { %v810_v4 = vadd.f32 %v4883_v28, %v587_v7  ;;  %v4908_v14 = vpop.f32.mrf.mxu1  ;;  %v1024_v6 = vadd.f32 %v987_v24, %v805_v35 }
 0x193   : > { %v781_v5 = vpop.f32.mrf.mxu0 }
 0x194   : > { %v808_v10 = vadd.f32 %v781_v5, %v579_v27  ;;  %v1003_v34 = vpop.f32.mrf.mxu1  ;;  %v1029_v30 = vadd.f32 %v4907_v61, %v810_v4 }
 0x195   : > { %v4884_v19 = vpop.f32.mrf.mxu0 }
 0x196   : > { %v811_v39 = vadd.f32 %v4884_v19, %v590_v9  ;;  %v4943_v16 = vpop.f32.mrf.mxu1  ;;  %v1027_v17 = vadd.f32 %v1000_v1, %v808_v10 }
 0x197   : > { %v784_v21 = vpop.f32.mrf.mxu0 }
 0x198   : > { %v809_v42 = vadd.f32 %v784_v21, %v6312_v50  ;;  %v1405_v11 = vpop.f32.mrf.mxu1  ;;  %v1030_v33 = vadd.f32 %v4908_v14, %v811_v39 }
 0x199   : > { %v4919_v0 = vpop.f32.mrf.mxu0 }
 0x19a   : > { %v1240_v43 = vadd.f32 %v4919_v0, %v6326_v62  ;;  %v4944_v36 = vpop.f32.mrf.mxu1  ;;  %v1028_v45 = vadd.f32 %v1003_v34, %v809_v42 }
 0x19b   : > { %v1175_v38 = vpop.f32.mrf.mxu0 }
 0x19c   : > { %v1238_v37 = vadd.f32 %v1175_v38, %v6337_v3  ;;  %v1408_v44 = vpop.f32.mrf.mxu1  ;;  %v1470_v40 = vadd.f32 %v4943_v16, %v1240_v43 }
 0x19d   : > { %v4920_v41 = vpop.f32.mrf.mxu0 }
 0x19e   : > { %v1241_v18 = vadd.f32 %v4920_v41, %v6342_v13  ;;  %v4947_v12 = vpop.f32.mrf.mxu1  ;;  %v1468_v48 = vadd.f32 %v1405_v11, %v1238_v37 }
 0x19f   : > { %v1178_v46 = vpop.f32.mrf.mxu0 }
 0x1a0   : > { %v1239_v50 = vadd.f32 %v1178_v46, %v6351_v29  ;;  %v1421_v47 = vpop.f32.mrf.mxu1  ;;  %v1471_v20 = vadd.f32 %v4944_v36, %v1241_v18 }
 0x1a1   : > { %v4923_v49 = vpop.f32.mrf.mxu0 }
 0x1a2   : > { %v1244_v62 = vadd.f32 %v4923_v49, %v6358_v15  ;;  %v4948_v51 = vpop.f32.mrf.mxu1  ;;  %v1469_v23 = vadd.f32 %v1408_v44, %v1239_v50 }
 0x1a3   : > { %v1191_v22 = vpop.f32.mrf.mxu0 }
 0x1a4   : > { %v1242_v3 = vadd.f32 %v1191_v22, %v6369_v58  ;;  %v1424_v53 = vpop.f32.mrf.mxu1  ;;  %v1474_v54 = vadd.f32 %v4947_v12, %v1244_v62 }
 0x1a5   : > { %v4924_v57 = vpop.f32.mrf.mxu0 }
 0x1a6   : > { %v1245_v13 = vadd.f32 %v4924_v57, %v6374_v52  ;;  %v4951_v25 = vpop.f32.mrf.mxu1  ;;  %v1472_v56 = vadd.f32 %v1421_v47, %v1242_v3 }
 0x1a7   : > { %v1194_v24 = vpop.f32.mrf.mxu0 }
 0x1a8   : > { %v1243_v29 = vadd.f32 %v1194_v24, %v6383_v55  ;;  %v1437_v59 = vpop.f32.mrf.mxu1  ;;  %v1475_v26 = vadd.f32 %v4948_v51, %v1245_v13 }
 0x1a9   : > { %v4927_v31 = vpop.f32.mrf.mxu0 }
 0x1aa   : > { %v1248_v15 = vadd.f32 %v4927_v31, %v6387_v8  ;;  %v4952_v60 = vpop.f32.mrf.mxu1  ;;  %v1473_v61 = vadd.f32 %v1424_v53, %v1243_v29 }
 0x1ab   : > { %v1207_v63 = vpop.f32.mrf.mxu0 }
 0x1ac   : > { %v1246_v7 = vadd.f32 %v1207_v63, %v1023_v32  ;;  %v1440_v58 = vpop.f32.mrf.mxu1  ;;  %v1478_v35 = vadd.f32 %v4951_v25, %v1248_v15 }
 0x1ad   : > { %v4928_v1 = vpop.f32.mrf.mxu0 }
 0x1ae   : > { %v1249_v28 = vadd.f32 %v4928_v1, %v1026_v2  ;;  %v4955_v27 = vpop.f32.mrf.mxu1  ;;  %v1476_v52 = vadd.f32 %v1437_v59, %v1246_v7 }
 0x1af   : > { %v1210_v4 = vpop.f32.mrf.mxu0 }
 0x1b0   : > { %v1247_v14 = vadd.f32 %v1210_v4, %v1024_v6  ;;  %v1453_v5 = vpop.f32.mrf.mxu1  ;;  %v1479_v9 = vadd.f32 %v4952_v60, %v1249_v28 }
 0x1b1   : > { %v4931_v55 = vpop.f32.mrf.mxu0 }
 0x1b2   : > { %v1252_v10 = vadd.f32 %v4931_v55, %v1029_v30  ;;  %v4956_v34 = vpop.f32.mrf.mxu1  ;;  %v1477_v19 = vadd.f32 %v1440_v58, %v1247_v14 }
 0x1b3   : > { %v1223_v39 = vpop.f32.mrf.mxu0 }
 0x1b4   : > { %v1250_v8 = vadd.f32 %v1223_v39, %v1027_v17  ;;  %v1456_v16 = vpop.f32.mrf.mxu1  ;;  %v1482_v21 = vadd.f32 %v4955_v27, %v1252_v10 }
 0x1b5   : > { %v4932_v42 = vpop.f32.mrf.mxu0 }
 0x1b6   : > { %v1253_v32 = vadd.f32 %v4932_v42, %v1030_v33  ;;  %v4991_v11 = vpop.f32.mrf.mxu1  ;;  %v1480_v0 = vadd.f32 %v1453_v5, %v1250_v8 }
 0x1b7   : > { %v1226_v43 = vpop.f32.mrf.mxu0 }
 0x1b8   : > { %v1251_v2 = vadd.f32 %v1226_v43, %v1028_v45  ;;  %v1841_v36 = vpop.f32.mrf.mxu1  ;;  %v1483_v38 = vadd.f32 %v4956_v34, %v1253_v32 }
 0x1b9   : > { %v4967_v37 = vpop.f32.mrf.mxu0 }
 0x1ba   : > { %v1688_v6 = vadd.f32 %v4967_v37, %v1470_v40  ;;  %v4992_v44 = vpop.f32.mrf.mxu1  ;;  %v1481_v41 = vadd.f32 %v1456_v16, %v1251_v2 }
 0x1bb   : > { %v1623_v18 = vpop.f32.mrf.mxu0 }
 0x1bc   : > { %v1686_v30 = vadd.f32 %v1623_v18, %v1468_v48  ;;  %v1844_v12 = vpop.f32.mrf.mxu1  ;;  %v1906_v46 = vadd.f32 %v4991_v11, %v1688_v6 }
 0x1bd   : > { %v4968_v50 = vpop.f32.mrf.mxu0 }
 0x1be   : > { %v1689_v17 = vadd.f32 %v4968_v50, %v1471_v20  ;;  %v4995_v47 = vpop.f32.mrf.mxu1  ;;  %v1904_v49 = vadd.f32 %v1841_v36, %v1686_v30 }
 0x1bf   : > { %v1626_v62 = vpop.f32.mrf.mxu0 }
 0x1c0   : > { %v1687_v33 = vadd.f32 %v1626_v62, %v1469_v23  ;;  %v1857_v51 = vpop.f32.mrf.mxu1  ;;  %v1907_v22 = vadd.f32 %v4992_v44, %v1689_v17 }
 0x1c1   : > { %v4971_v3 = vpop.f32.mrf.mxu0 }
 0x1c2   : > { %v1692_v45 = vadd.f32 %v4971_v3, %v1474_v54  ;;  %v4996_v53 = vpop.f32.mrf.mxu1  ;;  %v1905_v57 = vadd.f32 %v1844_v12, %v1687_v33 }
 0x1c3   : > { %v1639_v13 = vpop.f32.mrf.mxu0 }
 0x1c4   : > { %v1690_v40 = vadd.f32 %v1639_v13, %v1472_v56  ;;  %v1860_v25 = vpop.f32.mrf.mxu1  ;;  %v1910_v24 = vadd.f32 %v4995_v47, %v1692_v45 }
 0x1c5   : > { %v4972_v29 = vpop.f32.mrf.mxu0 }
 0x1c6   : > { %v1693_v48 = vadd.f32 %v4972_v29, %v1475_v26  ;;  %v4999_v59 = vpop.f32.mrf.mxu1  ;;  %v1908_v31 = vadd.f32 %v1857_v51, %v1690_v40 }
 0x1c7   : > { %v1642_v15 = vpop.f32.mrf.mxu0 }
 0x1c8   : > { %v1691_v20 = vadd.f32 %v1642_v15, %v1473_v61  ;;  %v1873_v60 = vpop.f32.mrf.mxu1  ;;  %v1911_v63 = vadd.f32 %v4996_v53, %v1693_v48 }
 0x1c9   : > { %v4975_v7 = vpop.f32.mrf.mxu0 }
 0x1ca   : > { %v1696_v23 = vadd.f32 %v4975_v7, %v1478_v35  ;;  %v5000_v58 = vpop.f32.mrf.mxu1  ;;  %v1909_v1 = vadd.f32 %v1860_v25, %v1691_v20 }
 0x1cb   : > { %v1655_v28 = vpop.f32.mrf.mxu0 }
 0x1cc   : > { %v1694_v54 = vadd.f32 %v1655_v28, %v1476_v52  ;;  %v1876_v27 = vpop.f32.mrf.mxu1  ;;  %v1914_v4 = vadd.f32 %v4999_v59, %v1696_v23 }
 0x1cd   : > { %v4976_v14 = vpop.f32.mrf.mxu0 }
 0x1ce   : > { %v1697_v56 = vadd.f32 %v4976_v14, %v1479_v9  ;;  %v5003_v5 = vpop.f32.mrf.mxu1  ;;  %v1912_v55 = vadd.f32 %v1873_v60, %v1694_v54 }
 0x1cf   : > { %v1658_v10 = vpop.f32.mrf.mxu0 }
 0x1d0   : > { %v1695_v26 = vadd.f32 %v1658_v10, %v1477_v19  ;;  %v1889_v34 = vpop.f32.mrf.mxu1  ;;  %v1915_v39 = vadd.f32 %v5000_v58, %v1697_v56 }
 0x1d1   : > { %v4979_v8 = vpop.f32.mrf.mxu0 }
 0x1d2   : > { %v1700_v61 = vadd.f32 %v4979_v8, %v1482_v21  ;;  %v5004_v16 = vpop.f32.mrf.mxu1  ;;  %v1913_v42 = vadd.f32 %v1876_v27, %v1695_v26 }
 0x1d3   : > { %v1671_v32 = vpop.f32.mrf.mxu0 }
 0x1d4   : > { %v1698_v35 = vadd.f32 %v1671_v32, %v1480_v0  ;;  %v1892_v11 = vpop.f32.mrf.mxu1  ;;  %v1918_v43 = vadd.f32 %v5003_v5, %v1700_v61 }
 0x1d5   : > { %v4980_v2 = vpop.f32.mrf.mxu0 }
 0x1d6   : > { %v1701_v52 = vadd.f32 %v4980_v2, %v1483_v38  ;;  %v5039_v36 = vpop.f32.mrf.mxu1  ;;  %v1916_v37 = vadd.f32 %v1889_v34, %v1698_v35 }
 0x1d7   : > { %v1674_v6 = vpop.f32.mrf.mxu0 }
 0x1d8   : > { %v1699_v9 = vadd.f32 %v1674_v6, %v1481_v41  ;;  %v2294_v44 = vpop.f32.mrf.mxu1  ;;  %v1919_v18 = vadd.f32 %v5004_v16, %v1701_v52 }
 0x1d9   : > { %v5015_v30 = vpop.f32.mrf.mxu0 }
 0x1da   : > { %v2129_v19 = vadd.f32 %v5015_v30, %v1906_v46  ;;  %v5040_v12 = vpop.f32.mrf.mxu1  ;;  %v1917_v50 = vadd.f32 %v1892_v11, %v1699_v9 }
 0x1db   : > { %v2064_v17 = vpop.f32.mrf.mxu0 }
 0x1dc   : > { %v2127_v21 = vadd.f32 %v2064_v17, %v1904_v49  ;;  %v2297_v47 = vpop.f32.mrf.mxu1  ;;  %v6412_v62 = vadd.f32 %v5039_v36, %v2129_v19 }
 0x1dd   : > { %v5016_v0 = vpop.f32.mrf.mxu0 }
 0x1de   : > { %v2130_v33 = vadd.f32 %v5016_v0, %v1907_v22  ;;  %v5043_v51 = vpop.f32.mrf.mxu1  ;;  %v6414_v3 = vadd.f32 %v2294_v44, %v2127_v21 }
 0x1df   : > { %v2067_v38 = vpop.f32.mrf.mxu0 }
 0x1e0   : > { %v2128_v45 = vadd.f32 %v2067_v38, %v1905_v57  ;;  %v2310_v53 = vpop.f32.mrf.mxu1  ;;  %v6416_v41 = vadd.f32 %v5040_v12, %v2130_v33 }
 0x1e1   : > { %v5019_v13 = vpop.f32.mrf.mxu0 }
 0x1e2   : > { %v2133_v40 = vadd.f32 %v5019_v13, %v1910_v24  ;;  %v5044_v46 = vpop.f32.mrf.mxu1  ;;  %v6418_v25 = vadd.f32 %v2297_v47, %v2128_v45 }
 0x1e3   : > { %v2080_v29 = vpop.f32.mrf.mxu0 }
 0x1e4   : > { %v2131_v49 = vadd.f32 %v2080_v29, %v1908_v31  ;;  %v2313_v48 = vpop.f32.mrf.mxu1  ;;  %v6420_v59 = vadd.f32 %v5043_v51, %v2133_v40 }
 0x1e5   : > { %v5020_v15 = vpop.f32.mrf.mxu0 }
 0x1e6   : > { %v2134_v22 = vadd.f32 %v5020_v15, %v1911_v63  ;;  %v5047_v20 = vpop.f32.mrf.mxu1  ;;  %v6422_v60 = vadd.f32 %v2310_v53, %v2131_v49 }
 0x1e7   : > { %v2083_v7 = vpop.f32.mrf.mxu0 }
 0x1e8   : > { %v2132_v57 = vadd.f32 %v2083_v7, %v1909_v1  ;;  %v2326_v23 = vpop.f32.mrf.mxu1  ;;  %v6424_v58 = vadd.f32 %v5044_v46, %v2134_v22 }
 0x1e9   : > { %v5023_v28 = vpop.f32.mrf.mxu0 }
 0x1ea   : > { %v2137_v24 = vadd.f32 %v5023_v28, %v1914_v4  ;;  %v5048_v54 = vpop.f32.mrf.mxu1  ;;  %v6426_v27 = vadd.f32 %v2313_v48, %v2132_v57 }
 0x1eb   : > { %v2096_v14 = vpop.f32.mrf.mxu0 }
 0x1ec   : > { %v2135_v31 = vadd.f32 %v2096_v14, %v1912_v55  ;;  %v2329_v56 = vpop.f32.mrf.mxu1  ;;  %v6428_v5 = vadd.f32 %v5047_v20, %v2137_v24 }
 0x1ed   : > { %v5024_v10 = vpop.f32.mrf.mxu0 }
 0x1ee   : > { %v2138_v63 = vadd.f32 %v5024_v10, %v1915_v39  ;;  %v5051_v26 = vpop.f32.mrf.mxu1  ;;  %v6430_v34 = vadd.f32 %v2326_v23, %v2135_v31 }
 0x1ef   : > { %v2099_v8 = vpop.f32.mrf.mxu0 }
 0x1f0   : > { %v2136_v1 = vadd.f32 %v2099_v8, %v1913_v42  ;;  %v2342_v61 = vpop.f32.mrf.mxu1  ;;  %v6432_v16 = vadd.f32 %v5048_v54, %v2138_v63 }
 0x1f1   : > { %v5027_v32 = vpop.f32.mrf.mxu0 }
 0x1f2   : > { %v2141_v4 = vadd.f32 %v5027_v32, %v1918_v43  ;;  %v5052_v35 = vpop.f32.mrf.mxu1  ;;  %v6434_v11 = vadd.f32 %v2329_v56, %v2136_v1 }
 0x1f3   : > { %v2112_v2 = vpop.f32.mrf.mxu0 }
 0x1f4   : > { %v2139_v55 = vadd.f32 %v2112_v2, %v1916_v37  ;;  %v2345_v52 = vpop.f32.mrf.mxu1  ;;  %v6436_v36 = vadd.f32 %v5051_v26, %v2141_v4 }
 0x1f5   : > { %v5028_v6 = vpop.f32.mrf.mxu0 }
 0x1f6   : > { %v2142_v39 = vadd.f32 %v5028_v6, %v1919_v18  ;;  %v6438_v9 = vpop.f32.mrf.mxu1  ;;  %v6440_v44 = vadd.f32 %v2342_v61, %v2139_v55 }
 0x1f7   : > { %v2115_v42 = vpop.f32.mrf.mxu0 }
 0x1f8   : > { %v2140_v30 = vadd.f32 %v2115_v42, %v1917_v50  ;;  %v6442_v19 = vpop.f32.mrf.mxu1  ;;  %v6444_v12 = vadd.f32 %v5052_v35, %v2142_v39 }
 0x1f9   : > { %v5063_v43 = vpop.f32.mrf.mxu0 }
 0x1fa   : > { %6664 = vst [vmem:[#allocation2_spill] sm:$0xff] %v6444_v12  ;;  %v6446_v17 = vpop.f32.mrf.mxu1  ;;  %v6448_v21 = vadd.f32 %v2345_v52, %v2140_v30 }
 0x1fb   : > { %v2512_v37 = vpop.f32.mrf.mxu0 }
 0x1fc   : > { %6665 = vst [vmem:[#allocation3_spill] sm:$0xff] %v6448_v21  ;;  %v6450_v47 = vpop.f32.mrf.mxu1  ;;  %v6528_v21 = vpop.permute.xlu1 %3721 }
 0x1fd   : > { %v5064_v0 = vpop.f32.mrf.mxu0  ;;  %6680 = vst [vmem:[#allocation18_spill] sm:$0xff] %v6528_v21 }
 0x1fe   : > { %v6452_v18 = vpop.f32.mrf.mxu1 }
 0x1ff   : > { %v2515_v33 = vpop.f32.mrf.mxu0 }
 0x200   : > { %v6454_v51 = vpop.f32.mrf.mxu1 }
 0x201   : > { %v6456_v38 = vpop.f32.mrf.mxu0 }
 0x202   : > { %v6458_v50 = vpop.f32.mrf.mxu1 }
 0x203   : > { %v6460_v45 = vpop.f32.mrf.mxu0 }
 0x204   : > { %v6462_v53 = vpop.f32.mrf.mxu1 }
 0x205   : > { %v6464_v13 = vpop.f32.mrf.mxu0 }
 0x206   : > { %v6466_v40 = vpop.f32.mrf.mxu1 }
 0x207   : > { %v6468_v46 = vpop.f32.mrf.mxu0 }
 0x208   : > { %v6470_v29 = vpop.f32.mrf.mxu1 }
 0x209   : > { %v6472_v49 = vpop.f32.mrf.mxu0 }
 0x20a   : > { %v6474_v48 = vpop.f32.mrf.mxu1 }
 0x20b   : > { %v6476_v15 = vpop.f32.mrf.mxu0 }
 0x20c   : > { %v6478_v22 = vpop.f32.mrf.mxu1 }
 0x20d   : > { %v6480_v20 = vpop.f32.mrf.mxu0 }
 0x20e   : > { %v6482_v7 = vpop.f32.mrf.mxu1 }
 0x20f   : > { %6666 = vst [vmem:[#allocation4_spill] sm:$0xff] %v6482_v7  ;;  %v6484_v57 = vpop.f32.mrf.mxu0 }
 0x210   : > { %v6486_v23 = vpop.f32.mrf.mxu1 }
 0x211   : > { %6667 = vst [vmem:[#allocation5_spill] sm:$0xff] %v6486_v23  ;;  %v6488_v28 = vpop.f32.mrf.mxu0 }
 0x212   : > { %v6490_v24 = vpop.f32.mrf.mxu1 }
 0x213   : > { %6668 = vst [vmem:[#allocation6_spill] sm:$0xff] %v6490_v24  ;;  %v6492_v54 = vpop.f32.mrf.mxu0 }
 0x214   : > { %v6494_v14 = vpop.f32.mrf.mxu1 }
 0x215   : > { %6669 = vst [vmem:[#allocation7_spill] sm:$0xff] %v6494_v14  ;;  %v6496_v31 = vpop.f32.mrf.mxu0 }
 0x216   : > { %6670 = vst [vmem:[#allocation8_spill] sm:$0xff] %v6496_v31  ;;  %v5135_v56 = vpop.f32.mrf.mxu1 }
 0x217   : > { %v6498_v10 = vpop.f32.mrf.mxu0 }
 0x218   : > { %6671 = vst [vmem:[#allocation9_spill] sm:$0xff] %v6498_v10  ;;  %v3183_v63 = vpop.f32.mrf.mxu1 }
 0x219   : > { %v5111_v26 = vpop.f32.mrf.mxu0 }
 0x21a   : > { %v6500_v8 = vpop.f32.mrf.mxu1 }
 0x21b   : > { %v2953_v1 = vpop.f32.mrf.mxu0 }
 0x21c   : > { %v6502_v61 = vpop.f32.mrf.mxu1 }
 0x21d   : > { %v5112_v32 = vpop.f32.mrf.mxu0 }
 0x21e   : > { %v6504_v4 = vpop.f32.mrf.mxu1 }
 0x21f   : > { %6672 = vst [vmem:[#allocation10_spill] sm:$0xff] %v6504_v4  ;;  %v2956_v35 = vpop.f32.mrf.mxu0 }
 0x220   : > { %v6506_v2 = vpop.f32.mrf.mxu1 }
 0x221   : > { %6673 = vst [vmem:[#allocation11_spill] sm:$0xff] %v6506_v2  ;;  %v6508_v55 = vpop.f32.mrf.mxu0 }
 0x222   : > { %v6510_v52 = vpop.f32.mrf.mxu1 }
 0x223   : > { %6674 = vst [vmem:[#allocation12_spill] sm:$0xff] %v6510_v52  ;;  %v6512_v6 = vpop.f32.mrf.mxu0 }
 0x224   : > { %v6514_v39 = vpop.f32.mrf.mxu1 }
 0x225   : > { %6675 = vst [vmem:[#allocation13_spill] sm:$0xff] %v6514_v39  ;;  %v6516_v42 = vpop.f32.mrf.mxu0  ;;  %v2577_v39 = vadd.f32 %v5063_v43, %v6412_v62  ;;  %v2576_v62 = vadd.f32 %v2515_v33, %v6418_v25 }
 0x226   : > { %v6518_v30 = vpop.f32.mrf.mxu1 }
 0x227   : > { %6676 = vst [vmem:[#allocation14_spill] sm:$0xff] %v6518_v30  ;;  %v6520_v14 = vpop.f32.mrf.mxu0  ;;  %v6539_v30 = vpop.permute.xlu0 %3716  ;;  %v2794_v33 = vadd.f32 %v6450_v47, %v2576_v62 }
 0x228   : > { %v6522_v24 = vpop.f32.mrf.mxu1 }
 0x229   : > { %6677 = vst [vmem:[#allocation15_spill] sm:$0xff] %v6522_v24  ;;  %v6524_v23 = vpop.f32.mrf.mxu0  ;;  %v2575_v24 = vadd.f32 %v2512_v37, %v6414_v3 }
 0x22a   : > { %6678 = vst [vmem:[#allocation16_spill] sm:$0xff] %v6524_v23  ;;  %v6526_v10 = vpop.f32.mrf.mxu1 }
 0x22b   : > { %6679 = vst [vmem:[#allocation17_spill] sm:$0xff] %v6526_v10  ;;  %v6530_v31 = vpop.f32.mrf.mxu0  ;;  %v3727_v10 = vpop.permute.xlu1 %3726 }
 0x22c   : > { %6681 = vst [vmem:[#allocation19_spill] sm:$0xff] %v6530_v31  ;;  %v6532_v52 = vpop.f32.mrf.mxu1  ;;  %v2578_v31 = vadd.f32 %v5064_v0, %v6416_v41  ;;  %v3732_v3 = vpop.permute.xlu0 %3731  ;;  %v2579_v41 = vadd.f32 %v6460_v45, %v6422_v60  ;;  %v3017_v60 = vadd.f32 %v2956_v35, %v2794_v33 }
 0x22d   : > { %6682 = vst [vmem:[#allocation20_spill] sm:$0xff] %v6532_v52  ;;  %v6534_v12 = vpop.f32.mrf.mxu0  ;;  %v2795_v52 = vadd.f32 %v6438_v9, %v2577_v39 }
 0x22e   : > { %6683 = vst [vmem:[#allocation21_spill] sm:$0xff] %v6534_v12  ;;  %v6537_v2 = vpop.f32.mrf.mxu1  ;;  %v2796_v0 = vadd.f32 %v6446_v17, %v2578_v31  ;;  %v2797_v45 = vadd.f32 %v6454_v51, %v2579_v41  ;;  %v2587_v41 = vadd.f32 %v6492_v54, %v6440_v44 }
 0x22f   : > { %6684 = vst [vmem:[#allocation22_spill] sm:$0xff] %v6537_v2  ;;  %v6541_v7 = vpop.f32.mrf.mxu0  ;;  %v3018_v2 = vadd.f32 %v5111_v26, %v2795_v52  ;;  %v6566_v26 = vpop.permute.xlu1 %3736 }
 0x230   : > { %6685 = vst [vmem:[#allocation23_spill] sm:$0xff] %v6541_v7  ;;  %v6544_v23 = vpop.f32.mrf.mxu1  ;;  %v2793_v7 = vadd.f32 %v6442_v19, %v2575_v24  ;;  %v2582_v24 = vadd.f32 %v6464_v13, %v6424_v58  ;;  %v3019_v52 = vadd.f32 %v5112_v32, %v2796_v0  ;;  %v2583_v58 = vadd.f32 %v6476_v15, %v6430_v34 }
 0x231   : > { %6686 = vst [vmem:[#allocation24_spill] sm:$0xff] %v6544_v23  ;;  %v6546_v21 = vpop.f32.mrf.mxu0  ;;  %v2581_v23 = vadd.f32 %v6456_v38, %v6420_v59  ;;  %v2580_v59 = vadd.f32 %v6468_v46, %v6426_v27  ;;  %v2586_v13 = vadd.f32 %v6480_v20, %v6432_v16  ;;  %v2584_v27 = vadd.f32 %v6484_v57, %v6434_v11  ;;  %v6584_v46 = vpop.permute.xlu0 %3741 }
 0x232   : > { %v6550_v12 = vpop.f32.mrf.mxu1  ;;  %v3016_v9 = vadd.f32 %v2953_v1, %v2793_v7  ;;  %v2585_v1 = vadd.f32 %v6472_v49, %v6428_v5  ;;  %v2800_v51 = vadd.f32 %v6458_v50, %v2582_v24  ;;  %v3249_v32 = vadd.f32 %v6500_v8, %v3019_v52 }
 0x233   : > { %v6553_v43 = vpop.f32.mrf.mxu0  ;;  %v2799_v17 = vadd.f32 %v6452_v18, %v2581_v23  ;;  %v2589_v5 = vadd.f32 %v6488_v28, %v6436_v36  ;;  %v2798_v16 = vadd.f32 %v6462_v53, %v2580_v59  ;;  %v3747_v49 = vpop.permute.xlu1 %3746  ;;  %v3247_v11 = vadd.f32 %v6502_v61, %v3017_v60  ;;  %v6691_v59 = vld [vmem:[#allocation2_spill] sm:$0xff]  ;;  %v6692_v60 = vld [vmem:[#allocation8_spill] sm:$0xff] }
 0x234   : > { %v6556_v4 = vpop.f32.mrf.mxu1  ;;  %v3246_v31 = vadd.f32 %v3183_v63, %v3016_v9  ;;  %v3020_v20 = vadd.f32 %v6512_v6, %v2797_v45  ;;  %v2801_v8 = vadd.f32 %v6470_v29, %v2583_v58  ;;  %v2804_v36 = vadd.f32 %v6474_v48, %v2586_v13  ;;  %v6688_v48 = vld [vmem:[#allocation10_spill] sm:$0xff]  ;;  %v6695_v13 = vld [vmem:[#allocation12_spill] sm:$0xff] }
 0x235   : > { %6687 = vst [vmem:[#allocation25_spill] sm:$0xff] %v6556_v4  ;;  %v6558_v37 = vpop.f32.mrf.mxu0  ;;  %v3248_v4 = vadd.f32 %v5135_v56, %v3018_v2  ;;  %v3022_v34 = vadd.f32 %v6508_v55, %v2799_v17  ;;  %v2803_v2 = vadd.f32 %v6466_v40, %v2585_v1  ;;  %v6598_v28 = vadd.f32 %v6478_v22, %v2584_v27  ;;  %v3752_v29 = vpop.permute.xlu0 %3751  ;;  %v6693_v17 = vld [vmem:[#allocation16_spill] sm:$0xff] }
 0x236   : > { %v5183_v25 = vpop.f32.mrf.mxu1  ;;  %v3023_v55 = vadd.f32 %v6516_v42, %v2800_v51  ;;  %v3021_v40 = vadd.f32 %v6520_v14, %v2798_v16 }
 0x237   : > { %v6568_v19 = vpop.f32.mrf.mxu0  ;;  %v3252_v0 = vadd.f32 %v6688_v48, %v3022_v34  ;;  %v3026_v44 = vadd.f32 %v6693_v17, %v2803_v2  ;;  %v6611_v54 = vpop.permute.xlu1 %3756  ;;  %v6701_v48 = vld [vmem:[#allocation9_spill] sm:$0xff]  ;;  %v6703_v17 = vld [vmem:[#allocation15_spill] sm:$0xff] }
 0x238   : > { %v3619_v39 = vpop.f32.mrf.mxu1  ;;  %v3253_v27 = vadd.f32 %v6695_v13, %v3023_v55 }
 0x239   : > { %v5159_v38 = vpop.f32.mrf.mxu0  ;;  %v6619_v2 = vpop.permute.xlu0 %3761 }
 0x23a   : > { %v3466_v47 = vadd.f32 %v5159_v38, %v3248_v4  ;;  %v5184_v7 = vpop.f32.mrf.mxu1  ;;  %v2590_v38 = vadd.f32 %v6692_v60, %v6691_v59 }
 0x23b   : > { %v3401_v18 = vpop.f32.mrf.mxu0 }
 0x23c   : > { %v3684_v23 = vadd.f32 %v5183_v25, %v3466_v47  ;;  %v3464_v56 = vadd.f32 %v3401_v18, %v3246_v31  ;;  %v3622_v63 = vpop.f32.mrf.mxu1  ;;  %v6689_v25 = vld [vmem:[#allocation4_spill] sm:$0xff]  ;;  %v6694_v31 = vld [vmem:[#allocation18_spill] sm:$0xff]  ;;  %v6696_v18 = vld [vmem:[#allocation19_spill] sm:$0xff] }
 0x23d   : > { %v5160_v15 = vpop.f32.mrf.mxu0  ;;  %v2807_v33 = vadd.f32 %v6689_v25, %v2589_v5  ;;  %v3024_v51 = vadd.f32 %v6696_v18, %v2801_v8  ;;  %v6699_v8 = vld [vmem:[#allocation14_spill] sm:$0xff]  ;;  %v3767_v25 = vpop.permute.xlu1 %3766 }
 0x23e   : > { %v3796_v57 = vadd.f32 %v3727_v10, %v3684_v23  ;;  %v3682_v50 = vadd.f32 %v3619_v39, %v3464_v56  ;;  %v3467_v4 = vadd.f32 %v5160_v15, %v3249_v32  ;;  %v5187_v35 = vpop.f32.mrf.mxu1  ;;  %v6697_v32 = vld [vmem:[#allocation13_spill] sm:$0xff]  ;;  %v3256_v55 = vadd.f32 %v6699_v8, %v3026_v44  ;;  %v6706_v18 = vld [vmem:[#allocation6_spill] sm:$0xff] }
 0x23f   : > { %v3404_v53 = vpop.f32.mrf.mxu0  ;;  %v3251_v5 = vadd.f32 %v6697_v32, %v3021_v40  ;;  %v3254_v44 = vadd.f32 %v6703_v17, %v3024_v51  ;;  %v3772_v51 = vpop.permute.xlu0 %3771 }
 0x240   : > { %v3794_v61 = vadd.f32 %v6539_v30, %v3682_v50  ;;  %v3685_v62 = vadd.f32 %v5184_v7, %v3467_v4  ;;  %v3465_v6 = vadd.f32 %v3404_v53, %v3247_v11  ;;  %v3635_v10 = vpop.f32.mrf.mxu1  ;;  %v3812_v9 = vmul.f32 0.1, %v3796_v57  ;;  %v6690_v30 = vld [vmem:[#allocation11_spill] sm:$0xff]  ;;  %v6698_v50 = vld [vmem:[#allocation21_spill] sm:$0xff] }
 0x241   : > { %v5163_v22 = vpop.f32.mrf.mxu0  ;;  %v3250_v39 = vadd.f32 %v6690_v30, %v3020_v20  ;;  %v3027_v4 = vadd.f32 %v6698_v50, %v2804_v36  ;;  %v6700_v36 = vld [vmem:[#allocation3_spill] sm:$0xff] }
 0x242   : > { %v3797_v24 = vadd.f32 %v3732_v3, %v3685_v62  ;;  %v3683_v42 = vadd.f32 %v3622_v63, %v3465_v6  ;;  %v5188_v52 = vpop.f32.mrf.mxu1  ;;  %v3810_v14 = vmul.f32 0.1, %v3794_v61  ;;  %v3470_v45 = vadd.f32 %v5163_v22, %v3252_v0 }
 0x243   : > { %v3417_v47 = vpop.f32.mrf.mxu0  ;;  %v3828_v23 = vmax.f32 %v3796_v57, %v3812_v9  ;;  %v2588_v0 = vadd.f32 %v6701_v48, %v6700_v36 }
 0x244   : > { %v3813_v7 = vmul.f32 0.1, %v3797_v24  ;;  %v3795_v1 = vadd.f32 %v6694_v31, %v3683_v42  ;;  %v3468_v58 = vadd.f32 %v3417_v47, %v3250_v39  ;;  %v3638_v3 = vpop.f32.mrf.mxu1  ;;  %v3688_v56 = vadd.f32 %v5187_v35, %v3470_v45 }
 0x245   : > { %v5164_v63 = vpop.f32.mrf.mxu0  ;;  %v3826_v53 = vmax.f32 %v3794_v61, %v3810_v14  ;;  %v6702_v61 = vld [vmem:[#allocation5_spill] sm:$0xff]  ;;  %v3030_v14 = vadd.f32 %v6546_v21, %v2807_v33 }
 0x246   : > { %v3829_v34 = vmax.f32 %v3797_v24, %v3813_v7  ;;  %v3811_v16 = vmul.f32 0.1, %v3795_v1  ;;  %v3686_v15 = vadd.f32 %v3635_v10, %v3468_v58  ;;  %v3471_v11 = vadd.f32 %v5164_v63, %v3253_v27  ;;  %v5191_v20 = vpop.f32.mrf.mxu1 }
 0x247   : > { %v3800_v57 = vadd.f32 %v3747_v49, %v3688_v56  ;;  %v3420_v35 = vpop.f32.mrf.mxu0  ;;  %v2805_v22 = vadd.f32 %v6702_v61, %v2587_v41  ;;  %v6705_v41 = vld [vmem:[#allocation17_spill] sm:$0xff] }
 0x248   : > { %v4582_v62 = vpack.c.bf16 %v3829_v34, %v3828_v23  ;;  %v3827_v6 = vmax.f32 %v3795_v1, %v3811_v16  ;;  %v3798_v10 = vadd.f32 %v6566_v26, %v3686_v15  ;;  %v3689_v40 = vadd.f32 %v5188_v52, %v3471_v11  ;;  %v3651_v9 = vpop.f32.mrf.mxu1  ;;  %v6704_v26 = vld [vmem:[#allocation23_spill] sm:$0xff]  ;;  %v3777_v15 = vpop.permute.xlu1 %3776 }
 0x249   : > { %v3816_v24 = vmul.f32 0.1, %v3800_v57  ;;  %v3469_v42 = vadd.f32 %v3420_v35, %v3251_v5  ;;  %v5167_v30 = vpop.f32.mrf.mxu0  ;;  %v3025_v52 = vadd.f32 %v6704_v26, %v6598_v28  ;;  %v3257_v7 = vadd.f32 %v6705_v41, %v3027_v4  ;;  %v6707_v34 = vld [vmem:[#allocation7_spill] sm:$0xff]  ;;  %v6709_v4 = vld [vmem:[#allocation22_spill] sm:$0xff]  ;;  %v6711_v41 = vld [vmem:[#allocation25_spill] sm:$0xff] }
 0x24a   : > { %4614 = vst [vmem:[%s6624_s15 + $0x8] sm:$0xff] %v4582_v62   ;;  %v4577_v49 = vpack.c.bf16 %v3827_v6, %v3826_v53  ;;  %v3801_v39 = vadd.f32 %v3752_v29, %v3689_v40  ;;  %v3474_v59 = vadd.f32 %v5167_v30, %v3256_v55  ;;  %v5192_v60 = vpop.f32.mrf.mxu1  ;;  %v3814_v31 = vmul.f32 0.1, %v3798_v10 }
 0x24b   : > { %v3687_v45 = vadd.f32 %v3638_v3, %v3469_v42  ;;  %v3433_v47 = vpop.f32.mrf.mxu0  ;;  %v3028_v29 = vadd.f32 %v6553_v43, %v2805_v22  ;;  %v2808_v23 = vadd.f32 %v6706_v18, %v2590_v38  ;;  %v3832_v56 = vmax.f32 %v3800_v57, %v3816_v24 }
 0x24c   : > { %4578 = vst [vmem:[%s6624_s15] sm:$0xff] %v4577_v49   ;;  %v3817_v1 = vmul.f32 0.1, %v3801_v39  ;;  %v3692_v58 = vadd.f32 %v5191_v20, %v3474_v59  ;;  %v3472_v13 = vadd.f32 %v3433_v47, %v3254_v44  ;;  %v3654_v27 = vpop.f32.mrf.mxu1  ;;  %v2806_v16 = vadd.f32 %v6707_v34, %v2588_v0  ;;  %v6708_v20 = vld [vmem:[#allocation20_spill] sm:$0xff] }
 0x24d   : > { %v3799_v28 = vadd.f32 %v6584_v46, %v3687_v45  ;;  %v5168_v63 = vpop.f32.mrf.mxu0  ;;  %v3255_v50 = vadd.f32 %v6708_v20, %v3025_v52  ;;  %v3260_v38 = vadd.f32 %v6709_v4, %v3030_v14  ;;  %v3031_v53 = vadd.f32 %v6558_v37, %v2808_v23  ;;  %v6710_v0 = vld [vmem:[#allocation24_spill] sm:$0xff] }
 0x24e   : > { %v3833_v21 = vmax.f32 %v3801_v39, %v3817_v1  ;;  %v3804_v33 = vadd.f32 %v3767_v25, %v3692_v58  ;;  %v3690_v3 = vadd.f32 %v3651_v9, %v3472_v13  ;;  %v3475_v32 = vadd.f32 %v5168_v63, %v3257_v7  ;;  %v5195_v5 = vpop.f32.mrf.mxu1  ;;  %v3782_v25 = vpop.permute.xlu0 %3781 }
 0x24f   : > { %v3815_v11 = vmul.f32 0.1, %v3799_v28  ;;  %v3436_v43 = vpop.f32.mrf.mxu0  ;;  %v3830_v57 = vmax.f32 %v3798_v10, %v3814_v31  ;;  %v3258_v61 = vadd.f32 %v6710_v0, %v3028_v29  ;;  %v3029_v22 = vadd.f32 %v6568_v19, %v2806_v16  ;;  %v3787_v39 = vpop.permute.xlu1 %3786 }
 0x250   : > { %v4592_v46 = vpack.c.bf16 %v3833_v21, %v3832_v56  ;;  %v3693_v35 = vadd.f32 %v5192_v60, %v3475_v32  ;;  %v3820_v55 = vmul.f32 0.1, %v3804_v33  ;;  %v3802_v62 = vadd.f32 %v6611_v54, %v3690_v3  ;;  %v3667_v36 = vpop.f32.mrf.mxu1 }
 0x251   : > { %v3831_v8 = vmax.f32 %v3799_v28, %v3815_v11  ;;  %v3473_v6 = vadd.f32 %v3436_v43, %v3255_v50  ;;  %v5171_v40 = vpop.f32.mrf.mxu0  ;;  %v3261_v54 = vadd.f32 %v6550_v12, %v3031_v53  ;;  %v3259_v7 = vadd.f32 %v6711_v41, %v3029_v22 }
 0x252   : > { %4616 = vst [vmem:[%s6624_s15 + $0x18] sm:$0xff] %v4592_v46   ;;  %v3805_v9 = vadd.f32 %v3772_v51, %v3693_v35  ;;  %v3478_v48 = vadd.f32 %v5171_v40, %v3260_v38  ;;  %v3836_v59 = vmax.f32 %v3804_v33, %v3820_v55  ;;  %v3818_v60 = vmul.f32 0.1, %v3802_v62  ;;  %v5196_v19 = vpop.f32.mrf.mxu1  ;;  %v3792_v58 = vpop.permute.xlu0 %3791 }
 0x253   : > { %v4587_v37 = vpack.c.bf16 %v3831_v8, %v3830_v57  ;;  %v3691_v10 = vadd.f32 %v3654_v27, %v3473_v6  ;;  %v3449_v24 = vpop.f32.mrf.mxu0 }
 0x254   : > { %v3821_v42 = vmul.f32 0.1, %v3805_v9  ;;  %v3696_v30 = vadd.f32 %v5195_v5, %v3478_v48  ;;  %v3476_v49 = vadd.f32 %v3449_v24, %v3258_v61  ;;  %v3834_v13 = vmax.f32 %v3802_v62, %v3818_v60  ;;  %v3670_v23 = vpop.f32.mrf.mxu1 }
 0x255   : > { %4615 = vst [vmem:[%s6624_s15 + $0x10] sm:$0xff] %v4587_v37   ;;  %v3803_v17 = vadd.f32 %v6619_v2, %v3691_v10  ;;  %v5172_v44 = vpop.f32.mrf.mxu0 }
 0x256   : > { %v3837_v26 = vmax.f32 %v3805_v9, %v3821_v42  ;;  %v3808_v52 = vadd.f32 %v3787_v39, %v3696_v30  ;;  %v3694_v14 = vadd.f32 %v3667_v36, %v3476_v49  ;;  %v3479_v45 = vadd.f32 %v5172_v44, %v3261_v54 }
 0x257   : > { %v3819_v47 = vmul.f32 0.1, %v3803_v17  ;;  %v3452_v31 = vpop.f32.mrf.mxu0 }
 0x258   : > { %v4602_v1 = vpack.c.bf16 %v3837_v26, %v3836_v59  ;;  %v3697_v12 = vadd.f32 %v5196_v19, %v3479_v45  ;;  %v3806_v29 = vadd.f32 %v3777_v15, %v3694_v14  ;;  %v3477_v18 = vadd.f32 %v3452_v31, %v3259_v7 }
 0x259   : > { %v3835_v27 = vmax.f32 %v3803_v17, %v3819_v47  ;;  %v3824_v2 = vmul.f32 0.1, %v3808_v52 }
 0x25a   : > { %4618 = vst [vmem:[%s6624_s15 + $0x28] sm:$0xff] %v4602_v1   ;;  %v3809_v51 = vadd.f32 %v3792_v58, %v3697_v12  ;;  %v3695_v28 = vadd.f32 %v3670_v23, %v3477_v18  ;;  %v3822_v21 = vmul.f32 0.1, %v3806_v29 }
 0x25b   : > { %v4597_v56 = vpack.c.bf16 %v3835_v27, %v3834_v13  ;;  %v3840_v3 = vmax.f32 %v3808_v52, %v3824_v2 }
 0x25c   : > { %v3825_v63 = vmul.f32 0.1, %v3809_v51  ;;  %v3807_v33 = vadd.f32 %v3782_v25, %v3695_v28  ;;  %v3838_v16 = vmax.f32 %v3806_v29, %v3822_v21 }
 0x25d   : > { %4617 = vst [vmem:[%s6624_s15 + $0x20] sm:$0xff] %v4597_v56  }
 0x25e   : > { %v3841_v32 = vmax.f32 %v3809_v51, %v3825_v63  ;;  %v3823_v5 = vmul.f32 0.1, %v3807_v33 }
 0x260   : > { %v4612_v34 = vpack.c.bf16 %v3841_v32, %v3840_v3  ;;  %v3839_v11 = vmax.f32 %v3807_v33, %v3823_v5 }
 0x262   : > { %4620 = vst [vmem:[%s6624_s15 + $0x38] sm:$0xff] %v4612_v34   ;;  %v4607_v15 = vpack.c.bf16 %v3839_v11, %v3838_v16 }
 0x264   : > { %4619 = vst [vmem:[%s6624_s15 + $0x30] sm:$0xff] %v4607_v15  }
 0x265 PF: > { %s13_s12 = sadd.s32 1, %s5393_s12  }
 0x266   : > { %p10_p4 = scmp.ge.s32.totalorder %s13_s12, 4  }
 0x268   :  { %12 = sbr.rel (!%p10_p4) target bundleno = 1 (0x1), region = 80 }

</bundles_post_ra>
